<compile_context>
chip_gen: v7x
topology: tpu7x:2x2x1
jax: 0.10.0
libtpu: 0.0.40
codegen_flags: <defaults>
</compile_context>

<pallas_src>
import math

import jax
import jax.numpy as jnp
from jax.experimental import pallas as pl
from jax.experimental.pallas import tpu as pltpu

LEAK = 0.1
LANE = 128


def _leaky(x):
    # LeakyReLU(0.1): max(x, 0.1*x) is exact for slopes in (0, 1).
    return jnp.maximum(x, LEAK * x)


def _dot(a_f32, w_bf16):
    """bf16 x bf16 -> f32 matmul (weights stored bf16, f32 accumulation)."""
    return jnp.dot(a_f32.astype(jnp.bfloat16), w_bf16,
                   preferred_element_type=jnp.float32)


def _cell(gates, c, hidden):
    """LSTM cell update from pre-computed gate pre-activations.

    gates: (B, 4*hidden) f32 = x @ W_ih^T + h @ W_hh^T + (b_ih + b_hh),
    PyTorch gate order (i, f, g, o).  `hidden` is a multiple of 128 so every
    slice below is 128-lane aligned (no sub-vreg shuffles).
    """
    i = jax.nn.sigmoid(gates[:, 0:hidden])
    f = jax.nn.sigmoid(gates[:, hidden:2 * hidden])
    g = jnp.tanh(gates[:, 2 * hidden:3 * hidden])
    o = jax.nn.sigmoid(gates[:, 3 * hidden:4 * hidden])
    c_new = f * c + i * g
    h_new = o * jnp.tanh(c_new)
    return h_new, c_new


# ---------------------------------------------------------------------------
# Single fused kernel: whole VINet forward
# ---------------------------------------------------------------------------
def vinet_kernel(
        # data
        img_ref,        # (B, P)          flattened flownet prefeat (f32)
        imu_ref,        # (S*B, 6)        imu sequence, row = t*B + b (f32)
        lp_ref,         # (B, 6*tiles)    last_pose.repeat(1, tiles) (f32)
        imu_h0_ref,     # (2, B, HP)      imu h0, lane-padded to HP (f32)
        imu_c0_ref,     # (2, B, HP)
        fus_h0_ref,     # (2, B, HF)
        fus_c0_ref,     # (2, B, HF)
        # weights (matrices bf16, biases f32)
        wimg_hbm,       # (P, IMG_FEAT)   stays in HBM; manual async copy
        bimg_ref, wpose_ref, bpose_ref,
        iwih0_ref, iwhh0_ref, ib0_ref, iwih1_ref, iwhh1_ref, ib1_ref,
        fw0_img_ref, fw0_imu_ref, fw0_pose_ref, fwhh0_ref, fb0_ref,
        fwih1_ref, fwhh1_ref, fb1_ref,
        wp1_ref, bp1_ref, wp2_ref, bp2_ref,
        # outputs
        pose_ref,       # (B, 6)
        imu_h_ref, imu_c_ref,     # (2, B, HP)
        fus_h_ref, fus_c_ref,     # (2, B, HF)
        # scratch
        wimg_vmem,      # (P, IMG_FEAT) bf16 VMEM buffer for the img_fc weight
        wimg_sem):      # DMA semaphore
    HP = iwhh0_ref.shape[0]           # padded IMU hidden width (128)
    HF = fwhh0_ref.shape[0]           # fusion hidden width (128)
    B = imu_h0_ref.shape[1]
    S = imu_ref.shape[0] // B

    # 1) Kick off the big img_fc weight DMA; it overlaps with the pose branch
    #    and the whole serial IMU-LSTM chain below.
    wimg_copy = pltpu.make_async_copy(wimg_hbm, wimg_vmem, wimg_sem)
    wimg_copy.start()

    # 2) last_pose branch: last_pose_fc + LeakyReLU.  Output is lane-padded to
    #    128; the padding lanes are exactly zero and drop out in the fusion
    #    matmul (the corresponding W_ih rows are zero).
    pose_feat = _leaky(_dot(lp_ref[...], wpose_ref[...]) + bpose_ref[...])

    # 3) IMU branch: 2-layer LSTM over the sequence.  Layer-0 input projection
    #    is hoisted out of the recurrence (one (S*B,6)x(6,4*HP) matmul); only
    #    h @ W_hh stays on the serial chain.  All gate tensors 128-lane aligned.
    x0 = _dot(imu_ref[...], iwih0_ref[...]) + ib0_ref[...]        # (S*B, 4*HP)
    iwhh0 = iwhh0_ref[...]
    iwih1 = iwih1_ref[...]
    iwhh1 = iwhh1_ref[...]
    ib1 = ib1_ref[...]
    h0, c0 = imu_h0_ref[0], imu_c0_ref[0]
    h1, c1 = imu_h0_ref[1], imu_c0_ref[1]
    for t in range(S):                           # static unroll, S is small (11)
        g0 = x0[t * B:(t + 1) * B, :] + _dot(h0, iwhh0)
        h0, c0 = _cell(g0, c0, HP)
        g1 = _dot(h0, iwih1) + _dot(h1, iwhh1) + ib1
        h1, c1 = _cell(g1, c1, HP)
    imu_h_ref[0], imu_h_ref[1] = h0, h1          # lane-dense (HP-wide) stores
    imu_c_ref[0], imu_c_ref[1] = c0, c1

    # 4) img branch: wait for the weight DMA (hidden behind the IMU chain),
    #    then one (B,P) x (P,IMG_FEAT) matmul + LeakyReLU.
    wimg_copy.wait()
    img_feat = _leaky(_dot(img_ref[...], wimg_vmem[...]) + bimg_ref[...])

    # 5) fusion LSTM (seq_len = 1): no concatenate -- accumulate the layer-0
    #    input gates from three per-segment matmuls against the pre-split,
    #    row-padded W_ih slices.  Full W_hh @ h0 and f*c0 math kept.
    fg0 = (_dot(img_feat, fw0_img_ref[...])
           + _dot(h1, fw0_imu_ref[...])     # h1 = imu_feat (last step, top layer)
           + _dot(pose_feat, fw0_pose_ref[...])
           + _dot(fus_h0_ref[0], fwhh0_ref[...])
           + fb0_ref[...])
    fh0, fc0 = _cell(fg0, fus_c0_ref[0], HF)
    fg1 = (_dot(fh0, fwih1_ref[...]) + _dot(fus_h0_ref[1], fwhh1_ref[...])
           + fb1_ref[...])
    fh1, fc1 = _cell(fg1, fus_c0_ref[1], HF)
    fus_h_ref[0], fus_h_ref[1] = fh0, fh1
    fus_c_ref[0], fus_c_ref[1] = fc0, fc1

    # 6) pose head: LeakyReLU(pose_fc_1(.)) then 0.01 * pose_fc_2(.)
    p = _leaky(_dot(fh1, wp1_ref[...]) + bp1_ref[...])
    pose_ref[...] = 0.01 * (_dot(p, wp2_ref[...]) + bp2_ref[...])


def run_vinet(img_flat, imu_2d, lp_tiled, imu_h0, imu_c0, fus_h0, fus_c0, p):
    B = img_flat.shape[0]
    HP = p["iwhh0"].shape[0]
    HF = p["fwhh0"].shape[0]
    P, IMG_FEAT = p["wimg"].shape

    data_args = (img_flat, imu_2d, lp_tiled, imu_h0, imu_c0, fus_h0, fus_c0)
    weight_args = (
        p["wimg"], p["bimg"], p["wpose"], p["bpose"],
        p["iwih0"], p["iwhh0"], p["ib0"], p["iwih1"], p["iwhh1"], p["ib1"],
        p["fw0_img"], p["fw0_imu"], p["fw0_pose"], p["fwhh0"], p["fb0"],
        p["fwih1"], p["fwhh1"], p["fb1"],
        p["wp1"], p["bp1"], p["wp2"], p["bp2"],
    )
    vmem = pl.BlockSpec(memory_space=pltpu.MemorySpace.VMEM)
    hbm = pl.BlockSpec(memory_space=pl.ANY)         # wimg: manual async copy
    in_specs = [vmem] * len(data_args) + [hbm] + [vmem] * (len(weight_args) - 1)
    out_shapes = (
        jax.ShapeDtypeStruct((B, 6), jnp.float32),          # pose_out
        jax.ShapeDtypeStruct((2, B, HP), jnp.float32),      # imu h_n (padded)
        jax.ShapeDtypeStruct((2, B, HP), jnp.float32),      # imu c_n (padded)
        jax.ShapeDtypeStruct((2, B, HF), jnp.float32),      # fused h_n
        jax.ShapeDtypeStruct((2, B, HF), jnp.float32),      # fused c_n
    )
    return pl.pallas_call(
        vinet_kernel,
        out_shape=out_shapes,
        in_specs=in_specs,
        out_specs=tuple([vmem] * len(out_shapes)),
        scratch_shapes=[
            pltpu.VMEM((P, IMG_FEAT), p["wimg"].dtype),     # img_fc weight buffer
            pltpu.SemaphoreType.DMA(()),                    # its DMA semaphore
        ],
        # Alias the recurrent state in place: imu_h0->imu_h, imu_c0->imu_c,
        # fus_h0->fus_h, fus_c0->fus_c (indices into data_args / out_shapes).
        input_output_aliases={3: 1, 4: 2, 5: 3, 6: 4},
        compiler_params=pltpu.CompilerParams(
            vmem_limit_bytes=32 * 1024 * 1024),
    )(*data_args, *weight_args)


# ---------------------------------------------------------------------------
# Full forward (thin glue; everything heavy is inside the single kernel)
# ---------------------------------------------------------------------------
def vinet_forward(image_pair, imu_seq, last_pose, imu_lstm_hidden,
                  fused_lstm_hidden, params):
    B = image_pair.shape[0]
    S = imu_seq.shape[1]
    HP = params["iwhh0"].shape[0]                 # padded IMU hidden (128)
    HF = params["fwhh0"].shape[0]                 # fusion hidden
    tiles = params["wpose"].shape[0] // last_pose.shape[1]

    img_flat = image_pair.reshape(B, -1)                       # NCHW flatten (view)
    # batch_first -> seq-major, flattened so row t*B + b is (timestep t, batch b)
    imu_2d = jnp.transpose(imu_seq, (1, 0, 2)).reshape(S * B, imu_seq.shape[2])
    lp_tiled = jnp.tile(last_pose, (1, tiles))                 # last_pose.repeat(1, tiles)

    imu_h0, imu_c0 = imu_lstm_hidden
    H_IMU = imu_h0.shape[2]
    imu_h0p = jnp.pad(imu_h0, ((0, 0), (0, 0), (0, HP - H_IMU)))
    imu_c0p = jnp.pad(imu_c0, ((0, 0), (0, 0), (0, HP - H_IMU)))
    if fused_lstm_hidden is None:
        fus_h0 = jnp.zeros((2, B, HF), jnp.float32)
        fus_c0 = jnp.zeros((2, B, HF), jnp.float32)
    else:
        fus_h0, fus_c0 = fused_lstm_hidden

    pose_out, imu_hp, imu_cp, fus_h, fus_c = run_vinet(
        img_flat, imu_2d, lp_tiled, imu_h0p, imu_c0p, fus_h0, fus_c0, params)

    hidden_states_out = {
        "imu_lstm_hidden": (imu_hp[:, :, :H_IMU], imu_cp[:, :, :H_IMU]),
        "fused_lstm_hidden": (fus_h, fus_c),
    }
    return pose_out, hidden_states_out


# ---------------------------------------------------------------------------
# Parameter packing (gate padding, W_ih splitting, bf16 casting)
# ---------------------------------------------------------------------------
def _ceil_to(x, m):
    return ((x + m - 1) // m) * m


def _pad_gate_cols(w, h, hp):
    """(rows, 4*h) -> (rows, 4*hp): each gate block starts on a 128-lane boundary."""
    rows = w.shape[0]
    w = w.reshape(rows, 4, h)
    w = jnp.pad(w, ((0, 0), (0, 0), (0, hp - h)))
    return w.reshape(rows, 4 * hp)


def _pad_rows(w, rows):
    return jnp.pad(w, ((0, rows - w.shape[0]), (0, 0)))


def pack_params(raw, *, img_feat, h_imu, pose_feat):
    """Repack reference-layout params for the kernel.

    `raw` holds the PyTorch tensors transposed to [in, out] / [in, 4H] layout,
    PyTorch gate order (i, f, g, o), with the two LSTM biases summed.  Packing:
    zero-pad the IMU-LSTM gate blocks (and the pose-fc output) to 128 lanes,
    split the fusion W_ih by input segment (row-padded), cast matrices to bf16
    (biases stay f32).  Zero padding keeps the math exact.
    """
    bf = jnp.bfloat16
    hp = _ceil_to(h_imu, LANE)
    pp = _ceil_to(pose_feat, LANE)
    p = {}
    p["wimg"] = raw["wimg"].astype(bf)
    p["bimg"] = raw["bimg"]
    p["wpose"] = jnp.pad(raw["wpose"], ((0, 0), (0, pp - pose_feat))).astype(bf)
    p["bpose"] = jnp.pad(raw["bpose"], ((0, 0), (0, pp - pose_feat)))
    p["iwih0"] = _pad_gate_cols(raw["imu_wih0"], h_imu, hp).astype(bf)
    p["iwhh0"] = _pad_rows(_pad_gate_cols(raw["imu_whh0"], h_imu, hp), hp).astype(bf)
    p["ib0"] = _pad_gate_cols(raw["imu_b0"], h_imu, hp)
    p["iwih1"] = _pad_rows(_pad_gate_cols(raw["imu_wih1"], h_imu, hp), hp).astype(bf)
    p["iwhh1"] = _pad_rows(_pad_gate_cols(raw["imu_whh1"], h_imu, hp), hp).astype(bf)
    p["ib1"] = _pad_gate_cols(raw["imu_b1"], h_imu, hp)
    fwih0 = raw["fus_wih0"]               # (img_feat + h_imu + pose_feat, 4*H_FUS)
    p["fw0_img"] = fwih0[:img_feat].astype(bf)
    p["fw0_imu"] = _pad_rows(fwih0[img_feat:img_feat + h_imu], hp).astype(bf)
    p["fw0_pose"] = _pad_rows(fwih0[img_feat + h_imu:], pp).astype(bf)
    p["fwhh0"] = raw["fus_whh0"].astype(bf)
    p["fb0"] = raw["fus_b0"]
    p["fwih1"] = raw["fus_wih1"].astype(bf)
    p["fwhh1"] = raw["fus_whh1"].astype(bf)
    p["fb1"] = raw["fus_b1"]
    p["wp1"] = raw["wp1"].astype(bf)
    p["bp1"] = raw["bp1"]
    p["wp2"] = raw["wp2"].astype(bf)
    p["bp2"] = raw["bp2"]
    return p


# ---------------------------------------------------------------------------
# Deterministic parameter initialization (synthetic, matching module shapes)
# ---------------------------------------------------------------------------
def xavier_normal(key, fan_in, fan_out):
    std = math.sqrt(2.0 / (fan_in + fan_out))
    return (std * jax.random.normal(key, (fan_in, fan_out))).astype(jnp.float32)


def lstm_uniform(key, shape, hidden):
    u = 1.0 / math.sqrt(hidden)
    return jax.random.uniform(key, shape, jnp.float32, -u, u)


if __name__ == "__main__":
    # Small config consistent with the module's flownet-'flatten' forward path.
    B = 2
    C, fH, fW = 32, 8, 16          # img_enc_size / feature-map size
    P = C * fH * fW                # img_prefeat_size = 4096
    IMG_FEAT = 128                 # img_hidden_size
    SEQ = 11                       # imu sequence length
    H_IMU = 64                     # imu_lstm_hidden_size
    POSE_TILES = 4                 # last_pose_tiles
    POSE_FEAT = 32                 # last_pose_hidden_size (last_pose_fc=True)
    H_FUS = 128                    # fused_lstm_hidden_size
    FUSED = IMG_FEAT + H_IMU + POSE_FEAT

    key = jax.random.PRNGKey(0)
    ks = jax.random.split(key, 24)

    raw = dict(
        # nn.Linear: weights stored transposed [in, out]; biases zero (init_weights)
        wimg=xavier_normal(ks[0], P, IMG_FEAT),
        bimg=jnp.zeros((1, IMG_FEAT), jnp.float32),
        wpose=xavier_normal(ks[1], 6 * POSE_TILES, POSE_FEAT),
        bpose=jnp.zeros((1, POSE_FEAT), jnp.float32),
        # nn.LSTM default init (uniform +-1/sqrt(H)); W^T stored [in, 4H];
        # combined bias (b_ih + b_hh) as one (1, 4H) row; PyTorch gate order i,f,g,o.
        imu_wih0=lstm_uniform(ks[2], (6, 4 * H_IMU), H_IMU),
        imu_whh0=lstm_uniform(ks[3], (H_IMU, 4 * H_IMU), H_IMU),
        imu_b0=lstm_uniform(ks[4], (1, 4 * H_IMU), H_IMU),
        imu_wih1=lstm_uniform(ks[5], (H_IMU, 4 * H_IMU), H_IMU),
        imu_whh1=lstm_uniform(ks[6], (H_IMU, 4 * H_IMU), H_IMU),
        imu_b1=lstm_uniform(ks[7], (1, 4 * H_IMU), H_IMU),
        fus_wih0=lstm_uniform(ks[8], (FUSED, 4 * H_FUS), H_FUS),
        fus_whh0=lstm_uniform(ks[9], (H_FUS, 4 * H_FUS), H_FUS),
        fus_b0=lstm_uniform(ks[10], (1, 4 * H_FUS), H_FUS),
        fus_wih1=lstm_uniform(ks[11], (H_FUS, 4 * H_FUS), H_FUS),
        fus_whh1=lstm_uniform(ks[12], (H_FUS, 4 * H_FUS), H_FUS),
        fus_b1=lstm_uniform(ks[13], (1, 4 * H_FUS), H_FUS),
        # pose_fc_1: H_FUS -> 128, pose_fc_2: 128 -> 6 (output scaled by 0.01)
        wp1=xavier_normal(ks[14], H_FUS, 128),
        bp1=jnp.zeros((1, 128), jnp.float32),
        wp2=xavier_normal(ks[15], 128, 6),
        bp2=jnp.zeros((1, 6), jnp.float32),
    )
    params = pack_params(raw, img_feat=IMG_FEAT, h_imu=H_IMU, pose_feat=POSE_FEAT)

    image_pair = jax.random.normal(ks[16], (B, C, fH, fW), jnp.float32)
    imu_seq = jax.random.normal(ks[17], (B, SEQ, 6), jnp.float32)
    last_pose = jax.random.normal(ks[18], (B, 6), jnp.float32)
    # imu_lstm_hidden must be provided by the caller (module raises otherwise).
    imu_lstm_hidden = (
        0.1 * jax.random.normal(ks[19], (2, B, H_IMU), jnp.float32),
        0.1 * jax.random.normal(ks[20], (2, B, H_IMU), jnp.float32),
    )

    fwd = jax.jit(vinet_forward)
    pose_out, hidden = fwd(image_pair, imu_seq, last_pose,
                           imu_lstm_hidden, None, params)
    jax.block_until_ready((pose_out, hidden))

    assert pose_out.shape == (B, 6)
    assert hidden["imu_lstm_hidden"][0].shape == (2, B, H_IMU)
    assert hidden["imu_lstm_hidden"][1].shape == (2, B, H_IMU)
    assert hidden["fused_lstm_hidden"][0].shape == (2, B, H_FUS)
    assert hidden["fused_lstm_hidden"][1].shape == (2, B, H_FUS)
    assert bool(jnp.all(jnp.isfinite(pose_out)))
    print("KERNEL_OK")
</pallas_src>

<mosaic_0001>
module attributes {stable_mosaic.version = 11 : i64} {
  func.func @vinet_kernel(%arg0: memref<2x4096xf32, #tpu.memory_space<vmem>>, %arg1: memref<22x6xf32, #tpu.memory_space<vmem>>, %arg2: memref<2x24xf32, #tpu.memory_space<vmem>>, %arg3: memref<2x2x128xf32, #tpu.memory_space<vmem>>, %arg4: memref<2x2x128xf32, #tpu.memory_space<vmem>>, %arg5: memref<2x2x128xf32, #tpu.memory_space<vmem>>, %arg6: memref<2x2x128xf32, #tpu.memory_space<vmem>>, %arg7: memref<4096x128xbf16, #tpu.memory_space<any>>, %arg8: memref<1x128xf32, #tpu.memory_space<vmem>>, %arg9: memref<24x128xbf16, #tpu.memory_space<vmem>>, %arg10: memref<1x128xf32, #tpu.memory_space<vmem>>, %arg11: memref<6x512xbf16, #tpu.memory_space<vmem>>, %arg12: memref<128x512xbf16, #tpu.memory_space<vmem>>, %arg13: memref<1x512xf32, #tpu.memory_space<vmem>>, %arg14: memref<128x512xbf16, #tpu.memory_space<vmem>>, %arg15: memref<128x512xbf16, #tpu.memory_space<vmem>>, %arg16: memref<1x512xf32, #tpu.memory_space<vmem>>, %arg17: memref<128x512xbf16, #tpu.memory_space<vmem>>, %arg18: memref<128x512xbf16, #tpu.memory_space<vmem>>, %arg19: memref<128x512xbf16, #tpu.memory_space<vmem>>, %arg20: memref<128x512xbf16, #tpu.memory_space<vmem>>, %arg21: memref<1x512xf32, #tpu.memory_space<vmem>>, %arg22: memref<128x512xbf16, #tpu.memory_space<vmem>>, %arg23: memref<128x512xbf16, #tpu.memory_space<vmem>>, %arg24: memref<1x512xf32, #tpu.memory_space<vmem>>, %arg25: memref<128x128xbf16, #tpu.memory_space<vmem>>, %arg26: memref<1x128xf32, #tpu.memory_space<vmem>>, %arg27: memref<128x6xbf16, #tpu.memory_space<vmem>>, %arg28: memref<1x6xf32, #tpu.memory_space<vmem>>, %arg29: memref<2x6xf32, #tpu.memory_space<vmem>>, %arg30: memref<2x2x128xf32, #tpu.memory_space<vmem>>, %arg31: memref<2x2x128xf32, #tpu.memory_space<vmem>>, %arg32: memref<2x2x128xf32, #tpu.memory_space<vmem>>, %arg33: memref<2x2x128xf32, #tpu.memory_space<vmem>>, %arg34: memref<4096x128xbf16, #tpu.memory_space<vmem>>, %arg35: memref<!tpu.dma_semaphore, #tpu.memory_space<semaphore_mem>>) attributes {dimension_semantics = [], scalar_prefetch = 0 : i64, scratch_operands = 2 : i64, tpu.core_type = #tpu.core_type<tc>} {
    tpu.enqueue_dma source(%arg7 : memref<4096x128xbf16, #tpu.memory_space<any>>) target(%arg34 : memref<4096x128xbf16, #tpu.memory_space<vmem>>) target_semaphore(%arg35 : memref<!tpu.dma_semaphore, #tpu.memory_space<semaphore_mem>>)
    %c0 = arith.constant 0 : index
    %c0_0 = arith.constant 0 : index
    %0 = vector.load %arg2[%c0, %c0_0] : memref<2x24xf32, #tpu.memory_space<vmem>>, vector<2x24xf32>
    %c0_1 = arith.constant 0 : index
    %c0_2 = arith.constant 0 : index
    %1 = vector.load %arg9[%c0_1, %c0_2] : memref<24x128xbf16, #tpu.memory_space<vmem>>, vector<24x128xbf16>
    %2 = arith.truncf %0 : vector<2x24xf32> to vector<2x24xbf16>
    %cst = arith.constant dense<0.000000e+00> : vector<2x128xf32>
    %3 = tpu.matmul %2, %1, %cst {dimension_numbers = #tpu.dot_dimension_numbers<[1], [0], [0], [1], [0, 0, 1, 1], [], []>} : vector<2x24xbf16>, vector<24x128xbf16>, vector<2x128xf32> -> vector<2x128xf32>
    %c0_3 = arith.constant 0 : index
    %c0_4 = arith.constant 0 : index
    %4 = vector.load %arg10[%c0_3, %c0_4] : memref<1x128xf32, #tpu.memory_space<vmem>>, vector<1x128xf32>
    %5 = vector.broadcast %4 : vector<1x128xf32> to vector<2x128xf32>
    %6 = arith.addf %3, %5 : vector<2x128xf32>
    %cst_5 = arith.constant 1.000000e-01 : f32
    %7 = vector.broadcast %cst_5 : f32 to vector<2x128xf32>
    %8 = arith.mulf %7, %6 : vector<2x128xf32>
    %9 = arith.maximumf %6, %8 : vector<2x128xf32>
    %c0_6 = arith.constant 0 : index
    %c0_7 = arith.constant 0 : index
    %10 = vector.load %arg1[%c0_6, %c0_7] : memref<22x6xf32, #tpu.memory_space<vmem>>, vector<22x6xf32>
    %c0_8 = arith.constant 0 : index
    %c0_9 = arith.constant 0 : index
    %11 = vector.load %arg11[%c0_8, %c0_9] : memref<6x512xbf16, #tpu.memory_space<vmem>>, vector<6x512xbf16>
    %12 = arith.truncf %10 : vector<22x6xf32> to vector<22x6xbf16>
    %cst_10 = arith.constant dense<0.000000e+00> : vector<22x512xf32>
    %13 = tpu.matmul %12, %11, %cst_10 {dimension_numbers = #tpu.dot_dimension_numbers<[1], [0], [0], [1], [0, 0, 1, 1], [], []>} : vector<22x6xbf16>, vector<6x512xbf16>, vector<22x512xf32> -> vector<22x512xf32>
    %c0_11 = arith.constant 0 : index
    %c0_12 = arith.constant 0 : index
    %14 = vector.load %arg13[%c0_11, %c0_12] : memref<1x512xf32, #tpu.memory_space<vmem>>, vector<1x512xf32>
    %15 = vector.broadcast %14 : vector<1x512xf32> to vector<22x512xf32>
    %16 = arith.addf %13, %15 : vector<22x512xf32>
    %c0_13 = arith.constant 0 : index
    %c0_14 = arith.constant 0 : index
    %17 = vector.load %arg12[%c0_13, %c0_14] : memref<128x512xbf16, #tpu.memory_space<vmem>>, vector<128x512xbf16>
    %c0_15 = arith.constant 0 : index
    %c0_16 = arith.constant 0 : index
    %18 = vector.load %arg14[%c0_15, %c0_16] : memref<128x512xbf16, #tpu.memory_space<vmem>>, vector<128x512xbf16>
    %c0_17 = arith.constant 0 : index
    %c0_18 = arith.constant 0 : index
    %19 = vector.load %arg15[%c0_17, %c0_18] : memref<128x512xbf16, #tpu.memory_space<vmem>>, vector<128x512xbf16>
    %c0_19 = arith.constant 0 : index
    %c0_20 = arith.constant 0 : index
    %20 = vector.load %arg16[%c0_19, %c0_20] : memref<1x512xf32, #tpu.memory_space<vmem>>, vector<1x512xf32>
    %c0_21 = arith.constant 0 : index
    %c0_22 = arith.constant 0 : index
    %c0_23 = arith.constant 0 : index
    %21 = vector.load %arg3[%c0_21, %c0_22, %c0_23] : memref<2x2x128xf32, #tpu.memory_space<vmem>>, vector<1x2x128xf32>
    %22 = vector.shape_cast %21 : vector<1x2x128xf32> to vector<2x128xf32>
    %c0_24 = arith.constant 0 : index
    %c0_25 = arith.constant 0 : index
    %c0_26 = arith.constant 0 : index
    %23 = vector.load %arg4[%c0_24, %c0_25, %c0_26] : memref<2x2x128xf32, #tpu.memory_space<vmem>>, vector<1x2x128xf32>
    %24 = vector.shape_cast %23 : vector<1x2x128xf32> to vector<2x128xf32>
    %c1 = arith.constant 1 : index
    %c0_27 = arith.constant 0 : index
    %c0_28 = arith.constant 0 : index
    %25 = vector.load %arg3[%c1, %c0_27, %c0_28] : memref<2x2x128xf32, #tpu.memory_space<vmem>>, vector<1x2x128xf32>
    %26 = vector.shape_cast %25 : vector<1x2x128xf32> to vector<2x128xf32>
    %c1_29 = arith.constant 1 : index
    %c0_30 = arith.constant 0 : index
    %c0_31 = arith.constant 0 : index
    %27 = vector.load %arg4[%c1_29, %c0_30, %c0_31] : memref<2x2x128xf32, #tpu.memory_space<vmem>>, vector<1x2x128xf32>
    %28 = vector.shape_cast %27 : vector<1x2x128xf32> to vector<2x128xf32>
    %29 = vector.extract_strided_slice %16 {offsets = [0, 0], sizes = [2, 512], strides = [1, 1]} : vector<22x512xf32> to vector<2x512xf32>
    %30 = arith.truncf %22 : vector<2x128xf32> to vector<2x128xbf16>
    %cst_32 = arith.constant dense<0.000000e+00> : vector<2x512xf32>
    %31 = tpu.matmul %30, %17, %cst_32 {dimension_numbers = #tpu.dot_dimension_numbers<[1], [0], [0], [1], [0, 0, 1, 1], [], []>} : vector<2x128xbf16>, vector<128x512xbf16>, vector<2x512xf32> -> vector<2x512xf32>
    %32 = arith.addf %29, %31 : vector<2x512xf32>
    %33 = vector.extract_strided_slice %32 {offsets = [0, 0], sizes = [2, 128], strides = [1, 1]} : vector<2x512xf32> to vector<2x128xf32>
    %34 = arith.negf %33 : vector<2x128xf32>
    %35 = math.exp %34 : vector<2x128xf32>
    %cst_33 = arith.constant 1.000000e+00 : f32
    %36 = vector.broadcast %cst_33 : f32 to vector<2x128xf32>
    %37 = arith.addf %36, %35 : vector<2x128xf32>
    %38 = arith.divf %36, %37 : vector<2x128xf32>
    %39 = vector.extract_strided_slice %32 {offsets = [0, 128], sizes = [2, 128], strides = [1, 1]} : vector<2x512xf32> to vector<2x128xf32>
    %40 = arith.negf %39 : vector<2x128xf32>
    %41 = math.exp %40 : vector<2x128xf32>
    %cst_34 = arith.constant 1.000000e+00 : f32
    %42 = vector.broadcast %cst_34 : f32 to vector<2x128xf32>
    %43 = arith.addf %42, %41 : vector<2x128xf32>
    %44 = arith.divf %42, %43 : vector<2x128xf32>
    %45 = vector.extract_strided_slice %32 {offsets = [0, 256], sizes = [2, 128], strides = [1, 1]} : vector<2x512xf32> to vector<2x128xf32>
    %46 = math.tanh %45 : vector<2x128xf32>
    %47 = vector.extract_strided_slice %32 {offsets = [0, 384], sizes = [2, 128], strides = [1, 1]} : vector<2x512xf32> to vector<2x128xf32>
    %48 = arith.negf %47 : vector<2x128xf32>
    %49 = math.exp %48 : vector<2x128xf32>
    %cst_35 = arith.constant 1.000000e+00 : f32
    %50 = vector.broadcast %cst_35 : f32 to vector<2x128xf32>
    %51 = arith.addf %50, %49 : vector<2x128xf32>
    %52 = arith.divf %50, %51 : vector<2x128xf32>
    %53 = arith.mulf %44, %24 : vector<2x128xf32>
    %54 = arith.mulf %38, %46 : vector<2x128xf32>
    %55 = arith.addf %53, %54 : vector<2x128xf32>
    %56 = math.tanh %55 : vector<2x128xf32>
    %57 = arith.mulf %52, %56 : vector<2x128xf32>
    %58 = arith.truncf %57 : vector<2x128xf32> to vector<2x128xbf16>
    %cst_36 = arith.constant dense<0.000000e+00> : vector<2x512xf32>
    %59 = tpu.matmul %58, %18, %cst_36 {dimension_numbers = #tpu.dot_dimension_numbers<[1], [0], [0], [1], [0, 0, 1, 1], [], []>} : vector<2x128xbf16>, vector<128x512xbf16>, vector<2x512xf32> -> vector<2x512xf32>
    %60 = arith.truncf %26 : vector<2x128xf32> to vector<2x128xbf16>
    %cst_37 = arith.constant dense<0.000000e+00> : vector<2x512xf32>
    %61 = tpu.matmul %60, %19, %cst_37 {dimension_numbers = #tpu.dot_dimension_numbers<[1], [0], [0], [1], [0, 0, 1, 1], [], []>} : vector<2x128xbf16>, vector<128x512xbf16>, vector<2x512xf32> -> vector<2x512xf32>
    %62 = arith.addf %59, %61 : vector<2x512xf32>
    %63 = vector.broadcast %20 : vector<1x512xf32> to vector<2x512xf32>
    %64 = arith.addf %62, %63 : vector<2x512xf32>
    %65 = vector.extract_strided_slice %64 {offsets = [0, 0], sizes = [2, 128], strides = [1, 1]} : vector<2x512xf32> to vector<2x128xf32>
    %66 = arith.negf %65 : vector<2x128xf32>
    %67 = math.exp %66 : vector<2x128xf32>
    %cst_38 = arith.constant 1.000000e+00 : f32
    %68 = vector.broadcast %cst_38 : f32 to vector<2x128xf32>
    %69 = arith.addf %68, %67 : vector<2x128xf32>
    %70 = arith.divf %68, %69 : vector<2x128xf32>
    %71 = vector.extract_strided_slice %64 {offsets = [0, 128], sizes = [2, 128], strides = [1, 1]} : vector<2x512xf32> to vector<2x128xf32>
    %72 = arith.negf %71 : vector<2x128xf32>
    %73 = math.exp %72 : vector<2x128xf32>
    %cst_39 = arith.constant 1.000000e+00 : f32
    %74 = vector.broadcast %cst_39 : f32 to vector<2x128xf32>
    %75 = arith.addf %74, %73 : vector<2x128xf32>
    %76 = arith.divf %74, %75 : vector<2x128xf32>
    %77 = vector.extract_strided_slice %64 {offsets = [0, 256], sizes = [2, 128], strides = [1, 1]} : vector<2x512xf32> to vector<2x128xf32>
    %78 = math.tanh %77 : vector<2x128xf32>
    %79 = vector.extract_strided_slice %64 {offsets = [0, 384], sizes = [2, 128], strides = [1, 1]} : vector<2x512xf32> to vector<2x128xf32>
    %80 = arith.negf %79 : vector<2x128xf32>
    %81 = math.exp %80 : vector<2x128xf32>
    %cst_40 = arith.constant 1.000000e+00 : f32
    %82 = vector.broadcast %cst_40 : f32 to vector<2x128xf32>
    %83 = arith.addf %82, %81 : vector<2x128xf32>
    %84 = arith.divf %82, %83 : vector<2x128xf32>
    %85 = arith.mulf %76, %28 : vector<2x128xf32>
    %86 = arith.mulf %70, %78 : vector<2x128xf32>
    %87 = arith.addf %85, %86 : vector<2x128xf32>
    %88 = math.tanh %87 : vector<2x128xf32>
    %89 = arith.mulf %84, %88 : vector<2x128xf32>
    %90 = vector.extract_strided_slice %16 {offsets = [2, 0], sizes = [2, 512], strides = [1, 1]} : vector<22x512xf32> to vector<2x512xf32>
    %91 = arith.truncf %57 : vector<2x128xf32> to vector<2x128xbf16>
    %cst_41 = arith.constant dense<0.000000e+00> : vector<2x512xf32>
    %92 = tpu.matmul %91, %17, %cst_41 {dimension_numbers = #tpu.dot_dimension_numbers<[1], [0], [0], [1], [0, 0, 1, 1], [], []>} : vector<2x128xbf16>, vector<128x512xbf16>, vector<2x512xf32> -> vector<2x512xf32>
    %93 = arith.addf %90, %92 : vector<2x512xf32>
    %94 = vector.extract_strided_slice %93 {offsets = [0, 0], sizes = [2, 128], strides = [1, 1]} : vector<2x512xf32> to vector<2x128xf32>
    %95 = arith.negf %94 : vector<2x128xf32>
    %96 = math.exp %95 : vector<2x128xf32>
    %cst_42 = arith.constant 1.000000e+00 : f32
    %97 = vector.broadcast %cst_42 : f32 to vector<2x128xf32>
    %98 = arith.addf %97, %96 : vector<2x128xf32>
    %99 = arith.divf %97, %98 : vector<2x128xf32>
    %100 = vector.extract_strided_slice %93 {offsets = [0, 128], sizes = [2, 128], strides = [1, 1]} : vector<2x512xf32> to vector<2x128xf32>
    %101 = arith.negf %100 : vector<2x128xf32>
    %102 = math.exp %101 : vector<2x128xf32>
    %cst_43 = arith.constant 1.000000e+00 : f32
    %103 = vector.broadcast %cst_43 : f32 to vector<2x128xf32>
    %104 = arith.addf %103, %102 : vector<2x128xf32>
    %105 = arith.divf %103, %104 : vector<2x128xf32>
    %106 = vector.extract_strided_slice %93 {offsets = [0, 256], sizes = [2, 128], strides = [1, 1]} : vector<2x512xf32> to vector<2x128xf32>
    %107 = math.tanh %106 : vector<2x128xf32>
    %108 = vector.extract_strided_slice %93 {offsets = [0, 384], sizes = [2, 128], strides = [1, 1]} : vector<2x512xf32> to vector<2x128xf32>
    %109 = arith.negf %108 : vector<2x128xf32>
    %110 = math.exp %109 : vector<2x128xf32>
    %cst_44 = arith.constant 1.000000e+00 : f32
    %111 = vector.broadcast %cst_44 : f32 to vector<2x128xf32>
    %112 = arith.addf %111, %110 : vector<2x128xf32>
    %113 = arith.divf %111, %112 : vector<2x128xf32>
    %114 = arith.mulf %105, %55 : vector<2x128xf32>
    %115 = arith.mulf %99, %107 : vector<2x128xf32>
    %116 = arith.addf %114, %115 : vector<2x128xf32>
    %117 = math.tanh %116 : vector<2x128xf32>
    %118 = arith.mulf %113, %117 : vector<2x128xf32>
    %119 = arith.truncf %118 : vector<2x128xf32> to vector<2x128xbf16>
    %cst_45 = arith.constant dense<0.000000e+00> : vector<2x512xf32>
    %120 = tpu.matmul %119, %18, %cst_45 {dimension_numbers = #tpu.dot_dimension_numbers<[1], [0], [0], [1], [0, 0, 1, 1], [], []>} : vector<2x128xbf16>, vector<128x512xbf16>, vector<2x512xf32> -> vector<2x512xf32>
    %121 = arith.truncf %89 : vector<2x128xf32> to vector<2x128xbf16>
    %cst_46 = arith.constant dense<0.000000e+00> : vector<2x512xf32>
    %122 = tpu.matmul %121, %19, %cst_46 {dimension_numbers = #tpu.dot_dimension_numbers<[1], [0], [0], [1], [0, 0, 1, 1], [], []>} : vector<2x128xbf16>, vector<128x512xbf16>, vector<2x512xf32> -> vector<2x512xf32>
    %123 = arith.addf %120, %122 : vector<2x512xf32>
    %124 = vector.broadcast %20 : vector<1x512xf32> to vector<2x512xf32>
    %125 = arith.addf %123, %124 : vector<2x512xf32>
    %126 = vector.extract_strided_slice %125 {offsets = [0, 0], sizes = [2, 128], strides = [1, 1]} : vector<2x512xf32> to vector<2x128xf32>
    %127 = arith.negf %126 : vector<2x128xf32>
    %128 = math.exp %127 : vector<2x128xf32>
    %cst_47 = arith.constant 1.000000e+00 : f32
    %129 = vector.broadcast %cst_47 : f32 to vector<2x128xf32>
    %130 = arith.addf %129, %128 : vector<2x128xf32>
    %131 = arith.divf %129, %130 : vector<2x128xf32>
    %132 = vector.extract_strided_slice %125 {offsets = [0, 128], sizes = [2, 128], strides = [1, 1]} : vector<2x512xf32> to vector<2x128xf32>
    %133 = arith.negf %132 : vector<2x128xf32>
    %134 = math.exp %133 : vector<2x128xf32>
    %cst_48 = arith.constant 1.000000e+00 : f32
    %135 = vector.broadcast %cst_48 : f32 to vector<2x128xf32>
    %136 = arith.addf %135, %134 : vector<2x128xf32>
    %137 = arith.divf %135, %136 : vector<2x128xf32>
    %138 = vector.extract_strided_slice %125 {offsets = [0, 256], sizes = [2, 128], strides = [1, 1]} : vector<2x512xf32> to vector<2x128xf32>
    %139 = math.tanh %138 : vector<2x128xf32>
    %140 = vector.extract_strided_slice %125 {offsets = [0, 384], sizes = [2, 128], strides = [1, 1]} : vector<2x512xf32> to vector<2x128xf32>
    %141 = arith.negf %140 : vector<2x128xf32>
    %142 = math.exp %141 : vector<2x128xf32>
    %cst_49 = arith.constant 1.000000e+00 : f32
    %143 = vector.broadcast %cst_49 : f32 to vector<2x128xf32>
    %144 = arith.addf %143, %142 : vector<2x128xf32>
    %145 = arith.divf %143, %144 : vector<2x128xf32>
    %146 = arith.mulf %137, %87 : vector<2x128xf32>
    %147 = arith.mulf %131, %139 : vector<2x128xf32>
    %148 = arith.addf %146, %147 : vector<2x128xf32>
    %149 = math.tanh %148 : vector<2x128xf32>
    %150 = arith.mulf %145, %149 : vector<2x128xf32>
    %151 = vector.extract_strided_slice %16 {offsets = [4, 0], sizes = [2, 512], strides = [1, 1]} : vector<22x512xf32> to vector<2x512xf32>
    %152 = arith.truncf %118 : vector<2x128xf32> to vector<2x128xbf16>
    %cst_50 = arith.constant dense<0.000000e+00> : vector<2x512xf32>
    %153 = tpu.matmul %152, %17, %cst_50 {dimension_numbers = #tpu.dot_dimension_numbers<[1], [0], [0], [1], [0, 0, 1, 1], [], []>} : vector<2x128xbf16>, vector<128x512xbf16>, vector<2x512xf32> -> vector<2x512xf32>
    %154 = arith.addf %151, %153 : vector<2x512xf32>
    %155 = vector.extract_strided_slice %154 {offsets = [0, 0], sizes = [2, 128], strides = [1, 1]} : vector<2x512xf32> to vector<2x128xf32>
    %156 = arith.negf %155 : vector<2x128xf32>
    %157 = math.exp %156 : vector<2x128xf32>
    %cst_51 = arith.constant 1.000000e+00 : f32
    %158 = vector.broadcast %cst_51 : f32 to vector<2x128xf32>
    %159 = arith.addf %158, %157 : vector<2x128xf32>
    %160 = arith.divf %158, %159 : vector<2x128xf32>
    %161 = vector.extract_strided_slice %154 {offsets = [0, 128], sizes = [2, 128], strides = [1, 1]} : vector<2x512xf32> to vector<2x128xf32>
    %162 = arith.negf %161 : vector<2x128xf32>
    %163 = math.exp %162 : vector<2x128xf32>
    %cst_52 = arith.constant 1.000000e+00 : f32
    %164 = vector.broadcast %cst_52 : f32 to vector<2x128xf32>
    %165 = arith.addf %164, %163 : vector<2x128xf32>
    %166 = arith.divf %164, %165 : vector<2x128xf32>
    %167 = vector.extract_strided_slice %154 {offsets = [0, 256], sizes = [2, 128], strides = [1, 1]} : vector<2x512xf32> to vector<2x128xf32>
    %168 = math.tanh %167 : vector<2x128xf32>
    %169 = vector.extract_strided_slice %154 {offsets = [0, 384], sizes = [2, 128], strides = [1, 1]} : vector<2x512xf32> to vector<2x128xf32>
    %170 = arith.negf %169 : vector<2x128xf32>
    %171 = math.exp %170 : vector<2x128xf32>
    %cst_53 = arith.constant 1.000000e+00 : f32
    %172 = vector.broadcast %cst_53 : f32 to vector<2x128xf32>
    %173 = arith.addf %172, %171 : vector<2x128xf32>
    %174 = arith.divf %172, %173 : vector<2x128xf32>
    %175 = arith.mulf %166, %116 : vector<2x128xf32>
    %176 = arith.mulf %160, %168 : vector<2x128xf32>
    %177 = arith.addf %175, %176 : vector<2x128xf32>
    %178 = math.tanh %177 : vector<2x128xf32>
    %179 = arith.mulf %174, %178 : vector<2x128xf32>
    %180 = arith.truncf %179 : vector<2x128xf32> to vector<2x128xbf16>
    %cst_54 = arith.constant dense<0.000000e+00> : vector<2x512xf32>
    %181 = tpu.matmul %180, %18, %cst_54 {dimension_numbers = #tpu.dot_dimension_numbers<[1], [0], [0], [1], [0, 0, 1, 1], [], []>} : vector<2x128xbf16>, vector<128x512xbf16>, vector<2x512xf32> -> vector<2x512xf32>
    %182 = arith.truncf %150 : vector<2x128xf32> to vector<2x128xbf16>
    %cst_55 = arith.constant dense<0.000000e+00> : vector<2x512xf32>
    %183 = tpu.matmul %182, %19, %cst_55 {dimension_numbers = #tpu.dot_dimension_numbers<[1], [0], [0], [1], [0, 0, 1, 1], [], []>} : vector<2x128xbf16>, vector<128x512xbf16>, vector<2x512xf32> -> vector<2x512xf32>
    %184 = arith.addf %181, %183 : vector<2x512xf32>
    %185 = vector.broadcast %20 : vector<1x512xf32> to vector<2x512xf32>
    %186 = arith.addf %184, %185 : vector<2x512xf32>
    %187 = vector.extract_strided_slice %186 {offsets = [0, 0], sizes = [2, 128], strides = [1, 1]} : vector<2x512xf32> to vector<2x128xf32>
    %188 = arith.negf %187 : vector<2x128xf32>
    %189 = math.exp %188 : vector<2x128xf32>
    %cst_56 = arith.constant 1.000000e+00 : f32
    %190 = vector.broadcast %cst_56 : f32 to vector<2x128xf32>
    %191 = arith.addf %190, %189 : vector<2x128xf32>
    %192 = arith.divf %190, %191 : vector<2x128xf32>
    %193 = vector.extract_strided_slice %186 {offsets = [0, 128], sizes = [2, 128], strides = [1, 1]} : vector<2x512xf32> to vector<2x128xf32>
    %194 = arith.negf %193 : vector<2x128xf32>
    %195 = math.exp %194 : vector<2x128xf32>
    %cst_57 = arith.constant 1.000000e+00 : f32
    %196 = vector.broadcast %cst_57 : f32 to vector<2x128xf32>
    %197 = arith.addf %196, %195 : vector<2x128xf32>
    %198 = arith.divf %196, %197 : vector<2x128xf32>
    %199 = vector.extract_strided_slice %186 {offsets = [0, 256], sizes = [2, 128], strides = [1, 1]} : vector<2x512xf32> to vector<2x128xf32>
    %200 = math.tanh %199 : vector<2x128xf32>
    %201 = vector.extract_strided_slice %186 {offsets = [0, 384], sizes = [2, 128], strides = [1, 1]} : vector<2x512xf32> to vector<2x128xf32>
    %202 = arith.negf %201 : vector<2x128xf32>
    %203 = math.exp %202 : vector<2x128xf32>
    %cst_58 = arith.constant 1.000000e+00 : f32
    %204 = vector.broadcast %cst_58 : f32 to vector<2x128xf32>
    %205 = arith.addf %204, %203 : vector<2x128xf32>
    %206 = arith.divf %204, %205 : vector<2x128xf32>
    %207 = arith.mulf %198, %148 : vector<2x128xf32>
    %208 = arith.mulf %192, %200 : vector<2x128xf32>
    %209 = arith.addf %207, %208 : vector<2x128xf32>
    %210 = math.tanh %209 : vector<2x128xf32>
    %211 = arith.mulf %206, %210 : vector<2x128xf32>
    %212 = vector.extract_strided_slice %16 {offsets = [6, 0], sizes = [2, 512], strides = [1, 1]} : vector<22x512xf32> to vector<2x512xf32>
    %213 = arith.truncf %179 : vector<2x128xf32> to vector<2x128xbf16>
    %cst_59 = arith.constant dense<0.000000e+00> : vector<2x512xf32>
    %214 = tpu.matmul %213, %17, %cst_59 {dimension_numbers = #tpu.dot_dimension_numbers<[1], [0], [0], [1], [0, 0, 1, 1], [], []>} : vector<2x128xbf16>, vector<128x512xbf16>, vector<2x512xf32> -> vector<2x512xf32>
    %215 = arith.addf %212, %214 : vector<2x512xf32>
    %216 = vector.extract_strided_slice %215 {offsets = [0, 0], sizes = [2, 128], strides = [1, 1]} : vector<2x512xf32> to vector<2x128xf32>
    %217 = arith.negf %216 : vector<2x128xf32>
    %218 = math.exp %217 : vector<2x128xf32>
    %cst_60 = arith.constant 1.000000e+00 : f32
    %219 = vector.broadcast %cst_60 : f32 to vector<2x128xf32>
    %220 = arith.addf %219, %218 : vector<2x128xf32>
    %221 = arith.divf %219, %220 : vector<2x128xf32>
    %222 = vector.extract_strided_slice %215 {offsets = [0, 128], sizes = [2, 128], strides = [1, 1]} : vector<2x512xf32> to vector<2x128xf32>
    %223 = arith.negf %222 : vector<2x128xf32>
    %224 = math.exp %223 : vector<2x128xf32>
    %cst_61 = arith.constant 1.000000e+00 : f32
    %225 = vector.broadcast %cst_61 : f32 to vector<2x128xf32>
    %226 = arith.addf %225, %224 : vector<2x128xf32>
    %227 = arith.divf %225, %226 : vector<2x128xf32>
    %228 = vector.extract_strided_slice %215 {offsets = [0, 256], sizes = [2, 128], strides = [1, 1]} : vector<2x512xf32> to vector<2x128xf32>
    %229 = math.tanh %228 : vector<2x128xf32>
    %230 = vector.extract_strided_slice %215 {offsets = [0, 384], sizes = [2, 128], strides = [1, 1]} : vector<2x512xf32> to vector<2x128xf32>
    %231 = arith.negf %230 : vector<2x128xf32>
    %232 = math.exp %231 : vector<2x128xf32>
    %cst_62 = arith.constant 1.000000e+00 : f32
    %233 = vector.broadcast %cst_62 : f32 to vector<2x128xf32>
    %234 = arith.addf %233, %232 : vector<2x128xf32>
    %235 = arith.divf %233, %234 : vector<2x128xf32>
    %236 = arith.mulf %227, %177 : vector<2x128xf32>
    %237 = arith.mulf %221, %229 : vector<2x128xf32>
    %238 = arith.addf %236, %237 : vector<2x128xf32>
    %239 = math.tanh %238 : vector<2x128xf32>
    %240 = arith.mulf %235, %239 : vector<2x128xf32>
    %241 = arith.truncf %240 : vector<2x128xf32> to vector<2x128xbf16>
    %cst_63 = arith.constant dense<0.000000e+00> : vector<2x512xf32>
    %242 = tpu.matmul %241, %18, %cst_63 {dimension_numbers = #tpu.dot_dimension_numbers<[1], [0], [0], [1], [0, 0, 1, 1], [], []>} : vector<2x128xbf16>, vector<128x512xbf16>, vector<2x512xf32> -> vector<2x512xf32>
    %243 = arith.truncf %211 : vector<2x128xf32> to vector<2x128xbf16>
    %cst_64 = arith.constant dense<0.000000e+00> : vector<2x512xf32>
    %244 = tpu.matmul %243, %19, %cst_64 {dimension_numbers = #tpu.dot_dimension_numbers<[1], [0], [0], [1], [0, 0, 1, 1], [], []>} : vector<2x128xbf16>, vector<128x512xbf16>, vector<2x512xf32> -> vector<2x512xf32>
    %245 = arith.addf %242, %244 : vector<2x512xf32>
    %246 = vector.broadcast %20 : vector<1x512xf32> to vector<2x512xf32>
    %247 = arith.addf %245, %246 : vector<2x512xf32>
    %248 = vector.extract_strided_slice %247 {offsets = [0, 0], sizes = [2, 128], strides = [1, 1]} : vector<2x512xf32> to vector<2x128xf32>
    %249 = arith.negf %248 : vector<2x128xf32>
    %250 = math.exp %249 : vector<2x128xf32>
    %cst_65 = arith.constant 1.000000e+00 : f32
    %251 = vector.broadcast %cst_65 : f32 to vector<2x128xf32>
    %252 = arith.addf %251, %250 : vector<2x128xf32>
    %253 = arith.divf %251, %252 : vector<2x128xf32>
    %254 = vector.extract_strided_slice %247 {offsets = [0, 128], sizes = [2, 128], strides = [1, 1]} : vector<2x512xf32> to vector<2x128xf32>
    %255 = arith.negf %254 : vector<2x128xf32>
    %256 = math.exp %255 : vector<2x128xf32>
    %cst_66 = arith.constant 1.000000e+00 : f32
    %257 = vector.broadcast %cst_66 : f32 to vector<2x128xf32>
    %258 = arith.addf %257, %256 : vector<2x128xf32>
    %259 = arith.divf %257, %258 : vector<2x128xf32>
    %260 = vector.extract_strided_slice %247 {offsets = [0, 256], sizes = [2, 128], strides = [1, 1]} : vector<2x512xf32> to vector<2x128xf32>
    %261 = math.tanh %260 : vector<2x128xf32>
    %262 = vector.extract_strided_slice %247 {offsets = [0, 384], sizes = [2, 128], strides = [1, 1]} : vector<2x512xf32> to vector<2x128xf32>
    %263 = arith.negf %262 : vector<2x128xf32>
    %264 = math.exp %263 : vector<2x128xf32>
    %cst_67 = arith.constant 1.000000e+00 : f32
    %265 = vector.broadcast %cst_67 : f32 to vector<2x128xf32>
    %266 = arith.addf %265, %264 : vector<2x128xf32>
    %267 = arith.divf %265, %266 : vector<2x128xf32>
    %268 = arith.mulf %259, %209 : vector<2x128xf32>
    %269 = arith.mulf %253, %261 : vector<2x128xf32>
    %270 = arith.addf %268, %269 : vector<2x128xf32>
    %271 = math.tanh %270 : vector<2x128xf32>
    %272 = arith.mulf %267, %271 : vector<2x128xf32>
    %273 = vector.extract_strided_slice %16 {offsets = [8, 0], sizes = [2, 512], strides = [1, 1]} : vector<22x512xf32> to vector<2x512xf32>
    %274 = arith.truncf %240 : vector<2x128xf32> to vector<2x128xbf16>
    %cst_68 = arith.constant dense<0.000000e+00> : vector<2x512xf32>
    %275 = tpu.matmul %274, %17, %cst_68 {dimension_numbers = #tpu.dot_dimension_numbers<[1], [0], [0], [1], [0, 0, 1, 1], [], []>} : vector<2x128xbf16>, vector<128x512xbf16>, vector<2x512xf32> -> vector<2x512xf32>
    %276 = arith.addf %273, %275 : vector<2x512xf32>
    %277 = vector.extract_strided_slice %276 {offsets = [0, 0], sizes = [2, 128], strides = [1, 1]} : vector<2x512xf32> to vector<2x128xf32>
    %278 = arith.negf %277 : vector<2x128xf32>
    %279 = math.exp %278 : vector<2x128xf32>
    %cst_69 = arith.constant 1.000000e+00 : f32
    %280 = vector.broadcast %cst_69 : f32 to vector<2x128xf32>
    %281 = arith.addf %280, %279 : vector<2x128xf32>
    %282 = arith.divf %280, %281 : vector<2x128xf32>
    %283 = vector.extract_strided_slice %276 {offsets = [0, 128], sizes = [2, 128], strides = [1, 1]} : vector<2x512xf32> to vector<2x128xf32>
    %284 = arith.negf %283 : vector<2x128xf32>
    %285 = math.exp %284 : vector<2x128xf32>
    %cst_70 = arith.constant 1.000000e+00 : f32
    %286 = vector.broadcast %cst_70 : f32 to vector<2x128xf32>
    %287 = arith.addf %286, %285 : vector<2x128xf32>
    %288 = arith.divf %286, %287 : vector<2x128xf32>
    %289 = vector.extract_strided_slice %276 {offsets = [0, 256], sizes = [2, 128], strides = [1, 1]} : vector<2x512xf32> to vector<2x128xf32>
    %290 = math.tanh %289 : vector<2x128xf32>
    %291 = vector.extract_strided_slice %276 {offsets = [0, 384], sizes = [2, 128], strides = [1, 1]} : vector<2x512xf32> to vector<2x128xf32>
    %292 = arith.negf %291 : vector<2x128xf32>
    %293 = math.exp %292 : vector<2x128xf32>
    %cst_71 = arith.constant 1.000000e+00 : f32
    %294 = vector.broadcast %cst_71 : f32 to vector<2x128xf32>
    %295 = arith.addf %294, %293 : vector<2x128xf32>
    %296 = arith.divf %294, %295 : vector<2x128xf32>
    %297 = arith.mulf %288, %238 : vector<2x128xf32>
    %298 = arith.mulf %282, %290 : vector<2x128xf32>
    %299 = arith.addf %297, %298 : vector<2x128xf32>
    %300 = math.tanh %299 : vector<2x128xf32>
    %301 = arith.mulf %296, %300 : vector<2x128xf32>
    %302 = arith.truncf %301 : vector<2x128xf32> to vector<2x128xbf16>
    %cst_72 = arith.constant dense<0.000000e+00> : vector<2x512xf32>
    %303 = tpu.matmul %302, %18, %cst_72 {dimension_numbers = #tpu.dot_dimension_numbers<[1], [0], [0], [1], [0, 0, 1, 1], [], []>} : vector<2x128xbf16>, vector<128x512xbf16>, vector<2x512xf32> -> vector<2x512xf32>
    %304 = arith.truncf %272 : vector<2x128xf32> to vector<2x128xbf16>
    %cst_73 = arith.constant dense<0.000000e+00> : vector<2x512xf32>
    %305 = tpu.matmul %304, %19, %cst_73 {dimension_numbers = #tpu.dot_dimension_numbers<[1], [0], [0], [1], [0, 0, 1, 1], [], []>} : vector<2x128xbf16>, vector<128x512xbf16>, vector<2x512xf32> -> vector<2x512xf32>
    %306 = arith.addf %303, %305 : vector<2x512xf32>
    %307 = vector.broadcast %20 : vector<1x512xf32> to vector<2x512xf32>
    %308 = arith.addf %306, %307 : vector<2x512xf32>
    %309 = vector.extract_strided_slice %308 {offsets = [0, 0], sizes = [2, 128], strides = [1, 1]} : vector<2x512xf32> to vector<2x128xf32>
    %310 = arith.negf %309 : vector<2x128xf32>
    %311 = math.exp %310 : vector<2x128xf32>
    %cst_74 = arith.constant 1.000000e+00 : f32
    %312 = vector.broadcast %cst_74 : f32 to vector<2x128xf32>
    %313 = arith.addf %312, %311 : vector<2x128xf32>
    %314 = arith.divf %312, %313 : vector<2x128xf32>
    %315 = vector.extract_strided_slice %308 {offsets = [0, 128], sizes = [2, 128], strides = [1, 1]} : vector<2x512xf32> to vector<2x128xf32>
    %316 = arith.negf %315 : vector<2x128xf32>
    %317 = math.exp %316 : vector<2x128xf32>
    %cst_75 = arith.constant 1.000000e+00 : f32
    %318 = vector.broadcast %cst_75 : f32 to vector<2x128xf32>
    %319 = arith.addf %318, %317 : vector<2x128xf32>
    %320 = arith.divf %318, %319 : vector<2x128xf32>
    %321 = vector.extract_strided_slice %308 {offsets = [0, 256], sizes = [2, 128], strides = [1, 1]} : vector<2x512xf32> to vector<2x128xf32>
    %322 = math.tanh %321 : vector<2x128xf32>
    %323 = vector.extract_strided_slice %308 {offsets = [0, 384], sizes = [2, 128], strides = [1, 1]} : vector<2x512xf32> to vector<2x128xf32>
    %324 = arith.negf %323 : vector<2x128xf32>
    %325 = math.exp %324 : vector<2x128xf32>
    %cst_76 = arith.constant 1.000000e+00 : f32
    %326 = vector.broadcast %cst_76 : f32 to vector<2x128xf32>
    %327 = arith.addf %326, %325 : vector<2x128xf32>
    %328 = arith.divf %326, %327 : vector<2x128xf32>
    %329 = arith.mulf %320, %270 : vector<2x128xf32>
    %330 = arith.mulf %314, %322 : vector<2x128xf32>
    %331 = arith.addf %329, %330 : vector<2x128xf32>
    %332 = math.tanh %331 : vector<2x128xf32>
    %333 = arith.mulf %328, %332 : vector<2x128xf32>
    %334 = vector.extract_strided_slice %16 {offsets = [10, 0], sizes = [2, 512], strides = [1, 1]} : vector<22x512xf32> to vector<2x512xf32>
    %335 = arith.truncf %301 : vector<2x128xf32> to vector<2x128xbf16>
    %cst_77 = arith.constant dense<0.000000e+00> : vector<2x512xf32>
    %336 = tpu.matmul %335, %17, %cst_77 {dimension_numbers = #tpu.dot_dimension_numbers<[1], [0], [0], [1], [0, 0, 1, 1], [], []>} : vector<2x128xbf16>, vector<128x512xbf16>, vector<2x512xf32> -> vector<2x512xf32>
    %337 = arith.addf %334, %336 : vector<2x512xf32>
    %338 = vector.extract_strided_slice %337 {offsets = [0, 0], sizes = [2, 128], strides = [1, 1]} : vector<2x512xf32> to vector<2x128xf32>
    %339 = arith.negf %338 : vector<2x128xf32>
    %340 = math.exp %339 : vector<2x128xf32>
    %cst_78 = arith.constant 1.000000e+00 : f32
    %341 = vector.broadcast %cst_78 : f32 to vector<2x128xf32>
    %342 = arith.addf %341, %340 : vector<2x128xf32>
    %343 = arith.divf %341, %342 : vector<2x128xf32>
    %344 = vector.extract_strided_slice %337 {offsets = [0, 128], sizes = [2, 128], strides = [1, 1]} : vector<2x512xf32> to vector<2x128xf32>
    %345 = arith.negf %344 : vector<2x128xf32>
    %346 = math.exp %345 : vector<2x128xf32>
    %cst_79 = arith.constant 1.000000e+00 : f32
    %347 = vector.broadcast %cst_79 : f32 to vector<2x128xf32>
    %348 = arith.addf %347, %346 : vector<2x128xf32>
    %349 = arith.divf %347, %348 : vector<2x128xf32>
    %350 = vector.extract_strided_slice %337 {offsets = [0, 256], sizes = [2, 128], strides = [1, 1]} : vector<2x512xf32> to vector<2x128xf32>
    %351 = math.tanh %350 : vector<2x128xf32>
    %352 = vector.extract_strided_slice %337 {offsets = [0, 384], sizes = [2, 128], strides = [1, 1]} : vector<2x512xf32> to vector<2x128xf32>
    %353 = arith.negf %352 : vector<2x128xf32>
    %354 = math.exp %353 : vector<2x128xf32>
    %cst_80 = arith.constant 1.000000e+00 : f32
    %355 = vector.broadcast %cst_80 : f32 to vector<2x128xf32>
    %356 = arith.addf %355, %354 : vector<2x128xf32>
    %357 = arith.divf %355, %356 : vector<2x128xf32>
    %358 = arith.mulf %349, %299 : vector<2x128xf32>
    %359 = arith.mulf %343, %351 : vector<2x128xf32>
    %360 = arith.addf %358, %359 : vector<2x128xf32>
    %361 = math.tanh %360 : vector<2x128xf32>
    %362 = arith.mulf %357, %361 : vector<2x128xf32>
    %363 = arith.truncf %362 : vector<2x128xf32> to vector<2x128xbf16>
    %cst_81 = arith.constant dense<0.000000e+00> : vector<2x512xf32>
    %364 = tpu.matmul %363, %18, %cst_81 {dimension_numbers = #tpu.dot_dimension_numbers<[1], [0], [0], [1], [0, 0, 1, 1], [], []>} : vector<2x128xbf16>, vector<128x512xbf16>, vector<2x512xf32> -> vector<2x512xf32>
    %365 = arith.truncf %333 : vector<2x128xf32> to vector<2x128xbf16>
    %cst_82 = arith.constant dense<0.000000e+00> : vector<2x512xf32>
    %366 = tpu.matmul %365, %19, %cst_82 {dimension_numbers = #tpu.dot_dimension_numbers<[1], [0], [0], [1], [0, 0, 1, 1], [], []>} : vector<2x128xbf16>, vector<128x512xbf16>, vector<2x512xf32> -> vector<2x512xf32>
    %367 = arith.addf %364, %366 : vector<2x512xf32>
    %368 = vector.broadcast %20 : vector<1x512xf32> to vector<2x512xf32>
    %369 = arith.addf %367, %368 : vector<2x512xf32>
    %370 = vector.extract_strided_slice %369 {offsets = [0, 0], sizes = [2, 128], strides = [1, 1]} : vector<2x512xf32> to vector<2x128xf32>
    %371 = arith.negf %370 : vector<2x128xf32>
    %372 = math.exp %371 : vector<2x128xf32>
    %cst_83 = arith.constant 1.000000e+00 : f32
    %373 = vector.broadcast %cst_83 : f32 to vector<2x128xf32>
    %374 = arith.addf %373, %372 : vector<2x128xf32>
    %375 = arith.divf %373, %374 : vector<2x128xf32>
    %376 = vector.extract_strided_slice %369 {offsets = [0, 128], sizes = [2, 128], strides = [1, 1]} : vector<2x512xf32> to vector<2x128xf32>
    %377 = arith.negf %376 : vector<2x128xf32>
    %378 = math.exp %377 : vector<2x128xf32>
    %cst_84 = arith.constant 1.000000e+00 : f32
    %379 = vector.broadcast %cst_84 : f32 to vector<2x128xf32>
    %380 = arith.addf %379, %378 : vector<2x128xf32>
    %381 = arith.divf %379, %380 : vector<2x128xf32>
    %382 = vector.extract_strided_slice %369 {offsets = [0, 256], sizes = [2, 128], strides = [1, 1]} : vector<2x512xf32> to vector<2x128xf32>
    %383 = math.tanh %382 : vector<2x128xf32>
    %384 = vector.extract_strided_slice %369 {offsets = [0, 384], sizes = [2, 128], strides = [1, 1]} : vector<2x512xf32> to vector<2x128xf32>
    %385 = arith.negf %384 : vector<2x128xf32>
    %386 = math.exp %385 : vector<2x128xf32>
    %cst_85 = arith.constant 1.000000e+00 : f32
    %387 = vector.broadcast %cst_85 : f32 to vector<2x128xf32>
    %388 = arith.addf %387, %386 : vector<2x128xf32>
    %389 = arith.divf %387, %388 : vector<2x128xf32>
    %390 = arith.mulf %381, %331 : vector<2x128xf32>
    %391 = arith.mulf %375, %383 : vector<2x128xf32>
    %392 = arith.addf %390, %391 : vector<2x128xf32>
    %393 = math.tanh %392 : vector<2x128xf32>
    %394 = arith.mulf %389, %393 : vector<2x128xf32>
    %395 = vector.extract_strided_slice %16 {offsets = [12, 0], sizes = [2, 512], strides = [1, 1]} : vector<22x512xf32> to vector<2x512xf32>
    %396 = arith.truncf %362 : vector<2x128xf32> to vector<2x128xbf16>
    %cst_86 = arith.constant dense<0.000000e+00> : vector<2x512xf32>
    %397 = tpu.matmul %396, %17, %cst_86 {dimension_numbers = #tpu.dot_dimension_numbers<[1], [0], [0], [1], [0, 0, 1, 1], [], []>} : vector<2x128xbf16>, vector<128x512xbf16>, vector<2x512xf32> -> vector<2x512xf32>
    %398 = arith.addf %395, %397 : vector<2x512xf32>
    %399 = vector.extract_strided_slice %398 {offsets = [0, 0], sizes = [2, 128], strides = [1, 1]} : vector<2x512xf32> to vector<2x128xf32>
    %400 = arith.negf %399 : vector<2x128xf32>
    %401 = math.exp %400 : vector<2x128xf32>
    %cst_87 = arith.constant 1.000000e+00 : f32
    %402 = vector.broadcast %cst_87 : f32 to vector<2x128xf32>
    %403 = arith.addf %402, %401 : vector<2x128xf32>
    %404 = arith.divf %402, %403 : vector<2x128xf32>
    %405 = vector.extract_strided_slice %398 {offsets = [0, 128], sizes = [2, 128], strides = [1, 1]} : vector<2x512xf32> to vector<2x128xf32>
    %406 = arith.negf %405 : vector<2x128xf32>
    %407 = math.exp %406 : vector<2x128xf32>
    %cst_88 = arith.constant 1.000000e+00 : f32
    %408 = vector.broadcast %cst_88 : f32 to vector<2x128xf32>
    %409 = arith.addf %408, %407 : vector<2x128xf32>
    %410 = arith.divf %408, %409 : vector<2x128xf32>
    %411 = vector.extract_strided_slice %398 {offsets = [0, 256], sizes = [2, 128], strides = [1, 1]} : vector<2x512xf32> to vector<2x128xf32>
    %412 = math.tanh %411 : vector<2x128xf32>
    %413 = vector.extract_strided_slice %398 {offsets = [0, 384], sizes = [2, 128], strides = [1, 1]} : vector<2x512xf32> to vector<2x128xf32>
    %414 = arith.negf %413 : vector<2x128xf32>
    %415 = math.exp %414 : vector<2x128xf32>
    %cst_89 = arith.constant 1.000000e+00 : f32
    %416 = vector.broadcast %cst_89 : f32 to vector<2x128xf32>
    %417 = arith.addf %416, %415 : vector<2x128xf32>
    %418 = arith.divf %416, %417 : vector<2x128xf32>
    %419 = arith.mulf %410, %360 : vector<2x128xf32>
    %420 = arith.mulf %404, %412 : vector<2x128xf32>
    %421 = arith.addf %419, %420 : vector<2x128xf32>
    %422 = math.tanh %421 : vector<2x128xf32>
    %423 = arith.mulf %418, %422 : vector<2x128xf32>
    %424 = arith.truncf %423 : vector<2x128xf32> to vector<2x128xbf16>
    %cst_90 = arith.constant dense<0.000000e+00> : vector<2x512xf32>
    %425 = tpu.matmul %424, %18, %cst_90 {dimension_numbers = #tpu.dot_dimension_numbers<[1], [0], [0], [1], [0, 0, 1, 1], [], []>} : vector<2x128xbf16>, vector<128x512xbf16>, vector<2x512xf32> -> vector<2x512xf32>
    %426 = arith.truncf %394 : vector<2x128xf32> to vector<2x128xbf16>
    %cst_91 = arith.constant dense<0.000000e+00> : vector<2x512xf32>
    %427 = tpu.matmul %426, %19, %cst_91 {dimension_numbers = #tpu.dot_dimension_numbers<[1], [0], [0], [1], [0, 0, 1, 1], [], []>} : vector<2x128xbf16>, vector<128x512xbf16>, vector<2x512xf32> -> vector<2x512xf32>
    %428 = arith.addf %425, %427 : vector<2x512xf32>
    %429 = vector.broadcast %20 : vector<1x512xf32> to vector<2x512xf32>
    %430 = arith.addf %428, %429 : vector<2x512xf32>
    %431 = vector.extract_strided_slice %430 {offsets = [0, 0], sizes = [2, 128], strides = [1, 1]} : vector<2x512xf32> to vector<2x128xf32>
    %432 = arith.negf %431 : vector<2x128xf32>
    %433 = math.exp %432 : vector<2x128xf32>
    %cst_92 = arith.constant 1.000000e+00 : f32
    %434 = vector.broadcast %cst_92 : f32 to vector<2x128xf32>
    %435 = arith.addf %434, %433 : vector<2x128xf32>
    %436 = arith.divf %434, %435 : vector<2x128xf32>
    %437 = vector.extract_strided_slice %430 {offsets = [0, 128], sizes = [2, 128], strides = [1, 1]} : vector<2x512xf32> to vector<2x128xf32>
    %438 = arith.negf %437 : vector<2x128xf32>
    %439 = math.exp %438 : vector<2x128xf32>
    %cst_93 = arith.constant 1.000000e+00 : f32
    %440 = vector.broadcast %cst_93 : f32 to vector<2x128xf32>
    %441 = arith.addf %440, %439 : vector<2x128xf32>
    %442 = arith.divf %440, %441 : vector<2x128xf32>
    %443 = vector.extract_strided_slice %430 {offsets = [0, 256], sizes = [2, 128], strides = [1, 1]} : vector<2x512xf32> to vector<2x128xf32>
    %444 = math.tanh %443 : vector<2x128xf32>
    %445 = vector.extract_strided_slice %430 {offsets = [0, 384], sizes = [2, 128], strides = [1, 1]} : vector<2x512xf32> to vector<2x128xf32>
    %446 = arith.negf %445 : vector<2x128xf32>
    %447 = math.exp %446 : vector<2x128xf32>
    %cst_94 = arith.constant 1.000000e+00 : f32
    %448 = vector.broadcast %cst_94 : f32 to vector<2x128xf32>
    %449 = arith.addf %448, %447 : vector<2x128xf32>
    %450 = arith.divf %448, %449 : vector<2x128xf32>
    %451 = arith.mulf %442, %392 : vector<2x128xf32>
    %452 = arith.mulf %436, %444 : vector<2x128xf32>
    %453 = arith.addf %451, %452 : vector<2x128xf32>
    %454 = math.tanh %453 : vector<2x128xf32>
    %455 = arith.mulf %450, %454 : vector<2x128xf32>
    %456 = vector.extract_strided_slice %16 {offsets = [14, 0], sizes = [2, 512], strides = [1, 1]} : vector<22x512xf32> to vector<2x512xf32>
    %457 = arith.truncf %423 : vector<2x128xf32> to vector<2x128xbf16>
    %cst_95 = arith.constant dense<0.000000e+00> : vector<2x512xf32>
    %458 = tpu.matmul %457, %17, %cst_95 {dimension_numbers = #tpu.dot_dimension_numbers<[1], [0], [0], [1], [0, 0, 1, 1], [], []>} : vector<2x128xbf16>, vector<128x512xbf16>, vector<2x512xf32> -> vector<2x512xf32>
    %459 = arith.addf %456, %458 : vector<2x512xf32>
    %460 = vector.extract_strided_slice %459 {offsets = [0, 0], sizes = [2, 128], strides = [1, 1]} : vector<2x512xf32> to vector<2x128xf32>
    %461 = arith.negf %460 : vector<2x128xf32>
    %462 = math.exp %461 : vector<2x128xf32>
    %cst_96 = arith.constant 1.000000e+00 : f32
    %463 = vector.broadcast %cst_96 : f32 to vector<2x128xf32>
    %464 = arith.addf %463, %462 : vector<2x128xf32>
    %465 = arith.divf %463, %464 : vector<2x128xf32>
    %466 = vector.extract_strided_slice %459 {offsets = [0, 128], sizes = [2, 128], strides = [1, 1]} : vector<2x512xf32> to vector<2x128xf32>
    %467 = arith.negf %466 : vector<2x128xf32>
    %468 = math.exp %467 : vector<2x128xf32>
    %cst_97 = arith.constant 1.000000e+00 : f32
    %469 = vector.broadcast %cst_97 : f32 to vector<2x128xf32>
    %470 = arith.addf %469, %468 : vector<2x128xf32>
    %471 = arith.divf %469, %470 : vector<2x128xf32>
    %472 = vector.extract_strided_slice %459 {offsets = [0, 256], sizes = [2, 128], strides = [1, 1]} : vector<2x512xf32> to vector<2x128xf32>
    %473 = math.tanh %472 : vector<2x128xf32>
    %474 = vector.extract_strided_slice %459 {offsets = [0, 384], sizes = [2, 128], strides = [1, 1]} : vector<2x512xf32> to vector<2x128xf32>
    %475 = arith.negf %474 : vector<2x128xf32>
    %476 = math.exp %475 : vector<2x128xf32>
    %cst_98 = arith.constant 1.000000e+00 : f32
    %477 = vector.broadcast %cst_98 : f32 to vector<2x128xf32>
    %478 = arith.addf %477, %476 : vector<2x128xf32>
    %479 = arith.divf %477, %478 : vector<2x128xf32>
    %480 = arith.mulf %471, %421 : vector<2x128xf32>
    %481 = arith.mulf %465, %473 : vector<2x128xf32>
    %482 = arith.addf %480, %481 : vector<2x128xf32>
    %483 = math.tanh %482 : vector<2x128xf32>
    %484 = arith.mulf %479, %483 : vector<2x128xf32>
    %485 = arith.truncf %484 : vector<2x128xf32> to vector<2x128xbf16>
    %cst_99 = arith.constant dense<0.000000e+00> : vector<2x512xf32>
    %486 = tpu.matmul %485, %18, %cst_99 {dimension_numbers = #tpu.dot_dimension_numbers<[1], [0], [0], [1], [0, 0, 1, 1], [], []>} : vector<2x128xbf16>, vector<128x512xbf16>, vector<2x512xf32> -> vector<2x512xf32>
    %487 = arith.truncf %455 : vector<2x128xf32> to vector<2x128xbf16>
    %cst_100 = arith.constant dense<0.000000e+00> : vector<2x512xf32>
    %488 = tpu.matmul %487, %19, %cst_100 {dimension_numbers = #tpu.dot_dimension_numbers<[1], [0], [0], [1], [0, 0, 1, 1], [], []>} : vector<2x128xbf16>, vector<128x512xbf16>, vector<2x512xf32> -> vector<2x512xf32>
    %489 = arith.addf %486, %488 : vector<2x512xf32>
    %490 = vector.broadcast %20 : vector<1x512xf32> to vector<2x512xf32>
    %491 = arith.addf %489, %490 : vector<2x512xf32>
    %492 = vector.extract_strided_slice %491 {offsets = [0, 0], sizes = [2, 128], strides = [1, 1]} : vector<2x512xf32> to vector<2x128xf32>
    %493 = arith.negf %492 : vector<2x128xf32>
    %494 = math.exp %493 : vector<2x128xf32>
    %cst_101 = arith.constant 1.000000e+00 : f32
    %495 = vector.broadcast %cst_101 : f32 to vector<2x128xf32>
    %496 = arith.addf %495, %494 : vector<2x128xf32>
    %497 = arith.divf %495, %496 : vector<2x128xf32>
    %498 = vector.extract_strided_slice %491 {offsets = [0, 128], sizes = [2, 128], strides = [1, 1]} : vector<2x512xf32> to vector<2x128xf32>
    %499 = arith.negf %498 : vector<2x128xf32>
    %500 = math.exp %499 : vector<2x128xf32>
    %cst_102 = arith.constant 1.000000e+00 : f32
    %501 = vector.broadcast %cst_102 : f32 to vector<2x128xf32>
    %502 = arith.addf %501, %500 : vector<2x128xf32>
    %503 = arith.divf %501, %502 : vector<2x128xf32>
    %504 = vector.extract_strided_slice %491 {offsets = [0, 256], sizes = [2, 128], strides = [1, 1]} : vector<2x512xf32> to vector<2x128xf32>
    %505 = math.tanh %504 : vector<2x128xf32>
    %506 = vector.extract_strided_slice %491 {offsets = [0, 384], sizes = [2, 128], strides = [1, 1]} : vector<2x512xf32> to vector<2x128xf32>
    %507 = arith.negf %506 : vector<2x128xf32>
    %508 = math.exp %507 : vector<2x128xf32>
    %cst_103 = arith.constant 1.000000e+00 : f32
    %509 = vector.broadcast %cst_103 : f32 to vector<2x128xf32>
    %510 = arith.addf %509, %508 : vector<2x128xf32>
    %511 = arith.divf %509, %510 : vector<2x128xf32>
    %512 = arith.mulf %503, %453 : vector<2x128xf32>
    %513 = arith.mulf %497, %505 : vector<2x128xf32>
    %514 = arith.addf %512, %513 : vector<2x128xf32>
    %515 = math.tanh %514 : vector<2x128xf32>
    %516 = arith.mulf %511, %515 : vector<2x128xf32>
    %517 = vector.extract_strided_slice %16 {offsets = [16, 0], sizes = [2, 512], strides = [1, 1]} : vector<22x512xf32> to vector<2x512xf32>
    %518 = arith.truncf %484 : vector<2x128xf32> to vector<2x128xbf16>
    %cst_104 = arith.constant dense<0.000000e+00> : vector<2x512xf32>
    %519 = tpu.matmul %518, %17, %cst_104 {dimension_numbers = #tpu.dot_dimension_numbers<[1], [0], [0], [1], [0, 0, 1, 1], [], []>} : vector<2x128xbf16>, vector<128x512xbf16>, vector<2x512xf32> -> vector<2x512xf32>
    %520 = arith.addf %517, %519 : vector<2x512xf32>
    %521 = vector.extract_strided_slice %520 {offsets = [0, 0], sizes = [2, 128], strides = [1, 1]} : vector<2x512xf32> to vector<2x128xf32>
    %522 = arith.negf %521 : vector<2x128xf32>
    %523 = math.exp %522 : vector<2x128xf32>
    %cst_105 = arith.constant 1.000000e+00 : f32
    %524 = vector.broadcast %cst_105 : f32 to vector<2x128xf32>
    %525 = arith.addf %524, %523 : vector<2x128xf32>
    %526 = arith.divf %524, %525 : vector<2x128xf32>
    %527 = vector.extract_strided_slice %520 {offsets = [0, 128], sizes = [2, 128], strides = [1, 1]} : vector<2x512xf32> to vector<2x128xf32>
    %528 = arith.negf %527 : vector<2x128xf32>
    %529 = math.exp %528 : vector<2x128xf32>
    %cst_106 = arith.constant 1.000000e+00 : f32
    %530 = vector.broadcast %cst_106 : f32 to vector<2x128xf32>
    %531 = arith.addf %530, %529 : vector<2x128xf32>
    %532 = arith.divf %530, %531 : vector<2x128xf32>
    %533 = vector.extract_strided_slice %520 {offsets = [0, 256], sizes = [2, 128], strides = [1, 1]} : vector<2x512xf32> to vector<2x128xf32>
    %534 = math.tanh %533 : vector<2x128xf32>
    %535 = vector.extract_strided_slice %520 {offsets = [0, 384], sizes = [2, 128], strides = [1, 1]} : vector<2x512xf32> to vector<2x128xf32>
    %536 = arith.negf %535 : vector<2x128xf32>
    %537 = math.exp %536 : vector<2x128xf32>
    %cst_107 = arith.constant 1.000000e+00 : f32
    %538 = vector.broadcast %cst_107 : f32 to vector<2x128xf32>
    %539 = arith.addf %538, %537 : vector<2x128xf32>
    %540 = arith.divf %538, %539 : vector<2x128xf32>
    %541 = arith.mulf %532, %482 : vector<2x128xf32>
    %542 = arith.mulf %526, %534 : vector<2x128xf32>
    %543 = arith.addf %541, %542 : vector<2x128xf32>
    %544 = math.tanh %543 : vector<2x128xf32>
    %545 = arith.mulf %540, %544 : vector<2x128xf32>
    %546 = arith.truncf %545 : vector<2x128xf32> to vector<2x128xbf16>
    %cst_108 = arith.constant dense<0.000000e+00> : vector<2x512xf32>
    %547 = tpu.matmul %546, %18, %cst_108 {dimension_numbers = #tpu.dot_dimension_numbers<[1], [0], [0], [1], [0, 0, 1, 1], [], []>} : vector<2x128xbf16>, vector<128x512xbf16>, vector<2x512xf32> -> vector<2x512xf32>
    %548 = arith.truncf %516 : vector<2x128xf32> to vector<2x128xbf16>
    %cst_109 = arith.constant dense<0.000000e+00> : vector<2x512xf32>
    %549 = tpu.matmul %548, %19, %cst_109 {dimension_numbers = #tpu.dot_dimension_numbers<[1], [0], [0], [1], [0, 0, 1, 1], [], []>} : vector<2x128xbf16>, vector<128x512xbf16>, vector<2x512xf32> -> vector<2x512xf32>
    %550 = arith.addf %547, %549 : vector<2x512xf32>
    %551 = vector.broadcast %20 : vector<1x512xf32> to vector<2x512xf32>
    %552 = arith.addf %550, %551 : vector<2x512xf32>
    %553 = vector.extract_strided_slice %552 {offsets = [0, 0], sizes = [2, 128], strides = [1, 1]} : vector<2x512xf32> to vector<2x128xf32>
    %554 = arith.negf %553 : vector<2x128xf32>
    %555 = math.exp %554 : vector<2x128xf32>
    %cst_110 = arith.constant 1.000000e+00 : f32
    %556 = vector.broadcast %cst_110 : f32 to vector<2x128xf32>
    %557 = arith.addf %556, %555 : vector<2x128xf32>
    %558 = arith.divf %556, %557 : vector<2x128xf32>
    %559 = vector.extract_strided_slice %552 {offsets = [0, 128], sizes = [2, 128], strides = [1, 1]} : vector<2x512xf32> to vector<2x128xf32>
    %560 = arith.negf %559 : vector<2x128xf32>
    %561 = math.exp %560 : vector<2x128xf32>
    %cst_111 = arith.constant 1.000000e+00 : f32
    %562 = vector.broadcast %cst_111 : f32 to vector<2x128xf32>
    %563 = arith.addf %562, %561 : vector<2x128xf32>
    %564 = arith.divf %562, %563 : vector<2x128xf32>
    %565 = vector.extract_strided_slice %552 {offsets = [0, 256], sizes = [2, 128], strides = [1, 1]} : vector<2x512xf32> to vector<2x128xf32>
    %566 = math.tanh %565 : vector<2x128xf32>
    %567 = vector.extract_strided_slice %552 {offsets = [0, 384], sizes = [2, 128], strides = [1, 1]} : vector<2x512xf32> to vector<2x128xf32>
    %568 = arith.negf %567 : vector<2x128xf32>
    %569 = math.exp %568 : vector<2x128xf32>
    %cst_112 = arith.constant 1.000000e+00 : f32
    %570 = vector.broadcast %cst_112 : f32 to vector<2x128xf32>
    %571 = arith.addf %570, %569 : vector<2x128xf32>
    %572 = arith.divf %570, %571 : vector<2x128xf32>
    %573 = arith.mulf %564, %514 : vector<2x128xf32>
    %574 = arith.mulf %558, %566 : vector<2x128xf32>
    %575 = arith.addf %573, %574 : vector<2x128xf32>
    %576 = math.tanh %575 : vector<2x128xf32>
    %577 = arith.mulf %572, %576 : vector<2x128xf32>
    %578 = vector.extract_strided_slice %16 {offsets = [18, 0], sizes = [2, 512], strides = [1, 1]} : vector<22x512xf32> to vector<2x512xf32>
    %579 = arith.truncf %545 : vector<2x128xf32> to vector<2x128xbf16>
    %cst_113 = arith.constant dense<0.000000e+00> : vector<2x512xf32>
    %580 = tpu.matmul %579, %17, %cst_113 {dimension_numbers = #tpu.dot_dimension_numbers<[1], [0], [0], [1], [0, 0, 1, 1], [], []>} : vector<2x128xbf16>, vector<128x512xbf16>, vector<2x512xf32> -> vector<2x512xf32>
    %581 = arith.addf %578, %580 : vector<2x512xf32>
    %582 = vector.extract_strided_slice %581 {offsets = [0, 0], sizes = [2, 128], strides = [1, 1]} : vector<2x512xf32> to vector<2x128xf32>
    %583 = arith.negf %582 : vector<2x128xf32>
    %584 = math.exp %583 : vector<2x128xf32>
    %cst_114 = arith.constant 1.000000e+00 : f32
    %585 = vector.broadcast %cst_114 : f32 to vector<2x128xf32>
    %586 = arith.addf %585, %584 : vector<2x128xf32>
    %587 = arith.divf %585, %586 : vector<2x128xf32>
    %588 = vector.extract_strided_slice %581 {offsets = [0, 128], sizes = [2, 128], strides = [1, 1]} : vector<2x512xf32> to vector<2x128xf32>
    %589 = arith.negf %588 : vector<2x128xf32>
    %590 = math.exp %589 : vector<2x128xf32>
    %cst_115 = arith.constant 1.000000e+00 : f32
    %591 = vector.broadcast %cst_115 : f32 to vector<2x128xf32>
    %592 = arith.addf %591, %590 : vector<2x128xf32>
    %593 = arith.divf %591, %592 : vector<2x128xf32>
    %594 = vector.extract_strided_slice %581 {offsets = [0, 256], sizes = [2, 128], strides = [1, 1]} : vector<2x512xf32> to vector<2x128xf32>
    %595 = math.tanh %594 : vector<2x128xf32>
    %596 = vector.extract_strided_slice %581 {offsets = [0, 384], sizes = [2, 128], strides = [1, 1]} : vector<2x512xf32> to vector<2x128xf32>
    %597 = arith.negf %596 : vector<2x128xf32>
    %598 = math.exp %597 : vector<2x128xf32>
    %cst_116 = arith.constant 1.000000e+00 : f32
    %599 = vector.broadcast %cst_116 : f32 to vector<2x128xf32>
    %600 = arith.addf %599, %598 : vector<2x128xf32>
    %601 = arith.divf %599, %600 : vector<2x128xf32>
    %602 = arith.mulf %593, %543 : vector<2x128xf32>
    %603 = arith.mulf %587, %595 : vector<2x128xf32>
    %604 = arith.addf %602, %603 : vector<2x128xf32>
    %605 = math.tanh %604 : vector<2x128xf32>
    %606 = arith.mulf %601, %605 : vector<2x128xf32>
    %607 = arith.truncf %606 : vector<2x128xf32> to vector<2x128xbf16>
    %cst_117 = arith.constant dense<0.000000e+00> : vector<2x512xf32>
    %608 = tpu.matmul %607, %18, %cst_117 {dimension_numbers = #tpu.dot_dimension_numbers<[1], [0], [0], [1], [0, 0, 1, 1], [], []>} : vector<2x128xbf16>, vector<128x512xbf16>, vector<2x512xf32> -> vector<2x512xf32>
    %609 = arith.truncf %577 : vector<2x128xf32> to vector<2x128xbf16>
    %cst_118 = arith.constant dense<0.000000e+00> : vector<2x512xf32>
    %610 = tpu.matmul %609, %19, %cst_118 {dimension_numbers = #tpu.dot_dimension_numbers<[1], [0], [0], [1], [0, 0, 1, 1], [], []>} : vector<2x128xbf16>, vector<128x512xbf16>, vector<2x512xf32> -> vector<2x512xf32>
    %611 = arith.addf %608, %610 : vector<2x512xf32>
    %612 = vector.broadcast %20 : vector<1x512xf32> to vector<2x512xf32>
    %613 = arith.addf %611, %612 : vector<2x512xf32>
    %614 = vector.extract_strided_slice %613 {offsets = [0, 0], sizes = [2, 128], strides = [1, 1]} : vector<2x512xf32> to vector<2x128xf32>
    %615 = arith.negf %614 : vector<2x128xf32>
    %616 = math.exp %615 : vector<2x128xf32>
    %cst_119 = arith.constant 1.000000e+00 : f32
    %617 = vector.broadcast %cst_119 : f32 to vector<2x128xf32>
    %618 = arith.addf %617, %616 : vector<2x128xf32>
    %619 = arith.divf %617, %618 : vector<2x128xf32>
    %620 = vector.extract_strided_slice %613 {offsets = [0, 128], sizes = [2, 128], strides = [1, 1]} : vector<2x512xf32> to vector<2x128xf32>
    %621 = arith.negf %620 : vector<2x128xf32>
    %622 = math.exp %621 : vector<2x128xf32>
    %cst_120 = arith.constant 1.000000e+00 : f32
    %623 = vector.broadcast %cst_120 : f32 to vector<2x128xf32>
    %624 = arith.addf %623, %622 : vector<2x128xf32>
    %625 = arith.divf %623, %624 : vector<2x128xf32>
    %626 = vector.extract_strided_slice %613 {offsets = [0, 256], sizes = [2, 128], strides = [1, 1]} : vector<2x512xf32> to vector<2x128xf32>
    %627 = math.tanh %626 : vector<2x128xf32>
    %628 = vector.extract_strided_slice %613 {offsets = [0, 384], sizes = [2, 128], strides = [1, 1]} : vector<2x512xf32> to vector<2x128xf32>
    %629 = arith.negf %628 : vector<2x128xf32>
    %630 = math.exp %629 : vector<2x128xf32>
    %cst_121 = arith.constant 1.000000e+00 : f32
    %631 = vector.broadcast %cst_121 : f32 to vector<2x128xf32>
    %632 = arith.addf %631, %630 : vector<2x128xf32>
    %633 = arith.divf %631, %632 : vector<2x128xf32>
    %634 = arith.mulf %625, %575 : vector<2x128xf32>
    %635 = arith.mulf %619, %627 : vector<2x128xf32>
    %636 = arith.addf %634, %635 : vector<2x128xf32>
    %637 = math.tanh %636 : vector<2x128xf32>
    %638 = arith.mulf %633, %637 : vector<2x128xf32>
    %639 = vector.extract_strided_slice %16 {offsets = [20, 0], sizes = [2, 512], strides = [1, 1]} : vector<22x512xf32> to vector<2x512xf32>
    %640 = arith.truncf %606 : vector<2x128xf32> to vector<2x128xbf16>
    %cst_122 = arith.constant dense<0.000000e+00> : vector<2x512xf32>
    %641 = tpu.matmul %640, %17, %cst_122 {dimension_numbers = #tpu.dot_dimension_numbers<[1], [0], [0], [1], [0, 0, 1, 1], [], []>} : vector<2x128xbf16>, vector<128x512xbf16>, vector<2x512xf32> -> vector<2x512xf32>
    %642 = arith.addf %639, %641 : vector<2x512xf32>
    %643 = vector.extract_strided_slice %642 {offsets = [0, 0], sizes = [2, 128], strides = [1, 1]} : vector<2x512xf32> to vector<2x128xf32>
    %644 = arith.negf %643 : vector<2x128xf32>
    %645 = math.exp %644 : vector<2x128xf32>
    %cst_123 = arith.constant 1.000000e+00 : f32
    %646 = vector.broadcast %cst_123 : f32 to vector<2x128xf32>
    %647 = arith.addf %646, %645 : vector<2x128xf32>
    %648 = arith.divf %646, %647 : vector<2x128xf32>
    %649 = vector.extract_strided_slice %642 {offsets = [0, 128], sizes = [2, 128], strides = [1, 1]} : vector<2x512xf32> to vector<2x128xf32>
    %650 = arith.negf %649 : vector<2x128xf32>
    %651 = math.exp %650 : vector<2x128xf32>
    %cst_124 = arith.constant 1.000000e+00 : f32
    %652 = vector.broadcast %cst_124 : f32 to vector<2x128xf32>
    %653 = arith.addf %652, %651 : vector<2x128xf32>
    %654 = arith.divf %652, %653 : vector<2x128xf32>
    %655 = vector.extract_strided_slice %642 {offsets = [0, 256], sizes = [2, 128], strides = [1, 1]} : vector<2x512xf32> to vector<2x128xf32>
    %656 = math.tanh %655 : vector<2x128xf32>
    %657 = vector.extract_strided_slice %642 {offsets = [0, 384], sizes = [2, 128], strides = [1, 1]} : vector<2x512xf32> to vector<2x128xf32>
    %658 = arith.negf %657 : vector<2x128xf32>
    %659 = math.exp %658 : vector<2x128xf32>
    %cst_125 = arith.constant 1.000000e+00 : f32
    %660 = vector.broadcast %cst_125 : f32 to vector<2x128xf32>
    %661 = arith.addf %660, %659 : vector<2x128xf32>
    %662 = arith.divf %660, %661 : vector<2x128xf32>
    %663 = arith.mulf %654, %604 : vector<2x128xf32>
    %664 = arith.mulf %648, %656 : vector<2x128xf32>
    %665 = arith.addf %663, %664 : vector<2x128xf32>
    %666 = math.tanh %665 : vector<2x128xf32>
    %667 = arith.mulf %662, %666 : vector<2x128xf32>
    %668 = arith.truncf %667 : vector<2x128xf32> to vector<2x128xbf16>
    %cst_126 = arith.constant dense<0.000000e+00> : vector<2x512xf32>
    %669 = tpu.matmul %668, %18, %cst_126 {dimension_numbers = #tpu.dot_dimension_numbers<[1], [0], [0], [1], [0, 0, 1, 1], [], []>} : vector<2x128xbf16>, vector<128x512xbf16>, vector<2x512xf32> -> vector<2x512xf32>
    %670 = arith.truncf %638 : vector<2x128xf32> to vector<2x128xbf16>
    %cst_127 = arith.constant dense<0.000000e+00> : vector<2x512xf32>
    %671 = tpu.matmul %670, %19, %cst_127 {dimension_numbers = #tpu.dot_dimension_numbers<[1], [0], [0], [1], [0, 0, 1, 1], [], []>} : vector<2x128xbf16>, vector<128x512xbf16>, vector<2x512xf32> -> vector<2x512xf32>
    %672 = arith.addf %669, %671 : vector<2x512xf32>
    %673 = vector.broadcast %20 : vector<1x512xf32> to vector<2x512xf32>
    %674 = arith.addf %672, %673 : vector<2x512xf32>
    %675 = vector.extract_strided_slice %674 {offsets = [0, 0], sizes = [2, 128], strides = [1, 1]} : vector<2x512xf32> to vector<2x128xf32>
    %676 = arith.negf %675 : vector<2x128xf32>
    %677 = math.exp %676 : vector<2x128xf32>
    %cst_128 = arith.constant 1.000000e+00 : f32
    %678 = vector.broadcast %cst_128 : f32 to vector<2x128xf32>
    %679 = arith.addf %678, %677 : vector<2x128xf32>
    %680 = arith.divf %678, %679 : vector<2x128xf32>
    %681 = vector.extract_strided_slice %674 {offsets = [0, 128], sizes = [2, 128], strides = [1, 1]} : vector<2x512xf32> to vector<2x128xf32>
    %682 = arith.negf %681 : vector<2x128xf32>
    %683 = math.exp %682 : vector<2x128xf32>
    %cst_129 = arith.constant 1.000000e+00 : f32
    %684 = vector.broadcast %cst_129 : f32 to vector<2x128xf32>
    %685 = arith.addf %684, %683 : vector<2x128xf32>
    %686 = arith.divf %684, %685 : vector<2x128xf32>
    %687 = vector.extract_strided_slice %674 {offsets = [0, 256], sizes = [2, 128], strides = [1, 1]} : vector<2x512xf32> to vector<2x128xf32>
    %688 = math.tanh %687 : vector<2x128xf32>
    %689 = vector.extract_strided_slice %674 {offsets = [0, 384], sizes = [2, 128], strides = [1, 1]} : vector<2x512xf32> to vector<2x128xf32>
    %690 = arith.negf %689 : vector<2x128xf32>
    %691 = math.exp %690 : vector<2x128xf32>
    %cst_130 = arith.constant 1.000000e+00 : f32
    %692 = vector.broadcast %cst_130 : f32 to vector<2x128xf32>
    %693 = arith.addf %692, %691 : vector<2x128xf32>
    %694 = arith.divf %692, %693 : vector<2x128xf32>
    %695 = arith.mulf %686, %636 : vector<2x128xf32>
    %696 = arith.mulf %680, %688 : vector<2x128xf32>
    %697 = arith.addf %695, %696 : vector<2x128xf32>
    %698 = math.tanh %697 : vector<2x128xf32>
    %699 = arith.mulf %694, %698 : vector<2x128xf32>
    %c0_131 = arith.constant 0 : index
    %c0_132 = arith.constant 0 : index
    %c0_133 = arith.constant 0 : index
    %700 = vector.load %arg30[%c0_131, %c0_132, %c0_133] : memref<2x2x128xf32, #tpu.memory_space<vmem>>, vector<1x2x128xf32>
    %701 = vector.shape_cast %700 : vector<1x2x128xf32> to vector<2x128xf32>
    %702 = vector.shape_cast %667 : vector<2x128xf32> to vector<1x2x128xf32>
    tpu.vector_store %arg30[%c0_131, %c0_132, %c0_133], %702 {strides = array<i32>} : memref<2x2x128xf32, #tpu.memory_space<vmem>>, vector<1x2x128xf32>,
    %c1_134 = arith.constant 1 : index
    %c0_135 = arith.constant 0 : index
    %c0_136 = arith.constant 0 : index
    %703 = vector.load %arg30[%c1_134, %c0_135, %c0_136] : memref<2x2x128xf32, #tpu.memory_space<vmem>>, vector<1x2x128xf32>
    %704 = vector.shape_cast %703 : vector<1x2x128xf32> to vector<2x128xf32>
    %705 = vector.shape_cast %699 : vector<2x128xf32> to vector<1x2x128xf32>
    tpu.vector_store %arg30[%c1_134, %c0_135, %c0_136], %705 {strides = array<i32>} : memref<2x2x128xf32, #tpu.memory_space<vmem>>, vector<1x2x128xf32>,
    %c0_137 = arith.constant 0 : index
    %c0_138 = arith.constant 0 : index
    %c0_139 = arith.constant 0 : index
    %706 = vector.load %arg31[%c0_137, %c0_138, %c0_139] : memref<2x2x128xf32, #tpu.memory_space<vmem>>, vector<1x2x128xf32>
    %707 = vector.shape_cast %706 : vector<1x2x128xf32> to vector<2x128xf32>
    %708 = vector.shape_cast %665 : vector<2x128xf32> to vector<1x2x128xf32>
    tpu.vector_store %arg31[%c0_137, %c0_138, %c0_139], %708 {strides = array<i32>} : memref<2x2x128xf32, #tpu.memory_space<vmem>>, vector<1x2x128xf32>,
    %c1_140 = arith.constant 1 : index
    %c0_141 = arith.constant 0 : index
    %c0_142 = arith.constant 0 : index
    %709 = vector.load %arg31[%c1_140, %c0_141, %c0_142] : memref<2x2x128xf32, #tpu.memory_space<vmem>>, vector<1x2x128xf32>
    %710 = vector.shape_cast %709 : vector<1x2x128xf32> to vector<2x128xf32>
    %711 = vector.shape_cast %697 : vector<2x128xf32> to vector<1x2x128xf32>
    tpu.vector_store %arg31[%c1_140, %c0_141, %c0_142], %711 {strides = array<i32>} : memref<2x2x128xf32, #tpu.memory_space<vmem>>, vector<1x2x128xf32>,
    tpu.wait_dma2 semaphore(%arg35 : memref<!tpu.dma_semaphore, #tpu.memory_space<semaphore_mem>>) src(%arg7 : memref<4096x128xbf16, #tpu.memory_space<any>>) dst(%arg34 : memref<4096x128xbf16, #tpu.memory_space<vmem>>)
    %c0_143 = arith.constant 0 : index
    %c0_144 = arith.constant 0 : index
    %712 = vector.load %arg0[%c0_143, %c0_144] : memref<2x4096xf32, #tpu.memory_space<vmem>>, vector<2x4096xf32>
    %c0_145 = arith.constant 0 : index
    %c0_146 = arith.constant 0 : index
    %713 = vector.load %arg34[%c0_145, %c0_146] : memref<4096x128xbf16, #tpu.memory_space<vmem>>, vector<4096x128xbf16>
    %714 = arith.truncf %712 : vector<2x4096xf32> to vector<2x4096xbf16>
    %cst_147 = arith.constant dense<0.000000e+00> : vector<2x128xf32>
    %715 = tpu.matmul %714, %713, %cst_147 {dimension_numbers = #tpu.dot_dimension_numbers<[1], [0], [0], [1], [0, 0, 1, 1], [], []>} : vector<2x4096xbf16>, vector<4096x128xbf16>, vector<2x128xf32> -> vector<2x128xf32>
    %c0_148 = arith.constant 0 : index
    %c0_149 = arith.constant 0 : index
    %716 = vector.load %arg8[%c0_148, %c0_149] : memref<1x128xf32, #tpu.memory_space<vmem>>, vector<1x128xf32>
    %717 = vector.broadcast %716 : vector<1x128xf32> to vector<2x128xf32>
    %718 = arith.addf %715, %717 : vector<2x128xf32>
    %cst_150 = arith.constant 1.000000e-01 : f32
    %719 = vector.broadcast %cst_150 : f32 to vector<2x128xf32>
    %720 = arith.mulf %719, %718 : vector<2x128xf32>
    %721 = arith.maximumf %718, %720 : vector<2x128xf32>
    %c0_151 = arith.constant 0 : index
    %c0_152 = arith.constant 0 : index
    %722 = vector.load %arg17[%c0_151, %c0_152] : memref<128x512xbf16, #tpu.memory_space<vmem>>, vector<128x512xbf16>
    %723 = arith.truncf %721 : vector<2x128xf32> to vector<2x128xbf16>
    %cst_153 = arith.constant dense<0.000000e+00> : vector<2x512xf32>
    %724 = tpu.matmul %723, %722, %cst_153 {dimension_numbers = #tpu.dot_dimension_numbers<[1], [0], [0], [1], [0, 0, 1, 1], [], []>} : vector<2x128xbf16>, vector<128x512xbf16>, vector<2x512xf32> -> vector<2x512xf32>
    %c0_154 = arith.constant 0 : index
    %c0_155 = arith.constant 0 : index
    %725 = vector.load %arg18[%c0_154, %c0_155] : memref<128x512xbf16, #tpu.memory_space<vmem>>, vector<128x512xbf16>
    %726 = arith.truncf %699 : vector<2x128xf32> to vector<2x128xbf16>
    %cst_156 = arith.constant dense<0.000000e+00> : vector<2x512xf32>
    %727 = tpu.matmul %726, %725, %cst_156 {dimension_numbers = #tpu.dot_dimension_numbers<[1], [0], [0], [1], [0, 0, 1, 1], [], []>} : vector<2x128xbf16>, vector<128x512xbf16>, vector<2x512xf32> -> vector<2x512xf32>
    %728 = arith.addf %724, %727 : vector<2x512xf32>
    %c0_157 = arith.constant 0 : index
    %c0_158 = arith.constant 0 : index
    %729 = vector.load %arg19[%c0_157, %c0_158] : memref<128x512xbf16, #tpu.memory_space<vmem>>, vector<128x512xbf16>
    %730 = arith.truncf %9 : vector<2x128xf32> to vector<2x128xbf16>
    %cst_159 = arith.constant dense<0.000000e+00> : vector<2x512xf32>
    %731 = tpu.matmul %730, %729, %cst_159 {dimension_numbers = #tpu.dot_dimension_numbers<[1], [0], [0], [1], [0, 0, 1, 1], [], []>} : vector<2x128xbf16>, vector<128x512xbf16>, vector<2x512xf32> -> vector<2x512xf32>
    %732 = arith.addf %728, %731 : vector<2x512xf32>
    %c0_160 = arith.constant 0 : index
    %c0_161 = arith.constant 0 : index
    %c0_162 = arith.constant 0 : index
    %733 = vector.load %arg5[%c0_160, %c0_161, %c0_162] : memref<2x2x128xf32, #tpu.memory_space<vmem>>, vector<1x2x128xf32>
    %734 = vector.shape_cast %733 : vector<1x2x128xf32> to vector<2x128xf32>
    %c0_163 = arith.constant 0 : index
    %c0_164 = arith.constant 0 : index
    %735 = vector.load %arg20[%c0_163, %c0_164] : memref<128x512xbf16, #tpu.memory_space<vmem>>, vector<128x512xbf16>
    %736 = arith.truncf %734 : vector<2x128xf32> to vector<2x128xbf16>
    %cst_165 = arith.constant dense<0.000000e+00> : vector<2x512xf32>
    %737 = tpu.matmul %736, %735, %cst_165 {dimension_numbers = #tpu.dot_dimension_numbers<[1], [0], [0], [1], [0, 0, 1, 1], [], []>} : vector<2x128xbf16>, vector<128x512xbf16>, vector<2x512xf32> -> vector<2x512xf32>
    %738 = arith.addf %732, %737 : vector<2x512xf32>
    %c0_166 = arith.constant 0 : index
    %c0_167 = arith.constant 0 : index
    %739 = vector.load %arg21[%c0_166, %c0_167] : memref<1x512xf32, #tpu.memory_space<vmem>>, vector<1x512xf32>
    %740 = vector.broadcast %739 : vector<1x512xf32> to vector<2x512xf32>
    %741 = arith.addf %738, %740 : vector<2x512xf32>
    %c0_168 = arith.constant 0 : index
    %c0_169 = arith.constant 0 : index
    %c0_170 = arith.constant 0 : index
    %742 = vector.load %arg6[%c0_168, %c0_169, %c0_170] : memref<2x2x128xf32, #tpu.memory_space<vmem>>, vector<1x2x128xf32>
    %743 = vector.shape_cast %742 : vector<1x2x128xf32> to vector<2x128xf32>
    %744 = vector.extract_strided_slice %741 {offsets = [0, 0], sizes = [2, 128], strides = [1, 1]} : vector<2x512xf32> to vector<2x128xf32>
    %745 = arith.negf %744 : vector<2x128xf32>
    %746 = math.exp %745 : vector<2x128xf32>
    %cst_171 = arith.constant 1.000000e+00 : f32
    %747 = vector.broadcast %cst_171 : f32 to vector<2x128xf32>
    %748 = arith.addf %747, %746 : vector<2x128xf32>
    %749 = arith.divf %747, %748 : vector<2x128xf32>
    %750 = vector.extract_strided_slice %741 {offsets = [0, 128], sizes = [2, 128], strides = [1, 1]} : vector<2x512xf32> to vector<2x128xf32>
    %751 = arith.negf %750 : vector<2x128xf32>
    %752 = math.exp %751 : vector<2x128xf32>
    %cst_172 = arith.constant 1.000000e+00 : f32
    %753 = vector.broadcast %cst_172 : f32 to vector<2x128xf32>
    %754 = arith.addf %753, %752 : vector<2x128xf32>
    %755 = arith.divf %753, %754 : vector<2x128xf32>
    %756 = vector.extract_strided_slice %741 {offsets = [0, 256], sizes = [2, 128], strides = [1, 1]} : vector<2x512xf32> to vector<2x128xf32>
    %757 = math.tanh %756 : vector<2x128xf32>
    %758 = vector.extract_strided_slice %741 {offsets = [0, 384], sizes = [2, 128], strides = [1, 1]} : vector<2x512xf32> to vector<2x128xf32>
    %759 = arith.negf %758 : vector<2x128xf32>
    %760 = math.exp %759 : vector<2x128xf32>
    %cst_173 = arith.constant 1.000000e+00 : f32
    %761 = vector.broadcast %cst_173 : f32 to vector<2x128xf32>
    %762 = arith.addf %761, %760 : vector<2x128xf32>
    %763 = arith.divf %761, %762 : vector<2x128xf32>
    %764 = arith.mulf %755, %743 : vector<2x128xf32>
    %765 = arith.mulf %749, %757 : vector<2x128xf32>
    %766 = arith.addf %764, %765 : vector<2x128xf32>
    %767 = math.tanh %766 : vector<2x128xf32>
    %768 = arith.mulf %763, %767 : vector<2x128xf32>
    %c0_174 = arith.constant 0 : index
    %c0_175 = arith.constant 0 : index
    %769 = vector.load %arg22[%c0_174, %c0_175] : memref<128x512xbf16, #tpu.memory_space<vmem>>, vector<128x512xbf16>
    %770 = arith.truncf %768 : vector<2x128xf32> to vector<2x128xbf16>
    %cst_176 = arith.constant dense<0.000000e+00> : vector<2x512xf32>
    %771 = tpu.matmul %770, %769, %cst_176 {dimension_numbers = #tpu.dot_dimension_numbers<[1], [0], [0], [1], [0, 0, 1, 1], [], []>} : vector<2x128xbf16>, vector<128x512xbf16>, vector<2x512xf32> -> vector<2x512xf32>
    %c1_177 = arith.constant 1 : index
    %c0_178 = arith.constant 0 : index
    %c0_179 = arith.constant 0 : index
    %772 = vector.load %arg5[%c1_177, %c0_178, %c0_179] : memref<2x2x128xf32, #tpu.memory_space<vmem>>, vector<1x2x128xf32>
    %773 = vector.shape_cast %772 : vector<1x2x128xf32> to vector<2x128xf32>
    %c0_180 = arith.constant 0 : index
    %c0_181 = arith.constant 0 : index
    %774 = vector.load %arg23[%c0_180, %c0_181] : memref<128x512xbf16, #tpu.memory_space<vmem>>, vector<128x512xbf16>
    %775 = arith.truncf %773 : vector<2x128xf32> to vector<2x128xbf16>
    %cst_182 = arith.constant dense<0.000000e+00> : vector<2x512xf32>
    %776 = tpu.matmul %775, %774, %cst_182 {dimension_numbers = #tpu.dot_dimension_numbers<[1], [0], [0], [1], [0, 0, 1, 1], [], []>} : vector<2x128xbf16>, vector<128x512xbf16>, vector<2x512xf32> -> vector<2x512xf32>
    %777 = arith.addf %771, %776 : vector<2x512xf32>
    %c0_183 = arith.constant 0 : index
    %c0_184 = arith.constant 0 : index
    %778 = vector.load %arg24[%c0_183, %c0_184] : memref<1x512xf32, #tpu.memory_space<vmem>>, vector<1x512xf32>
    %779 = vector.broadcast %778 : vector<1x512xf32> to vector<2x512xf32>
    %780 = arith.addf %777, %779 : vector<2x512xf32>
    %c1_185 = arith.constant 1 : index
    %c0_186 = arith.constant 0 : index
    %c0_187 = arith.constant 0 : index
    %781 = vector.load %arg6[%c1_185, %c0_186, %c0_187] : memref<2x2x128xf32, #tpu.memory_space<vmem>>, vector<1x2x128xf32>
    %782 = vector.shape_cast %781 : vector<1x2x128xf32> to vector<2x128xf32>
    %783 = vector.extract_strided_slice %780 {offsets = [0, 0], sizes = [2, 128], strides = [1, 1]} : vector<2x512xf32> to vector<2x128xf32>
    %784 = arith.negf %783 : vector<2x128xf32>
    %785 = math.exp %784 : vector<2x128xf32>
    %cst_188 = arith.constant 1.000000e+00 : f32
    %786 = vector.broadcast %cst_188 : f32 to vector<2x128xf32>
    %787 = arith.addf %786, %785 : vector<2x128xf32>
    %788 = arith.divf %786, %787 : vector<2x128xf32>
    %789 = vector.extract_strided_slice %780 {offsets = [0, 128], sizes = [2, 128], strides = [1, 1]} : vector<2x512xf32> to vector<2x128xf32>
    %790 = arith.negf %789 : vector<2x128xf32>
    %791 = math.exp %790 : vector<2x128xf32>
    %cst_189 = arith.constant 1.000000e+00 : f32
    %792 = vector.broadcast %cst_189 : f32 to vector<2x128xf32>
    %793 = arith.addf %792, %791 : vector<2x128xf32>
    %794 = arith.divf %792, %793 : vector<2x128xf32>
    %795 = vector.extract_strided_slice %780 {offsets = [0, 256], sizes = [2, 128], strides = [1, 1]} : vector<2x512xf32> to vector<2x128xf32>
    %796 = math.tanh %795 : vector<2x128xf32>
    %797 = vector.extract_strided_slice %780 {offsets = [0, 384], sizes = [2, 128], strides = [1, 1]} : vector<2x512xf32> to vector<2x128xf32>
    %798 = arith.negf %797 : vector<2x128xf32>
    %799 = math.exp %798 : vector<2x128xf32>
    %cst_190 = arith.constant 1.000000e+00 : f32
    %800 = vector.broadcast %cst_190 : f32 to vector<2x128xf32>
    %801 = arith.addf %800, %799 : vector<2x128xf32>
    %802 = arith.divf %800, %801 : vector<2x128xf32>
    %803 = arith.mulf %794, %782 : vector<2x128xf32>
    %804 = arith.mulf %788, %796 : vector<2x128xf32>
    %805 = arith.addf %803, %804 : vector<2x128xf32>
    %806 = math.tanh %805 : vector<2x128xf32>
    %807 = arith.mulf %802, %806 : vector<2x128xf32>
    %c0_191 = arith.constant 0 : index
    %c0_192 = arith.constant 0 : index
    %c0_193 = arith.constant 0 : index
    %808 = vector.load %arg32[%c0_191, %c0_192, %c0_193] : memref<2x2x128xf32, #tpu.memory_space<vmem>>, vector<1x2x128xf32>
    %809 = vector.shape_cast %808 : vector<1x2x128xf32> to vector<2x128xf32>
    %810 = vector.shape_cast %768 : vector<2x128xf32> to vector<1x2x128xf32>
    tpu.vector_store %arg32[%c0_191, %c0_192, %c0_193], %810 {strides = array<i32>} : memref<2x2x128xf32, #tpu.memory_space<vmem>>, vector<1x2x128xf32>,
    %c1_194 = arith.constant 1 : index
    %c0_195 = arith.constant 0 : index
    %c0_196 = arith.constant 0 : index
    %811 = vector.load %arg32[%c1_194, %c0_195, %c0_196] : memref<2x2x128xf32, #tpu.memory_space<vmem>>, vector<1x2x128xf32>
    %812 = vector.shape_cast %811 : vector<1x2x128xf32> to vector<2x128xf32>
    %813 = vector.shape_cast %807 : vector<2x128xf32> to vector<1x2x128xf32>
    tpu.vector_store %arg32[%c1_194, %c0_195, %c0_196], %813 {strides = array<i32>} : memref<2x2x128xf32, #tpu.memory_space<vmem>>, vector<1x2x128xf32>,
    %c0_197 = arith.constant 0 : index
    %c0_198 = arith.constant 0 : index
    %c0_199 = arith.constant 0 : index
    %814 = vector.load %arg33[%c0_197, %c0_198, %c0_199] : memref<2x2x128xf32, #tpu.memory_space<vmem>>, vector<1x2x128xf32>
    %815 = vector.shape_cast %814 : vector<1x2x128xf32> to vector<2x128xf32>
    %816 = vector.shape_cast %766 : vector<2x128xf32> to vector<1x2x128xf32>
    tpu.vector_store %arg33[%c0_197, %c0_198, %c0_199], %816 {strides = array<i32>} : memref<2x2x128xf32, #tpu.memory_space<vmem>>, vector<1x2x128xf32>,
    %c1_200 = arith.constant 1 : index
    %c0_201 = arith.constant 0 : index
    %c0_202 = arith.constant 0 : index
    %817 = vector.load %arg33[%c1_200, %c0_201, %c0_202] : memref<2x2x128xf32, #tpu.memory_space<vmem>>, vector<1x2x128xf32>
    %818 = vector.shape_cast %817 : vector<1x2x128xf32> to vector<2x128xf32>
    %819 = vector.shape_cast %805 : vector<2x128xf32> to vector<1x2x128xf32>
    tpu.vector_store %arg33[%c1_200, %c0_201, %c0_202], %819 {strides = array<i32>} : memref<2x2x128xf32, #tpu.memory_space<vmem>>, vector<1x2x128xf32>,
    %c0_203 = arith.constant 0 : index
    %c0_204 = arith.constant 0 : index
    %820 = vector.load %arg25[%c0_203, %c0_204] : memref<128x128xbf16, #tpu.memory_space<vmem>>, vector<128x128xbf16>
    %821 = arith.truncf %807 : vector<2x128xf32> to vector<2x128xbf16>
    %cst_205 = arith.constant dense<0.000000e+00> : vector<2x128xf32>
    %822 = tpu.matmul %821, %820, %cst_205 {dimension_numbers = #tpu.dot_dimension_numbers<[1], [0], [0], [1], [0, 0, 1, 1], [], []>} : vector<2x128xbf16>, vector<128x128xbf16>, vector<2x128xf32> -> vector<2x128xf32>
    %c0_206 = arith.constant 0 : index
    %c0_207 = arith.constant 0 : index
    %823 = vector.load %arg26[%c0_206, %c0_207] : memref<1x128xf32, #tpu.memory_space<vmem>>, vector<1x128xf32>
    %824 = vector.broadcast %823 : vector<1x128xf32> to vector<2x128xf32>
    %825 = arith.addf %822, %824 : vector<2x128xf32>
    %cst_208 = arith.constant 1.000000e-01 : f32
    %826 = vector.broadcast %cst_208 : f32 to vector<2x128xf32>
    %827 = arith.mulf %826, %825 : vector<2x128xf32>
    %828 = arith.maximumf %825, %827 : vector<2x128xf32>
    %c0_209 = arith.constant 0 : index
    %c0_210 = arith.constant 0 : index
    %829 = vector.load %arg27[%c0_209, %c0_210] : memref<128x6xbf16, #tpu.memory_space<vmem>>, vector<128x6xbf16>
    %830 = arith.truncf %828 : vector<2x128xf32> to vector<2x128xbf16>
    %cst_211 = arith.constant dense<0.000000e+00> : vector<2x6xf32>
    %831 = tpu.matmul %830, %829, %cst_211 {dimension_numbers = #tpu.dot_dimension_numbers<[1], [0], [0], [1], [0, 0, 1, 1], [], []>} : vector<2x128xbf16>, vector<128x6xbf16>, vector<2x6xf32> -> vector<2x6xf32>
    %c0_212 = arith.constant 0 : index
    %c0_213 = arith.constant 0 : index
    %832 = vector.load %arg28[%c0_212, %c0_213] : memref<1x6xf32, #tpu.memory_space<vmem>>, vector<1x6xf32>
    %833 = vector.broadcast %832 : vector<1x6xf32> to vector<2x6xf32>
    %834 = arith.addf %831, %833 : vector<2x6xf32>
    %cst_214 = arith.constant 0.00999999977 : f32
    %835 = vector.broadcast %cst_214 : f32 to vector<2x6xf32>
    %836 = arith.mulf %835, %834 : vector<2x6xf32>
    %c0_215 = arith.constant 0 : index
    %c0_216 = arith.constant 0 : index
    %837 = vector.load %arg29[%c0_215, %c0_216] : memref<2x6xf32, #tpu.memory_space<vmem>>, vector<2x6xf32>
    tpu.vector_store %arg29[%c0_215, %c0_216], %836 {strides = array<i32>} : memref<2x6xf32, #tpu.memory_space<vmem>>, vector<2x6xf32>,
    return
  }
}

</mosaic_0001>

<bundles_post_ra>
// kernel: tile.9
= control target key start
LH: loop header
LB: loop body
LE: loop exit
PB: predicated region body
PF: predicated region fallthrough
CT: control target
= control target key end

     0   :  { %s29_s10 = smov 3  ;;  %s10_s11 = smov 3  ;;  %vm12_vm0 = vcmask 48128   ;;  %vm19_vm1 = vcmask 195728   ;;  %vm26_vm2 = vcmask 146528   ;;  %vm33_vm3 = vcmask 97328   ;;  %s67_s0 = inlined_call_operand.vmem [shape: f32[2,4,6], index: 0, kind: input, shape index: {}]   ;;  %s68_s1 = inlined_call_operand.vmem [shape: f32[2,24], index: 1, kind: output, shape index: {}]  }
   0x1   :  { %v41_v0 = vld [vmem:[%s67_s0 + $0x4] sm:$0xf]  ;;  %v8_v1 = vld [vmem:[%s67_s0] sm:$0xf]  ;;  %s15_s0 = smov 3  ;;  %s22_s12 = smov 3 }
   0x2   :  { %7 = vst [vmem:[#allocation1 + $0x8] sm:$0xf] %v41_v0  ;;  %9 = vst [vmem:[#allocation1] sm:$0xf] %v8_v1  ;;  %s45_s13 = smov 18   ;;  %s46_s14 = smov 6  }
   0x3   :  { %s47_s15 = smov 12  }
   0x9   :  { %v16_v2 = vld [vmem:[#allocation1 + $0x3] ss:$8 sm:%s15_s0]   ;;  %v30_v3 = vld [vmem:[#allocation1 + $0x1] ss:$8 sm:%s29_s10]   ;;  %v11_v4 = vld [vmem:[#allocation1] ss:$8 sm:%s10_s11]  }
   0xa   :  { %17 = vrot.lane.b32.xlu0 %v16_v2, %s45_s13  ;;  %31 = vrot.lane.b32.xlu1 %v30_v3, %s46_s14  ;;  %v23_v5 = vld [vmem:[#allocation1 + $0x2] ss:$8 sm:%s22_s12]   ;;  %13 = vst.msk [vmem:[#allocation0] sm:$0x3] %vm12_vm0, %v11_v4  }
   0xe   :  { %24 = vrot.lane.b32.xlu0 %v23_v5, %s47_s15 }
  0x7c   :  { %v18_v6 = vpop.permute.xlu0 %17   ;;  %v32_v7 = vpop.permute.xlu1 %31  }
  0x7d   :  { %20 = vst.msk [vmem:[#allocation0] sm:$0x3] %vm19_vm1, %v18_v6  }
  0x80   :  { %v25_v8 = vpop.permute.xlu0 %24  }
  0x81   :  { %27 = vst.msk [vmem:[#allocation0] sm:$0x3] %vm26_vm2, %v25_v8  }
  0x82   :  { %34 = vst.msk [vmem:[#allocation0] sm:$0x3] %vm33_vm3, %v32_v7  }
  0x89   :  { %v38_v9 = vld [vmem:[#allocation0] sm:$0x3] }
  0x8a   :  { %40 = vst [vmem:[%s68_s1] sm:$0x3] %v38_v9 }

// kernel: vinet_forward.1
= control target key start
LH: loop header
LB: loop body
LE: loop exit
PB: predicated region body
PF: predicated region fallthrough
CT: control target
= control target key end

     0   :  { %s10022_s6 = smov 1   ;;  %s10023_s10 = smov 2   ;;  %s13165_s0 = inlined_call_operand.smem [shape: u32[34], index: -1, kind: input, shape index: {}] }
   0x1   :  { %s10081_s5 = sld [smem:[%s13165_s0]]   ;;  %s10024_s14 = smov 3  }
   0x2   :  { %s10086_s9 = sld [smem:[%s13165_s0 + %s10022_s6]]   ;;  %s10025_s18 = smov 4  }
   0x3   :  { %s10091_s13 = sld [smem:[%s13165_s0 + %s10023_s10]]   ;;  %s10026_s22 = smov 5  }
   0x4   :  { %s10096_s17 = sld [smem:[%s13165_s0 + %s10024_s14]]   ;;  %s10027_s26 = smov 6  }
   0x5   :  { %s10101_s21 = sld [smem:[%s13165_s0 + %s10025_s18]]   ;;  %s10028_s30 = smov 7  }
   0x6   :  { %s10106_s25 = sld [smem:[%s13165_s0 + %s10026_s22]]   ;;  %s10029_s4 = smov 8  }
   0x7   :  { %13624 = sst [smem:[#allocation30_spill]] %s10081_s5  ;;  %s10030_s10 = smov 9  }
   0x8   :  { %s10111_s29 = sld [smem:[%s13165_s0 + %s10027_s26]]   ;;  %s10031_s15 = smov 10  }
   0x9   :  { %s10116_s3 = sld [smem:[%s13165_s0 + %s10028_s30]]   ;;  %s10032_s20 = smov 11  }
   0xa   :  { %s10121_s8 = sld [smem:[%s13165_s0 + %s10029_s4]]   ;;  %s10033_s26 = smov 12  }
   0xb   :  { %13625 = sst [smem:[#allocation31_spill]] %s10101_s21  ;;  %s10034_s1 = smov 13  }
   0xc   :  { %13626 = sst [smem:[#allocation32_spill]] %s10106_s25  ;;  %s10035_s7 = smov 14  }
   0xd   :  { %s10126_s14 = sld [smem:[%s13165_s0 + %s10030_s10]]   ;;  %s10037_s22 = smov 16  }
   0xe   :  { %13627 = sst [smem:[#allocation33_spill]] %s10111_s29  ;;  %s10038_s28 = smov 17  }
   0xf   :  { %13628 = sst [smem:[#allocation34_spill]] %s10116_s3 }
  0x10   :  { %13629 = sst [smem:[#allocation35_spill]] %s10121_s8 }
  0x11   :  { %s10131_s19 = sld [smem:[%s13165_s0 + %s10031_s15]]   ;;  %s10036_s15 = smov 15  }
  0x12   :  { %s10136_s24 = sld [smem:[%s13165_s0 + %s10032_s20]]  }
  0x13   :  { %s10141_s30 = sld [smem:[%s13165_s0 + %s10033_s26]]  }
  0x14   :  { %s10146_s6 = sld [smem:[%s13165_s0 + %s10034_s1]]  }
  0x15   :  { %s10151_s12 = sld [smem:[%s13165_s0 + %s10035_s7]]   ;;  %s10039_s7 = smov 18  }
  0x16   :  { %s10156_s20 = sld [smem:[%s13165_s0 + %s10036_s15]]   ;;  %s10040_s15 = smov 19  }
  0x17   :  { %13630 = sst [smem:[#allocation36_spill]] %s10131_s19 }
  0x18   :  { %s10161_s27 = sld [smem:[%s13165_s0 + %s10037_s22]]   ;;  %s10041_s22 = smov 20  }
  0x19   :  { %s10166_s4 = sld [smem:[%s13165_s0 + %s10038_s28]]   ;;  %s10042_s28 = smov 21  }
  0x1a   :  { %s10171_s29 = sld [smem:[%s13165_s0 + %s10039_s7]]   ;;  %s10043_s7 = smov 22  }
  0x1b   :  { %s10176_s25 = sld [smem:[%s13165_s0 + %s10040_s15]]   ;;  %s10044_s15 = smov 23  }
  0x1c   :  { %s10181_s8 = sld [smem:[%s13165_s0 + %s10041_s22]]   ;;  %s10045_s22 = smov 24  }
  0x1d   :  { %s10201_s5 = sld [smem:[%s13165_s0 + %s10045_s22]]   ;;  %s10049_s22 = smov 28  }
  0x1f   :  { %13631 = sst [smem:[#allocation37_spill]] %s10166_s4 }
  0x20   :  { %13632 = sst [smem:[#allocation38_spill]] %s10171_s29 }
  0x21   :  { %13633 = sst [smem:[#allocation39_spill]] %s10176_s25 }
  0x22   :  { %s10186_s4 = sld [smem:[%s13165_s0 + %s10042_s28]]   ;;  %s10046_s28 = smov 25  }
  0x23   :  { %s10191_s29 = sld [smem:[%s13165_s0 + %s10043_s7]]   ;;  %s10047_s7 = smov 26  }
  0x24   :  { %s10196_s25 = sld [smem:[%s13165_s0 + %s10044_s15]]   ;;  %s10048_s15 = smov 27  }
  0x25   :  { %13635 = sst [smem:[#allocation41_spill]] %s10201_s5 }
  0x26   :  { %s10211_s3 = sld [smem:[%s13165_s0 + %s10047_s7]]   ;;  %s10051_s7 = smov 30  }
  0x27   :  { %s10216_s21 = sld [smem:[%s13165_s0 + %s10048_s15]]   ;;  %s10052_s15 = smov 31  }
  0x28   :  { %13634 = sst [smem:[#allocation40_spill]] %s10186_s4 }
  0x29   :  { %s10206_s4 = sld [smem:[%s13165_s0 + %s10046_s28]]   ;;  %s10050_s28 = smov 29  }
  0x2a   :  { %s10221_s5 = sld [smem:[%s13165_s0 + %s10049_s22]]   ;;  %s10053_s22 = smov 32  }
  0x2b   :  { %s10226_s19 = sld [smem:[%s13165_s0 + %s10050_s28]]   ;;  %s10054_s28 = smov 33  }
  0x2c   :  { %13636 = sst [smem:[#allocation42_spill]] %s10211_s3 }
  0x2d   :  { %13637 = sst [smem:[#allocation43_spill]] %s10216_s21 }
  0x2e   :  { %s10231_s3 = sld [smem:[%s13165_s0 + %s10051_s7]]  }
  0x2f   :  { %s10236_s21 = sld [smem:[%s13165_s0 + %s10052_s15]]  }
  0x30   :  { %13638 = sst [smem:[#allocation44_spill]] %s10221_s5 }
  0x31   :  { %13639 = sst [smem:[#allocation45_spill]] %s10226_s19 }
  0x32   :  { %s10241_s5 = sld [smem:[%s13165_s0 + %s10053_s22]]  }
  0x33   :  { %s10246_s19 = sld [smem:[%s13165_s0 + %s10054_s28]]  }
  0x34   :  { %73 = vsyncpa [#allocation5], 0 }
  0x35   :  { %74 = vsyncpa [#allocation8], 0 }
  0x36   :  { %75 = vsyncpa [#allocation11], 0 }
  0x37   :  { %76 = vsyncpa [#allocation14], 0 }
  0x38   :  { %77 = vsyncpa [#allocation17], 0 }
  0x39   :  { %78 = vsyncpa [#allocation6], 0  ;;  %s10055_s7 = smov [#allocation7]   ;;  %s10056_s11 = smov [#allocation10]  }
  0x3a   :  { %s115_s10 = sshll.u32 %s10055_s7, 4  ;;  %s141_s15 = sshll.u32 %s10056_s11, 4  ;;  %s116_s10 = int_to_ptr.vmem [resolvable:$true] %s115_s10  ;;  %s142_s15 = int_to_ptr.vmem [resolvable:$true] %s141_s15 }
  0x3b   :  { %s9788_s16 = scalar_lea.hbm %s10136_s24, 256 }
  0x3c   :  { %p9789_p0 = scmp.ne.s32.totalorder %s10136_s24, %s9788_s16  ;;  %p9792_p1 = scmp.lt.u32.totalorder %s9788_s16, %s10136_s24 }
  0x3e   :  { %p9794_p2 = pnand %p9792_p1, %p9789_p0 }
  0x40   :  { %9797 = shalt.err (!%p9794_p2)
}
  0x41   :  { %s9798_s0 = scalar_lea.vmem %s116_s10, 256  ;;  %p9803_p4 = scmp.lt.s32.totalorder %s116_s10, %s116_s10 }
  0x42   :  { %p9799_p3 = scmp.ne.s32.totalorder %s116_s10, %s9798_s0  ;;  %p9804_p5 = scmp.lt.s32.totalorder %s9798_s0, %s9798_s0 }
  0x44   :  { %p9805_p6 = por %p9804_p5, %p9803_p4 }
  0x46   :  { %p9806_p7 = pnand %p9805_p6, %p9799_p3 }
  0x48   :  { %9809 = shalt.err (!%p9806_p7)
}
  0x49   :  { %118 = dma.hbm_to_vmem [thread:$0]  %s10136_s24, 256, %s116_s10, [#allocation8]  }
  0x4a   :  { %s9810_s18 = scalar_lea.hbm %s10161_s27, 64 }
  0x4b   :  { %p9811_p8 = scmp.ne.s32.totalorder %s10161_s27, %s9810_s18  ;;  %p9814_p9 = scmp.lt.u32.totalorder %s9810_s18, %s10161_s27 }
  0x4d   :  { %p9816_p10 = pnand %p9814_p9, %p9811_p8 }
  0x4f   :  { %9819 = shalt.err (!%p9816_p10)
}
  0x50   :  { %s9820_s22 = scalar_lea.vmem %s142_s15, 64  ;;  %p9825_p12 = scmp.lt.s32.totalorder %s142_s15, %s142_s15 }
  0x51   :  { %p9821_p11 = scmp.ne.s32.totalorder %s142_s15, %s9820_s22  ;;  %p9826_p13 = scmp.lt.s32.totalorder %s9820_s22, %s9820_s22 }
  0x53   :  { %p9827_p0 = por %p9826_p13, %p9825_p12 }
  0x55   :  { %p9828_p1 = pnand %p9827_p0, %p9821_p11 }
  0x57   :  { %9831 = shalt.err (!%p9828_p1)
}
  0x58   :  { %144 = dma.hbm_to_vmem [thread:$0]  %s10161_s27, 64, %s142_s15, [#allocation11]  }
  0x59   :  { %s10057_s23 = smov [#allocation13]   ;;  %s10058_s24 = smov [#allocation4]  }
  0x5a   :  { %s170_s26 = sshll.u32 %s10057_s23, 4  ;;  %s100_s28 = sshll.u32 %s10058_s24, 4  ;;  %s171_s26 = int_to_ptr.vmem [resolvable:$true] %s170_s26  ;;  %s10256_s28 = int_to_ptr.vmem [resolvable:$true] %s100_s28 }
  0x5b   :  { %s9832_s1 = scalar_lea.hbm %s10191_s29, 4096 }
  0x5c   :  { %p9833_p2 = scmp.ne.s32.totalorder %s10191_s29, %s9832_s1  ;;  %p9836_p3 = scmp.lt.u32.totalorder %s9832_s1, %s10191_s29 }
  0x5e   :  { %p9838_p4 = pnand %p9836_p3, %p9833_p2 }
  0x60   :  { %9841 = shalt.err (!%p9838_p4)
}
  0x61   :  { %s9842_s2 = scalar_lea.vmem %s171_s26, 4096  ;;  %p9847_p6 = scmp.lt.s32.totalorder %s171_s26, %s171_s26 }
  0x62   :  { %p9843_p5 = scmp.ne.s32.totalorder %s171_s26, %s9842_s2  ;;  %p9848_p7 = scmp.lt.s32.totalorder %s9842_s2, %s9842_s2 }
  0x64   :  { %p9849_p8 = por %p9848_p7, %p9847_p6 }
  0x66   :  { %p9850_p9 = pnand %p9849_p8, %p9843_p5 }
  0x68   :  { %9853 = shalt.err (!%p9850_p9)
}
  0x69   :  { %s10059_s27 = smov 256   ;;  %s10060_s7 = smov 16  }
  0x6a   :  { %176 = dma.hbm_to_vmem [thread:$0]  %s10191_s29, 4096, %s171_s26, [#allocation14], %s10059_s27, %s10059_s27, %s10060_s7  }
  0x6b   :  { %s9854_s10 = scalar_lea.hbm %s10126_s14, 192 }
  0x6c   :  { %p9855_p10 = scmp.ne.s32.totalorder %s10126_s14, %s9854_s10  ;;  %p9858_p11 = scmp.lt.u32.totalorder %s9854_s10, %s10126_s14 }
  0x6e   :  { %p9860_p12 = pnand %p9858_p11, %p9855_p10 }
  0x70   :  { %9863 = shalt.err (!%p9860_p12)
}
  0x71   :  { %s9864_s11 = scalar_lea.vmem %s10256_s28, 192  ;;  %p9869_p0 = scmp.lt.s32.totalorder %s10256_s28, %s10256_s28 }
  0x72   :  { %p9865_p13 = scmp.ne.s32.totalorder %s10256_s28, %s9864_s11  ;;  %p9870_p1 = scmp.lt.s32.totalorder %s9864_s11, %s9864_s11 }
  0x74   :  { %p9871_p2 = por %p9870_p1, %p9869_p0 }
  0x76   :  { %p9872_p3 = pnand %p9871_p2, %p9865_p13 }
  0x78   :  { %9875 = shalt.err (!%p9872_p3)
}
  0x79   :  { %s10061_s15 = smov 64   ;;  %s10062_s29 = smov 4  }
  0x7a   :  { %106 = dma.hbm_to_vmem [thread:$0]  %s10126_s14, 192, %s10256_s28, [#allocation5], %s10061_s15, %s10061_s15, %s10062_s29  }
  0x7b   :  { %s10063_s16 = smov [#allocation9]   ;;  %s10064_s18 = smov [#allocation12]  }
  0x7c   :  { %s127_s0 = sshll.u32 %s10063_s16, 4  ;;  %s156_s22 = sshll.u32 %s10064_s18, 4  ;;  %s128_s0 = int_to_ptr.vmem [resolvable:$true] %s127_s0  ;;  %s10277_s22 = int_to_ptr.vmem [resolvable:$true] %s156_s22 }
  0x7d   :  { %s9876_s23 = scalar_lea.hbm %s10146_s6, 64 }
  0x7e   :  { %p9877_p4 = scmp.ne.s32.totalorder %s10146_s6, %s9876_s23  ;;  %p9880_p5 = scmp.lt.u32.totalorder %s9876_s23, %s10146_s6 }
  0x80   :  { %p9882_p6 = pnand %p9880_p5, %p9877_p4 }
  0x82   :  { %9885 = shalt.err (!%p9882_p6)
}
  0x83   :  { %s9886_s26 = scalar_lea.vmem %s128_s0, 64  ;;  %p9891_p8 = scmp.lt.s32.totalorder %s128_s0, %s128_s0 }
  0x84   :  { %p9887_p7 = scmp.ne.s32.totalorder %s128_s0, %s9886_s26  ;;  %p9892_p9 = scmp.lt.s32.totalorder %s9886_s26, %s9886_s26 }
  0x86   :  { %p9893_p10 = por %p9892_p9, %p9891_p8 }
  0x88   :  { %p9894_p11 = pnand %p9893_p10, %p9887_p7 }
  0x8a   :  { %9897 = shalt.err (!%p9894_p11)
}
  0x8b   :  { %130 = dma.hbm_to_vmem [thread:$0]  %s10146_s6, 64, %s128_s0, [#allocation8]  }
  0x8c   :  { %s9898_s14 = scalar_lea.hbm %s10181_s8, 4096 }
  0x8d   :  { %p9899_p12 = scmp.ne.s32.totalorder %s10181_s8, %s9898_s14  ;;  %p9902_p13 = scmp.lt.u32.totalorder %s9898_s14, %s10181_s8 }
  0x8f   :  { %p9904_p0 = pnand %p9902_p13, %p9899_p12 }
  0x91   :  { %9907 = shalt.err (!%p9904_p0)
}
  0x92   :  { %s9908_s24 = scalar_lea.vmem %s10277_s22, 4096  ;;  %p9913_p2 = scmp.lt.s32.totalorder %s10277_s22, %s10277_s22 }
  0x93   :  { %p9909_p1 = scmp.ne.s32.totalorder %s10277_s22, %s9908_s24  ;;  %p9914_p3 = scmp.lt.s32.totalorder %s9908_s24, %s9908_s24 }
  0x95   :  { %p9915_p4 = por %p9914_p3, %p9913_p2 }
  0x97   :  { %p9916_p5 = pnand %p9915_p4, %p9909_p1 }
  0x99   :  { %9919 = shalt.err (!%p9916_p5)
}
  0x9a   :  { %162 = dma.hbm_to_vmem [thread:$0]  %s10181_s8, 4096, %s10277_s22, [#allocation11], %s10059_s27, %s10059_s27, %s10060_s7  }
  0x9b   :  { %s10065_s6 = smov [#allocation15]   ;;  %s10066_s1 = smov [#allocation16]  }
  0x9c   :  { %s182_s28 = sshll.u32 %s10065_s6, 4  ;;  %s196_s2 = sshll.u32 %s10066_s1, 4  ;;  %s183_s28 = int_to_ptr.vmem [resolvable:$true] %s182_s28  ;;  %s10295_s2 = int_to_ptr.vmem [resolvable:$true] %s196_s2 }
  0x9d   :  { %s9920_s10 = scalar_lea.hbm %s10196_s25, 4096 }
  0x9e   :  { %p9921_p6 = scmp.ne.s32.totalorder %s10196_s25, %s9920_s10  ;;  %p9924_p7 = scmp.lt.u32.totalorder %s9920_s10, %s10196_s25 }
  0xa0   :  { %p9926_p8 = pnand %p9924_p7, %p9921_p6 }
  0xa2   :  { %9929 = shalt.err (!%p9926_p8)
}
  0xa3   :  { %s9930_s11 = scalar_lea.vmem %s183_s28, 4096  ;;  %p9935_p10 = scmp.lt.s32.totalorder %s183_s28, %s183_s28 }
  0xa4   :  { %p9931_p9 = scmp.ne.s32.totalorder %s183_s28, %s9930_s11  ;;  %p9936_p11 = scmp.lt.s32.totalorder %s9930_s11, %s9930_s11 }
  0xa6   :  { %p9937_p12 = por %p9936_p11, %p9935_p10 }
  0xa8   :  { %p9938_p13 = pnand %p9937_p12, %p9931_p9 }
  0xaa   :  { %9941 = shalt.err (!%p9938_p13)
}
  0xab   :  { %188 = dma.hbm_to_vmem [thread:$0]  %s10196_s25, 4096, %s183_s28, [#allocation14], %s10059_s27, %s10059_s27, %s10060_s7  }
  0xac   :  { %s9942_s8 = scalar_lea.hbm %s10206_s4, 1024 }
  0xad   :  { %p9943_p0 = scmp.ne.s32.totalorder %s10206_s4, %s9942_s8  ;;  %p9946_p1 = scmp.lt.u32.totalorder %s9942_s8, %s10206_s4 }
  0xaf   :  { %p9948_p2 = pnand %p9946_p1, %p9943_p0 }
  0xb1   :  { %9951 = shalt.err (!%p9948_p2)
}
  0xb2   :  { %s9952_s16 = scalar_lea.vmem %s10295_s2, 1024  ;;  %p9957_p4 = scmp.lt.s32.totalorder %s10295_s2, %s10295_s2 }
  0xb3   :  { %p9953_p3 = scmp.ne.s32.totalorder %s10295_s2, %s9952_s16  ;;  %p9958_p5 = scmp.lt.s32.totalorder %s9952_s16, %s9952_s16 }
  0xb5   :  { %p9959_p6 = por %p9958_p5, %p9957_p4 }
  0xb7   :  { %p9960_p7 = pnand %p9959_p6, %p9953_p3 }
  0xb9   :  { %9963 = shalt.err (!%p9960_p7)
}
  0xba   :  { %202 = dma.hbm_to_vmem [thread:$0]  %s10206_s4, 1024, %s10295_s2, [#allocation17], %s10061_s15, %s10061_s15, %s10062_s29  }
  0xbb   :  { %10008 = dma.done.wait [#allocation5], 192  }
  0xbc   :  { %10009 = vsyncadd [#allocation5], 4294967104 }
  0xbd   :  { %10010 = dma.done.wait [#allocation8], 320  }
  0xbe   :  { %10011 = vsyncadd [#allocation8], 4294966976 }
  0xbf   :  { %10012 = dma.done.wait [#allocation11], 4160  }
  0xc0   :  { %10013 = vsyncadd [#allocation11], 4294963136 }
  0xc1   :  { %10014 = dma.done.wait [#allocation14], 8192  }
  0xc2   :  { %10015 = vsyncadd [#allocation14], 4294959104 }
  0xc3   :  { %10016 = dma.done.wait [#allocation17], 1024  }
  0xc4   :  { %10017 = vsyncadd [#allocation17], 4294966272  ;;  %v13176_v0 = vmov 0.0   ;;  %v13178_v1 = vmov 0   ;;  %vm10069_vm0 = vmmov 0   ;;  %vm362_vm1 = vcmask 1042432  }
  0xc5   :  { %8555 = vmatprep.subr.bf16.mxu0 %v13176_v0  ;;  %407 = vmatprep.mubr.bf16.mxu1 %v13178_v1  ;;  %v8654_v2 = vld [vmem:[#allocation4] sm:$0xff]   ;;  %vm270_vm2 = vcmask 1043456   ;;  %v319_v3 = vld [vmem:[#allocation7] sm:$0x77]  ;;  %v8657_v4 = vld [vmem:[#allocation4 + $0x8] ss:$0 sps:$4 sm:$0xff]  }
  0xc6   :  { %8559 = vmatprep.mubr.msk.bf16.mxu0 %vm10069_vm0, %v13176_v0  ;;  %8556 = vmatpush3.bf16.msra.mxu0 %v8654_v2  ;;  %v7785_v5 = vcombine.high %v319_v3, %v319_v3  ;;  %v7784_v6 = vcombine.low %v319_v3, %v319_v3  ;;  %v316_v7 = vld [vmem:[%s10086_s9] sm:$0xff]  ;;  %v317_v8 = vld [vmem:[%s10086_s9 + $0x8] sm:$0xff]  ;;  %v272_v9 = vsel %vm270_vm2, %v8657_v4, 0  ;;  %vm355_vm3 = vcmask 48128   ;;  %v320_v16 = vld [vmem:[#allocation7 + $0x8] sm:$0x77] }
  0xc7   :  { %8557 = vmatprep.subr.bf16.mxu0 %v13176_v0  ;;  %v10324_v10 = vld [vmem:[%s10141_s30 + $0x4] ss:$16 sps:$4 sm:$0xff]   ;;  %v321_v12 = vpack.c.bf16 %v317_v8, %v316_v7  ;;  %v245_v13 = vld [vmem:[%s10091_s13] sm:$0x3]  ;;  %vm266_vm4 = vcmask 195584   ;;  %v7787_v18 = vcombine.high %v320_v16, %v320_v16  ;;  %v7786_v19 = vcombine.low %v320_v16, %v320_v16  ;;  %s13711_s13 = sld [smem:[#allocation31_spill]] }
  0xc8   :  { %7788 = vmatprep.subr.msk.bf16.mxu1 %vm362_vm1, %v7785_v5  ;;  %v364_v11 = vsel %vm362_vm1, %v7784_v6, 0  ;;  %v10330_v14 = vld [vmem:[%s10141_s30] ss:$16 sps:$4 sm:$0xff]   ;;  %v249_v15 = vpack.c.bf16 %v245_v13, %v245_v13  ;;  %v10334_v17 = vld [vmem:[%s10141_s30 + $0x24] ss:$16 sps:$4 sm:$0xff]   ;;  %s10070_s25 = smov [#allocation2]  }
  0xc9   :  { %376 = vmatpush1.bf16.msra.mxu1 %v364_v11  ;;  %v370_v20 = vsel %vm362_vm1, %v7786_v19, 0  ;;  %v10340_v21 = vld [vmem:[%s10141_s30 + $0xc] ss:$16 sps:$4 sm:$0xff]   ;;  %v10344_v22 = vld [vmem:[%s10141_s30 + $0x20] ss:$16 sps:$4 sm:$0xff]  }
  0xca   :  { %8558 = vmatpush3.bf16.msra.mxu0 %v272_v9  ;;  %741 = vmatprep.subr.bf16.mxu1 %v10324_v10  ;;  %v10348_v23 = vld [vmem:[%s10141_s30 + $0x44] ss:$16 sps:$4 sm:$0xff]   ;;  %v10355_v24 = vld [vmem:[%s10141_s30 + $0x40] ss:$16 sps:$4 sm:$0xff]   ;;  %v10358_v25 = vld [vmem:[%s10141_s30 + $0x8] ss:$16 sps:$4 sm:$0xff]  }
  0xcb   :  { %7791 = vmatprep.subr.msk.bf16.mxu0 %vm362_vm1, %v7787_v18  ;;  %v10362_v26 = vld [vmem:[%s10141_s30 + $0x64] ss:$16 sps:$4 sm:$0xff]   ;;  %v10365_v27 = vld [vmem:[%s10141_s30 + $0x2c] ss:$16 sps:$4 sm:$0xff]   ;;  %v10369_v29 = vld [vmem:[%s10141_s30 + $0x60] ss:$16 sps:$4 sm:$0xff]  }
  0xcc   :  { %7789 = vmatmul.mubr.msk.bf16.vlgmr.msra.gmra.mrb[0].mxu1 %vm355_vm3, %v321_v12  ;;  %v318_v28 = vld [vmem:[%s10086_s9 + $0x10] sm:$0x3f]  ;;  %v10374_v31 = vld [vmem:[%s10141_s30 + $0x28] ss:$16 sps:$4 sm:$0xff]   ;;  %v10383_v33 = vld [vmem:[%s10141_s30 + $0x4c] ss:$16 sps:$4 sm:$0xff]  }
  0xcd   :  { %742 = vmatpush1.bf16.msra.mxu1 %v10330_v14  ;;  %8560 = vmatmul.mubr.msk.bf16.vlgmr.msra.gmra.mrb[0].mxu0 %vm266_vm4, %v249_v15  ;;  %v322_v30 = vpack.c.bf16 %v318_v28, %v318_v28  ;;  %v10379_v32 = vld [vmem:[%s10141_s30 + $0x84] ss:$16 sps:$4 sm:$0xff]   ;;  %v10390_v34 = vld [vmem:[%s10141_s30 + $0x80] ss:$16 sps:$4 sm:$0xff]   ;;  %v10395_v35 = vld [vmem:[%s10141_s30 + $0x48] ss:$16 sps:$4 sm:$0xff]  }
  0xce   :  { %743 = vmatprep.subr.bf16.mxu1 %v10334_v17  ;;  %427 = vmatpush1.bf16.msra.mxu0 %v370_v20  ;;  %v10398_v36 = vld [vmem:[%s10141_s30 + $0xa4] ss:$16 sps:$4 sm:$0xff]   ;;  %v10402_v37 = vld [vmem:[%s10141_s30 + $0xa0] ss:$16 sps:$4 sm:$0xff]   ;;  %v10405_v38 = vld [vmem:[%s10141_s30 + $0x6c] ss:$16 sps:$4 sm:$0xff]  }
  0xcf   :  { %458 = vmatprep.mubr.bf16.mxu0 %v13178_v1  ;;  %782 = vmatprep.subr.bf16.mxu0 %v10340_v21  ;;  %v10408_v39 = vld [vmem:[%s10141_s30 + $0x68] ss:$16 sps:$4 sm:$0xff]   ;;  %v10412_v40 = vld [vmem:[%s10141_s30 + $0xc4] ss:$16 sps:$4 sm:$0xff]   ;;  %v10415_v41 = vld [vmem:[%s10141_s30 + $0x8c] ss:$16 sps:$4 sm:$0xff]  }
  0xd0   :  { %417 = vmatprep.mubr.bf16.mxu1 %v13178_v1  ;;  %v10422_v42 = vld [vmem:[%s10141_s30 + $0xc0] ss:$16 sps:$4 sm:$0xff]   ;;  %v10426_v43 = vld [vmem:[%s10141_s30 + $0x88] ss:$16 sps:$4 sm:$0xff]   ;;  %v10429_v44 = vld [vmem:[%s10141_s30 + $0xe4] ss:$16 sps:$4 sm:$0xff]  }
  0xd1   :  { %744 = vmatpush1.bf16.msra.mxu1 %v10344_v22  ;;  %v10433_v45 = vld [vmem:[%s10141_s30 + $0xac] ss:$16 sps:$4 sm:$0xff]   ;;  %v10439_v46 = vld [vmem:[%s10141_s30 + $0xe0] ss:$16 sps:$4 sm:$0xff]   ;;  %v10443_v48 = vld [vmem:[%s10141_s30 + $0xa8] ss:$16 sps:$4 sm:$0xff]  }
  0xd2   :  { %745 = vmatprep.subr.bf16.mxu1 %v10348_v23  ;;  %v574_v47 = vld [vmem:[%s10096_s17] sm:$0x3]  ;;  %v10447_v49 = vld [vmem:[%s10141_s30 + $0xcc] ss:$16 sps:$4 sm:$0xff]   ;;  %v10453_v51 = vld [vmem:[%s10141_s30 + $0xc8] ss:$16 sps:$4 sm:$0xff]  }
  0xd3   :  { %v580_v50 = vpack.c.bf16 %v574_v47, %v574_v47  ;;  %v10457_v52 = vld [vmem:[%s10141_s30 + $0xec] ss:$16 sps:$4 sm:$0xff]   ;;  %v10462_v53 = vld [vmem:[%s10141_s30 + $0xe8] ss:$16 sps:$4 sm:$0xff]   ;;  %v10470_v54 = vld [vmem:[%s10156_s20 + $0x4] ss:$16 sps:$4 sm:$0xff]  }
  0xd4   :  { %7790 = vmatmul.mubr.msk.bf16.gmra.mrb[4].mxu1 %vm355_vm3, %v322_v30  ;;  %v10473_v55 = vld [vmem:[%s10156_s20] ss:$16 sps:$4 sm:$0xff]   ;;  %v10477_v56 = vld [vmem:[%s10156_s20 + $0xc] ss:$16 sps:$4 sm:$0xff]   ;;  %v10480_v57 = vld [vmem:[%s10156_s20 + $0x8] ss:$16 sps:$4 sm:$0xff]  }
  0xd5   :  { %746 = vmatpush1.bf16.msra.mxu1 %v10355_v24  ;;  %7792 = vmatmul.mubr.msk.bf16.vlgmr.msra.gmra.mrb[4].mxu0 %vm355_vm3, %v321_v12  ;;  %v10483_v58 = vld [vmem:[%s10156_s20 + $0x24] ss:$16 sps:$4 sm:$0xff]   ;;  %v10487_v59 = vld [vmem:[%s10156_s20 + $0x20] ss:$16 sps:$4 sm:$0xff]   ;;  %v10490_v60 = vld [vmem:[%s10156_s20 + $0x2c] ss:$16 sps:$4 sm:$0xff]  }
  0xd6   :  { %783 = vmatpush1.bf16.msra.mxu0 %v10358_v25  ;;  %747 = vmatprep.subr.bf16.mxu1 %v10362_v26  ;;  %v10495_v61 = vld [vmem:[%s10156_s20 + $0x44] ss:$16 sps:$4 sm:$0xff]   ;;  %v10499_v62 = vld [vmem:[%s10156_s20 + $0x28] ss:$16 sps:$4 sm:$0xff]   ;;  %v10503_v63 = vld [vmem:[%s10156_s20 + $0x4c] ss:$16 sps:$4 sm:$0xff]  }
  0xd7   :  { %784 = vmatprep.subr.bf16.mxu0 %v10365_v27  ;;  %773 = vmatprep.mubr.bf16.mxu1 %v13178_v1  ;;  %13640 = vst [vmem:[#allocation46_spill] sm:$0xff] %v10503_v63  ;;  %v10507_v2 = vld [vmem:[%s10156_s20 + $0x40] ss:$16 sps:$4 sm:$0xff]   ;;  %v10511_v3 = vld [vmem:[%s10156_s20 + $0x64] ss:$16 sps:$4 sm:$0xff]   ;;  %s13694_s9 = sld [smem:[#allocation36_spill]] }
  0xd8   :  { %468 = vmatprep.mubr.bf16.mxu0 %v13178_v1  ;;  %13641 = vst [vmem:[#allocation47_spill] sm:$0xff] %v10507_v2  ;;  %13642 = vst [vmem:[#allocation48_spill] sm:$0xff] %v10511_v3  ;;  %v10515_v4 = vld [vmem:[%s10156_s20 + $0x48] ss:$16 sps:$4 sm:$0xff]   ;;  %v10519_v5 = vld [vmem:[%s10156_s20 + $0x6c] ss:$16 sps:$4 sm:$0xff]  }
  0xd9   :  { %748 = vmatpush1.bf16.msra.mxu1 %v10369_v29  ;;  %13643 = vst [vmem:[#allocation49_spill] sm:$0xff] %v10515_v4  ;;  %13644 = vst [vmem:[#allocation50_spill] sm:$0xff] %v10519_v5  ;;  %v10523_v6 = vld [vmem:[%s10156_s20 + $0x60] ss:$16 sps:$4 sm:$0xff]   ;;  %v10527_v7 = vld [vmem:[%s10156_s20 + $0x84] ss:$16 sps:$4 sm:$0xff]  }
  0xda   :  { %785 = vmatpush1.bf16.msra.mxu0 %v10374_v31  ;;  %749 = vmatprep.subr.bf16.mxu1 %v10379_v32  ;;  %13645 = vst [vmem:[#allocation51_spill] sm:$0xff] %v10523_v6  ;;  %13646 = vst [vmem:[#allocation52_spill] sm:$0xff] %v10527_v7  ;;  %v10531_v8 = vld [vmem:[%s10156_s20 + $0x68] ss:$16 sps:$4 sm:$0xff]   ;;  %v10536_v9 = vld [vmem:[%s10156_s20 + $0x80] ss:$16 sps:$4 sm:$0xff]  }
  0xdb   :  { %786 = vmatprep.subr.bf16.mxu0 %v10383_v33  ;;  %13647 = vst [vmem:[#allocation53_spill] sm:$0xff] %v10531_v8  ;;  %13648 = vst [vmem:[#allocation54_spill] sm:$0xff] %v10536_v9  ;;  %v10542_v11 = vld [vmem:[%s10156_s20 + $0x8c] ss:$16 sps:$4 sm:$0xff]   ;;  %v10545_v12 = vld [vmem:[%s10156_s20 + $0x88] ss:$16 sps:$4 sm:$0xff]  }
  0xdc   :  { %13649 = vst [vmem:[#allocation55_spill] sm:$0xff] %v10542_v11  ;;  %13650 = vst [vmem:[#allocation56_spill] sm:$0xff] %v10545_v12  ;;  %v10549_v13 = vld [vmem:[%s10156_s20 + $0xa4] ss:$16 sps:$4 sm:$0xff]   ;;  %v10553_v15 = vld [vmem:[%s10156_s20 + $0xa0] ss:$16 sps:$4 sm:$0xff]  }
  0xdd   :  { %750 = vmatpush1.bf16.msra.mxu1 %v10390_v34  ;;  %7793 = vmatmul.mubr.msk.bf16.gmra.mrb[8].mxu0 %vm355_vm3, %v322_v30  ;;  %13651 = vst [vmem:[#allocation57_spill] sm:$0xff] %v10549_v13  ;;  %13652 = vst [vmem:[#allocation58_spill] sm:$0xff] %v10553_v15  ;;  %v10557_v16 = vld [vmem:[%s10156_s20 + $0xac] ss:$16 sps:$4 sm:$0xff]   ;;  %v10561_v18 = vld [vmem:[%s10156_s20 + $0xa8] ss:$16 sps:$4 sm:$0xff]  }
  0xde   :  { %787 = vmatpush1.bf16.msra.mxu0 %v10395_v35  ;;  %751 = vmatprep.subr.bf16.mxu1 %v10398_v36  ;;  %13653 = vst [vmem:[#allocation59_spill] sm:$0xff] %v10557_v16  ;;  %13654 = vst [vmem:[#allocation60_spill] sm:$0xff] %v10561_v18  ;;  %v10565_v19 = vld [vmem:[%s10156_s20 + $0xc4] ss:$16 sps:$4 sm:$0xff]   ;;  %v10569_v20 = vld [vmem:[%s10156_s20 + $0xc0] ss:$16 sps:$4 sm:$0xff]  }
  0xdf   :  { %788 = vmatprep.subr.bf16.mxu0 %v10405_v38  ;;  %814 = vmatprep.mubr.bf16.mxu0 %v13178_v1  ;;  %13655 = vst [vmem:[#allocation61_spill] sm:$0xff] %v10565_v19  ;;  %13656 = vst [vmem:[#allocation62_spill] sm:$0xff] %v10569_v20  ;;  %v10573_v28 = vld [vmem:[%s10156_s20 + $0xcc] ss:$16 sps:$4 sm:$0xff]   ;;  %v10577_v30 = vld [vmem:[%s10156_s20 + $0xc8] ss:$16 sps:$4 sm:$0xff]  }
  0xe0   :  { %13657 = vst [vmem:[#allocation63_spill] sm:$0xff] %v10573_v28  ;;  %13658 = vst [vmem:[#allocation64_spill] sm:$0xff] %v10577_v30  ;;  %v10581_v47 = vld [vmem:[%s10156_s20 + $0xe4] ss:$16 sps:$4 sm:$0xff]   ;;  %v10589_v0 = vld [vmem:[%s10156_s20 + $0xec] ss:$16 sps:$4 sm:$0xff]  }
  0xe1   :  { %752 = vmatpush1.bf16.msra.mxu1 %v10402_v37  ;;  %13659 = vst [vmem:[#allocation65_spill] sm:$0xff] %v10581_v47  ;;  %13661 = vst [vmem:[#allocation67_spill] sm:$0xff] %v10589_v0 }
  0xe2   :  { %789 = vmatpush1.bf16.msra.mxu0 %v10408_v39  ;;  %753 = vmatprep.subr.bf16.mxu1 %v10412_v40 }
  0xe3   :  { %790 = vmatprep.subr.bf16.mxu0 %v10415_v41 }
  0xe5   :  { %754 = vmatpush1.bf16.msra.mxu1 %v10422_v42 }
  0xe6   :  { %791 = vmatpush1.bf16.msra.mxu0 %v10426_v43  ;;  %755 = vmatprep.subr.bf16.mxu1 %v10429_v44 }
  0xe7   :  { %792 = vmatprep.subr.bf16.mxu0 %v10433_v45 }
  0xe9   :  { %756 = vmatpush1.bf16.msra.mxu1 %v10439_v46 }
  0xea   :  { %793 = vmatpush1.bf16.msra.mxu0 %v10443_v48  ;;  %1013 = vmatprep.subr.bf16.mxu1 %v10470_v54 }
  0xeb   :  { %794 = vmatprep.subr.bf16.mxu0 %v10447_v49 }
  0xec   :  { %774 = vmatmul.mubr.bf16.vlgmr.msra.gmra.mrb[8].mxu1 %v580_v50 }
  0xed   :  { %1045 = vmatprep.mubr.bf16.mxu1 %v13178_v1  ;;  %1014 = vmatpush1.bf16.msra.mxu1 %v10473_v55 }
  0xee   :  { %795 = vmatpush1.bf16.msra.mxu0 %v10453_v51  ;;  %1015 = vmatprep.subr.bf16.mxu1 %v10483_v58 }
  0xef   :  { %796 = vmatprep.subr.bf16.mxu0 %v10457_v52 }
  0xf1   :  { %1016 = vmatpush1.bf16.msra.mxu1 %v10487_v59 }
  0xf2   :  { %797 = vmatpush1.bf16.msra.mxu0 %v10462_v53  ;;  %1017 = vmatprep.subr.bf16.mxu1 %v10495_v61 }
  0xf3   :  { %1054 = vmatprep.subr.bf16.mxu0 %v10477_v56 }
  0xf5   :  { %815 = vmatmul.mubr.bf16.vlgmr.msra.gmra.mrb[12].mxu0 %v580_v50  ;;  %1018 = vmatpush1.bf16.msra.mxu1 %v10507_v2  ;;  %v10585_v50 = vld [vmem:[%s10156_s20 + $0xe0] ss:$16 sps:$4 sm:$0xff]  }
  0xf6   :  { %1086 = vmatprep.mubr.bf16.mxu0 %v13178_v1  ;;  %1055 = vmatpush1.bf16.msra.mxu0 %v10480_v57  ;;  %13660 = vst [vmem:[#allocation66_spill] sm:$0xff] %v10585_v50  ;;  %v10593_v1 = vld [vmem:[%s10156_s20 + $0xe8] ss:$16 sps:$4 sm:$0xff]  }
  0xf7   :  { %1056 = vmatprep.subr.bf16.mxu0 %v10490_v60  ;;  %1019 = vmatprep.subr.bf16.mxu1 %v10511_v3  ;;  %13662 = vst [vmem:[#allocation68_spill] sm:$0xff] %v10593_v1 }
  0xf9   :  { %1020 = vmatpush1.bf16.msra.mxu1 %v10523_v6 }
  0xfa   :  { %1057 = vmatpush1.bf16.msra.mxu0 %v10499_v62  ;;  %1021 = vmatprep.subr.bf16.mxu1 %v10527_v7 }
  0xfb   :  { %1058 = vmatprep.subr.bf16.mxu0 %v10503_v63 }
  0xfd   :  { %1022 = vmatpush1.bf16.msra.mxu1 %v10536_v9 }
  0xfe   :  { %1059 = vmatpush1.bf16.msra.mxu0 %v10515_v4  ;;  %1023 = vmatprep.subr.bf16.mxu1 %v10549_v13 }
  0xff   :  { %1060 = vmatprep.subr.bf16.mxu0 %v10519_v5 }
 0x101   :  { %1024 = vmatpush1.bf16.msra.mxu1 %v10553_v15  ;;  %v10693_v15 = vld [vmem:[%s10151_s12 + $0xc4] ss:$16 sps:$4 sm:$0xff]  }
 0x102   :  { %1061 = vmatpush1.bf16.msra.mxu0 %v10531_v8  ;;  %1025 = vmatprep.subr.bf16.mxu1 %v10565_v19  ;;  %v10605_v19 = vld [vmem:[%s10151_s12] ss:$16 sps:$4 sm:$0xff]   ;;  %13688 = vst [vmem:[#allocation93_spill] sm:$0xff] %v10693_v15 }
 0x103   :  { %1062 = vmatprep.subr.bf16.mxu0 %v10542_v11  ;;  %13665 = vst [vmem:[#allocation71_spill] sm:$0xff] %v10605_v19 }
 0x105   :  { %1026 = vmatpush1.bf16.msra.mxu1 %v10569_v20  ;;  %v7794_v20 = vld [vmem:[%s10096_s17 + $0x2] sm:$0x3]  ;;  %s14238_s17 = sld [smem:[#allocation34_spill]] }
 0x106   :  { %1063 = vmatpush1.bf16.msra.mxu0 %v10545_v12  ;;  %1027 = vmatprep.subr.bf16.mxu1 %v10581_v47  ;;  %v10602_v47 = vld [vmem:[%s10151_s12 + $0xc] ss:$16 sps:$4 sm:$0xff]  }
 0x107   :  { %1064 = vmatprep.subr.bf16.mxu0 %v10557_v16  ;;  %13664 = vst [vmem:[#allocation70_spill] sm:$0xff] %v10602_v47  ;;  %v10714_v16 = vld [vmem:[%s10151_s12 + $0xec] ss:$16 sps:$4 sm:$0xff]  }
 0x108   :  { %13693 = vst [vmem:[#allocation98_spill] sm:$0xff] %v10714_v16 }
 0x109   :  { %1028 = vmatpush1.bf16.msra.mxu1 %v10585_v50  ;;  %v10608_v50 = vld [vmem:[%s10151_s12 + $0x8] ss:$16 sps:$4 sm:$0xff]  }
 0x10a   :  { %1065 = vmatpush1.bf16.msra.mxu0 %v10561_v18  ;;  %13666 = vst [vmem:[#allocation72_spill] sm:$0xff] %v10608_v50  ;;  %v13667_v18 = vmov 0  }
 0x10b   :  { %1066 = vmatprep.subr.bf16.mxu0 %v10573_v28  ;;  %v852_v28 = vpack.c.bf16 %v7794_v20, %v7794_v20  ;;  %v10616_v20 = vld [vmem:[%s10151_s12 + $0x24] ss:$16 sps:$4 sm:$0xff]  }
 0x10c   :  { %13668 = vst [vmem:[#allocation73_spill] sm:$0xff] %v10616_v20 }
 0x10d   :  { %1046 = vmatmul.mubr.bf16.vlgmr.msra.gmra.mrb[12].mxu1 %v852_v28 }
 0x10e   :  { %1067 = vmatpush1.bf16.msra.mxu0 %v10577_v30  ;;  %v10599_v30 = vld [vmem:[%s10151_s12 + $0x4] ss:$16 sps:$4 sm:$0xff]   ;;  %1287 = vmatprep.mubr.bf16.mxu1 %v13667_v18 }
 0x10f   :  { %1068 = vmatprep.subr.bf16.mxu0 %v10589_v0  ;;  %13663 = vst [vmem:[#allocation69_spill] sm:$0xff] %v10599_v30  ;;  %1255 = vmatprep.subr.bf16.mxu1 %v10599_v30  ;;  %v10623_v0 = vld [vmem:[%s10151_s12 + $0x20] ss:$16 sps:$4 sm:$0xff]   ;;  %v10626_v30 = vld [vmem:[%s10151_s12 + $0x28] ss:$16 sps:$4 sm:$0xff]  }
 0x110   :  { %1256 = vmatpush1.bf16.msra.mxu1 %v10605_v19  ;;  %13670 = vst [vmem:[#allocation75_spill] sm:$0xff] %v10623_v0  ;;  %13671 = vst [vmem:[#allocation76_spill] sm:$0xff] %v10626_v30  ;;  %v10639_v19 = vld [vmem:[%s10151_s12 + $0x40] ss:$16 sps:$4 sm:$0xff]  }
 0x111   :  { %1257 = vmatprep.subr.bf16.mxu1 %v10616_v20  ;;  %13674 = vst [vmem:[#allocation79_spill] sm:$0xff] %v10639_v19  ;;  %v10658_v20 = vld [vmem:[%s10151_s12 + $0x68] ss:$16 sps:$4 sm:$0xff]  }
 0x112   :  { %1069 = vmatpush1.bf16.msra.mxu0 %v10593_v1  ;;  %v10619_v1 = vld [vmem:[%s10151_s12 + $0x2c] ss:$16 sps:$4 sm:$0xff]   ;;  %13679 = vst [vmem:[#allocation84_spill] sm:$0xff] %v10658_v20 }
 0x113   :  { %1296 = vmatprep.subr.bf16.mxu0 %v10602_v47  ;;  %13669 = vst [vmem:[#allocation74_spill] sm:$0xff] %v10619_v1  ;;  %v10642_v47 = vld [vmem:[%s10151_s12 + $0x48] ss:$16 sps:$4 sm:$0xff]  }
 0x114   :  { %1258 = vmatpush1.bf16.msra.mxu1 %v10623_v0  ;;  %13675 = vst [vmem:[#allocation80_spill] sm:$0xff] %v10642_v47  ;;  %v10652_v0 = vld [vmem:[%s10151_s12 + $0x6c] ss:$16 sps:$4 sm:$0xff]  }
 0x115   :  { %1087 = vmatmul.mubr.bf16.vlgmr.msra.gmra.mrb[16].mxu0 %v852_v28  ;;  %v10633_v28 = vld [vmem:[%s10151_s12 + $0x44] ss:$16 sps:$4 sm:$0xff]   ;;  %13677 = vst [vmem:[#allocation82_spill] sm:$0xff] %v10652_v0 }
 0x116   :  { %1297 = vmatpush1.bf16.msra.mxu0 %v10608_v50  ;;  %1328 = vmatprep.mubr.bf16.mxu0 %v13667_v18  ;;  %13672 = vst [vmem:[#allocation77_spill] sm:$0xff] %v10633_v28  ;;  %v10636_v50 = vld [vmem:[%s10151_s12 + $0x4c] ss:$16 sps:$4 sm:$0xff]  }
 0x117   :  { %1298 = vmatprep.subr.bf16.mxu0 %v10619_v1  ;;  %13673 = vst [vmem:[#allocation78_spill] sm:$0xff] %v10636_v50  ;;  %1259 = vmatprep.subr.bf16.mxu1 %v10633_v28  ;;  %v10655_v1 = vld [vmem:[%s10151_s12 + $0x60] ss:$16 sps:$4 sm:$0xff]   ;;  %v10674_v28 = vld [vmem:[%s10151_s12 + $0x88] ss:$16 sps:$4 sm:$0xff]  }
 0x118   :  { %1260 = vmatpush1.bf16.msra.mxu1 %v10639_v19  ;;  %13678 = vst [vmem:[#allocation83_spill] sm:$0xff] %v10655_v1  ;;  %v10668_v19 = vld [vmem:[%s10151_s12 + $0x8c] ss:$16 sps:$4 sm:$0xff]   ;;  %13683 = vst [vmem:[#allocation88_spill] sm:$0xff] %v10674_v28 }
 0x119   :  { %13681 = vst [vmem:[#allocation86_spill] sm:$0xff] %v10668_v19 }
 0x11a   :  { %1299 = vmatpush1.bf16.msra.mxu0 %v10626_v30  ;;  %v10649_v30 = vld [vmem:[%s10151_s12 + $0x64] ss:$16 sps:$4 sm:$0xff]  }
 0x11b   :  { %1300 = vmatprep.subr.bf16.mxu0 %v10636_v50  ;;  %13676 = vst [vmem:[#allocation81_spill] sm:$0xff] %v10649_v30  ;;  %1261 = vmatprep.subr.bf16.mxu1 %v10649_v30  ;;  %v10671_v50 = vld [vmem:[%s10151_s12 + $0x80] ss:$16 sps:$4 sm:$0xff]   ;;  %v10690_v30 = vld [vmem:[%s10151_s12 + $0xa8] ss:$16 sps:$4 sm:$0xff]  }
 0x11c   :  { %1262 = vmatpush1.bf16.msra.mxu1 %v10655_v1  ;;  %13682 = vst [vmem:[#allocation87_spill] sm:$0xff] %v10671_v50  ;;  %v10684_v1 = vld [vmem:[%s10151_s12 + $0xac] ss:$16 sps:$4 sm:$0xff]   ;;  %13687 = vst [vmem:[#allocation92_spill] sm:$0xff] %v10690_v30 }
 0x11d   :  { %13685 = vst [vmem:[#allocation90_spill] sm:$0xff] %v10684_v1 }
 0x11e   :  { %1301 = vmatpush1.bf16.msra.mxu0 %v10642_v47  ;;  %v10665_v47 = vld [vmem:[%s10151_s12 + $0x84] ss:$16 sps:$4 sm:$0xff]  }
 0x11f   :  { %1302 = vmatprep.subr.bf16.mxu0 %v10652_v0  ;;  %13680 = vst [vmem:[#allocation85_spill] sm:$0xff] %v10665_v47  ;;  %1263 = vmatprep.subr.bf16.mxu1 %v10665_v47  ;;  %v10687_v0 = vld [vmem:[%s10151_s12 + $0xa0] ss:$16 sps:$4 sm:$0xff]   ;;  %v10696_v47 = vld [vmem:[%s10151_s12 + $0xcc] ss:$16 sps:$4 sm:$0xff]  }
 0x120   :  { %1264 = vmatpush1.bf16.msra.mxu1 %v10671_v50  ;;  %13686 = vst [vmem:[#allocation91_spill] sm:$0xff] %v10687_v0  ;;  %13689 = vst [vmem:[#allocation94_spill] sm:$0xff] %v10696_v47  ;;  %v10707_v50 = vld [vmem:[%s10151_s12 + $0xc8] ss:$16 sps:$4 sm:$0xff]  }
 0x121   :  { %13691 = vst [vmem:[#allocation96_spill] sm:$0xff] %v10707_v50 }
 0x122   :  { %1303 = vmatpush1.bf16.msra.mxu0 %v10658_v20  ;;  %v10681_v20 = vld [vmem:[%s10151_s12 + $0xa4] ss:$16 sps:$4 sm:$0xff]  }
 0x123   :  { %1304 = vmatprep.subr.bf16.mxu0 %v10668_v19  ;;  %13684 = vst [vmem:[#allocation89_spill] sm:$0xff] %v10681_v20  ;;  %1265 = vmatprep.subr.bf16.mxu1 %v10681_v20  ;;  %v10710_v19 = vld [vmem:[%s10151_s12 + $0xe4] ss:$16 sps:$4 sm:$0xff]  }
 0x124   :  { %1266 = vmatpush1.bf16.msra.mxu1 %v10687_v0  ;;  %13692 = vst [vmem:[#allocation97_spill] sm:$0xff] %v10710_v19  ;;  %v7780_v0 = vld [vmem:[%s13694_s9] ss:$0 sm:$0xff] }
 0x125   :  { %1267 = vmatprep.subr.bf16.mxu1 %v10693_v15 }
 0x126   :  { %1305 = vmatpush1.bf16.msra.mxu0 %v10674_v28  ;;  %v10702_v28 = vld [vmem:[%s10151_s12 + $0xc0] ss:$16 sps:$4 sm:$0xff]  }
 0x127   :  { %1306 = vmatprep.subr.bf16.mxu0 %v10684_v1  ;;  %13690 = vst [vmem:[#allocation95_spill] sm:$0xff] %v10702_v28  ;;  %v10718_v1 = vld [vmem:[%s10151_s12 + $0xe0] ss:$16 sps:$4 sm:$0xff]  }
 0x128   :  { %1268 = vmatpush1.bf16.msra.mxu1 %v10702_v28  ;;  %13695 = vst [vmem:[#allocation99_spill] sm:$0xff] %v10718_v1  ;;  %v325_v28 = vlaneseq }
 0x129   :  { %1269 = vmatprep.subr.bf16.mxu1 %v10710_v19 }
 0x12a   :  { %1307 = vmatpush1.bf16.msra.mxu0 %v10690_v30  ;;  %v10723_v30 = vld [vmem:[%s10151_s12 + $0xe8] ss:$16 sps:$4 sm:$0xff]  }
 0x12b   :  { %1308 = vmatprep.subr.bf16.mxu0 %v10696_v47  ;;  %13696 = vst [vmem:[#allocation100_spill] sm:$0xff] %v10723_v30  ;;  %v10730_v47 = vshrl.u32 %v325_v28, 7 }
 0x12c   :  { %1270 = vmatpush1.bf16.msra.mxu1 %v10718_v1 }
 0x12d   :  { %1386 = vmatprep.subr.bf16.mxu1 %v10324_v10  ;;  %13697 = vst [vmem:[#allocation101_spill] sm:$0xff] %v10730_v47  ;;  %v10733_v15 = vsub.s32 0, %v10730_v47  ;;  %v10736_v19 = vsub.s32 1, %v10730_v47  ;;  %v10746_v5 = vsub.s32 2, %v10730_v47 }
 0x12e   :  { %1309 = vmatpush1.bf16.msra.mxu0 %v10707_v50  ;;  %v323_v50 = vld [vmem:[#allocation9] sm:$0xf] }
 0x12f   :  { %1310 = vmatprep.subr.bf16.mxu0 %v10714_v16  ;;  %13698 = vst [vmem:[#allocation102_spill] sm:$0xff] %v10733_v15  ;;  %13699 = vst [vmem:[#allocation103_spill] sm:$0xff] %v10736_v19  ;;  %v328_v16 = vrot.slane %v323_v50, %v10733_v15  ;;  %v332_v10 = vrot.slane %v323_v50, %v10736_v19  ;;  %v10749_v15 = vsub.s32 3, %v10730_v47 }
 0x130   :  { %13702 = vst [vmem:[#allocation106_spill] sm:$0xff] %v10746_v5  ;;  %v336_v19 = vrot.slane %v323_v50, %v10746_v5 }
 0x131   :  { %13703 = vst [vmem:[#allocation107_spill] sm:$0xff] %v10749_v15 }
 0x132   :  { %1311 = vmatpush1.bf16.msra.mxu0 %v10723_v30 }
 0x133   :  { %1427 = vmatprep.subr.bf16.mxu0 %v10340_v21 }
 0x19f   :  { %v409_v1 = vpop.f32.mrb[0].mxu1 }
 0x1a0   :  { %v411_v20 = vpop.f32.mrb[1].mxu1  ;;  %v308_v30 = vpop.f32.mrb[0].mxu0 }
 0x1a1   :  { %v413_v13 = vpop.f32.mrb[2].mxu1  ;;  %v309_v21 = vadd.f32 %v7780_v0, %v308_v30  ;;  %v8561_v12 = vpop.f32.mrb[1].mxu0 }
 0x1a2   :  { %v10741_v28 = vadd.f32 %v413_v13, %v328_v16  ;;  %v415_v9 = vpop.f32.mrb[3].mxu1  ;;  %v311_v11 = vpop.f32.mrb[2].mxu0  ;;  %v340_v12 = vrot.slane %v323_v50, %v10749_v15 }
 0x1a3   :  { %v10743_v7 = vadd.f32 %v415_v9, %v332_v10  ;;  %v314_v8 = vmul.f32 0.1, %v309_v21  ;;  %v8562_v6 = vpop.f32.mrb[3].mxu0 }
 0x1a4   :  { %13700 = vst [vmem:[#allocation104_spill] sm:$0xff] %v10741_v28 }
 0x1a5   :  { %13701 = vst [vmem:[#allocation105_spill] sm:$0xff] %v10743_v7  ;;  %v10751_v3 = vmax.f32 %v309_v21, %v314_v8 }
 0x1a7   :  { %13704 = vst [vmem:[#allocation108_spill] sm:$0xff] %v10751_v3  ;;  %v419_v11 = vpop.f32.mrb[4].mxu1 }
 0x1a8   :  { %v460_v0 = vpop.f32.mrb[4].mxu0  ;;  %v10757_v6 = vadd.f32 %v419_v11, %v328_v16  ;;  %v421_v28 = vpop.f32.mrb[5].mxu1 }
 0x1a9   :  { %v462_v13 = vpop.f32.mrb[5].mxu0  ;;  %v10761_v47 = vadd.f32 %v421_v28, %v332_v10  ;;  %v423_v8 = vpop.f32.mrb[6].mxu1 }
 0x1aa   :  { %v464_v30 = vpop.f32.mrb[6].mxu0  ;;  %13706 = vst [vmem:[#allocation110_spill] sm:$0xff] %v10757_v6  ;;  %v424_v21 = vpop.f32.mrb[7].mxu1 }
 0x1ab   :  { %v10755_v9 = vadd.f32 %v464_v30, %v336_v19  ;;  %v466_v7 = vpop.f32.mrb[7].mxu0  ;;  %13708 = vst [vmem:[#allocation112_spill] sm:$0xff] %v10761_v47  ;;  %v10767_v30 = vadd.f32 %v409_v1, %v328_v16  ;;  %v10775_v1 = vadd.f32 %v460_v0, %v336_v19 }
 0x1ac   :  { %v10759_v4 = vadd.f32 %v466_v7, %v340_v12 }
 0x1ad   :  { %13705 = vst [vmem:[#allocation109_spill] sm:$0xff] %v10755_v9  ;;  %v10769_v9 = vadd.f32 %v411_v20, %v332_v10 }
 0x1ae   :  { %13707 = vst [vmem:[#allocation111_spill] sm:$0xff] %v10759_v4 }
 0x1b0   :  { %v470_v3 = vpop.f32.mrb[8].mxu0 }
 0x1b1   :  { %v10763_v5 = vadd.f32 %v470_v3, %v336_v19  ;;  %v472_v2 = vpop.f32.mrb[9].mxu0  ;;  %v575_v19 = vld [vmem:[%s13711_s13] sm:$0x3] }
 0x1b2   :  { %v10765_v50 = vadd.f32 %v472_v2, %v340_v12  ;;  %v474_v15 = vpop.f32.mrb[10].mxu0  ;;  %v10773_v2 = vadd.f32 %v462_v13, %v340_v12 }
 0x1b3   :  { %13709 = vst [vmem:[#allocation113_spill] sm:$0xff] %v10763_v5  ;;  %v475_v63 = vpop.f32.mrb[11].mxu0 }
 0x1b4   :  { %13710 = vst [vmem:[#allocation114_spill] sm:$0xff] %v10765_v50 }
 0x1bf   :  { %v775_v11 = vpop.f32.mrb[8].mxu1 }
 0x1c0   :  { %v823_v7 = vadd.f32 %v775_v11, %v10767_v30  ;;  %v777_v6 = vpop.f32.mrb[9].mxu1 }
 0x1c1   :  { %v824_v28 = vadd.f32 %v777_v6, %v10769_v9  ;;  %v779_v8 = vpop.f32.mrb[10].mxu1 }
 0x1c2   :  { %v7828_v21 = vmul.f32 -1.442695, %v823_v7  ;;  %v780_v47 = vpop.f32.mrb[11].mxu1 }
 0x1c3   :  { %v7829_v3 = vmul.f32 -1.442695, %v824_v28 }
 0x1c4   :  { %8804 = vpow2.f32 %v7828_v21 }
 0x1c5   :  { %8806 = vpow2.f32 %v7829_v3 }
 0x1c8   :  { %v816_v15 = vpop.f32.mrb[12].mxu0 }
 0x1c9   :  { %v818_v63 = vpop.f32.mrb[13].mxu0  ;;  %v825_v11 = vadd.f32 %v816_v15, %v10775_v1 }
 0x1ca   :  { %v826_v16 = vadd.f32 %v818_v63, %v10773_v2  ;;  %v820_v20 = vpop.f32.mrb[14].mxu0 }
 0x1cb   :  { %v821_v10 = vpop.f32.mrb[15].mxu0 }
 0x1cc   :  { %v7830_v6 = vmul.f32 -1.442695, %v826_v16 }
 0x1ce   :  { %v8805_v8 = vpop.eup %8804  ;;  %8808 = vpow2.f32 %v7830_v6 }
 0x1cf   :  { %v8807_v7 = vpop.eup %8806  ;;  %v830_v47 = vadd.f32 1.0, %v8805_v8  ;;  %8810 = vtanh.f32 %v825_v11  ;;  %v13731_v11 = vld [vmem:[#allocation65_spill] sm:$0xff] }
 0x1d0   :  { %v836_v28 = vadd.f32 1.0, %v8807_v7  ;;  %v13732_v7 = vld [vmem:[#allocation67_spill] sm:$0xff] }
 0x1d1   :  { %8812 = vrcp.f32 %v830_v47  ;;  %v13733_v47 = vld [vmem:[#allocation66_spill] sm:$0xff] }
 0x1d2   :  { %8814 = vrcp.f32 %v836_v28  ;;  %v13734_v28 = vld [vmem:[#allocation68_spill] sm:$0xff] }
 0x1d8   :  { %v8809_v12 = vpop.eup %8808 }
 0x1d9   :  { %v8811_v13 = vpop.eup %8810  ;;  %v843_v63 = vadd.f32 1.0, %v8809_v12  ;;  %v13735_v12 = vld [vmem:[#allocation69_spill] sm:$0xff] }
 0x1db   :  { %v8813_v0 = vpop.eup %8812  ;;  %8816 = vrcp.f32 %v843_v63 }
 0x1dc   :  { %v8815_v21 = vpop.eup %8814  ;;  %v847_v3 = vmul.f32 %v8813_v0, %v8811_v13  ;;  %v13736_v13 = vld [vmem:[#allocation70_spill] sm:$0xff] }
 0x1dd   :  { %v846_v20 = vmul.f32 %v8815_v21, %v575_v19  ;;  %v573_v19 = vld [vmem:[#allocation10] sm:$0xf]  ;;  %v13737_v0 = vld [vmem:[#allocation102_spill] sm:$0xff] }
 0x1de   :  { %v10852_v21 = vrot.slane %v573_v19, %v13737_v0 }
 0x1df   :  { %v10780_v10 = vadd.f32 %v847_v3, %v846_v20  ;;  %v13738_v3 = vld [vmem:[#allocation103_spill] sm:$0xff] }
 0x1e0   :  { %v10855_v63 = vrot.slane %v573_v19, %v13738_v3 }
 0x1e1   :  { %8818 = vtanh.f32 %v10780_v10 }
 0x1e5   :  { %v8817_v15 = vpop.eup %8816 }
 0x1eb   :  { %v8819_v16 = vpop.eup %8818 }
 0x1ec   :  { %v850_v6 = vmul.f32 %v8819_v16, %v8817_v15 }
 0x1ee   :  { %v851_v8 = vpack.c.bf16 %v850_v6, %v850_v6 }
 0x1f0   :  { %1288 = vmatmul.mubr.bf16.vlgmr.msra.gmra.mrb[16].mxu1 %v851_v8  ;;  %1329 = vmatmul.mubr.bf16.vlgmr.msra.gmra.mrb[20].mxu0 %v851_v8 }
 0x1f1   :  { %1387 = vmatpush1.bf16.msra.mxu1 %v10330_v14  ;;  %1428 = vmatpush1.bf16.msra.mxu0 %v10358_v25  ;;  %v13712_v14 = vld [vmem:[#allocation46_spill] sm:$0xff]  ;;  %v13717_v25 = vld [vmem:[#allocation51_spill] sm:$0xff] }
 0x1f2   :  { %1388 = vmatprep.subr.bf16.mxu1 %v10334_v17  ;;  %1429 = vmatprep.subr.bf16.mxu0 %v10365_v27  ;;  %v13713_v17 = vld [vmem:[#allocation47_spill] sm:$0xff]  ;;  %v13719_v27 = vld [vmem:[#allocation52_spill] sm:$0xff] }
 0x1f3   :  { %1418 = vmatprep.mubr.bf16.mxu1 %v13667_v18  ;;  %1459 = vmatprep.mubr.bf16.mxu0 %v13667_v18 }
 0x1f5   :  { %1389 = vmatpush1.bf16.msra.mxu1 %v10344_v22  ;;  %1430 = vmatpush1.bf16.msra.mxu0 %v10374_v31  ;;  %v13714_v22 = vld [vmem:[#allocation49_spill] sm:$0xff]  ;;  %v1047_v31 = vpop.f32.mrb[12].mxu1 }
 0x1f6   :  { %1390 = vmatprep.subr.bf16.mxu1 %v10348_v23  ;;  %1431 = vmatprep.subr.bf16.mxu0 %v10383_v33  ;;  %v13715_v23 = vld [vmem:[#allocation48_spill] sm:$0xff]  ;;  %v13721_v33 = vld [vmem:[#allocation54_spill] sm:$0xff] }
 0x1f9   :  { %1391 = vmatpush1.bf16.msra.mxu1 %v10355_v24  ;;  %1432 = vmatpush1.bf16.msra.mxu0 %v10395_v35  ;;  %v13716_v24 = vld [vmem:[#allocation50_spill] sm:$0xff] }
 0x1fa   :  { %1392 = vmatprep.subr.bf16.mxu1 %v10362_v26  ;;  %1433 = vmatprep.subr.bf16.mxu0 %v10405_v38  ;;  %v13718_v26 = vld [vmem:[#allocation53_spill] sm:$0xff] }
 0x1fd   :  { %1393 = vmatpush1.bf16.msra.mxu1 %v10369_v29  ;;  %1434 = vmatpush1.bf16.msra.mxu0 %v10408_v39  ;;  %v13720_v29 = vld [vmem:[#allocation55_spill] sm:$0xff]  ;;  %v1088_v39 = vpop.f32.mrb[16].mxu0 }
 0x1fe   :  { %1394 = vmatprep.subr.bf16.mxu1 %v10379_v32  ;;  %1435 = vmatprep.subr.bf16.mxu0 %v10415_v41  ;;  %v1049_v32 = vpop.f32.mrb[13].mxu1 }
 0x1ff   :  { %v1051_v35 = vpop.f32.mrb[14].mxu1 }
 0x200   :  { %v1052_v38 = vpop.f32.mrb[15].mxu1 }
 0x201   :  { %1395 = vmatpush1.bf16.msra.mxu1 %v10390_v34  ;;  %1436 = vmatpush1.bf16.msra.mxu0 %v10426_v43  ;;  %v13722_v34 = vld [vmem:[#allocation56_spill] sm:$0xff] }
 0x202   :  { %1396 = vmatprep.subr.bf16.mxu1 %v10398_v36  ;;  %1437 = vmatprep.subr.bf16.mxu0 %v10433_v45  ;;  %v13723_v36 = vld [vmem:[#allocation57_spill] sm:$0xff]  ;;  %v13726_v43 = vld [vmem:[#allocation60_spill] sm:$0xff] }
 0x203   :  { %v13727_v45 = vld [vmem:[#allocation61_spill] sm:$0xff] }
 0x205   :  { %1397 = vmatpush1.bf16.msra.mxu1 %v10402_v37  ;;  %1438 = vmatpush1.bf16.msra.mxu0 %v10443_v48  ;;  %v13724_v37 = vld [vmem:[#allocation59_spill] sm:$0xff]  ;;  %v13729_v48 = vld [vmem:[#allocation62_spill] sm:$0xff] }
 0x206   :  { %1398 = vmatprep.subr.bf16.mxu1 %v10412_v40  ;;  %1439 = vmatprep.subr.bf16.mxu0 %v10447_v49  ;;  %v1090_v40 = vpop.f32.mrb[17].mxu0  ;;  %v13730_v49 = vld [vmem:[#allocation64_spill] sm:$0xff] }
 0x207   :  { %v1092_v41 = vpop.f32.mrb[18].mxu0 }
 0x209   :  { %1399 = vmatpush1.bf16.msra.mxu1 %v10422_v42  ;;  %1440 = vmatpush1.bf16.msra.mxu0 %v10453_v51  ;;  %v13725_v42 = vld [vmem:[#allocation58_spill] sm:$0xff] }
 0x20a   :  { %1400 = vmatprep.subr.bf16.mxu1 %v10429_v44  ;;  %1441 = vmatprep.subr.bf16.mxu0 %v10457_v52  ;;  %v1093_v44 = vpop.f32.mrb[19].mxu0 }
 0x20d   :  { %1401 = vmatpush1.bf16.msra.mxu1 %v10439_v46  ;;  %1442 = vmatpush1.bf16.msra.mxu0 %v10462_v53  ;;  %v13728_v46 = vld [vmem:[#allocation63_spill] sm:$0xff] }
 0x20e   :  { %1513 = vmatprep.subr.bf16.mxu1 %v10470_v54  ;;  %1554 = vmatprep.subr.bf16.mxu0 %v10477_v56 }
 0x210   :  { %1419 = vmatmul.mubr.bf16.vlgmr.msra.gmra.mrb[20].mxu1 %v851_v8  ;;  %1460 = vmatmul.mubr.bf16.vlgmr.msra.gmra.mrb[24].mxu0 %v851_v8 }
 0x211   :  { %1514 = vmatpush1.bf16.msra.mxu1 %v10473_v55  ;;  %1555 = vmatpush1.bf16.msra.mxu0 %v10480_v57 }
 0x212   :  { %1515 = vmatprep.subr.bf16.mxu1 %v10483_v58  ;;  %1556 = vmatprep.subr.bf16.mxu0 %v10490_v60 }
 0x213   :  { %1545 = vmatprep.mubr.bf16.mxu1 %v13667_v18  ;;  %1586 = vmatprep.mubr.bf16.mxu0 %v13667_v18 }
 0x215   :  { %1516 = vmatpush1.bf16.msra.mxu1 %v10487_v59  ;;  %1557 = vmatpush1.bf16.msra.mxu0 %v10499_v62 }
 0x216   :  { %1517 = vmatprep.subr.bf16.mxu1 %v10495_v61  ;;  %1558 = vmatprep.subr.bf16.mxu0 %v13712_v14 }
 0x219   :  { %1518 = vmatpush1.bf16.msra.mxu1 %v13713_v17  ;;  %1559 = vmatpush1.bf16.msra.mxu0 %v13714_v22 }
 0x21a   :  { %1519 = vmatprep.subr.bf16.mxu1 %v13715_v23  ;;  %1560 = vmatprep.subr.bf16.mxu0 %v13716_v24 }
 0x21d   :  { %1520 = vmatpush1.bf16.msra.mxu1 %v13717_v25  ;;  %1561 = vmatpush1.bf16.msra.mxu0 %v13718_v26 }
 0x21e   :  { %1521 = vmatprep.subr.bf16.mxu1 %v13719_v27  ;;  %1562 = vmatprep.subr.bf16.mxu0 %v13720_v29 }
 0x221   :  { %1522 = vmatpush1.bf16.msra.mxu1 %v13721_v33  ;;  %1563 = vmatpush1.bf16.msra.mxu0 %v13722_v34 }
 0x222   :  { %1523 = vmatprep.subr.bf16.mxu1 %v13723_v36  ;;  %1564 = vmatprep.subr.bf16.mxu0 %v13724_v37 }
 0x225   :  { %1524 = vmatpush1.bf16.msra.mxu1 %v13725_v42  ;;  %1565 = vmatpush1.bf16.msra.mxu0 %v13726_v43 }
 0x226   :  { %1525 = vmatprep.subr.bf16.mxu1 %v13727_v45  ;;  %1566 = vmatprep.subr.bf16.mxu0 %v13728_v46 }
 0x229   :  { %1526 = vmatpush1.bf16.msra.mxu1 %v13729_v48  ;;  %1567 = vmatpush1.bf16.msra.mxu0 %v13730_v49 }
 0x22a   :  { %1527 = vmatprep.subr.bf16.mxu1 %v13731_v11  ;;  %1568 = vmatprep.subr.bf16.mxu0 %v13732_v7 }
 0x22d   :  { %1528 = vmatpush1.bf16.msra.mxu1 %v13733_v47  ;;  %1569 = vmatpush1.bf16.msra.mxu0 %v13734_v28  ;;  %v13739_v28 = vld [vmem:[#allocation107_spill] sm:$0xff] }
 0x22e   :  { %1598 = vmatprep.subr.bf16.mxu1 %v13735_v12  ;;  %1639 = vmatprep.subr.bf16.mxu0 %v13736_v13  ;;  %v10860_v3 = vrot.slane %v573_v19, %v13739_v28 }
 0x2c3   :  { %v1289_v20 = vpop.f32.mrb[16].mxu1  ;;  %v1330_v15 = vpop.f32.mrb[20].mxu0 }
 0x2c4   :  { %v1290_v16 = vadd.f32 %v1289_v20, %v1047_v31  ;;  %v1331_v6 = vadd.f32 %v1330_v15, %v1088_v39  ;;  %v1291_v8 = vpop.f32.mrb[17].mxu1  ;;  %v1332_v35 = vpop.f32.mrb[21].mxu0  ;;  %v7795_v15 = vld [vmem:[%s13711_s13 + $0x2] sm:$0x3] }
 0x2c5   :  { %v1292_v38 = vadd.f32 %v1291_v8, %v1049_v32  ;;  %v1333_v41 = vadd.f32 %v1332_v35, %v1090_v40  ;;  %v1293_v44 = vpop.f32.mrb[18].mxu1  ;;  %v1334_v5 = vpop.f32.mrb[22].mxu0  ;;  %v13740_v32 = vld [vmem:[#allocation106_spill] sm:$0xff] }
 0x2c6   :  { %v1358_v50 = vadd.f32 %v10852_v21, %v1290_v16  ;;  %v1294_v4 = vpop.f32.mrb[19].mxu1  ;;  %v1335_v13 = vpop.f32.mrb[23].mxu0  ;;  %v10864_v39 = vrot.slane %v573_v19, %v13740_v32 }
 0x2c7   :  { %v1359_v0 = vadd.f32 %v10855_v63, %v1292_v38  ;;  %v1361_v31 = vadd.f32 %v10860_v3, %v1333_v41 }
 0x2c8   :  { %v7895_v12 = vmul.f32 -1.442695, %v1358_v50  ;;  %v1360_v40 = vadd.f32 %v10864_v39, %v1331_v6 }
 0x2c9   :  { %v7896_v47 = vmul.f32 -1.442695, %v1359_v0  ;;  %v7897_v5 = vmul.f32 -1.442695, %v1361_v31 }
 0x2ca   :  { %8820 = vpow2.f32 %v7895_v12 }
 0x2cb   :  { %8822 = vpow2.f32 %v7896_v47 }
 0x2cc   :  { %8824 = vpow2.f32 %v7897_v5 }
 0x2cd   :  { %8826 = vtanh.f32 %v1360_v40 }
 0x2d4   :  { %v8821_v4 = vpop.eup %8820 }
 0x2d5   :  { %v8823_v13 = vpop.eup %8822  ;;  %v1365_v20 = vadd.f32 1.0, %v8821_v4 }
 0x2d6   :  { %v1371_v50 = vadd.f32 1.0, %v8823_v13  ;;  %v8825_v0 = vpop.eup %8824 }
 0x2d7   :  { %8828 = vrcp.f32 %v1365_v20  ;;  %v8827_v12 = vpop.eup %8826  ;;  %v1378_v35 = vadd.f32 1.0, %v8825_v0 }
 0x2d8   :  { %8830 = vrcp.f32 %v1371_v50 }
 0x2d9   :  { %8832 = vrcp.f32 %v1378_v35 }
 0x2e1   :  { %v8829_v47 = vpop.eup %8828 }
 0x2e2   :  { %v8831_v16 = vpop.eup %8830  ;;  %v1382_v8 = vmul.f32 %v8829_v47, %v8827_v12 }
 0x2e3   :  { %v1381_v19 = vmul.f32 %v8831_v16, %v7795_v15  ;;  %v1420_v38 = vpop.f32.mrb[20].mxu1  ;;  %v1461_v41 = vpop.f32.mrb[24].mxu0 }
 0x2e4   :  { %v1472_v44 = vrot.slane %v1420_v38, 6  ;;  %v1422_v6 = vpop.f32.mrb[21].mxu1  ;;  %v1463_v31 = vpop.f32.mrb[25].mxu0  ;;  %v1474_v16 = vrot.slane %v1461_v41, 6  ;;  %v13743_v41 = vld [vmem:[#allocation73_spill] sm:$0xff] }
 0x2e5   :  { %v10868_v32 = vadd.f32 %v1382_v8, %v1381_v19  ;;  %v1473_v5 = vrot.slane %v1422_v6, 6  ;;  %v1424_v40 = vpop.f32.mrb[22].mxu1  ;;  %v1465_v4 = vpop.f32.mrb[26].mxu0  ;;  %v1475_v15 = vrot.slane %v1463_v31, 6  ;;  %v13742_v31 = vld [vmem:[#allocation72_spill] sm:$0xff] }
 0x2e6   :  { %v1480_v13 = vadd.f32 %v1472_v44, %v10767_v30  ;;  %v1425_v20 = vpop.f32.mrb[23].mxu1  ;;  %v1466_v50 = vpop.f32.mrb[27].mxu0  ;;  %v1482_v35 = vadd.f32 %v1474_v16, %v10775_v1  ;;  %v13749_v16 = vld [vmem:[#allocation79_spill] sm:$0xff] }
 0x2e7   :  { %v1481_v28 = vadd.f32 %v1473_v5, %v10769_v9  ;;  %8834 = vtanh.f32 %v10868_v32  ;;  %v1483_v47 = vadd.f32 %v1475_v15, %v10773_v2  ;;  %v8833_v8 = vpop.eup %8832  ;;  %v13744_v20 = vld [vmem:[#allocation74_spill] sm:$0xff]  ;;  %v13745_v50 = vld [vmem:[#allocation75_spill] sm:$0xff] }
 0x2e8   :  { %v7898_v0 = vmul.f32 -1.442695, %v1480_v13  ;;  %v13748_v15 = vld [vmem:[#allocation78_spill] sm:$0xff] }
 0x2e9   :  { %v7899_v12 = vmul.f32 -1.442695, %v1481_v28  ;;  %v7900_v38 = vmul.f32 -1.442695, %v1483_v47  ;;  %v13741_v28 = vld [vmem:[#allocation71_spill] sm:$0xff] }
 0x2ea   :  { %8836 = vpow2.f32 %v7898_v0  ;;  %v13746_v0 = vld [vmem:[#allocation76_spill] sm:$0xff] }
 0x2eb   :  { %8838 = vpow2.f32 %v7899_v12  ;;  %v13747_v12 = vld [vmem:[#allocation77_spill] sm:$0xff] }
 0x2ec   :  { %8840 = vpow2.f32 %v7900_v38  ;;  %v13751_v38 = vld [vmem:[#allocation81_spill] sm:$0xff] }
 0x2ed   :  { %8842 = vtanh.f32 %v1482_v35  ;;  %v13752_v35 = vld [vmem:[#allocation82_spill] sm:$0xff] }
 0x2f1   :  { %v8835_v19 = vpop.eup %8834 }
 0x2f2   :  { %v1385_v44 = vmul.f32 %v8835_v19, %v8833_v8  ;;  %v13750_v8 = vld [vmem:[#allocation80_spill] sm:$0xff] }
 0x2f4   :  { %v8837_v6 = vpop.eup %8836  ;;  %v1512_v40 = vpack.c.bf16 %v1385_v44, %v1385_v44 }
 0x2f5   :  { %v8839_v4 = vpop.eup %8838  ;;  %v1487_v5 = vadd.f32 1.0, %v8837_v6  ;;  %v1504_v6 = vrot.slane %v10780_v10, 6  ;;  %v13759_v10 = vld [vmem:[#allocation89_spill] sm:$0xff] }
 0x2f6   :  { %v1493_v13 = vadd.f32 1.0, %v8839_v4  ;;  %1546 = vmatmul.mubr.bf16.vlgmr.msra.gmra.mrb[24].mxu1 %v1512_v40  ;;  %1587 = vmatmul.mubr.bf16.vlgmr.msra.gmra.mrb[28].mxu0 %v1512_v40  ;;  %v8841_v47 = vpop.eup %8840 }
 0x2f7   :  { %8844 = vrcp.f32 %v1487_v5  ;;  %1599 = vmatpush1.bf16.msra.mxu1 %v13741_v28  ;;  %1640 = vmatpush1.bf16.msra.mxu0 %v13742_v31  ;;  %v8843_v19 = vpop.eup %8842  ;;  %v1500_v5 = vadd.f32 1.0, %v8841_v47  ;;  %v13753_v28 = vld [vmem:[#allocation83_spill] sm:$0xff]  ;;  %v13754_v31 = vld [vmem:[#allocation84_spill] sm:$0xff]  ;;  %v13760_v47 = vld [vmem:[#allocation90_spill] sm:$0xff] }
 0x2f8   :  { %8846 = vrcp.f32 %v1493_v13  ;;  %1600 = vmatprep.subr.bf16.mxu1 %v13743_v41  ;;  %1641 = vmatprep.subr.bf16.mxu0 %v13744_v20  ;;  %v13755_v41 = vld [vmem:[#allocation85_spill] sm:$0xff]  ;;  %v13756_v20 = vld [vmem:[#allocation86_spill] sm:$0xff] }
 0x2f9   :  { %1630 = vmatprep.mubr.bf16.mxu1 %v13667_v18  ;;  %1671 = vmatprep.mubr.bf16.mxu0 %v13667_v18  ;;  %8848 = vrcp.f32 %v1500_v5  ;;  %v13766_v5 = vld [vmem:[#allocation96_spill] sm:$0xff] }
 0x2fb   :  { %1601 = vmatpush1.bf16.msra.mxu1 %v13745_v50  ;;  %1642 = vmatpush1.bf16.msra.mxu0 %v13746_v0  ;;  %v13757_v0 = vld [vmem:[#allocation87_spill] sm:$0xff] }
 0x2fc   :  { %1602 = vmatprep.subr.bf16.mxu1 %v13747_v12  ;;  %1643 = vmatprep.subr.bf16.mxu0 %v13748_v15 }
 0x2ff   :  { %1603 = vmatpush1.bf16.msra.mxu1 %v13749_v16  ;;  %1644 = vmatpush1.bf16.msra.mxu0 %v13750_v8 }
 0x300   :  { %1604 = vmatprep.subr.bf16.mxu1 %v13751_v38  ;;  %1645 = vmatprep.subr.bf16.mxu0 %v13752_v35  ;;  %v13758_v35 = vld [vmem:[#allocation88_spill] sm:$0xff] }
 0x301   :  { %v8845_v44 = vpop.eup %8844 }
 0x302   :  { %v8847_v40 = vpop.eup %8846  ;;  %v1507_v4 = vmul.f32 %v8845_v44, %v8843_v19  ;;  %v13761_v19 = vld [vmem:[#allocation91_spill] sm:$0xff]  ;;  %v13762_v44 = vld [vmem:[#allocation92_spill] sm:$0xff] }
 0x303   :  { %v1506_v13 = vmul.f32 %v8847_v40, %v1504_v6  ;;  %1605 = vmatpush1.bf16.msra.mxu1 %v13753_v28  ;;  %1646 = vmatpush1.bf16.msra.mxu0 %v13754_v31  ;;  %v13763_v6 = vld [vmem:[#allocation93_spill] sm:$0xff]  ;;  %v13764_v40 = vld [vmem:[#allocation94_spill] sm:$0xff] }
 0x304   :  { %1606 = vmatprep.subr.bf16.mxu1 %v13755_v41  ;;  %1647 = vmatprep.subr.bf16.mxu0 %v13756_v20  ;;  %v13767_v28 = vld [vmem:[#allocation97_spill] sm:$0xff]  ;;  %v13768_v31 = vld [vmem:[#allocation98_spill] sm:$0xff] }
 0x305   :  { %v10894_v50 = vadd.f32 %v1507_v4, %v1506_v13  ;;  %v13765_v4 = vld [vmem:[#allocation95_spill] sm:$0xff]  ;;  %v8849_v13 = vpop.eup %8848 }
 0x307   :  { %1607 = vmatpush1.bf16.msra.mxu1 %v13757_v0  ;;  %1648 = vmatpush1.bf16.msra.mxu0 %v13758_v35  ;;  %8850 = vtanh.f32 %v10894_v50 }
 0x308   :  { %1608 = vmatprep.subr.bf16.mxu1 %v13759_v10  ;;  %1649 = vmatprep.subr.bf16.mxu0 %v13760_v47  ;;  %v13769_v10 = vld [vmem:[#allocation99_spill] sm:$0xff] }
 0x30b   :  { %1609 = vmatpush1.bf16.msra.mxu1 %v13761_v19  ;;  %1650 = vmatpush1.bf16.msra.mxu0 %v13762_v44  ;;  %v13770_v44 = vld [vmem:[#allocation100_spill] sm:$0xff] }
 0x30c   :  { %1610 = vmatprep.subr.bf16.mxu1 %v13763_v6  ;;  %1651 = vmatprep.subr.bf16.mxu0 %v13764_v40  ;;  %v10912_v40 = vld [vmem:[%s10141_s30 + $0x4] ss:$16 sps:$4 sm:$0xff]  }
 0x30d   :  { %13771 = vst [vmem:[#allocation46_spill] sm:$0xff] %v10912_v40 }
 0x30f   :  { %1611 = vmatpush1.bf16.msra.mxu1 %v13765_v4  ;;  %1652 = vmatpush1.bf16.msra.mxu0 %v13766_v5  ;;  %v10916_v5 = vld [vmem:[%s10141_s30 + $0xc] ss:$16 sps:$4 sm:$0xff]  }
 0x310   :  { %1612 = vmatprep.subr.bf16.mxu1 %v13767_v28  ;;  %1653 = vmatprep.subr.bf16.mxu0 %v13768_v31  ;;  %13772 = vst [vmem:[#allocation47_spill] sm:$0xff] %v10916_v5 }
 0x311   :  { %v8851_v47 = vpop.eup %8850 }
 0x312   :  { %v1510_v19 = vmul.f32 %v8851_v47, %v8849_v13  ;;  %v10924_v47 = vld [vmem:[%s10141_s30] ss:$16 sps:$4 sm:$0xff]   ;;  %v10928_v13 = vld [vmem:[%s10141_s30 + $0x8] ss:$16 sps:$4 sm:$0xff]  }
 0x313   :  { %1613 = vmatpush1.bf16.msra.mxu1 %v13769_v10  ;;  %1654 = vmatpush1.bf16.msra.mxu0 %v13770_v44  ;;  %13773 = vst [vmem:[#allocation49_spill] sm:$0xff] %v10924_v47  ;;  %13774 = vst [vmem:[#allocation48_spill] sm:$0xff] %v10928_v13 }
 0x314   :  { %1708 = vmatprep.subr.bf16.mxu1 %v10912_v40  ;;  %1749 = vmatprep.subr.bf16.mxu0 %v10916_v5  ;;  %v1511_v28 = vpack.c.bf16 %v1510_v19, %v1510_v19  ;;  %v10932_v5 = vld [vmem:[%s10141_s30 + $0x24] ss:$16 sps:$4 sm:$0xff]   ;;  %v10936_v19 = vld [vmem:[%s10141_s30 + $0x2c] ss:$16 sps:$4 sm:$0xff]   ;;  %v11010_v40 = vld [vmem:[%s10141_s30 + $0xa8] ss:$16 sps:$4 sm:$0xff]  }
 0x315   :  { %13775 = vst [vmem:[#allocation50_spill] sm:$0xff] %v10932_v5  ;;  %13776 = vst [vmem:[#allocation51_spill] sm:$0xff] %v10936_v19 }
 0x316   :  { %v10919_v31 = vrot.slane %v1511_v28, 1  ;;  %v10942_v28 = vld [vmem:[%s10141_s30 + $0x20] ss:$16 sps:$4 sm:$0xff]   ;;  %13793 = vst [vmem:[#allocation72_spill] sm:$0xff] %v11010_v40 }
 0x317   :  { %13777 = vst [vmem:[#allocation53_spill] sm:$0xff] %v10942_v28 }
 0x318   :  { %1631 = vmatmul.mubr.bf16.vlgmr.msra.gmra.mrb[28].mxu1 %v10919_v31  ;;  %1672 = vmatmul.mubr.bf16.vlgmr.msra.gmra.mrb[32].mxu0 %v10919_v31 }
 0x319   :  { %1709 = vmatpush1.bf16.msra.mxu1 %v10924_v47  ;;  %1750 = vmatpush1.bf16.msra.mxu0 %v10928_v13  ;;  %v10946_v13 = vld [vmem:[%s10141_s30 + $0x28] ss:$16 sps:$4 sm:$0xff]   ;;  %v10958_v47 = vld [vmem:[%s10141_s30 + $0x40] ss:$16 sps:$4 sm:$0xff]  }
 0x31a   :  { %1710 = vmatprep.subr.bf16.mxu1 %v10932_v5  ;;  %1751 = vmatprep.subr.bf16.mxu0 %v10936_v19  ;;  %13778 = vst [vmem:[#allocation52_spill] sm:$0xff] %v10946_v13  ;;  %v10950_v5 = vld [vmem:[%s10141_s30 + $0x44] ss:$16 sps:$4 sm:$0xff]   ;;  %v10954_v19 = vld [vmem:[%s10141_s30 + $0x4c] ss:$16 sps:$4 sm:$0xff]   ;;  %13781 = vst [vmem:[#allocation56_spill] sm:$0xff] %v10958_v47 }
 0x31b   :  { %1740 = vmatprep.mubr.bf16.mxu1 %v13667_v18  ;;  %1781 = vmatprep.mubr.bf16.mxu0 %v13667_v18  ;;  %13779 = vst [vmem:[#allocation55_spill] sm:$0xff] %v10950_v5  ;;  %13780 = vst [vmem:[#allocation54_spill] sm:$0xff] %v10954_v19 }
 0x31d   :  { %1711 = vmatpush1.bf16.msra.mxu1 %v10942_v28  ;;  %1752 = vmatpush1.bf16.msra.mxu0 %v10946_v13  ;;  %v10962_v28 = vld [vmem:[%s10141_s30 + $0x48] ss:$16 sps:$4 sm:$0xff]   ;;  %v10966_v13 = vld [vmem:[%s10141_s30 + $0x64] ss:$16 sps:$4 sm:$0xff]  }
 0x31e   :  { %1712 = vmatprep.subr.bf16.mxu1 %v10950_v5  ;;  %1753 = vmatprep.subr.bf16.mxu0 %v10954_v19  ;;  %13782 = vst [vmem:[#allocation57_spill] sm:$0xff] %v10962_v28  ;;  %13783 = vst [vmem:[#allocation59_spill] sm:$0xff] %v10966_v13  ;;  %v10970_v5 = vld [vmem:[%s10141_s30 + $0x6c] ss:$16 sps:$4 sm:$0xff]   ;;  %v10974_v19 = vld [vmem:[%s10141_s30 + $0x60] ss:$16 sps:$4 sm:$0xff]  }
 0x31f   :  { %13784 = vst [vmem:[#allocation58_spill] sm:$0xff] %v10970_v5  ;;  %13785 = vst [vmem:[#allocation60_spill] sm:$0xff] %v10974_v19 }
 0x321   :  { %1713 = vmatpush1.bf16.msra.mxu1 %v10958_v47  ;;  %1754 = vmatpush1.bf16.msra.mxu0 %v10962_v28  ;;  %v10978_v47 = vld [vmem:[%s10141_s30 + $0x68] ss:$16 sps:$4 sm:$0xff]   ;;  %v10982_v28 = vld [vmem:[%s10141_s30 + $0x84] ss:$16 sps:$4 sm:$0xff]  }
 0x322   :  { %1714 = vmatprep.subr.bf16.mxu1 %v10966_v13  ;;  %1755 = vmatprep.subr.bf16.mxu0 %v10970_v5  ;;  %13786 = vst [vmem:[#allocation61_spill] sm:$0xff] %v10978_v47  ;;  %13787 = vst [vmem:[#allocation63_spill] sm:$0xff] %v10982_v28  ;;  %v10986_v13 = vld [vmem:[%s10141_s30 + $0x8c] ss:$16 sps:$4 sm:$0xff]   ;;  %v10990_v5 = vld [vmem:[%s10141_s30 + $0x80] ss:$16 sps:$4 sm:$0xff]  }
 0x323   :  { %13788 = vst [vmem:[#allocation62_spill] sm:$0xff] %v10986_v13  ;;  %13789 = vst [vmem:[#allocation64_spill] sm:$0xff] %v10990_v5 }
 0x325   :  { %1715 = vmatpush1.bf16.msra.mxu1 %v10974_v19  ;;  %1756 = vmatpush1.bf16.msra.mxu0 %v10978_v47  ;;  %v10994_v19 = vld [vmem:[%s10141_s30 + $0x88] ss:$16 sps:$4 sm:$0xff]   ;;  %v10998_v47 = vld [vmem:[%s10141_s30 + $0xa4] ss:$16 sps:$4 sm:$0xff]  }
 0x326   :  { %1716 = vmatprep.subr.bf16.mxu1 %v10982_v28  ;;  %1757 = vmatprep.subr.bf16.mxu0 %v10986_v13  ;;  %13790 = vst [vmem:[#allocation65_spill] sm:$0xff] %v10994_v19  ;;  %13791 = vst [vmem:[#allocation67_spill] sm:$0xff] %v10998_v47  ;;  %v11002_v28 = vld [vmem:[%s10141_s30 + $0xac] ss:$16 sps:$4 sm:$0xff]   ;;  %v11006_v13 = vld [vmem:[%s10141_s30 + $0xa0] ss:$16 sps:$4 sm:$0xff]  }
 0x327   :  { %13792 = vst [vmem:[#allocation71_spill] sm:$0xff] %v11002_v28 }
 0x329   :  { %1717 = vmatpush1.bf16.msra.mxu1 %v10990_v5  ;;  %1758 = vmatpush1.bf16.msra.mxu0 %v10994_v19  ;;  %v11014_v5 = vld [vmem:[%s10141_s30 + $0xc4] ss:$16 sps:$4 sm:$0xff]   ;;  %v11018_v19 = vld [vmem:[%s10141_s30 + $0xcc] ss:$16 sps:$4 sm:$0xff]  }
 0x32a   :  { %1718 = vmatprep.subr.bf16.mxu1 %v10998_v47  ;;  %1759 = vmatprep.subr.bf16.mxu0 %v11002_v28  ;;  %13794 = vst [vmem:[#allocation73_spill] sm:$0xff] %v11014_v5  ;;  %13795 = vst [vmem:[#allocation74_spill] sm:$0xff] %v11018_v19  ;;  %v11022_v47 = vld [vmem:[%s10141_s30 + $0xc0] ss:$16 sps:$4 sm:$0xff]   ;;  %v11027_v28 = vld [vmem:[%s10141_s30 + $0xe4] ss:$16 sps:$4 sm:$0xff]  }
 0x32b   :  { %13796 = vst [vmem:[#allocation75_spill] sm:$0xff] %v11022_v47  ;;  %13797 = vst [vmem:[#allocation76_spill] sm:$0xff] %v11027_v28 }
 0x32d   :  { %1719 = vmatpush1.bf16.msra.mxu1 %v11006_v13  ;;  %1760 = vmatpush1.bf16.msra.mxu0 %v11010_v40  ;;  %v11032_v40 = vld [vmem:[%s10141_s30 + $0xe0] ss:$16 sps:$4 sm:$0xff]  }
 0x32e   :  { %1720 = vmatprep.subr.bf16.mxu1 %v11014_v5  ;;  %1761 = vmatprep.subr.bf16.mxu0 %v11018_v19  ;;  %13798 = vst [vmem:[#allocation77_spill] sm:$0xff] %v11032_v40 }
 0x331   :  { %1721 = vmatpush1.bf16.msra.mxu1 %v11022_v47  ;;  %1762 = vmatpush1.bf16.msra.mxu0 %v10453_v51  ;;  %v13799_v51 = vld [vmem:[#allocation66_spill] sm:$0xff] }
 0x332   :  { %1722 = vmatprep.subr.bf16.mxu1 %v11027_v28  ;;  %1763 = vmatprep.subr.bf16.mxu0 %v10457_v52  ;;  %v13800_v52 = vld [vmem:[#allocation68_spill] sm:$0xff] }
 0x335   :  { %1723 = vmatpush1.bf16.msra.mxu1 %v11032_v40  ;;  %1764 = vmatpush1.bf16.msra.mxu0 %v10462_v53  ;;  %v13801_v53 = vld [vmem:[#allocation69_spill] sm:$0xff] }
 0x336   :  { %1835 = vmatprep.subr.bf16.mxu1 %v10470_v54  ;;  %1876 = vmatprep.subr.bf16.mxu0 %v10477_v56  ;;  %v13802_v54 = vld [vmem:[#allocation70_spill] sm:$0xff] }
 0x338   :  { %1741 = vmatmul.mubr.bf16.vlgmr.msra.gmra.mrb[32].mxu1 %v10919_v31  ;;  %1782 = vmatmul.mubr.bf16.vlgmr.msra.gmra.mrb[36].mxu0 %v10919_v31 }
 0x339   :  { %1836 = vmatpush1.bf16.msra.mxu1 %v10473_v55  ;;  %1877 = vmatpush1.bf16.msra.mxu0 %v10480_v57 }
 0x33a   :  { %1837 = vmatprep.subr.bf16.mxu1 %v10483_v58  ;;  %1878 = vmatprep.subr.bf16.mxu0 %v10490_v60 }
 0x33b   :  { %1867 = vmatprep.mubr.bf16.mxu1 %v13667_v18  ;;  %1908 = vmatprep.mubr.bf16.mxu0 %v13667_v18 }
 0x33d   :  { %1838 = vmatpush1.bf16.msra.mxu1 %v10487_v59  ;;  %1879 = vmatpush1.bf16.msra.mxu0 %v10499_v62 }
 0x33e   :  { %1839 = vmatprep.subr.bf16.mxu1 %v10495_v61  ;;  %1880 = vmatprep.subr.bf16.mxu0 %v13712_v14 }
 0x341   :  { %1840 = vmatpush1.bf16.msra.mxu1 %v13713_v17  ;;  %1881 = vmatpush1.bf16.msra.mxu0 %v13714_v22 }
 0x342   :  { %1841 = vmatprep.subr.bf16.mxu1 %v13715_v23  ;;  %1882 = vmatprep.subr.bf16.mxu0 %v13716_v24 }
 0x345   :  { %1842 = vmatpush1.bf16.msra.mxu1 %v13717_v25  ;;  %1883 = vmatpush1.bf16.msra.mxu0 %v13718_v26 }
 0x346   :  { %1843 = vmatprep.subr.bf16.mxu1 %v13719_v27  ;;  %1884 = vmatprep.subr.bf16.mxu0 %v13720_v29 }
 0x349   :  { %1844 = vmatpush1.bf16.msra.mxu1 %v13721_v33  ;;  %1885 = vmatpush1.bf16.msra.mxu0 %v13722_v34 }
 0x34a   :  { %1845 = vmatprep.subr.bf16.mxu1 %v13723_v36  ;;  %1886 = vmatprep.subr.bf16.mxu0 %v13724_v37 }
 0x34d   :  { %1846 = vmatpush1.bf16.msra.mxu1 %v13725_v42  ;;  %1887 = vmatpush1.bf16.msra.mxu0 %v13726_v43 }
 0x34e   :  { %1847 = vmatprep.subr.bf16.mxu1 %v13727_v45  ;;  %1888 = vmatprep.subr.bf16.mxu0 %v13728_v46 }
 0x351   :  { %1848 = vmatpush1.bf16.msra.mxu1 %v13729_v48  ;;  %1889 = vmatpush1.bf16.msra.mxu0 %v13730_v49 }
 0x352   :  { %1849 = vmatprep.subr.bf16.mxu1 %v13731_v11  ;;  %1890 = vmatprep.subr.bf16.mxu0 %v13732_v7 }
 0x355   :  { %1850 = vmatpush1.bf16.msra.mxu1 %v13799_v51  ;;  %1891 = vmatpush1.bf16.msra.mxu0 %v13800_v52 }
 0x356   :  { %1920 = vmatprep.subr.bf16.mxu1 %v13801_v53  ;;  %1961 = vmatprep.subr.bf16.mxu0 %v13802_v54 }
 0x3c9   :  { %v1547_v55 = vpop.f32.mrb[24].mxu1  ;;  %v1588_v56 = vpop.f32.mrb[28].mxu0 }
 0x3ca   :  { %v1549_v57 = vpop.f32.mrb[25].mxu1  ;;  %v1590_v58 = vpop.f32.mrb[29].mxu0 }
 0x3cb   :  { %v1551_v59 = vpop.f32.mrb[26].mxu1  ;;  %v1592_v60 = vpop.f32.mrb[30].mxu0 }
 0x3cc   :  { %v1552_v61 = vpop.f32.mrb[27].mxu1  ;;  %v1593_v62 = vpop.f32.mrb[31].mxu0 }
 0x3eb   :  { %v1632_v14 = vpop.f32.mrb[28].mxu1  ;;  %v1673_v17 = vpop.f32.mrb[32].mxu0 }
 0x3ec   :  { %v1633_v22 = vadd.f32 %v1632_v14, %v1547_v55  ;;  %v1674_v23 = vadd.f32 %v1673_v17, %v1588_v56  ;;  %v1634_v24 = vpop.f32.mrb[29].mxu1  ;;  %v1675_v25 = vpop.f32.mrb[33].mxu0 }
 0x3ed   :  { %v1635_v26 = vadd.f32 %v1634_v24, %v1549_v57  ;;  %v1676_v27 = vadd.f32 %v1675_v25, %v1590_v58  ;;  %v1636_v29 = vpop.f32.mrb[30].mxu1  ;;  %v1677_v33 = vpop.f32.mrb[34].mxu0 }
 0x3ee   :  { %v1680_v34 = vadd.f32 %v1633_v22, %v10852_v21  ;;  %v1637_v36 = vpop.f32.mrb[31].mxu1  ;;  %v1678_v37 = vpop.f32.mrb[35].mxu0  ;;  %v1682_v49 = vadd.f32 %v1674_v23, %v10864_v39 }
 0x3ef   :  { %v1681_v42 = vadd.f32 %v1635_v26, %v10855_v63  ;;  %v1683_v46 = vadd.f32 %v1676_v27, %v10860_v3 }
 0x3f0   :  { %v7901_v43 = vmul.f32 -1.442695, %v1680_v34 }
 0x3f1   :  { %v7902_v45 = vmul.f32 -1.442695, %v1681_v42  ;;  %v7903_v48 = vmul.f32 -1.442695, %v1683_v46 }
 0x3f2   :  { %8852 = vpow2.f32 %v7901_v43 }
 0x3f3   :  { %8854 = vpow2.f32 %v7902_v45 }
 0x3f4   :  { %8856 = vpow2.f32 %v7903_v48 }
 0x3f5   :  { %8858 = vtanh.f32 %v1682_v49 }
 0x3fc   :  { %v8853_v11 = vpop.eup %8852 }
 0x3fd   :  { %v8855_v7 = vpop.eup %8854  ;;  %v1687_v31 = vadd.f32 1.0, %v8853_v11 }
 0x3fe   :  { %v1693_v51 = vadd.f32 1.0, %v8855_v7  ;;  %v8857_v52 = vpop.eup %8856 }
 0x3ff   :  { %8860 = vrcp.f32 %v1687_v31  ;;  %v8859_v53 = vpop.eup %8858  ;;  %v1700_v57 = vadd.f32 1.0, %v8857_v52  ;;  %v11087_v52 = vld [vmem:[%s10151_s12] ss:$16 sps:$4 sm:$0xff]  }
 0x400   :  { %8862 = vrcp.f32 %v1693_v51 }
 0x401   :  { %8864 = vrcp.f32 %v1700_v57  ;;  %v11109_v57 = vld [vmem:[%s10151_s12 + $0x28] ss:$16 sps:$4 sm:$0xff]  }
 0x409   :  { %v8861_v54 = vpop.eup %8860 }
 0x40a   :  { %v8863_v55 = vpop.eup %8862  ;;  %v1704_v56 = vmul.f32 %v8861_v54, %v8859_v53  ;;  %v11091_v53 = vld [vmem:[%s10151_s12 + $0x8] ss:$16 sps:$4 sm:$0xff]   ;;  %v11095_v54 = vld [vmem:[%s10151_s12 + $0x24] ss:$16 sps:$4 sm:$0xff]  }
 0x40b   :  { %v1703_v58 = vmul.f32 %v8863_v55, %v10868_v32  ;;  %v1742_v59 = vpop.f32.mrb[32].mxu1  ;;  %v1783_v60 = vpop.f32.mrb[36].mxu0  ;;  %v11099_v55 = vld [vmem:[%s10151_s12 + $0x2c] ss:$16 sps:$4 sm:$0xff]  }
 0x40c   :  { %v1794_v61 = vrot.slane %v1742_v59, 4  ;;  %v1744_v62 = vpop.f32.mrb[33].mxu1  ;;  %v1785_v14 = vpop.f32.mrb[37].mxu0  ;;  %v1796_v37 = vrot.slane %v1783_v60, 4  ;;  %v13803_v60 = vld [vmem:[#allocation82_spill] sm:$0xff] }
 0x40d   :  { %v11079_v17 = vadd.f32 %v1704_v56, %v1703_v58  ;;  %v1795_v22 = vrot.slane %v1744_v62, 4  ;;  %v1746_v23 = vpop.f32.mrb[34].mxu1  ;;  %v1787_v24 = vpop.f32.mrb[38].mxu0  ;;  %v1797_v34 = vrot.slane %v1785_v14, 4  ;;  %v11105_v56 = vld [vmem:[%s10151_s12 + $0x20] ss:$16 sps:$4 sm:$0xff]  }
 0x40e   :  { %v1802_v25 = vadd.f32 %v1794_v61, %v10767_v30  ;;  %v1747_v26 = vpop.f32.mrb[35].mxu1  ;;  %v1788_v27 = vpop.f32.mrb[39].mxu0  ;;  %v1804_v46 = vadd.f32 %v1796_v37, %v10775_v1  ;;  %v1826_v62 = vrot.slane %v10894_v50, 6  ;;  %v11120_v24 = vld [vmem:[%s10151_s12 + $0x60] ss:$16 sps:$4 sm:$0xff]   ;;  %v13816_v37 = vld [vmem:[#allocation50_spill] sm:$0xff] }
 0x40f   :  { %v1803_v29 = vadd.f32 %v1795_v22, %v10769_v9  ;;  %8866 = vtanh.f32 %v11079_v17  ;;  %v1805_v36 = vadd.f32 %v1797_v34, %v10773_v2  ;;  %v8865_v42 = vpop.eup %8864  ;;  %v13806_v50 = vld [vmem:[#allocation91_spill] sm:$0xff]  ;;  %v13811_v26 = vld [vmem:[#allocation98_spill] sm:$0xff] }
 0x410   :  { %v7904_v32 = vmul.f32 -1.442695, %v1802_v25  ;;  %v13807_v25 = vld [vmem:[#allocation92_spill] sm:$0xff] }
 0x411   :  { %v7905_v33 = vmul.f32 -1.442695, %v1803_v29  ;;  %v7906_v45 = vmul.f32 -1.442695, %v1805_v36  ;;  %v13815_v36 = vld [vmem:[#allocation48_spill] sm:$0xff] }
 0x412   :  { %8868 = vpow2.f32 %v7904_v32  ;;  %v13812_v32 = vld [vmem:[#allocation46_spill] sm:$0xff] }
 0x413   :  { %8870 = vpow2.f32 %v7905_v33 }
 0x414   :  { %8872 = vpow2.f32 %v7906_v45  ;;  %v13821_v45 = vld [vmem:[#allocation54_spill] sm:$0xff] }
 0x415   :  { %8874 = vtanh.f32 %v1804_v46  ;;  %v13822_v46 = vld [vmem:[#allocation56_spill] sm:$0xff] }
 0x419   :  { %v8867_v43 = vpop.eup %8866 }
 0x41a   :  { %v1707_v48 = vmul.f32 %v8867_v43, %v8865_v42  ;;  %v13817_v42 = vld [vmem:[#allocation51_spill] sm:$0xff] }
 0x41b   :  { %v13820_v43 = vld [vmem:[#allocation55_spill] sm:$0xff] }
 0x41c   :  { %v8869_v49 = vpop.eup %8868  ;;  %v1834_v11 = vpack.c.bf16 %v1707_v48, %v1707_v48  ;;  %v13823_v48 = vld [vmem:[#allocation57_spill] sm:$0xff] }
 0x41d   :  { %v8871_v7 = vpop.eup %8870  ;;  %v1809_v31 = vadd.f32 1.0, %v8869_v49  ;;  %v13824_v49 = vld [vmem:[#allocation59_spill] sm:$0xff] }
 0x41e   :  { %v1815_v51 = vadd.f32 1.0, %v8871_v7  ;;  %1868 = vmatmul.mubr.bf16.vlgmr.msra.gmra.mrb[36].mxu1 %v1834_v11  ;;  %1909 = vmatmul.mubr.bf16.vlgmr.msra.gmra.mrb[40].mxu0 %v1834_v11  ;;  %v8873_v58 = vpop.eup %8872  ;;  %v13825_v11 = vld [vmem:[#allocation58_spill] sm:$0xff]  ;;  %v13826_v7 = vld [vmem:[#allocation60_spill] sm:$0xff] }
 0x41f   :  { %8876 = vrcp.f32 %v1809_v31  ;;  %1921 = vmatpush1.bf16.msra.mxu1 %v11087_v52  ;;  %1962 = vmatpush1.bf16.msra.mxu0 %v11091_v53  ;;  %v8875_v59 = vpop.eup %8874  ;;  %v1822_v23 = vadd.f32 1.0, %v8873_v58  ;;  %v13827_v31 = vld [vmem:[#allocation61_spill] sm:$0xff]  ;;  %v13829_v58 = vld [vmem:[#allocation62_spill] sm:$0xff] }
 0x420   :  { %8878 = vrcp.f32 %v1815_v51  ;;  %1922 = vmatprep.subr.bf16.mxu1 %v11095_v54  ;;  %1963 = vmatprep.subr.bf16.mxu0 %v11099_v55  ;;  %v13828_v51 = vld [vmem:[#allocation63_spill] sm:$0xff] }
 0x421   :  { %1952 = vmatprep.mubr.bf16.mxu1 %v13667_v18  ;;  %1993 = vmatprep.mubr.bf16.mxu0 %v13667_v18  ;;  %8880 = vrcp.f32 %v1822_v23  ;;  %v11181_v23 = vld [vmem:[%s10141_s30 + $0xec] ss:$16 sps:$4 sm:$0xff]  }
 0x422   :  { %13836 = vst [vmem:[#allocation79_spill] sm:$0xff] %v11181_v23 }
 0x423   :  { %1923 = vmatpush1.bf16.msra.mxu1 %v11105_v56  ;;  %1964 = vmatpush1.bf16.msra.mxu0 %v11109_v57 }
 0x424   :  { %1924 = vmatprep.subr.bf16.mxu1 %v13747_v12  ;;  %1965 = vmatprep.subr.bf16.mxu0 %v13748_v15  ;;  %v11124_v15 = vld [vmem:[%s10151_s12 + $0x68] ss:$16 sps:$4 sm:$0xff]  }
 0x427   :  { %1925 = vmatpush1.bf16.msra.mxu1 %v13749_v16  ;;  %1966 = vmatpush1.bf16.msra.mxu0 %v13750_v8  ;;  %v13804_v8 = vld [vmem:[#allocation89_spill] sm:$0xff] }
 0x428   :  { %1926 = vmatprep.subr.bf16.mxu1 %v13751_v38  ;;  %1967 = vmatprep.subr.bf16.mxu0 %v13803_v60  ;;  %v13805_v38 = vld [vmem:[#allocation90_spill] sm:$0xff]  ;;  %v13831_v60 = vld [vmem:[#allocation65_spill] sm:$0xff] }
 0x429   :  { %v8877_v61 = vpop.eup %8876 }
 0x42a   :  { %v8879_v14 = vpop.eup %8878  ;;  %v1829_v22 = vmul.f32 %v8877_v61, %v8875_v59  ;;  %v13830_v59 = vld [vmem:[#allocation64_spill] sm:$0xff]  ;;  %v13832_v61 = vld [vmem:[#allocation67_spill] sm:$0xff] }
 0x42b   :  { %v1828_v12 = vmul.f32 %v8879_v14, %v1826_v62  ;;  %1927 = vmatpush1.bf16.msra.mxu1 %v11120_v24  ;;  %1968 = vmatpush1.bf16.msra.mxu0 %v11124_v15  ;;  %v13833_v62 = vld [vmem:[#allocation71_spill] sm:$0xff]  ;;  %v13834_v14 = vld [vmem:[#allocation72_spill] sm:$0xff] }
 0x42c   :  { %1928 = vmatprep.subr.bf16.mxu1 %v13755_v41  ;;  %1969 = vmatprep.subr.bf16.mxu0 %v13756_v20  ;;  %v13808_v41 = vld [vmem:[#allocation94_spill] sm:$0xff]  ;;  %v13809_v20 = vld [vmem:[#allocation96_spill] sm:$0xff] }
 0x42d   :  { %v11129_v16 = vadd.f32 %v1829_v22, %v1828_v12  ;;  %v11176_v22 = vld [vmem:[%s10141_s30 + $0xc8] ss:$16 sps:$4 sm:$0xff]  }
 0x42e   :  { %13835 = vst [vmem:[#allocation78_spill] sm:$0xff] %v11176_v22  ;;  %v11186_v12 = vld [vmem:[%s10141_s30 + $0xe8] ss:$16 sps:$4 sm:$0xff]  }
 0x42f   :  { %1929 = vmatpush1.bf16.msra.mxu1 %v13757_v0  ;;  %1970 = vmatpush1.bf16.msra.mxu0 %v13758_v35  ;;  %8882 = vtanh.f32 %v11129_v16  ;;  %v8881_v0 = vpop.eup %8880  ;;  %v13810_v35 = vld [vmem:[#allocation97_spill] sm:$0xff]  ;;  %13837 = vst [vmem:[#allocation80_spill] sm:$0xff] %v11186_v12 }
 0x430   :  { %1930 = vmatprep.subr.bf16.mxu1 %v13804_v8  ;;  %1971 = vmatprep.subr.bf16.mxu0 %v13805_v38  ;;  %v11190_v8 = vld [vmem:[%s10156_s20 + $0x4] ss:$16 sps:$4 sm:$0xff]   ;;  %v11194_v38 = vld [vmem:[%s10156_s20 + $0xc] ss:$16 sps:$4 sm:$0xff]  }
 0x431   :  { %13838 = vst [vmem:[#allocation81_spill] sm:$0xff] %v11190_v8  ;;  %13839 = vst [vmem:[#allocation83_spill] sm:$0xff] %v11194_v38 }
 0x433   :  { %1931 = vmatpush1.bf16.msra.mxu1 %v13806_v50  ;;  %1972 = vmatpush1.bf16.msra.mxu0 %v13807_v25  ;;  %v11198_v50 = vld [vmem:[%s10156_s20] ss:$16 sps:$4 sm:$0xff]   ;;  %v11202_v25 = vld [vmem:[%s10156_s20 + $0x8] ss:$16 sps:$4 sm:$0xff]  }
 0x434   :  { %1932 = vmatprep.subr.bf16.mxu1 %v13763_v6  ;;  %1973 = vmatprep.subr.bf16.mxu0 %v13808_v41  ;;  %v13813_v6 = vld [vmem:[#allocation47_spill] sm:$0xff]  ;;  %13840 = vst [vmem:[#allocation84_spill] sm:$0xff] %v11198_v50  ;;  %13841 = vst [vmem:[#allocation85_spill] sm:$0xff] %v11202_v25 }
 0x435   :  { %v11206_v41 = vld [vmem:[%s10156_s20 + $0x24] ss:$16 sps:$4 sm:$0xff]  }
 0x436   :  { %13842 = vst [vmem:[#allocation86_spill] sm:$0xff] %v11206_v41 }
 0x437   :  { %1933 = vmatpush1.bf16.msra.mxu1 %v13765_v4  ;;  %1974 = vmatpush1.bf16.msra.mxu0 %v13809_v20  ;;  %v13814_v4 = vld [vmem:[#allocation49_spill] sm:$0xff] }
 0x438   :  { %1934 = vmatprep.subr.bf16.mxu1 %v13810_v35  ;;  %1975 = vmatprep.subr.bf16.mxu0 %v13811_v26  ;;  %v11210_v20 = vld [vmem:[%s10156_s20 + $0x2c] ss:$16 sps:$4 sm:$0xff]   ;;  %v11220_v35 = vld [vmem:[%s10156_s20 + $0x28] ss:$16 sps:$4 sm:$0xff]   ;;  %v11224_v26 = vld [vmem:[%s10156_s20 + $0x44] ss:$16 sps:$4 sm:$0xff]  }
 0x439   :  { %v8883_v27 = vpop.eup %8882  ;;  %13843 = vst [vmem:[#allocation87_spill] sm:$0xff] %v11210_v20  ;;  %13845 = vst [vmem:[#allocation93_spill] sm:$0xff] %v11220_v35 }
 0x43a   :  { %v1832_v29 = vmul.f32 %v8883_v27, %v8881_v0  ;;  %v11216_v0 = vld [vmem:[%s10156_s20 + $0x20] ss:$16 sps:$4 sm:$0xff]   ;;  %13846 = vst [vmem:[#allocation95_spill] sm:$0xff] %v11224_v26  ;;  %v11228_v27 = vld [vmem:[%s10156_s20 + $0x4c] ss:$16 sps:$4 sm:$0xff]  }
 0x43b   :  { %1935 = vmatpush1.bf16.msra.mxu1 %v13769_v10  ;;  %1976 = vmatpush1.bf16.msra.mxu0 %v13770_v44  ;;  %v13818_v10 = vld [vmem:[#allocation53_spill] sm:$0xff]  ;;  %v13819_v44 = vld [vmem:[#allocation52_spill] sm:$0xff]  ;;  %13844 = vst [vmem:[#allocation88_spill] sm:$0xff] %v11216_v0  ;;  %13847 = vst [vmem:[#allocation99_spill] sm:$0xff] %v11228_v27 }
 0x43c   :  { %2030 = vmatprep.subr.bf16.mxu1 %v13812_v32  ;;  %2071 = vmatprep.subr.bf16.mxu0 %v13813_v6  ;;  %v1833_v33 = vpack.c.bf16 %v1832_v29, %v1832_v29  ;;  %v11232_v29 = vld [vmem:[%s10156_s20 + $0x40] ss:$16 sps:$4 sm:$0xff]  }
 0x43d   :  { %13848 = vst [vmem:[#allocation100_spill] sm:$0xff] %v11232_v29 }
 0x43e   :  { %v1918_v34 = vrot.slane %v1833_v33, 2  ;;  %v11236_v33 = vld [vmem:[%s10156_s20 + $0x48] ss:$16 sps:$4 sm:$0xff]  }
 0x43f   :  { %13849 = vst [vmem:[#allocation66_spill] sm:$0xff] %v11236_v33 }
 0x440   :  { %1953 = vmatmul.mubr.bf16.vlgmr.msra.gmra.mrb[40].mxu1 %v1918_v34  ;;  %1994 = vmatmul.mubr.bf16.vlgmr.msra.gmra.mrb[44].mxu0 %v1918_v34 }
 0x441   :  { %2031 = vmatpush1.bf16.msra.mxu1 %v13814_v4  ;;  %2072 = vmatpush1.bf16.msra.mxu0 %v13815_v36 }
 0x442   :  { %2032 = vmatprep.subr.bf16.mxu1 %v13816_v37  ;;  %2073 = vmatprep.subr.bf16.mxu0 %v13817_v42 }
 0x443   :  { %2062 = vmatprep.mubr.bf16.mxu1 %v13667_v18  ;;  %2103 = vmatprep.mubr.bf16.mxu0 %v13667_v18 }
 0x445   :  { %2033 = vmatpush1.bf16.msra.mxu1 %v13818_v10  ;;  %2074 = vmatpush1.bf16.msra.mxu0 %v13819_v44 }
 0x446   :  { %2034 = vmatprep.subr.bf16.mxu1 %v13820_v43  ;;  %2075 = vmatprep.subr.bf16.mxu0 %v13821_v45 }
 0x449   :  { %2035 = vmatpush1.bf16.msra.mxu1 %v13822_v46  ;;  %2076 = vmatpush1.bf16.msra.mxu0 %v13823_v48 }
 0x44a   :  { %2036 = vmatprep.subr.bf16.mxu1 %v13824_v49  ;;  %2077 = vmatprep.subr.bf16.mxu0 %v13825_v11 }
 0x44d   :  { %2037 = vmatpush1.bf16.msra.mxu1 %v13826_v7  ;;  %2078 = vmatpush1.bf16.msra.mxu0 %v13827_v31 }
 0x44e   :  { %2038 = vmatprep.subr.bf16.mxu1 %v13828_v51  ;;  %2079 = vmatprep.subr.bf16.mxu0 %v13829_v58 }
 0x451   :  { %2039 = vmatpush1.bf16.msra.mxu1 %v13830_v59  ;;  %2080 = vmatpush1.bf16.msra.mxu0 %v13831_v60 }
 0x452   :  { %2040 = vmatprep.subr.bf16.mxu1 %v13832_v61  ;;  %2081 = vmatprep.subr.bf16.mxu0 %v13833_v62 }
 0x455   :  { %2041 = vmatpush1.bf16.msra.mxu1 %v11006_v13  ;;  %2082 = vmatpush1.bf16.msra.mxu0 %v13834_v14 }
 0x456   :  { %2042 = vmatprep.subr.bf16.mxu1 %v11014_v5  ;;  %2083 = vmatprep.subr.bf16.mxu0 %v11018_v19 }
 0x459   :  { %2043 = vmatpush1.bf16.msra.mxu1 %v11022_v47  ;;  %2084 = vmatpush1.bf16.msra.mxu0 %v11176_v22 }
 0x45a   :  { %2044 = vmatprep.subr.bf16.mxu1 %v11027_v28  ;;  %2085 = vmatprep.subr.bf16.mxu0 %v11181_v23 }
 0x45d   :  { %2045 = vmatpush1.bf16.msra.mxu1 %v11032_v40  ;;  %2086 = vmatpush1.bf16.msra.mxu0 %v11186_v12 }
 0x45e   :  { %2157 = vmatprep.subr.bf16.mxu1 %v11190_v8  ;;  %2198 = vmatprep.subr.bf16.mxu0 %v11194_v38 }
 0x460   :  { %2063 = vmatmul.mubr.bf16.vlgmr.msra.gmra.mrb[44].mxu1 %v1918_v34  ;;  %2104 = vmatmul.mubr.bf16.vlgmr.msra.gmra.mrb[48].mxu0 %v1918_v34  ;;  %v11240_v34 = vld [vmem:[%s10156_s20 + $0x64] ss:$16 sps:$4 sm:$0xff]  }
 0x461   :  { %2158 = vmatpush1.bf16.msra.mxu1 %v11198_v50  ;;  %2199 = vmatpush1.bf16.msra.mxu0 %v11202_v25  ;;  %13850 = vst [vmem:[#allocation68_spill] sm:$0xff] %v11240_v34 }
 0x462   :  { %2159 = vmatprep.subr.bf16.mxu1 %v11206_v41  ;;  %2200 = vmatprep.subr.bf16.mxu0 %v11210_v20 }
 0x463   :  { %2189 = vmatprep.mubr.bf16.mxu1 %v13667_v18  ;;  %2230 = vmatprep.mubr.bf16.mxu0 %v13667_v18 }
 0x465   :  { %2160 = vmatpush1.bf16.msra.mxu1 %v11216_v0  ;;  %2201 = vmatpush1.bf16.msra.mxu0 %v11220_v35  ;;  %v11304_v35 = vld [vmem:[%s10156_s20 + $0xe4] ss:$16 sps:$4 sm:$0xff]  }
 0x466   :  { %2161 = vmatprep.subr.bf16.mxu1 %v11224_v26  ;;  %2202 = vmatprep.subr.bf16.mxu0 %v11228_v27  ;;  %v11244_v26 = vld [vmem:[%s10156_s20 + $0x6c] ss:$16 sps:$4 sm:$0xff]   ;;  %v11248_v27 = vld [vmem:[%s10156_s20 + $0x60] ss:$16 sps:$4 sm:$0xff]   ;;  %13866 = vst [vmem:[#allocation50_spill] sm:$0xff] %v11304_v35 }
 0x467   :  { %13851 = vst [vmem:[#allocation69_spill] sm:$0xff] %v11244_v26  ;;  %13852 = vst [vmem:[#allocation70_spill] sm:$0xff] %v11248_v27 }
 0x469   :  { %2162 = vmatpush1.bf16.msra.mxu1 %v11232_v29  ;;  %2203 = vmatpush1.bf16.msra.mxu0 %v11236_v33  ;;  %v11252_v29 = vld [vmem:[%s10156_s20 + $0x68] ss:$16 sps:$4 sm:$0xff]   ;;  %v11256_v33 = vld [vmem:[%s10156_s20 + $0x84] ss:$16 sps:$4 sm:$0xff]  }
 0x46a   :  { %2163 = vmatprep.subr.bf16.mxu1 %v11240_v34  ;;  %2204 = vmatprep.subr.bf16.mxu0 %v11244_v26  ;;  %13853 = vst [vmem:[#allocation82_spill] sm:$0xff] %v11252_v29  ;;  %13854 = vst [vmem:[#allocation89_spill] sm:$0xff] %v11256_v33  ;;  %v11260_v34 = vld [vmem:[%s10156_s20 + $0x8c] ss:$16 sps:$4 sm:$0xff]   ;;  %v11264_v26 = vld [vmem:[%s10156_s20 + $0x80] ss:$16 sps:$4 sm:$0xff]  }
 0x46b   :  { %13855 = vst [vmem:[#allocation90_spill] sm:$0xff] %v11260_v34  ;;  %13856 = vst [vmem:[#allocation91_spill] sm:$0xff] %v11264_v26 }
 0x46d   :  { %2164 = vmatpush1.bf16.msra.mxu1 %v11248_v27  ;;  %2205 = vmatpush1.bf16.msra.mxu0 %v11252_v29  ;;  %v11268_v27 = vld [vmem:[%s10156_s20 + $0x88] ss:$16 sps:$4 sm:$0xff]   ;;  %v11272_v29 = vld [vmem:[%s10156_s20 + $0xa4] ss:$16 sps:$4 sm:$0xff]  }
 0x46e   :  { %2165 = vmatprep.subr.bf16.mxu1 %v11256_v33  ;;  %2206 = vmatprep.subr.bf16.mxu0 %v11260_v34  ;;  %13857 = vst [vmem:[#allocation92_spill] sm:$0xff] %v11268_v27  ;;  %13858 = vst [vmem:[#allocation94_spill] sm:$0xff] %v11272_v29  ;;  %v11276_v33 = vld [vmem:[%s10156_s20 + $0xac] ss:$16 sps:$4 sm:$0xff]   ;;  %v11280_v34 = vld [vmem:[%s10156_s20 + $0xa0] ss:$16 sps:$4 sm:$0xff]  }
 0x46f   :  { %13859 = vst [vmem:[#allocation96_spill] sm:$0xff] %v11276_v33  ;;  %13860 = vst [vmem:[#allocation97_spill] sm:$0xff] %v11280_v34 }
 0x471   :  { %2166 = vmatpush1.bf16.msra.mxu1 %v11264_v26  ;;  %2207 = vmatpush1.bf16.msra.mxu0 %v11268_v27  ;;  %v11284_v26 = vld [vmem:[%s10156_s20 + $0xa8] ss:$16 sps:$4 sm:$0xff]   ;;  %v11288_v27 = vld [vmem:[%s10156_s20 + $0xc4] ss:$16 sps:$4 sm:$0xff]  }
 0x472   :  { %2167 = vmatprep.subr.bf16.mxu1 %v11272_v29  ;;  %2208 = vmatprep.subr.bf16.mxu0 %v11276_v33  ;;  %13861 = vst [vmem:[#allocation98_spill] sm:$0xff] %v11284_v26  ;;  %13862 = vst [vmem:[#allocation46_spill] sm:$0xff] %v11288_v27  ;;  %v11292_v29 = vld [vmem:[%s10156_s20 + $0xcc] ss:$16 sps:$4 sm:$0xff]   ;;  %v11296_v33 = vld [vmem:[%s10156_s20 + $0xc0] ss:$16 sps:$4 sm:$0xff]  }
 0x473   :  { %13863 = vst [vmem:[#allocation47_spill] sm:$0xff] %v11292_v29  ;;  %13864 = vst [vmem:[#allocation49_spill] sm:$0xff] %v11296_v33 }
 0x475   :  { %2168 = vmatpush1.bf16.msra.mxu1 %v11280_v34  ;;  %2209 = vmatpush1.bf16.msra.mxu0 %v11284_v26  ;;  %v11300_v34 = vld [vmem:[%s10156_s20 + $0xc8] ss:$16 sps:$4 sm:$0xff]   ;;  %v11308_v26 = vld [vmem:[%s10156_s20 + $0xec] ss:$16 sps:$4 sm:$0xff]  }
 0x476   :  { %2169 = vmatprep.subr.bf16.mxu1 %v11288_v27  ;;  %2210 = vmatprep.subr.bf16.mxu0 %v11292_v29  ;;  %13865 = vst [vmem:[#allocation48_spill] sm:$0xff] %v11300_v34  ;;  %13867 = vst [vmem:[#allocation51_spill] sm:$0xff] %v11308_v26  ;;  %v11312_v27 = vld [vmem:[%s10156_s20 + $0xe0] ss:$16 sps:$4 sm:$0xff]   ;;  %v11316_v29 = vld [vmem:[%s10156_s20 + $0xe8] ss:$16 sps:$4 sm:$0xff]  }
 0x477   :  { %13868 = vst [vmem:[#allocation53_spill] sm:$0xff] %v11312_v27  ;;  %13869 = vst [vmem:[#allocation52_spill] sm:$0xff] %v11316_v29 }
 0x479   :  { %2170 = vmatpush1.bf16.msra.mxu1 %v11296_v33  ;;  %2211 = vmatpush1.bf16.msra.mxu0 %v11300_v34  ;;  %v11320_v33 = vld [vmem:[%s10151_s12 + $0x4] ss:$16 sps:$4 sm:$0xff]   ;;  %v11324_v34 = vld [vmem:[%s10151_s12 + $0xc] ss:$16 sps:$4 sm:$0xff]  }
 0x47a   :  { %2171 = vmatprep.subr.bf16.mxu1 %v11304_v35  ;;  %2212 = vmatprep.subr.bf16.mxu0 %v11308_v26  ;;  %13870 = vst [vmem:[#allocation55_spill] sm:$0xff] %v11320_v33  ;;  %13871 = vst [vmem:[#allocation54_spill] sm:$0xff] %v11324_v34 }
 0x47d   :  { %2172 = vmatpush1.bf16.msra.mxu1 %v11312_v27  ;;  %2213 = vmatpush1.bf16.msra.mxu0 %v11316_v29 }
 0x47e   :  { %2242 = vmatprep.subr.bf16.mxu1 %v11320_v33  ;;  %2283 = vmatprep.subr.bf16.mxu0 %v11324_v34 }
 0x4f1   :  { %v1869_v35 = vpop.f32.mrb[36].mxu1  ;;  %v1910_v0 = vpop.f32.mrb[40].mxu0 }
 0x4f2   :  { %v1871_v20 = vpop.f32.mrb[37].mxu1  ;;  %v1912_v26 = vpop.f32.mrb[41].mxu0 }
 0x4f3   :  { %v1873_v41 = vpop.f32.mrb[38].mxu1  ;;  %v1914_v25 = vpop.f32.mrb[42].mxu0 }
 0x4f4   :  { %v1874_v50 = vpop.f32.mrb[39].mxu1  ;;  %v1915_v27 = vpop.f32.mrb[43].mxu0 }
 0x513   :  { %v1954_v38 = vpop.f32.mrb[40].mxu1  ;;  %v1995_v8 = vpop.f32.mrb[44].mxu0 }
 0x514   :  { %v1955_v12 = vadd.f32 %v1954_v38, %v1869_v35  ;;  %v1996_v29 = vadd.f32 %v1995_v8, %v1910_v0  ;;  %v1956_v40 = vpop.f32.mrb[41].mxu1  ;;  %v1997_v23 = vpop.f32.mrb[45].mxu0 }
 0x515   :  { %v1957_v28 = vadd.f32 %v1956_v40, %v1871_v20  ;;  %v1998_v33 = vadd.f32 %v1997_v23, %v1912_v26  ;;  %v1958_v22 = vpop.f32.mrb[42].mxu1  ;;  %v1999_v47 = vpop.f32.mrb[46].mxu0 }
 0x516   :  { %v2002_v34 = vadd.f32 %v1955_v12, %v10852_v21  ;;  %v1959_v19 = vpop.f32.mrb[43].mxu1  ;;  %v2000_v5 = vpop.f32.mrb[47].mxu0  ;;  %v2004_v8 = vadd.f32 %v1996_v29, %v10864_v39 }
 0x517   :  { %v2003_v14 = vadd.f32 %v1957_v28, %v10855_v63  ;;  %v2005_v50 = vadd.f32 %v1998_v33, %v10860_v3 }
 0x518   :  { %v7907_v41 = vmul.f32 -1.442695, %v2002_v34 }
 0x519   :  { %v7908_v25 = vmul.f32 -1.442695, %v2003_v14  ;;  %v7909_v38 = vmul.f32 -1.442695, %v2005_v50 }
 0x51a   :  { %8884 = vpow2.f32 %v7907_v41 }
 0x51b   :  { %8886 = vpow2.f32 %v7908_v25 }
 0x51c   :  { %8888 = vpow2.f32 %v7909_v38 }
 0x51d   :  { %8890 = vtanh.f32 %v2004_v8 }
 0x524   :  { %v8885_v0 = vpop.eup %8884 }
 0x525   :  { %v8887_v40 = vpop.eup %8886  ;;  %v2009_v23 = vadd.f32 1.0, %v8885_v0 }
 0x526   :  { %v2015_v47 = vadd.f32 1.0, %v8887_v40  ;;  %v8889_v5 = vpop.eup %8888 }
 0x527   :  { %8892 = vrcp.f32 %v2009_v23  ;;  %v8891_v19 = vpop.eup %8890  ;;  %v2022_v12 = vadd.f32 1.0, %v8889_v5 }
 0x528   :  { %8894 = vrcp.f32 %v2015_v47 }
 0x529   :  { %8896 = vrcp.f32 %v2022_v12 }
 0x531   :  { %v8893_v28 = vpop.eup %8892 }
 0x532   :  { %v8895_v22 = vpop.eup %8894  ;;  %v2026_v14 = vmul.f32 %v8893_v28, %v8891_v19 }
 0x533   :  { %v2025_v20 = vmul.f32 %v8895_v22, %v11079_v17  ;;  %v2064_v35 = vpop.f32.mrb[44].mxu1  ;;  %v2105_v26 = vpop.f32.mrb[48].mxu0 }
 0x534   :  { %v2116_v27 = vrot.slane %v2064_v35, 2  ;;  %v2066_v29 = vpop.f32.mrb[45].mxu1  ;;  %v2107_v33 = vpop.f32.mrb[49].mxu0  ;;  %v2118_v19 = vrot.slane %v2105_v26, 2 }
 0x535   :  { %v11332_v34 = vadd.f32 %v2026_v14, %v2025_v20  ;;  %v2117_v41 = vrot.slane %v2066_v29, 2  ;;  %v2068_v25 = vpop.f32.mrb[46].mxu1  ;;  %v2109_v50 = vpop.f32.mrb[50].mxu0  ;;  %v2119_v47 = vrot.slane %v2107_v33, 2  ;;  %v11356_v33 = vld [vmem:[%s10151_s12 + $0x40] ss:$16 sps:$4 sm:$0xff]  }
 0x536   :  { %v2124_v38 = vadd.f32 %v2116_v27, %v10767_v30  ;;  %v2069_v8 = vpop.f32.mrb[47].mxu1  ;;  %v2110_v0 = vpop.f32.mrb[51].mxu0  ;;  %v2126_v12 = vadd.f32 %v2118_v19, %v10775_v1  ;;  %v11352_v1 = vld [vmem:[%s10151_s12 + $0x4c] ss:$16 sps:$4 sm:$0xff]   ;;  %v11364_v50 = vld [vmem:[%s10151_s12 + $0x64] ss:$16 sps:$4 sm:$0xff]  }
 0x537   :  { %v2125_v40 = vadd.f32 %v2117_v41, %v10769_v9  ;;  %8898 = vtanh.f32 %v11332_v34  ;;  %v2127_v5 = vadd.f32 %v2119_v47, %v10773_v2  ;;  %v8897_v28 = vpop.eup %8896  ;;  %v11348_v2 = vld [vmem:[%s10151_s12 + $0x44] ss:$16 sps:$4 sm:$0xff]   ;;  %v11360_v41 = vld [vmem:[%s10151_s12 + $0x48] ss:$16 sps:$4 sm:$0xff]   ;;  %v2148_v0 = vrot.slane %v11129_v16, 6 }
 0x538   :  { %v7910_v17 = vmul.f32 -1.442695, %v2124_v38  ;;  %v11368_v38 = vld [vmem:[%s10151_s12 + $0x6c] ss:$16 sps:$4 sm:$0xff]  }
 0x539   :  { %v7911_v23 = vmul.f32 -1.442695, %v2125_v40  ;;  %v7912_v14 = vmul.f32 -1.442695, %v2127_v5  ;;  %v11375_v5 = vld [vmem:[%s10151_s12 + $0x84] ss:$16 sps:$4 sm:$0xff]  }
 0x53a   :  { %8900 = vpow2.f32 %v7910_v17  ;;  %v11379_v19 = vld [vmem:[%s10151_s12 + $0x8c] ss:$16 sps:$4 sm:$0xff]  }
 0x53b   :  { %8902 = vpow2.f32 %v7911_v23 }
 0x53c   :  { %8904 = vpow2.f32 %v7912_v14  ;;  %v11394_v14 = vld [vmem:[%s10151_s12 + $0xa4] ss:$16 sps:$4 sm:$0xff]  }
 0x53d   :  { %8906 = vtanh.f32 %v2126_v12  ;;  %v11398_v12 = vld [vmem:[%s10151_s12 + $0xac] ss:$16 sps:$4 sm:$0xff]  }
 0x541   :  { %v8899_v22 = vpop.eup %8898 }
 0x542   :  { %v2029_v30 = vmul.f32 %v8899_v22, %v8897_v28  ;;  %v11385_v28 = vld [vmem:[%s10151_s12 + $0x80] ss:$16 sps:$4 sm:$0xff]   ;;  %v11389_v22 = vld [vmem:[%s10151_s12 + $0x88] ss:$16 sps:$4 sm:$0xff]  }
 0x544   :  { %v8901_v20 = vpop.eup %8900  ;;  %v2156_v35 = vpack.c.bf16 %v2029_v30, %v2029_v30  ;;  %v11402_v30 = vld [vmem:[%s10151_s12 + $0xa0] ss:$16 sps:$4 sm:$0xff]  }
 0x545   :  { %v8903_v27 = vpop.eup %8902  ;;  %v2131_v9 = vadd.f32 1.0, %v8901_v20  ;;  %v11406_v20 = vld [vmem:[%s10151_s12 + $0xa8] ss:$16 sps:$4 sm:$0xff]  }
 0x546   :  { %v2137_v29 = vadd.f32 1.0, %v8903_v27  ;;  %2190 = vmatmul.mubr.bf16.vlgmr.msra.gmra.mrb[48].mxu1 %v2156_v35  ;;  %2231 = vmatmul.mubr.bf16.vlgmr.msra.gmra.mrb[52].mxu0 %v2156_v35  ;;  %v8905_v26 = vpop.eup %8904  ;;  %v11410_v35 = vld [vmem:[%s10151_s12 + $0xc4] ss:$16 sps:$4 sm:$0xff]   ;;  %v11414_v27 = vld [vmem:[%s10151_s12 + $0xcc] ss:$16 sps:$4 sm:$0xff]  }
 0x547   :  { %8908 = vrcp.f32 %v2131_v9  ;;  %2243 = vmatpush1.bf16.msra.mxu1 %v11087_v52  ;;  %2284 = vmatpush1.bf16.msra.mxu0 %v11091_v53  ;;  %v8907_v25 = vpop.eup %8906  ;;  %v2144_v23 = vadd.f32 1.0, %v8905_v26  ;;  %v11418_v9 = vld [vmem:[%s10151_s12 + $0xc0] ss:$16 sps:$4 sm:$0xff]  }
 0x548   :  { %8910 = vrcp.f32 %v2137_v29  ;;  %2244 = vmatprep.subr.bf16.mxu1 %v11095_v54  ;;  %2285 = vmatprep.subr.bf16.mxu0 %v11099_v55  ;;  %v11422_v29 = vld [vmem:[%s10151_s12 + $0xc8] ss:$16 sps:$4 sm:$0xff]  }
 0x549   :  { %2274 = vmatprep.mubr.bf16.mxu1 %v13667_v18  ;;  %2315 = vmatprep.mubr.bf16.mxu0 %v13667_v18  ;;  %8912 = vrcp.f32 %v2144_v23  ;;  %v11438_v23 = vld [vmem:[%s10151_s12 + $0xe8] ss:$16 sps:$4 sm:$0xff]  }
 0x54b   :  { %2245 = vmatpush1.bf16.msra.mxu1 %v11105_v56  ;;  %2286 = vmatpush1.bf16.msra.mxu0 %v11109_v57 }
 0x54c   :  { %2246 = vmatprep.subr.bf16.mxu1 %v11348_v2  ;;  %2287 = vmatprep.subr.bf16.mxu0 %v11352_v1 }
 0x54f   :  { %2247 = vmatpush1.bf16.msra.mxu1 %v11356_v33  ;;  %2288 = vmatpush1.bf16.msra.mxu0 %v11360_v41 }
 0x550   :  { %2248 = vmatprep.subr.bf16.mxu1 %v11364_v50  ;;  %2289 = vmatprep.subr.bf16.mxu0 %v11368_v38 }
 0x551   :  { %v8909_v8 = vpop.eup %8908 }
 0x552   :  { %v8911_v40 = vpop.eup %8910  ;;  %v2151_v17 = vmul.f32 %v8909_v8, %v8907_v25  ;;  %v11426_v25 = vld [vmem:[%s10151_s12 + $0xe4] ss:$16 sps:$4 sm:$0xff]   ;;  %v11430_v8 = vld [vmem:[%s10151_s12 + $0xec] ss:$16 sps:$4 sm:$0xff]  }
 0x553   :  { %v2150_v47 = vmul.f32 %v8911_v40, %v2148_v0  ;;  %2249 = vmatpush1.bf16.msra.mxu1 %v11120_v24  ;;  %2290 = vmatpush1.bf16.msra.mxu0 %v11124_v15  ;;  %v8913_v26 = vpop.eup %8912  ;;  %13872 = vst [vmem:[#allocation56_spill] sm:$0xff] %v11426_v25 }
 0x554   :  { %2250 = vmatprep.subr.bf16.mxu1 %v11375_v5  ;;  %2291 = vmatprep.subr.bf16.mxu0 %v11379_v19 }
 0x555   :  { %v11382_v16 = vadd.f32 %v2151_v17, %v2150_v47  ;;  %v11434_v17 = vld [vmem:[%s10151_s12 + $0xe0] ss:$16 sps:$4 sm:$0xff]  }
 0x557   :  { %2251 = vmatpush1.bf16.msra.mxu1 %v11385_v28  ;;  %2292 = vmatpush1.bf16.msra.mxu0 %v11389_v22  ;;  %8914 = vtanh.f32 %v11382_v16 }
 0x558   :  { %2252 = vmatprep.subr.bf16.mxu1 %v11394_v14  ;;  %2293 = vmatprep.subr.bf16.mxu0 %v11398_v12 }
 0x55b   :  { %2253 = vmatpush1.bf16.msra.mxu1 %v11402_v30  ;;  %2294 = vmatpush1.bf16.msra.mxu0 %v11406_v20 }
 0x55c   :  { %2254 = vmatprep.subr.bf16.mxu1 %v11410_v35  ;;  %2295 = vmatprep.subr.bf16.mxu0 %v11414_v27 }
 0x55f   :  { %2255 = vmatpush1.bf16.msra.mxu1 %v11418_v9  ;;  %2296 = vmatpush1.bf16.msra.mxu0 %v11422_v29 }
 0x560   :  { %2256 = vmatprep.subr.bf16.mxu1 %v11426_v25  ;;  %2297 = vmatprep.subr.bf16.mxu0 %v11430_v8 }
 0x561   :  { %v8915_v0 = vpop.eup %8914 }
 0x562   :  { %v2154_v40 = vmul.f32 %v8915_v0, %v8913_v26  ;;  %v13896_v26 = vld [vmem:[#allocation70_spill] sm:$0xff]  ;;  %v13898_v0 = vld [vmem:[#allocation89_spill] sm:$0xff] }
 0x563   :  { %2257 = vmatpush1.bf16.msra.mxu1 %v11434_v17  ;;  %2298 = vmatpush1.bf16.msra.mxu0 %v11438_v23 }
 0x564   :  { %2352 = vmatprep.subr.bf16.mxu1 %v13812_v32  ;;  %2393 = vmatprep.subr.bf16.mxu0 %v13813_v6  ;;  %v2155_v47 = vpack.c.bf16 %v2154_v40, %v2154_v40  ;;  %v13873_v32 = vld [vmem:[#allocation72_spill] sm:$0xff]  ;;  %v13874_v6 = vld [vmem:[#allocation73_spill] sm:$0xff]  ;;  %v13899_v40 = vld [vmem:[#allocation90_spill] sm:$0xff] }
 0x566   :  { %v2240_v25 = vrot.slane %v2155_v47, 3  ;;  %v13900_v47 = vld [vmem:[#allocation91_spill] sm:$0xff] }
 0x568   :  { %2275 = vmatmul.mubr.bf16.vlgmr.msra.gmra.mrb[52].mxu1 %v2240_v25  ;;  %2316 = vmatmul.mubr.bf16.vlgmr.msra.gmra.mrb[56].mxu0 %v2240_v25 }
 0x569   :  { %2353 = vmatpush1.bf16.msra.mxu1 %v13814_v4  ;;  %2394 = vmatpush1.bf16.msra.mxu0 %v13815_v36  ;;  %v13875_v4 = vld [vmem:[#allocation74_spill] sm:$0xff]  ;;  %v13876_v36 = vld [vmem:[#allocation75_spill] sm:$0xff] }
 0x56a   :  { %2354 = vmatprep.subr.bf16.mxu1 %v13816_v37  ;;  %2395 = vmatprep.subr.bf16.mxu0 %v13817_v42  ;;  %v13877_v37 = vld [vmem:[#allocation78_spill] sm:$0xff]  ;;  %v13878_v42 = vld [vmem:[#allocation76_spill] sm:$0xff] }
 0x56b   :  { %2384 = vmatprep.mubr.bf16.mxu1 %v13667_v18  ;;  %2425 = vmatprep.mubr.bf16.mxu0 %v13667_v18 }
 0x56d   :  { %2355 = vmatpush1.bf16.msra.mxu1 %v13818_v10  ;;  %2396 = vmatpush1.bf16.msra.mxu0 %v13819_v44  ;;  %v13879_v10 = vld [vmem:[#allocation79_spill] sm:$0xff]  ;;  %v13880_v44 = vld [vmem:[#allocation77_spill] sm:$0xff] }
 0x56e   :  { %2356 = vmatprep.subr.bf16.mxu1 %v13820_v43  ;;  %2397 = vmatprep.subr.bf16.mxu0 %v13821_v45  ;;  %v13881_v43 = vld [vmem:[#allocation80_spill] sm:$0xff]  ;;  %v13882_v45 = vld [vmem:[#allocation81_spill] sm:$0xff] }
 0x571   :  { %2357 = vmatpush1.bf16.msra.mxu1 %v13822_v46  ;;  %2398 = vmatpush1.bf16.msra.mxu0 %v13823_v48  ;;  %v13884_v46 = vld [vmem:[#allocation84_spill] sm:$0xff]  ;;  %v13885_v48 = vld [vmem:[#allocation85_spill] sm:$0xff] }
 0x572   :  { %2358 = vmatprep.subr.bf16.mxu1 %v13824_v49  ;;  %2399 = vmatprep.subr.bf16.mxu0 %v13825_v11  ;;  %v13886_v49 = vld [vmem:[#allocation86_spill] sm:$0xff]  ;;  %v13887_v11 = vld [vmem:[#allocation87_spill] sm:$0xff] }
 0x575   :  { %2359 = vmatpush1.bf16.msra.mxu1 %v13826_v7  ;;  %2400 = vmatpush1.bf16.msra.mxu0 %v13827_v31  ;;  %v13888_v7 = vld [vmem:[#allocation88_spill] sm:$0xff]  ;;  %v13889_v31 = vld [vmem:[#allocation93_spill] sm:$0xff] }
 0x576   :  { %2360 = vmatprep.subr.bf16.mxu1 %v13828_v51  ;;  %2401 = vmatprep.subr.bf16.mxu0 %v13829_v58  ;;  %v13890_v51 = vld [vmem:[#allocation95_spill] sm:$0xff] }
 0x577   :  { %v13891_v58 = vld [vmem:[#allocation99_spill] sm:$0xff] }
 0x579   :  { %2361 = vmatpush1.bf16.msra.mxu1 %v13830_v59  ;;  %2402 = vmatpush1.bf16.msra.mxu0 %v13831_v60  ;;  %v13892_v59 = vld [vmem:[#allocation100_spill] sm:$0xff]  ;;  %v13893_v60 = vld [vmem:[#allocation66_spill] sm:$0xff] }
 0x57a   :  { %2362 = vmatprep.subr.bf16.mxu1 %v13832_v61  ;;  %2403 = vmatprep.subr.bf16.mxu0 %v13833_v62  ;;  %v13894_v61 = vld [vmem:[#allocation68_spill] sm:$0xff]  ;;  %v13895_v62 = vld [vmem:[#allocation69_spill] sm:$0xff] }
 0x57d   :  { %2363 = vmatpush1.bf16.msra.mxu1 %v11006_v13  ;;  %2404 = vmatpush1.bf16.msra.mxu0 %v13873_v32  ;;  %v13883_v13 = vld [vmem:[#allocation83_spill] sm:$0xff]  ;;  %v13901_v32 = vld [vmem:[#allocation92_spill] sm:$0xff] }
 0x57e   :  { %2364 = vmatprep.subr.bf16.mxu1 %v13874_v6  ;;  %2405 = vmatprep.subr.bf16.mxu0 %v13875_v4  ;;  %v13902_v6 = vld [vmem:[#allocation94_spill] sm:$0xff]  ;;  %v13903_v4 = vld [vmem:[#allocation96_spill] sm:$0xff] }
 0x581   :  { %2365 = vmatpush1.bf16.msra.mxu1 %v13876_v36  ;;  %2406 = vmatpush1.bf16.msra.mxu0 %v13877_v37  ;;  %v13904_v36 = vld [vmem:[#allocation97_spill] sm:$0xff] }
 0x582   :  { %2366 = vmatprep.subr.bf16.mxu1 %v13878_v42  ;;  %2407 = vmatprep.subr.bf16.mxu0 %v13879_v10  ;;  %v13905_v42 = vld [vmem:[#allocation98_spill] sm:$0xff] }
 0x585   :  { %2367 = vmatpush1.bf16.msra.mxu1 %v13880_v44  ;;  %2408 = vmatpush1.bf16.msra.mxu0 %v13881_v43  ;;  %v13906_v44 = vld [vmem:[#allocation46_spill] sm:$0xff] }
 0x586   :  { %2467 = vmatprep.subr.bf16.mxu1 %v13882_v45  ;;  %2508 = vmatprep.subr.bf16.mxu0 %v13883_v13 }
 0x588   :  { %2385 = vmatmul.mubr.bf16.vlgmr.msra.gmra.mrb[56].mxu1 %v2240_v25  ;;  %2426 = vmatmul.mubr.bf16.vlgmr.msra.gmra.mrb[60].mxu0 %v2240_v25  ;;  %v13897_v25 = vld [vmem:[#allocation82_spill] sm:$0xff] }
 0x589   :  { %2468 = vmatpush1.bf16.msra.mxu1 %v13884_v46  ;;  %2509 = vmatpush1.bf16.msra.mxu0 %v13885_v48 }
 0x58a   :  { %2469 = vmatprep.subr.bf16.mxu1 %v13886_v49  ;;  %2510 = vmatprep.subr.bf16.mxu0 %v13887_v11 }
 0x58b   :  { %2499 = vmatprep.mubr.bf16.mxu1 %v13667_v18  ;;  %2540 = vmatprep.mubr.bf16.mxu0 %v13667_v18 }
 0x58d   :  { %2470 = vmatpush1.bf16.msra.mxu1 %v13888_v7  ;;  %2511 = vmatpush1.bf16.msra.mxu0 %v13889_v31 }
 0x58e   :  { %2471 = vmatprep.subr.bf16.mxu1 %v13890_v51  ;;  %2512 = vmatprep.subr.bf16.mxu0 %v13891_v58 }
 0x591   :  { %2472 = vmatpush1.bf16.msra.mxu1 %v13892_v59  ;;  %2513 = vmatpush1.bf16.msra.mxu0 %v13893_v60 }
 0x592   :  { %2473 = vmatprep.subr.bf16.mxu1 %v13894_v61  ;;  %2514 = vmatprep.subr.bf16.mxu0 %v13895_v62 }
 0x595   :  { %2474 = vmatpush1.bf16.msra.mxu1 %v13896_v26  ;;  %2515 = vmatpush1.bf16.msra.mxu0 %v13897_v25  ;;  %v13907_v26 = vld [vmem:[#allocation47_spill] sm:$0xff]  ;;  %v13908_v25 = vld [vmem:[#allocation49_spill] sm:$0xff] }
 0x596   :  { %2475 = vmatprep.subr.bf16.mxu1 %v13898_v0  ;;  %2516 = vmatprep.subr.bf16.mxu0 %v13899_v40  ;;  %v13909_v0 = vld [vmem:[#allocation48_spill] sm:$0xff]  ;;  %v13910_v40 = vld [vmem:[#allocation50_spill] sm:$0xff] }
 0x599   :  { %2476 = vmatpush1.bf16.msra.mxu1 %v13900_v47  ;;  %2517 = vmatpush1.bf16.msra.mxu0 %v13901_v32  ;;  %v13911_v47 = vld [vmem:[#allocation51_spill] sm:$0xff]  ;;  %v13912_v32 = vld [vmem:[#allocation53_spill] sm:$0xff] }
 0x59a   :  { %2477 = vmatprep.subr.bf16.mxu1 %v13902_v6  ;;  %2518 = vmatprep.subr.bf16.mxu0 %v13903_v4  ;;  %v13913_v6 = vld [vmem:[#allocation52_spill] sm:$0xff]  ;;  %v13914_v4 = vld [vmem:[#allocation55_spill] sm:$0xff] }
 0x59d   :  { %2478 = vmatpush1.bf16.msra.mxu1 %v13904_v36  ;;  %2519 = vmatpush1.bf16.msra.mxu0 %v13905_v42  ;;  %v13915_v36 = vld [vmem:[#allocation54_spill] sm:$0xff] }
 0x59e   :  { %2479 = vmatprep.subr.bf16.mxu1 %v13906_v44  ;;  %2520 = vmatprep.subr.bf16.mxu0 %v13907_v26 }
 0x5a1   :  { %2480 = vmatpush1.bf16.msra.mxu1 %v13908_v25  ;;  %2521 = vmatpush1.bf16.msra.mxu0 %v13909_v0 }
 0x5a2   :  { %2481 = vmatprep.subr.bf16.mxu1 %v13910_v40  ;;  %2522 = vmatprep.subr.bf16.mxu0 %v13911_v47 }
 0x5a5   :  { %2482 = vmatpush1.bf16.msra.mxu1 %v13912_v32  ;;  %2523 = vmatpush1.bf16.msra.mxu0 %v13913_v6 }
 0x5a6   :  { %2549 = vmatprep.subr.bf16.mxu1 %v13914_v4  ;;  %2590 = vmatprep.subr.bf16.mxu0 %v13915_v36 }
 0x619   :  { %v2191_v42 = vpop.f32.mrb[48].mxu1  ;;  %v2232_v44 = vpop.f32.mrb[52].mxu0 }
 0x61a   :  { %v2193_v62 = vpop.f32.mrb[49].mxu1  ;;  %v2234_v26 = vpop.f32.mrb[53].mxu0 }
 0x61b   :  { %v2195_v61 = vpop.f32.mrb[50].mxu1  ;;  %v2236_v25 = vpop.f32.mrb[54].mxu0 }
 0x61c   :  { %v2196_v60 = vpop.f32.mrb[51].mxu1  ;;  %v2237_v0 = vpop.f32.mrb[55].mxu0 }
 0x63b   :  { %v2276_v59 = vpop.f32.mrb[52].mxu1  ;;  %v2317_v40 = vpop.f32.mrb[56].mxu0 }
 0x63c   :  { %v2277_v58 = vadd.f32 %v2276_v59, %v2191_v42  ;;  %v2318_v47 = vadd.f32 %v2317_v40, %v2232_v44  ;;  %v2278_v51 = vpop.f32.mrb[53].mxu1  ;;  %v2319_v32 = vpop.f32.mrb[57].mxu0 }
 0x63d   :  { %v2279_v31 = vadd.f32 %v2278_v51, %v2193_v62  ;;  %v2320_v6 = vadd.f32 %v2319_v32, %v2234_v26  ;;  %v2280_v7 = vpop.f32.mrb[54].mxu1  ;;  %v2321_v4 = vpop.f32.mrb[58].mxu0 }
 0x63e   :  { %v2324_v36 = vadd.f32 %v2277_v58, %v10852_v21  ;;  %v2281_v11 = vpop.f32.mrb[55].mxu1  ;;  %v2322_v49 = vpop.f32.mrb[59].mxu0  ;;  %v2326_v0 = vadd.f32 %v2318_v47, %v10864_v39 }
 0x63f   :  { %v2325_v48 = vadd.f32 %v2279_v31, %v10855_v63  ;;  %v2327_v60 = vadd.f32 %v2320_v6, %v10860_v3 }
 0x640   :  { %v7913_v61 = vmul.f32 -1.442695, %v2324_v36  ;;  %v13916_v36 = vld [vmem:[#allocation104_spill] sm:$0xff] }
 0x641   :  { %v7914_v25 = vmul.f32 -1.442695, %v2325_v48  ;;  %v7915_v59 = vmul.f32 -1.442695, %v2327_v60 }
 0x642   :  { %8916 = vpow2.f32 %v7913_v61 }
 0x643   :  { %8918 = vpow2.f32 %v7914_v25  ;;  %v13917_v25 = vld [vmem:[#allocation105_spill] sm:$0xff] }
 0x644   :  { %8920 = vpow2.f32 %v7915_v59 }
 0x645   :  { %8922 = vtanh.f32 %v2326_v0 }
 0x64c   :  { %v8917_v40 = vpop.eup %8916 }
 0x64d   :  { %v8919_v51 = vpop.eup %8918  ;;  %v2331_v62 = vadd.f32 1.0, %v8917_v40 }
 0x64e   :  { %v2337_v7 = vadd.f32 1.0, %v8919_v51  ;;  %v8921_v49 = vpop.eup %8920 }
 0x64f   :  { %8924 = vrcp.f32 %v2331_v62  ;;  %v8923_v11 = vpop.eup %8922  ;;  %v2344_v26 = vadd.f32 1.0, %v8921_v49 }
 0x650   :  { %8926 = vrcp.f32 %v2337_v7 }
 0x651   :  { %8928 = vrcp.f32 %v2344_v26 }
 0x659   :  { %v8925_v31 = vpop.eup %8924 }
 0x65a   :  { %v8927_v58 = vpop.eup %8926  ;;  %v2348_v48 = vmul.f32 %v8925_v31, %v8923_v11 }
 0x65b   :  { %v2347_v32 = vmul.f32 %v8927_v58, %v11332_v34  ;;  %v2386_v6 = vpop.f32.mrb[56].mxu1  ;;  %v2427_v4 = vpop.f32.mrb[60].mxu0  ;;  %v13918_v34 = vld [vmem:[#allocation111_spill] sm:$0xff]  ;;  %v13919_v58 = vld [vmem:[#allocation109_spill] sm:$0xff] }
 0x65c   :  { %v2434_v47 = vadd.f32 %v2386_v6, %v13916_v36  ;;  %v2388_v42 = vpop.f32.mrb[57].mxu1  ;;  %v2429_v44 = vpop.f32.mrb[61].mxu0 }
 0x65d   :  { %v11517_v61 = vadd.f32 %v2348_v48, %v2347_v32  ;;  %v2435_v60 = vadd.f32 %v2388_v42, %v13917_v25  ;;  %v2390_v59 = vpop.f32.mrb[58].mxu1  ;;  %v2431_v0 = vpop.f32.mrb[62].mxu0  ;;  %v2437_v49 = vadd.f32 %v2429_v44, %v13918_v34  ;;  %v2436_v48 = vadd.f32 %v2427_v4, %v13919_v58 }
 0x65e   :  { %v7916_v40 = vmul.f32 -1.442695, %v2434_v47  ;;  %v2391_v51 = vpop.f32.mrb[59].mxu1  ;;  %v2432_v62 = vpop.f32.mrb[63].mxu0 }
 0x65f   :  { %v7917_v7 = vmul.f32 -1.442695, %v2435_v60  ;;  %8930 = vtanh.f32 %v11517_v61  ;;  %v7918_v11 = vmul.f32 -1.442695, %v2437_v49  ;;  %v8929_v31 = vpop.eup %8928  ;;  %v11562_v62 = vld [vmem:[%s10141_s30 + $0x4] ss:$16 sps:$4 sm:$0xff]  }
 0x660   :  { %8932 = vpow2.f32 %v7916_v40  ;;  %v11572_v49 = vld [vmem:[%s10141_s30] ss:$16 sps:$4 sm:$0xff]  }
 0x661   :  { %8934 = vpow2.f32 %v7917_v7  ;;  %v11566_v7 = vld [vmem:[%s10141_s30 + $0xc] ss:$16 sps:$4 sm:$0xff]  }
 0x662   :  { %8936 = vpow2.f32 %v7918_v11  ;;  %v11576_v11 = vld [vmem:[%s10141_s30 + $0x8] ss:$16 sps:$4 sm:$0xff]  }
 0x663   :  { %8938 = vtanh.f32 %v2436_v48  ;;  %v11584_v48 = vld [vmem:[%s10141_s30 + $0x2c] ss:$16 sps:$4 sm:$0xff]  }
 0x669   :  { %v8931_v32 = vpop.eup %8930 }
 0x66a   :  { %v8933_v6 = vpop.eup %8932  ;;  %v2351_v42 = vmul.f32 %v8931_v32, %v8929_v31  ;;  %v11580_v31 = vld [vmem:[%s10141_s30 + $0x24] ss:$16 sps:$4 sm:$0xff]   ;;  %v11590_v32 = vld [vmem:[%s10141_s30 + $0x20] ss:$16 sps:$4 sm:$0xff]  }
 0x66b   :  { %v8935_v59 = vpop.eup %8934  ;;  %v2441_v0 = vadd.f32 1.0, %v8933_v6  ;;  %v11594_v6 = vld [vmem:[%s10141_s30 + $0x28] ss:$16 sps:$4 sm:$0xff]  }
 0x66c   :  { %v2447_v26 = vadd.f32 1.0, %v8935_v59  ;;  %v2466_v47 = vpack.c.bf16 %v2351_v42, %v2351_v42  ;;  %v8937_v4 = vpop.eup %8936  ;;  %v11598_v42 = vld [vmem:[%s10141_s30 + $0x44] ss:$16 sps:$4 sm:$0xff]   ;;  %v11602_v59 = vld [vmem:[%s10141_s30 + $0x4c] ss:$16 sps:$4 sm:$0xff]  }
 0x66d   :  { %8940 = vrcp.f32 %v2441_v0  ;;  %v2454_v60 = vadd.f32 1.0, %v8937_v4  ;;  %13921 = vst [vmem:[#allocation57_spill] sm:$0xff] %v11602_v59  ;;  %v11606_v0 = vld [vmem:[%s10141_s30 + $0x40] ss:$16 sps:$4 sm:$0xff]   ;;  %v11618_v4 = vld [vmem:[%s10141_s30 + $0x6c] ss:$16 sps:$4 sm:$0xff]  }
 0x66e   :  { %8942 = vrcp.f32 %v2447_v26  ;;  %2500 = vmatmul.mubr.bf16.vlgmr.msra.gmra.mrb[60].mxu1 %v2466_v47  ;;  %2541 = vmatmul.mubr.bf16.vlgmr.msra.gmra.mrb[64].mxu0 %v2466_v47  ;;  %13922 = vst [vmem:[#allocation59_spill] sm:$0xff] %v11606_v0  ;;  %v11610_v26 = vld [vmem:[%s10141_s30 + $0x48] ss:$16 sps:$4 sm:$0xff]   ;;  %v11614_v47 = vld [vmem:[%s10141_s30 + $0x64] ss:$16 sps:$4 sm:$0xff]   ;;  %13925 = vst [vmem:[#allocation61_spill] sm:$0xff] %v11618_v4 }
 0x66f   :  { %2550 = vmatpush1.bf16.msra.mxu1 %v11087_v52  ;;  %2591 = vmatpush1.bf16.msra.mxu0 %v11091_v53  ;;  %v8939_v52 = vpop.eup %8938  ;;  %v2458_v53 = vrot.slane %v11382_v16, 6  ;;  %8944 = vrcp.f32 %v2454_v60  ;;  %v13920_v16 = vld [vmem:[#allocation56_spill] sm:$0xff]  ;;  %13923 = vst [vmem:[#allocation58_spill] sm:$0xff] %v11610_v26  ;;  %13924 = vst [vmem:[#allocation60_spill] sm:$0xff] %v11614_v47 }
 0x670   :  { %2551 = vmatprep.subr.bf16.mxu1 %v11095_v54  ;;  %2592 = vmatprep.subr.bf16.mxu0 %v11099_v55  ;;  %v11642_v60 = vld [vmem:[%s10141_s30 + $0x88] ss:$16 sps:$4 sm:$0xff]  }
 0x671   :  { %2581 = vmatprep.mubr.bf16.mxu1 %v13667_v18  ;;  %2622 = vmatprep.mubr.bf16.mxu0 %v13667_v18  ;;  %13931 = vst [vmem:[#allocation71_spill] sm:$0xff] %v11642_v60 }
 0x673   :  { %2552 = vmatpush1.bf16.msra.mxu1 %v11105_v56  ;;  %2593 = vmatpush1.bf16.msra.mxu0 %v11109_v57 }
 0x674   :  { %2553 = vmatprep.subr.bf16.mxu1 %v11348_v2  ;;  %2594 = vmatprep.subr.bf16.mxu0 %v11352_v1 }
 0x677   :  { %v8941_v44 = vpop.eup %8940  ;;  %2554 = vmatpush1.bf16.msra.mxu1 %v11356_v33  ;;  %2595 = vmatpush1.bf16.msra.mxu0 %v11360_v41 }
 0x678   :  { %v8943_v54 = vpop.eup %8942  ;;  %v2461_v55 = vmul.f32 %v8941_v44, %v8939_v52  ;;  %2555 = vmatprep.subr.bf16.mxu1 %v11364_v50  ;;  %2596 = vmatprep.subr.bf16.mxu0 %v11368_v38  ;;  %v11622_v52 = vld [vmem:[%s10141_s30 + $0x60] ss:$16 sps:$4 sm:$0xff]   ;;  %v11626_v44 = vld [vmem:[%s10141_s30 + $0x68] ss:$16 sps:$4 sm:$0xff]  }
 0x679   :  { %v2460_v56 = vmul.f32 %v8943_v54, %v2458_v53  ;;  %13926 = vst [vmem:[#allocation63_spill] sm:$0xff] %v11622_v52  ;;  %13927 = vst [vmem:[#allocation62_spill] sm:$0xff] %v11626_v44  ;;  %v11630_v53 = vld [vmem:[%s10141_s30 + $0x84] ss:$16 sps:$4 sm:$0xff]   ;;  %v11634_v54 = vld [vmem:[%s10141_s30 + $0x8c] ss:$16 sps:$4 sm:$0xff]  }
 0x67a   :  { %13928 = vst [vmem:[#allocation64_spill] sm:$0xff] %v11630_v53  ;;  %13929 = vst [vmem:[#allocation65_spill] sm:$0xff] %v11634_v54 }
 0x67b   :  { %v11538_v57 = vadd.f32 %v2461_v55, %v2460_v56  ;;  %2556 = vmatpush1.bf16.msra.mxu1 %v11120_v24  ;;  %2597 = vmatpush1.bf16.msra.mxu0 %v11124_v15  ;;  %v8945_v24 = vpop.eup %8944  ;;  %v11638_v55 = vld [vmem:[%s10141_s30 + $0x80] ss:$16 sps:$4 sm:$0xff]   ;;  %v11646_v56 = vld [vmem:[%s10141_s30 + $0xa4] ss:$16 sps:$4 sm:$0xff]  }
 0x67c   :  { %2557 = vmatprep.subr.bf16.mxu1 %v11375_v5  ;;  %2598 = vmatprep.subr.bf16.mxu0 %v11379_v19  ;;  %13930 = vst [vmem:[#allocation67_spill] sm:$0xff] %v11638_v55  ;;  %13932 = vst [vmem:[#allocation72_spill] sm:$0xff] %v11646_v56 }
 0x67d   :  { %8946 = vtanh.f32 %v11538_v57 }
 0x67f   :  { %2558 = vmatpush1.bf16.msra.mxu1 %v11385_v28  ;;  %2599 = vmatpush1.bf16.msra.mxu0 %v11389_v22 }
 0x680   :  { %2559 = vmatprep.subr.bf16.mxu1 %v11394_v14  ;;  %2600 = vmatprep.subr.bf16.mxu0 %v11398_v12 }
 0x683   :  { %2560 = vmatpush1.bf16.msra.mxu1 %v11402_v30  ;;  %2601 = vmatpush1.bf16.msra.mxu0 %v11406_v20 }
 0x684   :  { %2561 = vmatprep.subr.bf16.mxu1 %v11410_v35  ;;  %2602 = vmatprep.subr.bf16.mxu0 %v11414_v27 }
 0x687   :  { %v8947_v15 = vpop.eup %8946  ;;  %2562 = vmatpush1.bf16.msra.mxu1 %v11418_v9  ;;  %2603 = vmatpush1.bf16.msra.mxu0 %v11422_v29 }
 0x688   :  { %2563 = vmatprep.subr.bf16.mxu1 %v13920_v16  ;;  %2604 = vmatprep.subr.bf16.mxu0 %v11430_v8  ;;  %v2464_v40 = vmul.f32 %v8947_v15, %v8945_v24  ;;  %v11650_v24 = vld [vmem:[%s10141_s30 + $0xac] ss:$16 sps:$4 sm:$0xff]   ;;  %v11654_v15 = vld [vmem:[%s10141_s30 + $0xa0] ss:$16 sps:$4 sm:$0xff]  }
 0x689   :  { %13933 = vst [vmem:[#allocation73_spill] sm:$0xff] %v11650_v24  ;;  %13934 = vst [vmem:[#allocation74_spill] sm:$0xff] %v11654_v15 }
 0x68a   :  { %v11559_v51 = vpack.c.bf16 %v2464_v40, %v2464_v40  ;;  %v11658_v40 = vld [vmem:[%s10141_s30 + $0xa8] ss:$16 sps:$4 sm:$0xff]  }
 0x68b   :  { %2564 = vmatpush1.bf16.msra.mxu1 %v11434_v17  ;;  %2605 = vmatpush1.bf16.msra.mxu0 %v11438_v23  ;;  %13935 = vst [vmem:[#allocation75_spill] sm:$0xff] %v11658_v40 }
 0x68c   :  { %2659 = vmatprep.subr.bf16.mxu1 %v11562_v62  ;;  %2700 = vmatprep.subr.bf16.mxu0 %v11566_v7 }
 0x68e   :  { %2582 = vmatmul.mubr.bf16.vlgmr.msra.gmra.mrb[64].mxu1 %v11559_v51  ;;  %2623 = vmatmul.mubr.bf16.vlgmr.msra.gmra.mrb[68].mxu0 %v11559_v51 }
 0x68f   :  { %2660 = vmatpush1.bf16.msra.mxu1 %v11572_v49  ;;  %2701 = vmatpush1.bf16.msra.mxu0 %v11576_v11 }
 0x690   :  { %2661 = vmatprep.subr.bf16.mxu1 %v11580_v31  ;;  %2702 = vmatprep.subr.bf16.mxu0 %v11584_v48 }
 0x691   :  { %2691 = vmatprep.mubr.bf16.mxu1 %v13667_v18  ;;  %2732 = vmatprep.mubr.bf16.mxu0 %v13667_v18 }
 0x693   :  { %2662 = vmatpush1.bf16.msra.mxu1 %v11590_v32  ;;  %2703 = vmatpush1.bf16.msra.mxu0 %v11594_v6 }
 0x694   :  { %2663 = vmatprep.subr.bf16.mxu1 %v11598_v42  ;;  %2704 = vmatprep.subr.bf16.mxu0 %v11602_v59 }
 0x697   :  { %2664 = vmatpush1.bf16.msra.mxu1 %v11606_v0  ;;  %2705 = vmatpush1.bf16.msra.mxu0 %v11610_v26 }
 0x698   :  { %2665 = vmatprep.subr.bf16.mxu1 %v11614_v47  ;;  %2706 = vmatprep.subr.bf16.mxu0 %v11618_v4 }
 0x69b   :  { %2666 = vmatpush1.bf16.msra.mxu1 %v11622_v52  ;;  %2707 = vmatpush1.bf16.msra.mxu0 %v11626_v44 }
 0x69c   :  { %2667 = vmatprep.subr.bf16.mxu1 %v11630_v53  ;;  %2708 = vmatprep.subr.bf16.mxu0 %v11634_v54 }
 0x69f   :  { %2668 = vmatpush1.bf16.msra.mxu1 %v11638_v55  ;;  %2709 = vmatpush1.bf16.msra.mxu0 %v11642_v60  ;;  %v11662_v55 = vld [vmem:[%s10141_s30 + $0xc4] ss:$16 sps:$4 sm:$0xff]   ;;  %v11666_v60 = vld [vmem:[%s10141_s30 + $0xcc] ss:$16 sps:$4 sm:$0xff]  }
 0x6a0   :  { %2669 = vmatprep.subr.bf16.mxu1 %v11646_v56  ;;  %2710 = vmatprep.subr.bf16.mxu0 %v11650_v24  ;;  %13936 = vst [vmem:[#allocation78_spill] sm:$0xff] %v11662_v55  ;;  %13937 = vst [vmem:[#allocation76_spill] sm:$0xff] %v11666_v60  ;;  %v11670_v56 = vld [vmem:[%s10141_s30 + $0xc0] ss:$16 sps:$4 sm:$0xff]   ;;  %v11675_v24 = vld [vmem:[%s10141_s30 + $0xe4] ss:$16 sps:$4 sm:$0xff]  }
 0x6a1   :  { %13938 = vst [vmem:[#allocation79_spill] sm:$0xff] %v11670_v56  ;;  %13939 = vst [vmem:[#allocation77_spill] sm:$0xff] %v11675_v24 }
 0x6a3   :  { %2670 = vmatpush1.bf16.msra.mxu1 %v11654_v15  ;;  %2711 = vmatpush1.bf16.msra.mxu0 %v11658_v40  ;;  %v11680_v40 = vld [vmem:[%s10141_s30 + $0xe0] ss:$16 sps:$4 sm:$0xff]  }
 0x6a4   :  { %2671 = vmatprep.subr.bf16.mxu1 %v11662_v55  ;;  %2712 = vmatprep.subr.bf16.mxu0 %v11666_v60  ;;  %13940 = vst [vmem:[#allocation80_spill] sm:$0xff] %v11680_v40  ;;  %v13954_v60 = vld [vmem:[#allocation89_spill] sm:$0xff] }
 0x6a7   :  { %2672 = vmatpush1.bf16.msra.mxu1 %v11670_v56  ;;  %2713 = vmatpush1.bf16.msra.mxu0 %v13877_v37  ;;  %v13941_v37 = vld [vmem:[#allocation85_spill] sm:$0xff]  ;;  %v13953_v56 = vld [vmem:[#allocation82_spill] sm:$0xff] }
 0x6a8   :  { %2673 = vmatprep.subr.bf16.mxu1 %v11675_v24  ;;  %2714 = vmatprep.subr.bf16.mxu0 %v13879_v10  ;;  %v13942_v24 = vld [vmem:[#allocation86_spill] sm:$0xff]  ;;  %v13943_v10 = vld [vmem:[#allocation87_spill] sm:$0xff] }
 0x6ab   :  { %2674 = vmatpush1.bf16.msra.mxu1 %v11680_v40  ;;  %2715 = vmatpush1.bf16.msra.mxu0 %v13881_v43  ;;  %v13944_v43 = vld [vmem:[#allocation88_spill] sm:$0xff]  ;;  %v13947_v40 = vld [vmem:[#allocation99_spill] sm:$0xff] }
 0x6ac   :  { %2786 = vmatprep.subr.bf16.mxu1 %v13882_v45  ;;  %2827 = vmatprep.subr.bf16.mxu0 %v13883_v13  ;;  %v13945_v45 = vld [vmem:[#allocation93_spill] sm:$0xff]  ;;  %v13946_v13 = vld [vmem:[#allocation95_spill] sm:$0xff] }
 0x6ae   :  { %2692 = vmatmul.mubr.bf16.vlgmr.msra.gmra.mrb[68].mxu1 %v11559_v51  ;;  %2733 = vmatmul.mubr.bf16.vlgmr.msra.gmra.mrb[72].mxu0 %v11559_v51  ;;  %v13948_v51 = vld [vmem:[#allocation100_spill] sm:$0xff] }
 0x6af   :  { %2787 = vmatpush1.bf16.msra.mxu1 %v13884_v46  ;;  %2828 = vmatpush1.bf16.msra.mxu0 %v13941_v37  ;;  %v13949_v46 = vld [vmem:[#allocation66_spill] sm:$0xff]  ;;  %v13950_v37 = vld [vmem:[#allocation68_spill] sm:$0xff] }
 0x6b0   :  { %2788 = vmatprep.subr.bf16.mxu1 %v13942_v24  ;;  %2829 = vmatprep.subr.bf16.mxu0 %v13943_v10  ;;  %v13951_v24 = vld [vmem:[#allocation69_spill] sm:$0xff]  ;;  %v13952_v10 = vld [vmem:[#allocation70_spill] sm:$0xff] }
 0x6b1   :  { %2818 = vmatprep.mubr.bf16.mxu1 %v13667_v18  ;;  %2859 = vmatprep.mubr.bf16.mxu0 %v13667_v18 }
 0x6b3   :  { %2789 = vmatpush1.bf16.msra.mxu1 %v13944_v43  ;;  %2830 = vmatpush1.bf16.msra.mxu0 %v13945_v45  ;;  %v13955_v43 = vld [vmem:[#allocation90_spill] sm:$0xff]  ;;  %v13956_v45 = vld [vmem:[#allocation91_spill] sm:$0xff] }
 0x6b4   :  { %2790 = vmatprep.subr.bf16.mxu1 %v13946_v13  ;;  %2831 = vmatprep.subr.bf16.mxu0 %v13947_v40  ;;  %v13957_v13 = vld [vmem:[#allocation92_spill] sm:$0xff]  ;;  %v13958_v40 = vld [vmem:[#allocation94_spill] sm:$0xff] }
 0x6b7   :  { %2791 = vmatpush1.bf16.msra.mxu1 %v13948_v51  ;;  %2832 = vmatpush1.bf16.msra.mxu0 %v13949_v46  ;;  %v13959_v51 = vld [vmem:[#allocation96_spill] sm:$0xff]  ;;  %v13960_v46 = vld [vmem:[#allocation97_spill] sm:$0xff] }
 0x6b8   :  { %2792 = vmatprep.subr.bf16.mxu1 %v13950_v37  ;;  %2833 = vmatprep.subr.bf16.mxu0 %v13951_v24  ;;  %v13961_v37 = vld [vmem:[#allocation98_spill] sm:$0xff] }
 0x6b9   :  { %v13962_v24 = vld [vmem:[#allocation46_spill] sm:$0xff] }
 0x6bb   :  { %2793 = vmatpush1.bf16.msra.mxu1 %v13952_v10  ;;  %2834 = vmatpush1.bf16.msra.mxu0 %v13953_v56  ;;  %v13963_v10 = vld [vmem:[#allocation47_spill] sm:$0xff]  ;;  %v13964_v56 = vld [vmem:[#allocation49_spill] sm:$0xff] }
 0x6bc   :  { %2794 = vmatprep.subr.bf16.mxu1 %v13954_v60  ;;  %2835 = vmatprep.subr.bf16.mxu0 %v13955_v43  ;;  %v13965_v60 = vld [vmem:[#allocation48_spill] sm:$0xff]  ;;  %v13966_v43 = vld [vmem:[#allocation50_spill] sm:$0xff] }
 0x6bf   :  { %2795 = vmatpush1.bf16.msra.mxu1 %v13956_v45  ;;  %2836 = vmatpush1.bf16.msra.mxu0 %v13957_v13  ;;  %v13967_v45 = vld [vmem:[#allocation51_spill] sm:$0xff]  ;;  %v13968_v13 = vld [vmem:[#allocation53_spill] sm:$0xff] }
 0x6c0   :  { %2796 = vmatprep.subr.bf16.mxu1 %v13958_v40  ;;  %2837 = vmatprep.subr.bf16.mxu0 %v13959_v51  ;;  %v13969_v40 = vld [vmem:[#allocation52_spill] sm:$0xff]  ;;  %v13970_v51 = vld [vmem:[#allocation55_spill] sm:$0xff] }
 0x6c3   :  { %2797 = vmatpush1.bf16.msra.mxu1 %v13960_v46  ;;  %2838 = vmatpush1.bf16.msra.mxu0 %v13961_v37  ;;  %v13971_v46 = vld [vmem:[#allocation54_spill] sm:$0xff] }
 0x6c4   :  { %2798 = vmatprep.subr.bf16.mxu1 %v13962_v24  ;;  %2839 = vmatprep.subr.bf16.mxu0 %v13963_v10 }
 0x6c7   :  { %2799 = vmatpush1.bf16.msra.mxu1 %v13964_v56  ;;  %2840 = vmatpush1.bf16.msra.mxu0 %v13965_v60 }
 0x6c8   :  { %2800 = vmatprep.subr.bf16.mxu1 %v13966_v43  ;;  %2841 = vmatprep.subr.bf16.mxu0 %v13967_v45 }
 0x6cb   :  { %2801 = vmatpush1.bf16.msra.mxu1 %v13968_v13  ;;  %2842 = vmatpush1.bf16.msra.mxu0 %v13969_v40 }
 0x6cc   :  { %2871 = vmatprep.subr.bf16.mxu1 %v13970_v51  ;;  %2912 = vmatprep.subr.bf16.mxu0 %v13971_v46 }
 0x741   :  { %v2501_v37 = vpop.f32.mrb[60].mxu1  ;;  %v2542_v24 = vpop.f32.mrb[64].mxu0 }
 0x742   :  { %v2503_v55 = vpop.f32.mrb[61].mxu1  ;;  %v2544_v10 = vpop.f32.mrb[65].mxu0 }
 0x743   :  { %v2505_v15 = vpop.f32.mrb[62].mxu1  ;;  %v2546_v56 = vpop.f32.mrb[66].mxu0 }
 0x744   :  { %v2506_v54 = vpop.f32.mrb[63].mxu1  ;;  %v2547_v60 = vpop.f32.mrb[67].mxu0 }
 0x761   :  { %v2583_v53 = vpop.f32.mrb[64].mxu1  ;;  %v2624_v43 = vpop.f32.mrb[68].mxu0 }
 0x762   :  { %v2584_v44 = vadd.f32 %v2583_v53, %v2501_v37  ;;  %v2625_v45 = vadd.f32 %v2624_v43, %v2542_v24  ;;  %v2585_v52 = vpop.f32.mrb[65].mxu1  ;;  %v2626_v13 = vpop.f32.mrb[69].mxu0 }
 0x763   :  { %v2586_v4 = vadd.f32 %v2585_v52, %v2503_v55  ;;  %v2627_v40 = vadd.f32 %v2626_v13, %v2544_v10  ;;  %v2587_v47 = vpop.f32.mrb[66].mxu1  ;;  %v2628_v51 = vpop.f32.mrb[70].mxu0 }
 0x764   :  { %v2631_v46 = vadd.f32 %v2584_v44, %v10852_v21  ;;  %v2588_v26 = vpop.f32.mrb[67].mxu1  ;;  %v2629_v0 = vpop.f32.mrb[71].mxu0  ;;  %v2633_v37 = vadd.f32 %v2625_v45, %v10864_v39 }
 0x765   :  { %v2632_v59 = vadd.f32 %v2586_v4, %v10855_v63  ;;  %v2634_v54 = vadd.f32 %v2627_v40, %v10860_v3 }
 0x766   :  { %v7919_v15 = vmul.f32 -1.442695, %v2631_v46 }
 0x767   :  { %v7920_v56 = vmul.f32 -1.442695, %v2632_v59  ;;  %v7921_v53 = vmul.f32 -1.442695, %v2634_v54 }
 0x768   :  { %8948 = vpow2.f32 %v7919_v15 }
 0x769   :  { %8950 = vpow2.f32 %v7920_v56 }
 0x76a   :  { %8952 = vpow2.f32 %v7921_v53 }
 0x76b   :  { %8954 = vtanh.f32 %v2633_v37 }
 0x772   :  { %v8949_v24 = vpop.eup %8948 }
 0x773   :  { %v8951_v52 = vpop.eup %8950  ;;  %v2638_v55 = vadd.f32 1.0, %v8949_v24 }
 0x774   :  { %v2644_v47 = vadd.f32 1.0, %v8951_v52  ;;  %v8953_v0 = vpop.eup %8952 }
 0x775   :  { %8956 = vrcp.f32 %v2638_v55  ;;  %v8955_v26 = vpop.eup %8954  ;;  %v2651_v10 = vadd.f32 1.0, %v8953_v0 }
 0x776   :  { %8958 = vrcp.f32 %v2644_v47 }
 0x777   :  { %8960 = vrcp.f32 %v2651_v10 }
 0x77f   :  { %v8957_v4 = vpop.eup %8956 }
 0x780   :  { %v8959_v44 = vpop.eup %8958  ;;  %v2655_v59 = vmul.f32 %v8957_v4, %v8955_v26 }
 0x781   :  { %v2654_v60 = vmul.f32 %v8959_v44, %v11517_v61  ;;  %v2693_v43 = vpop.f32.mrb[68].mxu1  ;;  %v2734_v13 = vpop.f32.mrb[72].mxu0 }
 0x782   :  { %v2745_v40 = vrot.slane %v2693_v43, 6  ;;  %v2695_v45 = vpop.f32.mrb[69].mxu1  ;;  %v2736_v51 = vpop.f32.mrb[73].mxu0  ;;  %v2747_v26 = vrot.slane %v2734_v13, 6  ;;  %v11735_v13 = vld [vmem:[%s10151_s12] ss:$16 sps:$4 sm:$0xff]  }
 0x783   :  { %v11727_v46 = vadd.f32 %v2655_v59, %v2654_v60  ;;  %v2746_v15 = vrot.slane %v2695_v45, 6  ;;  %v2697_v56 = vpop.f32.mrb[70].mxu1  ;;  %v2738_v54 = vpop.f32.mrb[74].mxu0  ;;  %v2748_v47 = vrot.slane %v2736_v51, 6 }
 0x784   :  { %v2753_v53 = vadd.f32 %v2745_v40, %v13916_v36  ;;  %v2698_v37 = vpop.f32.mrb[71].mxu1  ;;  %v2739_v24 = vpop.f32.mrb[75].mxu0  ;;  %v2755_v10 = vadd.f32 %v2747_v26, %v13919_v58  ;;  %v11739_v56 = vld [vmem:[%s10151_s12 + $0x8] ss:$16 sps:$4 sm:$0xff]   ;;  %v11743_v54 = vld [vmem:[%s10151_s12 + $0x24] ss:$16 sps:$4 sm:$0xff]  }
 0x785   :  { %v2754_v52 = vadd.f32 %v2746_v15, %v13917_v25  ;;  %8962 = vtanh.f32 %v11727_v46  ;;  %v2756_v0 = vadd.f32 %v2748_v47, %v13918_v34  ;;  %v8961_v4 = vpop.eup %8960  ;;  %v11753_v37 = vld [vmem:[%s10151_s12 + $0x20] ss:$16 sps:$4 sm:$0xff]   ;;  %v11757_v24 = vld [vmem:[%s10151_s12 + $0x28] ss:$16 sps:$4 sm:$0xff]   ;;  %v2777_v47 = vrot.slane %v11538_v57, 6 }
 0x786   :  { %v7922_v61 = vmul.f32 -1.442695, %v2753_v53  ;;  %v11747_v53 = vld [vmem:[%s10151_s12 + $0x2c] ss:$16 sps:$4 sm:$0xff]  }
 0x787   :  { %v7923_v55 = vmul.f32 -1.442695, %v2754_v52  ;;  %v7924_v59 = vmul.f32 -1.442695, %v2756_v0  ;;  %v13985_v57 = vld [vmem:[#allocation74_spill] sm:$0xff] }
 0x788   :  { %8964 = vpow2.f32 %v7922_v61 }
 0x789   :  { %8966 = vpow2.f32 %v7923_v55 }
 0x78a   :  { %8968 = vpow2.f32 %v7924_v59  ;;  %v13987_v59 = vld [vmem:[#allocation78_spill] sm:$0xff] }
 0x78b   :  { %8970 = vtanh.f32 %v2755_v10  ;;  %v13988_v10 = vld [vmem:[#allocation76_spill] sm:$0xff] }
 0x78f   :  { %v8963_v44 = vpop.eup %8962 }
 0x790   :  { %v2658_v60 = vmul.f32 %v8963_v44, %v8961_v4  ;;  %v11768_v44 = vld [vmem:[%s10151_s12 + $0x60] ss:$16 sps:$4 sm:$0xff]  }
 0x792   :  { %v8965_v43 = vpop.eup %8964  ;;  %v2785_v40 = vpack.c.bf16 %v2658_v60, %v2658_v60  ;;  %v13989_v60 = vld [vmem:[#allocation79_spill] sm:$0xff] }
 0x793   :  { %v8967_v45 = vpop.eup %8966  ;;  %v2760_v15 = vadd.f32 1.0, %v8965_v43  ;;  %v11824_v43 = vld [vmem:[%s10141_s30 + $0xc8] ss:$16 sps:$4 sm:$0xff]  }
 0x794   :  { %v2766_v51 = vadd.f32 1.0, %v8967_v45  ;;  %2819 = vmatmul.mubr.bf16.vlgmr.msra.gmra.mrb[72].mxu1 %v2785_v40  ;;  %2860 = vmatmul.mubr.bf16.vlgmr.msra.gmra.mrb[76].mxu0 %v2785_v40  ;;  %v8969_v52 = vpop.eup %8968  ;;  %13990 = vst [vmem:[#allocation81_spill] sm:$0xff] %v11824_v43  ;;  %v13991_v40 = vld [vmem:[#allocation77_spill] sm:$0xff] }
 0x795   :  { %8972 = vrcp.f32 %v2760_v15  ;;  %2872 = vmatpush1.bf16.msra.mxu1 %v11735_v13  ;;  %2913 = vmatpush1.bf16.msra.mxu0 %v11739_v56  ;;  %v8971_v61 = vpop.eup %8970  ;;  %v2773_v4 = vadd.f32 1.0, %v8969_v52  ;;  %v11829_v45 = vld [vmem:[%s10141_s30 + $0xec] ss:$16 sps:$4 sm:$0xff]   ;;  %v11838_v52 = vld [vmem:[%s10156_s20 + $0x4] ss:$16 sps:$4 sm:$0xff]  }
 0x796   :  { %8974 = vrcp.f32 %v2766_v51  ;;  %2873 = vmatprep.subr.bf16.mxu1 %v11743_v54  ;;  %2914 = vmatprep.subr.bf16.mxu0 %v11747_v53  ;;  %13992 = vst [vmem:[#allocation83_spill] sm:$0xff] %v11829_v45  ;;  %v13993_v15 = vld [vmem:[#allocation80_spill] sm:$0xff]  ;;  %13995 = vst [vmem:[#allocation104_spill] sm:$0xff] %v11838_v52 }
 0x797   :  { %2903 = vmatprep.mubr.bf16.mxu1 %v13667_v18  ;;  %2944 = vmatprep.mubr.bf16.mxu0 %v13667_v18  ;;  %8976 = vrcp.f32 %v2773_v4  ;;  %v11834_v51 = vld [vmem:[%s10141_s30 + $0xe8] ss:$16 sps:$4 sm:$0xff]   ;;  %v11864_v4 = vld [vmem:[%s10156_s20 + $0x20] ss:$16 sps:$4 sm:$0xff]  }
 0x798   :  { %13994 = vst [vmem:[#allocation84_spill] sm:$0xff] %v11834_v51  ;;  %14001 = vst [vmem:[#allocation86_spill] sm:$0xff] %v11864_v4 }
 0x799   :  { %2874 = vmatpush1.bf16.msra.mxu1 %v11753_v37  ;;  %2915 = vmatpush1.bf16.msra.mxu0 %v11757_v24 }
 0x79a   :  { %2875 = vmatprep.subr.bf16.mxu1 %v11348_v2  ;;  %2916 = vmatprep.subr.bf16.mxu0 %v11352_v1  ;;  %v11772_v1 = vld [vmem:[%s10151_s12 + $0x68] ss:$16 sps:$4 sm:$0xff]  }
 0x79d   :  { %2876 = vmatpush1.bf16.msra.mxu1 %v11356_v33  ;;  %2917 = vmatpush1.bf16.msra.mxu0 %v11360_v41 }
 0x79e   :  { %2877 = vmatprep.subr.bf16.mxu1 %v11364_v50  ;;  %2918 = vmatprep.subr.bf16.mxu0 %v11368_v38 }
 0x79f   :  { %v8973_v55 = vpop.eup %8972 }
 0x7a0   :  { %v8975_v0 = vpop.eup %8974  ;;  %v2780_v26 = vmul.f32 %v8973_v55, %v8971_v61  ;;  %v11842_v61 = vld [vmem:[%s10156_s20 + $0xc] ss:$16 sps:$4 sm:$0xff]   ;;  %v11846_v55 = vld [vmem:[%s10156_s20] ss:$16 sps:$4 sm:$0xff]  }
 0x7a1   :  { %v2779_v2 = vmul.f32 %v8975_v0, %v2777_v47  ;;  %2878 = vmatpush1.bf16.msra.mxu1 %v11768_v44  ;;  %2919 = vmatpush1.bf16.msra.mxu0 %v11772_v1  ;;  %v8977_v41 = vpop.eup %8976  ;;  %13996 = vst [vmem:[#allocation105_spill] sm:$0xff] %v11842_v61  ;;  %13997 = vst [vmem:[#allocation111_spill] sm:$0xff] %v11846_v55  ;;  %v11850_v47 = vld [vmem:[%s10156_s20 + $0x8] ss:$16 sps:$4 sm:$0xff]   ;;  %v11854_v0 = vld [vmem:[%s10156_s20 + $0x24] ss:$16 sps:$4 sm:$0xff]  }
 0x7a2   :  { %2879 = vmatprep.subr.bf16.mxu1 %v11375_v5  ;;  %2920 = vmatprep.subr.bf16.mxu0 %v11379_v19  ;;  %13998 = vst [vmem:[#allocation109_spill] sm:$0xff] %v11850_v47  ;;  %13999 = vst [vmem:[#allocation56_spill] sm:$0xff] %v11854_v0 }
 0x7a3   :  { %v11777_v33 = vadd.f32 %v2780_v26, %v2779_v2  ;;  %v11858_v26 = vld [vmem:[%s10156_s20 + $0x2c] ss:$16 sps:$4 sm:$0xff]   ;;  %v11868_v2 = vld [vmem:[%s10156_s20 + $0x28] ss:$16 sps:$4 sm:$0xff]  }
 0x7a4   :  { %14000 = vst [vmem:[#allocation85_spill] sm:$0xff] %v11858_v26  ;;  %14002 = vst [vmem:[#allocation87_spill] sm:$0xff] %v11868_v2 }
 0x7a5   :  { %2880 = vmatpush1.bf16.msra.mxu1 %v11385_v28  ;;  %2921 = vmatpush1.bf16.msra.mxu0 %v11389_v22  ;;  %8978 = vtanh.f32 %v11777_v33  ;;  %v13972_v28 = vld [vmem:[#allocation57_spill] sm:$0xff]  ;;  %v13973_v22 = vld [vmem:[#allocation59_spill] sm:$0xff] }
 0x7a6   :  { %2881 = vmatprep.subr.bf16.mxu1 %v11394_v14  ;;  %2922 = vmatprep.subr.bf16.mxu0 %v11398_v12  ;;  %v13974_v14 = vld [vmem:[#allocation58_spill] sm:$0xff]  ;;  %v13975_v12 = vld [vmem:[#allocation60_spill] sm:$0xff] }
 0x7a9   :  { %2882 = vmatpush1.bf16.msra.mxu1 %v11402_v30  ;;  %2923 = vmatpush1.bf16.msra.mxu0 %v11406_v20  ;;  %v13976_v30 = vld [vmem:[#allocation61_spill] sm:$0xff]  ;;  %v13977_v20 = vld [vmem:[#allocation63_spill] sm:$0xff] }
 0x7aa   :  { %2883 = vmatprep.subr.bf16.mxu1 %v11410_v35  ;;  %2924 = vmatprep.subr.bf16.mxu0 %v11414_v27  ;;  %v13978_v35 = vld [vmem:[#allocation62_spill] sm:$0xff]  ;;  %v13979_v27 = vld [vmem:[#allocation64_spill] sm:$0xff] }
 0x7ad   :  { %2884 = vmatpush1.bf16.msra.mxu1 %v11418_v9  ;;  %2925 = vmatpush1.bf16.msra.mxu0 %v11422_v29  ;;  %v13980_v9 = vld [vmem:[#allocation65_spill] sm:$0xff]  ;;  %v13981_v29 = vld [vmem:[#allocation67_spill] sm:$0xff] }
 0x7ae   :  { %2885 = vmatprep.subr.bf16.mxu1 %v13920_v16  ;;  %2926 = vmatprep.subr.bf16.mxu0 %v11430_v8  ;;  %v13982_v8 = vld [vmem:[#allocation71_spill] sm:$0xff] }
 0x7af   :  { %v8979_v50 = vpop.eup %8978  ;;  %v13986_v16 = vld [vmem:[#allocation75_spill] sm:$0xff] }
 0x7b0   :  { %v2783_v38 = vmul.f32 %v8979_v50, %v8977_v41  ;;  %v11872_v41 = vld [vmem:[%s10156_s20 + $0x44] ss:$16 sps:$4 sm:$0xff]   ;;  %v11876_v50 = vld [vmem:[%s10156_s20 + $0x4c] ss:$16 sps:$4 sm:$0xff]  }
 0x7b1   :  { %2886 = vmatpush1.bf16.msra.mxu1 %v11434_v17  ;;  %2927 = vmatpush1.bf16.msra.mxu0 %v11438_v23  ;;  %v13983_v17 = vld [vmem:[#allocation72_spill] sm:$0xff]  ;;  %v13984_v23 = vld [vmem:[#allocation73_spill] sm:$0xff]  ;;  %14003 = vst [vmem:[#allocation88_spill] sm:$0xff] %v11872_v41  ;;  %14004 = vst [vmem:[#allocation93_spill] sm:$0xff] %v11876_v50 }
 0x7b2   :  { %2981 = vmatprep.subr.bf16.mxu1 %v11562_v62  ;;  %3022 = vmatprep.subr.bf16.mxu0 %v11566_v7  ;;  %v2784_v5 = vpack.c.bf16 %v2783_v38, %v2783_v38  ;;  %v11880_v38 = vld [vmem:[%s10156_s20 + $0x40] ss:$16 sps:$4 sm:$0xff]  }
 0x7b3   :  { %14005 = vst [vmem:[#allocation95_spill] sm:$0xff] %v11880_v38 }
 0x7b4   :  { %v2869_v19 = vrot.slane %v2784_v5, 1  ;;  %v11884_v5 = vld [vmem:[%s10156_s20 + $0x48] ss:$16 sps:$4 sm:$0xff]  }
 0x7b5   :  { %14006 = vst [vmem:[#allocation99_spill] sm:$0xff] %v11884_v5 }
 0x7b6   :  { %2904 = vmatmul.mubr.bf16.vlgmr.msra.gmra.mrb[76].mxu1 %v2869_v19  ;;  %2945 = vmatmul.mubr.bf16.vlgmr.msra.gmra.mrb[80].mxu0 %v2869_v19 }
 0x7b7   :  { %2982 = vmatpush1.bf16.msra.mxu1 %v11572_v49  ;;  %3023 = vmatpush1.bf16.msra.mxu0 %v11576_v11 }
 0x7b8   :  { %2983 = vmatprep.subr.bf16.mxu1 %v11580_v31  ;;  %3024 = vmatprep.subr.bf16.mxu0 %v11584_v48 }
 0x7b9   :  { %3013 = vmatprep.mubr.bf16.mxu1 %v13667_v18  ;;  %3054 = vmatprep.mubr.bf16.mxu0 %v13667_v18 }
 0x7bb   :  { %2984 = vmatpush1.bf16.msra.mxu1 %v11590_v32  ;;  %3025 = vmatpush1.bf16.msra.mxu0 %v11594_v6 }
 0x7bc   :  { %2985 = vmatprep.subr.bf16.mxu1 %v11598_v42  ;;  %3026 = vmatprep.subr.bf16.mxu0 %v13972_v28 }
 0x7bf   :  { %2986 = vmatpush1.bf16.msra.mxu1 %v13973_v22  ;;  %3027 = vmatpush1.bf16.msra.mxu0 %v13974_v14 }
 0x7c0   :  { %2987 = vmatprep.subr.bf16.mxu1 %v13975_v12  ;;  %3028 = vmatprep.subr.bf16.mxu0 %v13976_v30 }
 0x7c3   :  { %2988 = vmatpush1.bf16.msra.mxu1 %v13977_v20  ;;  %3029 = vmatpush1.bf16.msra.mxu0 %v13978_v35 }
 0x7c4   :  { %2989 = vmatprep.subr.bf16.mxu1 %v13979_v27  ;;  %3030 = vmatprep.subr.bf16.mxu0 %v13980_v9 }
 0x7c7   :  { %2990 = vmatpush1.bf16.msra.mxu1 %v13981_v29  ;;  %3031 = vmatpush1.bf16.msra.mxu0 %v13982_v8 }
 0x7c8   :  { %2991 = vmatprep.subr.bf16.mxu1 %v13983_v17  ;;  %3032 = vmatprep.subr.bf16.mxu0 %v13984_v23 }
 0x7cb   :  { %2992 = vmatpush1.bf16.msra.mxu1 %v13985_v57  ;;  %3033 = vmatpush1.bf16.msra.mxu0 %v13986_v16 }
 0x7cc   :  { %2993 = vmatprep.subr.bf16.mxu1 %v13987_v59  ;;  %3034 = vmatprep.subr.bf16.mxu0 %v13988_v10 }
 0x7cf   :  { %2994 = vmatpush1.bf16.msra.mxu1 %v13989_v60  ;;  %3035 = vmatpush1.bf16.msra.mxu0 %v11824_v43 }
 0x7d0   :  { %2995 = vmatprep.subr.bf16.mxu1 %v13991_v40  ;;  %3036 = vmatprep.subr.bf16.mxu0 %v11829_v45 }
 0x7d3   :  { %2996 = vmatpush1.bf16.msra.mxu1 %v13993_v15  ;;  %3037 = vmatpush1.bf16.msra.mxu0 %v11834_v51 }
 0x7d4   :  { %3108 = vmatprep.subr.bf16.mxu1 %v11838_v52  ;;  %3149 = vmatprep.subr.bf16.mxu0 %v11842_v61 }
 0x7d6   :  { %3014 = vmatmul.mubr.bf16.vlgmr.msra.gmra.mrb[80].mxu1 %v2869_v19  ;;  %3055 = vmatmul.mubr.bf16.vlgmr.msra.gmra.mrb[84].mxu0 %v2869_v19  ;;  %v11888_v19 = vld [vmem:[%s10156_s20 + $0x64] ss:$16 sps:$4 sm:$0xff]  }
 0x7d7   :  { %3109 = vmatpush1.bf16.msra.mxu1 %v11846_v55  ;;  %3150 = vmatpush1.bf16.msra.mxu0 %v11850_v47  ;;  %14007 = vst [vmem:[#allocation100_spill] sm:$0xff] %v11888_v19 }
 0x7d8   :  { %3110 = vmatprep.subr.bf16.mxu1 %v11854_v0  ;;  %3151 = vmatprep.subr.bf16.mxu0 %v11858_v26 }
 0x7d9   :  { %3140 = vmatprep.mubr.bf16.mxu1 %v13667_v18  ;;  %3181 = vmatprep.mubr.bf16.mxu0 %v13667_v18 }
 0x7db   :  { %3111 = vmatpush1.bf16.msra.mxu1 %v11864_v4  ;;  %3152 = vmatpush1.bf16.msra.mxu0 %v11868_v2  ;;  %v11952_v2 = vld [vmem:[%s10156_s20 + $0xe4] ss:$16 sps:$4 sm:$0xff]  }
 0x7dc   :  { %3112 = vmatprep.subr.bf16.mxu1 %v11872_v41  ;;  %3153 = vmatprep.subr.bf16.mxu0 %v11876_v50  ;;  %v11892_v41 = vld [vmem:[%s10156_s20 + $0x6c] ss:$16 sps:$4 sm:$0xff]   ;;  %v11896_v50 = vld [vmem:[%s10156_s20 + $0x60] ss:$16 sps:$4 sm:$0xff]   ;;  %14023 = vst [vmem:[#allocation49_spill] sm:$0xff] %v11952_v2 }
 0x7dd   :  { %14008 = vst [vmem:[#allocation66_spill] sm:$0xff] %v11892_v41  ;;  %14009 = vst [vmem:[#allocation68_spill] sm:$0xff] %v11896_v50 }
 0x7df   :  { %3113 = vmatpush1.bf16.msra.mxu1 %v11880_v38  ;;  %3154 = vmatpush1.bf16.msra.mxu0 %v11884_v5  ;;  %v11900_v38 = vld [vmem:[%s10156_s20 + $0x68] ss:$16 sps:$4 sm:$0xff]   ;;  %v11904_v5 = vld [vmem:[%s10156_s20 + $0x84] ss:$16 sps:$4 sm:$0xff]  }
 0x7e0   :  { %3114 = vmatprep.subr.bf16.mxu1 %v11888_v19  ;;  %3155 = vmatprep.subr.bf16.mxu0 %v11892_v41  ;;  %14010 = vst [vmem:[#allocation69_spill] sm:$0xff] %v11900_v38  ;;  %14011 = vst [vmem:[#allocation70_spill] sm:$0xff] %v11904_v5  ;;  %v11908_v19 = vld [vmem:[%s10156_s20 + $0x8c] ss:$16 sps:$4 sm:$0xff]   ;;  %v11912_v41 = vld [vmem:[%s10156_s20 + $0x80] ss:$16 sps:$4 sm:$0xff]  }
 0x7e1   :  { %14012 = vst [vmem:[#allocation82_spill] sm:$0xff] %v11908_v19  ;;  %14013 = vst [vmem:[#allocation89_spill] sm:$0xff] %v11912_v41 }
 0x7e3   :  { %3115 = vmatpush1.bf16.msra.mxu1 %v11896_v50  ;;  %3156 = vmatpush1.bf16.msra.mxu0 %v11900_v38  ;;  %v11916_v50 = vld [vmem:[%s10156_s20 + $0x88] ss:$16 sps:$4 sm:$0xff]   ;;  %v11920_v38 = vld [vmem:[%s10156_s20 + $0xa4] ss:$16 sps:$4 sm:$0xff]  }
 0x7e4   :  { %3116 = vmatprep.subr.bf16.mxu1 %v11904_v5  ;;  %3157 = vmatprep.subr.bf16.mxu0 %v11908_v19  ;;  %14014 = vst [vmem:[#allocation90_spill] sm:$0xff] %v11916_v50  ;;  %14015 = vst [vmem:[#allocation91_spill] sm:$0xff] %v11920_v38  ;;  %v11924_v5 = vld [vmem:[%s10156_s20 + $0xac] ss:$16 sps:$4 sm:$0xff]   ;;  %v11928_v19 = vld [vmem:[%s10156_s20 + $0xa0] ss:$16 sps:$4 sm:$0xff]  }
 0x7e5   :  { %14016 = vst [vmem:[#allocation92_spill] sm:$0xff] %v11924_v5  ;;  %14017 = vst [vmem:[#allocation94_spill] sm:$0xff] %v11928_v19 }
 0x7e7   :  { %3117 = vmatpush1.bf16.msra.mxu1 %v11912_v41  ;;  %3158 = vmatpush1.bf16.msra.mxu0 %v11916_v50  ;;  %v11932_v41 = vld [vmem:[%s10156_s20 + $0xa8] ss:$16 sps:$4 sm:$0xff]   ;;  %v11936_v50 = vld [vmem:[%s10156_s20 + $0xc4] ss:$16 sps:$4 sm:$0xff]  }
 0x7e8   :  { %3118 = vmatprep.subr.bf16.mxu1 %v11920_v38  ;;  %3159 = vmatprep.subr.bf16.mxu0 %v11924_v5  ;;  %14018 = vst [vmem:[#allocation96_spill] sm:$0xff] %v11932_v41  ;;  %14019 = vst [vmem:[#allocation97_spill] sm:$0xff] %v11936_v50  ;;  %v11940_v38 = vld [vmem:[%s10156_s20 + $0xcc] ss:$16 sps:$4 sm:$0xff]   ;;  %v11944_v5 = vld [vmem:[%s10156_s20 + $0xc0] ss:$16 sps:$4 sm:$0xff]  }
 0x7e9   :  { %14020 = vst [vmem:[#allocation98_spill] sm:$0xff] %v11940_v38  ;;  %14021 = vst [vmem:[#allocation46_spill] sm:$0xff] %v11944_v5 }
 0x7eb   :  { %3119 = vmatpush1.bf16.msra.mxu1 %v11928_v19  ;;  %3160 = vmatpush1.bf16.msra.mxu0 %v11932_v41  ;;  %v11948_v19 = vld [vmem:[%s10156_s20 + $0xc8] ss:$16 sps:$4 sm:$0xff]   ;;  %v11956_v41 = vld [vmem:[%s10156_s20 + $0xec] ss:$16 sps:$4 sm:$0xff]  }
 0x7ec   :  { %3120 = vmatprep.subr.bf16.mxu1 %v11936_v50  ;;  %3161 = vmatprep.subr.bf16.mxu0 %v11940_v38  ;;  %14022 = vst [vmem:[#allocation47_spill] sm:$0xff] %v11948_v19  ;;  %14024 = vst [vmem:[#allocation48_spill] sm:$0xff] %v11956_v41  ;;  %v11960_v50 = vld [vmem:[%s10156_s20 + $0xe0] ss:$16 sps:$4 sm:$0xff]   ;;  %v11964_v38 = vld [vmem:[%s10156_s20 + $0xe8] ss:$16 sps:$4 sm:$0xff]  }
 0x7ed   :  { %14025 = vst [vmem:[#allocation50_spill] sm:$0xff] %v11960_v50  ;;  %14026 = vst [vmem:[#allocation51_spill] sm:$0xff] %v11964_v38 }
 0x7ef   :  { %3121 = vmatpush1.bf16.msra.mxu1 %v11944_v5  ;;  %3162 = vmatpush1.bf16.msra.mxu0 %v11948_v19  ;;  %v11968_v5 = vld [vmem:[%s10151_s12 + $0x4] ss:$16 sps:$4 sm:$0xff]   ;;  %v11972_v19 = vld [vmem:[%s10151_s12 + $0xc] ss:$16 sps:$4 sm:$0xff]  }
 0x7f0   :  { %3122 = vmatprep.subr.bf16.mxu1 %v11952_v2  ;;  %3163 = vmatprep.subr.bf16.mxu0 %v11956_v41  ;;  %14027 = vst [vmem:[#allocation53_spill] sm:$0xff] %v11968_v5  ;;  %14028 = vst [vmem:[#allocation52_spill] sm:$0xff] %v11972_v19 }
 0x7f3   :  { %3123 = vmatpush1.bf16.msra.mxu1 %v11960_v50  ;;  %3164 = vmatpush1.bf16.msra.mxu0 %v11964_v38 }
 0x7f4   :  { %3193 = vmatprep.subr.bf16.mxu1 %v11968_v5  ;;  %3234 = vmatprep.subr.bf16.mxu0 %v11972_v19 }
 0x867   :  { %v2820_v2 = vpop.f32.mrb[72].mxu1  ;;  %v2861_v4 = vpop.f32.mrb[76].mxu0 }
 0x868   :  { %v2822_v26 = vpop.f32.mrb[73].mxu1  ;;  %v2863_v41 = vpop.f32.mrb[77].mxu0 }
 0x869   :  { %v2824_v0 = vpop.f32.mrb[74].mxu1  ;;  %v2865_v47 = vpop.f32.mrb[78].mxu0 }
 0x86a   :  { %v2825_v55 = vpop.f32.mrb[75].mxu1  ;;  %v2866_v50 = vpop.f32.mrb[79].mxu0 }
 0x889   :  { %v2905_v61 = vpop.f32.mrb[76].mxu1  ;;  %v2946_v52 = vpop.f32.mrb[80].mxu0 }
 0x88a   :  { %v2906_v51 = vadd.f32 %v2905_v61, %v2820_v2  ;;  %v2947_v38 = vadd.f32 %v2946_v52, %v2861_v4  ;;  %v2907_v15 = vpop.f32.mrb[77].mxu1  ;;  %v2948_v45 = vpop.f32.mrb[81].mxu0 }
 0x88b   :  { %v2908_v40 = vadd.f32 %v2907_v15, %v2822_v26  ;;  %v2949_v5 = vadd.f32 %v2948_v45, %v2863_v41  ;;  %v2909_v43 = vpop.f32.mrb[78].mxu1  ;;  %v2950_v60 = vpop.f32.mrb[82].mxu0 }
 0x88c   :  { %v2953_v19 = vadd.f32 %v2906_v51, %v10852_v21  ;;  %v2910_v10 = vpop.f32.mrb[79].mxu1  ;;  %v2951_v59 = vpop.f32.mrb[83].mxu0  ;;  %v2955_v52 = vadd.f32 %v2947_v38, %v10864_v39 }
 0x88d   :  { %v2954_v16 = vadd.f32 %v2908_v40, %v10855_v63  ;;  %v2956_v55 = vadd.f32 %v2949_v5, %v10860_v3 }
 0x88e   :  { %v7925_v0 = vmul.f32 -1.442695, %v2953_v19 }
 0x88f   :  { %v7926_v47 = vmul.f32 -1.442695, %v2954_v16  ;;  %v7927_v61 = vmul.f32 -1.442695, %v2956_v55 }
 0x890   :  { %8980 = vpow2.f32 %v7925_v0 }
 0x891   :  { %8982 = vpow2.f32 %v7926_v47 }
 0x892   :  { %8984 = vpow2.f32 %v7927_v61 }
 0x893   :  { %8986 = vtanh.f32 %v2955_v52 }
 0x89a   :  { %v8981_v4 = vpop.eup %8980 }
 0x89b   :  { %v8983_v15 = vpop.eup %8982  ;;  %v2960_v45 = vadd.f32 1.0, %v8981_v4 }
 0x89c   :  { %v2966_v60 = vadd.f32 1.0, %v8983_v15  ;;  %v8985_v59 = vpop.eup %8984 }
 0x89d   :  { %8988 = vrcp.f32 %v2960_v45  ;;  %v8987_v10 = vpop.eup %8986  ;;  %v2973_v51 = vadd.f32 1.0, %v8985_v59 }
 0x89e   :  { %8990 = vrcp.f32 %v2966_v60 }
 0x89f   :  { %8992 = vrcp.f32 %v2973_v51 }
 0x8a7   :  { %v8989_v43 = vpop.eup %8988 }
 0x8a8   :  { %v8991_v40 = vpop.eup %8990  ;;  %v2977_v16 = vmul.f32 %v8989_v43, %v8987_v10 }
 0x8a9   :  { %v2976_v26 = vmul.f32 %v8991_v40, %v11727_v46  ;;  %v3015_v2 = vpop.f32.mrb[80].mxu1  ;;  %v3056_v41 = vpop.f32.mrb[84].mxu0 }
 0x8aa   :  { %v3067_v50 = vrot.slane %v3015_v2, 4  ;;  %v3017_v38 = vpop.f32.mrb[81].mxu1  ;;  %v3058_v5 = vpop.f32.mrb[85].mxu0  ;;  %v3069_v10 = vrot.slane %v3056_v41, 4  ;;  %v11996_v41 = vld [vmem:[%s10151_s12 + $0x44] ss:$16 sps:$4 sm:$0xff]  }
 0x8ab   :  { %v11980_v19 = vadd.f32 %v2977_v16, %v2976_v26  ;;  %v3068_v0 = vrot.slane %v3017_v38, 4  ;;  %v3019_v47 = vpop.f32.mrb[82].mxu1  ;;  %v3060_v55 = vpop.f32.mrb[86].mxu0  ;;  %v3070_v60 = vrot.slane %v3058_v5, 4 }
 0x8ac   :  { %v3075_v61 = vadd.f32 %v3067_v50, %v13916_v36  ;;  %v3020_v52 = vpop.f32.mrb[83].mxu1  ;;  %v3061_v4 = vpop.f32.mrb[87].mxu0  ;;  %v3077_v51 = vadd.f32 %v3069_v10, %v13919_v58  ;;  %v12000_v47 = vld [vmem:[%s10151_s12 + $0x4c] ss:$16 sps:$4 sm:$0xff]  }
 0x8ad   :  { %v3076_v15 = vadd.f32 %v3068_v0, %v13917_v25  ;;  %8994 = vtanh.f32 %v11980_v19  ;;  %v3078_v59 = vadd.f32 %v3070_v60, %v13918_v34  ;;  %v8993_v43 = vpop.eup %8992  ;;  %v12008_v52 = vld [vmem:[%s10151_s12 + $0x48] ss:$16 sps:$4 sm:$0xff]   ;;  %v3099_v60 = vrot.slane %v11777_v33, 6 }
 0x8ae   :  { %v7928_v46 = vmul.f32 -1.442695, %v3075_v61  ;;  %v12004_v61 = vld [vmem:[%s10151_s12 + $0x40] ss:$16 sps:$4 sm:$0xff]  }
 0x8af   :  { %v7929_v45 = vmul.f32 -1.442695, %v3076_v15  ;;  %v7930_v16 = vmul.f32 -1.442695, %v3078_v59  ;;  %v12012_v15 = vld [vmem:[%s10151_s12 + $0x64] ss:$16 sps:$4 sm:$0xff]  }
 0x8b0   :  { %8996 = vpow2.f32 %v7928_v46  ;;  %v12016_v46 = vld [vmem:[%s10151_s12 + $0x6c] ss:$16 sps:$4 sm:$0xff]  }
 0x8b1   :  { %8998 = vpow2.f32 %v7929_v45 }
 0x8b2   :  { %9000 = vpow2.f32 %v7930_v16  ;;  %v12023_v16 = vld [vmem:[%s10151_s12 + $0x84] ss:$16 sps:$4 sm:$0xff]  }
 0x8b3   :  { %9002 = vtanh.f32 %v3077_v51  ;;  %v12027_v51 = vld [vmem:[%s10151_s12 + $0x8c] ss:$16 sps:$4 sm:$0xff]  }
 0x8b7   :  { %v8995_v40 = vpop.eup %8994 }
 0x8b8   :  { %v2980_v26 = vmul.f32 %v8995_v40, %v8993_v43 }
 0x8ba   :  { %v8997_v2 = vpop.eup %8996  ;;  %v3107_v50 = vpack.c.bf16 %v2980_v26, %v2980_v26  ;;  %v12033_v26 = vld [vmem:[%s10151_s12 + $0x80] ss:$16 sps:$4 sm:$0xff]  }
 0x8bb   :  { %v8999_v38 = vpop.eup %8998  ;;  %v3082_v0 = vadd.f32 1.0, %v8997_v2  ;;  %v12037_v2 = vld [vmem:[%s10151_s12 + $0x88] ss:$16 sps:$4 sm:$0xff]  }
 0x8bc   :  { %v3088_v5 = vadd.f32 1.0, %v8999_v38  ;;  %3141 = vmatmul.mubr.bf16.vlgmr.msra.gmra.mrb[84].mxu1 %v3107_v50  ;;  %3182 = vmatmul.mubr.bf16.vlgmr.msra.gmra.mrb[88].mxu0 %v3107_v50  ;;  %v9001_v55 = vpop.eup %9000  ;;  %v12042_v50 = vld [vmem:[%s10151_s12 + $0xa4] ss:$16 sps:$4 sm:$0xff]   ;;  %v12046_v38 = vld [vmem:[%s10151_s12 + $0xac] ss:$16 sps:$4 sm:$0xff]  }
 0x8bd   :  { %9004 = vrcp.f32 %v3082_v0  ;;  %3194 = vmatpush1.bf16.msra.mxu1 %v11735_v13  ;;  %3235 = vmatpush1.bf16.msra.mxu0 %v11739_v56  ;;  %v9003_v4 = vpop.eup %9002  ;;  %v3095_v43 = vadd.f32 1.0, %v9001_v55  ;;  %v12050_v0 = vld [vmem:[%s10151_s12 + $0xa0] ss:$16 sps:$4 sm:$0xff]   ;;  %v12058_v55 = vld [vmem:[%s10151_s12 + $0xc4] ss:$16 sps:$4 sm:$0xff]  }
 0x8be   :  { %9006 = vrcp.f32 %v3088_v5  ;;  %3195 = vmatprep.subr.bf16.mxu1 %v11743_v54  ;;  %3236 = vmatprep.subr.bf16.mxu0 %v11747_v53  ;;  %v12054_v5 = vld [vmem:[%s10151_s12 + $0xa8] ss:$16 sps:$4 sm:$0xff]   ;;  %14029 = vst [vmem:[#allocation55_spill] sm:$0xff] %v12058_v55 }
 0x8bf   :  { %3225 = vmatprep.mubr.bf16.mxu1 %v13667_v18  ;;  %3266 = vmatprep.mubr.bf16.mxu0 %v13667_v18  ;;  %9008 = vrcp.f32 %v3095_v43  ;;  %v12078_v43 = vld [vmem:[%s10151_s12 + $0xec] ss:$16 sps:$4 sm:$0xff]  }
 0x8c1   :  { %3196 = vmatpush1.bf16.msra.mxu1 %v11753_v37  ;;  %3237 = vmatpush1.bf16.msra.mxu0 %v11757_v24 }
 0x8c2   :  { %3197 = vmatprep.subr.bf16.mxu1 %v11996_v41  ;;  %3238 = vmatprep.subr.bf16.mxu0 %v12000_v47 }
 0x8c5   :  { %3198 = vmatpush1.bf16.msra.mxu1 %v12004_v61  ;;  %3239 = vmatpush1.bf16.msra.mxu0 %v12008_v52 }
 0x8c6   :  { %3199 = vmatprep.subr.bf16.mxu1 %v12012_v15  ;;  %3240 = vmatprep.subr.bf16.mxu0 %v12016_v46 }
 0x8c7   :  { %v9005_v45 = vpop.eup %9004 }
 0x8c8   :  { %v9007_v59 = vpop.eup %9006  ;;  %v3102_v10 = vmul.f32 %v9005_v45, %v9003_v4  ;;  %v12062_v4 = vld [vmem:[%s10151_s12 + $0xcc] ss:$16 sps:$4 sm:$0xff]   ;;  %v12066_v45 = vld [vmem:[%s10151_s12 + $0xc0] ss:$16 sps:$4 sm:$0xff]  }
 0x8c9   :  { %v3101_v40 = vmul.f32 %v9007_v59, %v3099_v60  ;;  %3200 = vmatpush1.bf16.msra.mxu1 %v11768_v44  ;;  %3241 = vmatpush1.bf16.msra.mxu0 %v11772_v1  ;;  %14030 = vst [vmem:[#allocation54_spill] sm:$0xff] %v12062_v4  ;;  %14031 = vst [vmem:[#allocation57_spill] sm:$0xff] %v12066_v45  ;;  %v12070_v60 = vld [vmem:[%s10151_s12 + $0xc8] ss:$16 sps:$4 sm:$0xff]   ;;  %v9009_v59 = vpop.eup %9008 }
 0x8ca   :  { %3201 = vmatprep.subr.bf16.mxu1 %v12023_v16  ;;  %3242 = vmatprep.subr.bf16.mxu0 %v12027_v51  ;;  %14032 = vst [vmem:[#allocation59_spill] sm:$0xff] %v12070_v60 }
 0x8cb   :  { %v12030_v33 = vadd.f32 %v3102_v10, %v3101_v40  ;;  %v12074_v10 = vld [vmem:[%s10151_s12 + $0xe4] ss:$16 sps:$4 sm:$0xff]  }
 0x8cc   :  { %14033 = vst [vmem:[#allocation58_spill] sm:$0xff] %v12074_v10 }
 0x8cd   :  { %3202 = vmatpush1.bf16.msra.mxu1 %v12033_v26  ;;  %3243 = vmatpush1.bf16.msra.mxu0 %v12037_v2  ;;  %9010 = vtanh.f32 %v12030_v33 }
 0x8ce   :  { %3203 = vmatprep.subr.bf16.mxu1 %v12042_v50  ;;  %3244 = vmatprep.subr.bf16.mxu0 %v12046_v38 }
 0x8d1   :  { %3204 = vmatpush1.bf16.msra.mxu1 %v12050_v0  ;;  %3245 = vmatpush1.bf16.msra.mxu0 %v12054_v5 }
 0x8d2   :  { %3205 = vmatprep.subr.bf16.mxu1 %v12058_v55  ;;  %3246 = vmatprep.subr.bf16.mxu0 %v12062_v4  ;;  %v12082_v4 = vld [vmem:[%s10151_s12 + $0xe0] ss:$16 sps:$4 sm:$0xff]  }
 0x8d5   :  { %3206 = vmatpush1.bf16.msra.mxu1 %v12066_v45  ;;  %3247 = vmatpush1.bf16.msra.mxu0 %v12070_v60  ;;  %v12086_v45 = vld [vmem:[%s10151_s12 + $0xe8] ss:$16 sps:$4 sm:$0xff]  }
 0x8d6   :  { %3207 = vmatprep.subr.bf16.mxu1 %v12074_v10  ;;  %3248 = vmatprep.subr.bf16.mxu0 %v12078_v43 }
 0x8d7   :  { %v9011_v40 = vpop.eup %9010 }
 0x8d8   :  { %v3105_v55 = vmul.f32 %v9011_v40, %v9009_v59  ;;  %v14059_v59 = vld [vmem:[#allocation70_spill] sm:$0xff]  ;;  %v14061_v40 = vld [vmem:[#allocation89_spill] sm:$0xff] }
 0x8d9   :  { %3208 = vmatpush1.bf16.msra.mxu1 %v12082_v4  ;;  %3249 = vmatpush1.bf16.msra.mxu0 %v12086_v45 }
 0x8da   :  { %3303 = vmatprep.subr.bf16.mxu1 %v11562_v62  ;;  %3344 = vmatprep.subr.bf16.mxu0 %v11566_v7  ;;  %v3106_v60 = vpack.c.bf16 %v3105_v55, %v3105_v55  ;;  %v14034_v62 = vld [vmem:[#allocation75_spill] sm:$0xff]  ;;  %v14035_v7 = vld [vmem:[#allocation78_spill] sm:$0xff]  ;;  %v14057_v55 = vld [vmem:[#allocation68_spill] sm:$0xff] }
 0x8dc   :  { %v3191_v10 = vrot.slane %v3106_v60, 2  ;;  %v14058_v60 = vld [vmem:[#allocation69_spill] sm:$0xff] }
 0x8de   :  { %3226 = vmatmul.mubr.bf16.vlgmr.msra.gmra.mrb[88].mxu1 %v3191_v10  ;;  %3267 = vmatmul.mubr.bf16.vlgmr.msra.gmra.mrb[92].mxu0 %v3191_v10 }
 0x8df   :  { %3304 = vmatpush1.bf16.msra.mxu1 %v11572_v49  ;;  %3345 = vmatpush1.bf16.msra.mxu0 %v11576_v11  ;;  %v14036_v49 = vld [vmem:[#allocation76_spill] sm:$0xff]  ;;  %v14037_v11 = vld [vmem:[#allocation79_spill] sm:$0xff] }
 0x8e0   :  { %3305 = vmatprep.subr.bf16.mxu1 %v11580_v31  ;;  %3346 = vmatprep.subr.bf16.mxu0 %v11584_v48  ;;  %v14038_v31 = vld [vmem:[#allocation81_spill] sm:$0xff] }
 0x8e1   :  { %3335 = vmatprep.mubr.bf16.mxu1 %v13667_v18  ;;  %3376 = vmatprep.mubr.bf16.mxu0 %v13667_v18  ;;  %v14039_v48 = vld [vmem:[#allocation77_spill] sm:$0xff] }
 0x8e3   :  { %3306 = vmatpush1.bf16.msra.mxu1 %v11590_v32  ;;  %3347 = vmatpush1.bf16.msra.mxu0 %v11594_v6  ;;  %v14040_v32 = vld [vmem:[#allocation83_spill] sm:$0xff]  ;;  %v14041_v6 = vld [vmem:[#allocation80_spill] sm:$0xff] }
 0x8e4   :  { %3307 = vmatprep.subr.bf16.mxu1 %v11598_v42  ;;  %3348 = vmatprep.subr.bf16.mxu0 %v13972_v28  ;;  %v14042_v42 = vld [vmem:[#allocation84_spill] sm:$0xff] }
 0x8e5   :  { %v14043_v28 = vld [vmem:[#allocation104_spill] sm:$0xff] }
 0x8e7   :  { %3308 = vmatpush1.bf16.msra.mxu1 %v13973_v22  ;;  %3349 = vmatpush1.bf16.msra.mxu0 %v13974_v14  ;;  %v14044_v22 = vld [vmem:[#allocation105_spill] sm:$0xff]  ;;  %v14045_v14 = vld [vmem:[#allocation111_spill] sm:$0xff] }
 0x8e8   :  { %3309 = vmatprep.subr.bf16.mxu1 %v13975_v12  ;;  %3350 = vmatprep.subr.bf16.mxu0 %v13976_v30  ;;  %v14046_v12 = vld [vmem:[#allocation109_spill] sm:$0xff]  ;;  %v14047_v30 = vld [vmem:[#allocation56_spill] sm:$0xff] }
 0x8eb   :  { %3310 = vmatpush1.bf16.msra.mxu1 %v13977_v20  ;;  %3351 = vmatpush1.bf16.msra.mxu0 %v13978_v35  ;;  %v14048_v20 = vld [vmem:[#allocation85_spill] sm:$0xff]  ;;  %v14049_v35 = vld [vmem:[#allocation86_spill] sm:$0xff] }
 0x8ec   :  { %3311 = vmatprep.subr.bf16.mxu1 %v13979_v27  ;;  %3352 = vmatprep.subr.bf16.mxu0 %v13980_v9  ;;  %v14050_v27 = vld [vmem:[#allocation87_spill] sm:$0xff]  ;;  %v14051_v9 = vld [vmem:[#allocation88_spill] sm:$0xff] }
 0x8ef   :  { %3312 = vmatpush1.bf16.msra.mxu1 %v13981_v29  ;;  %3353 = vmatpush1.bf16.msra.mxu0 %v13982_v8  ;;  %v14052_v29 = vld [vmem:[#allocation93_spill] sm:$0xff]  ;;  %v14053_v8 = vld [vmem:[#allocation95_spill] sm:$0xff] }
 0x8f0   :  { %3313 = vmatprep.subr.bf16.mxu1 %v13983_v17  ;;  %3354 = vmatprep.subr.bf16.mxu0 %v13984_v23  ;;  %v14054_v17 = vld [vmem:[#allocation99_spill] sm:$0xff]  ;;  %v14055_v23 = vld [vmem:[#allocation100_spill] sm:$0xff] }
 0x8f3   :  { %3314 = vmatpush1.bf16.msra.mxu1 %v13985_v57  ;;  %3355 = vmatpush1.bf16.msra.mxu0 %v14034_v62  ;;  %v14056_v57 = vld [vmem:[#allocation66_spill] sm:$0xff] }
 0x8f4   :  { %3315 = vmatprep.subr.bf16.mxu1 %v14035_v7  ;;  %3356 = vmatprep.subr.bf16.mxu0 %v14036_v49  ;;  %v14062_v62 = vld [vmem:[#allocation90_spill] sm:$0xff]  ;;  %v14063_v7 = vld [vmem:[#allocation91_spill] sm:$0xff]  ;;  %v14064_v49 = vld [vmem:[#allocation92_spill] sm:$0xff] }
 0x8f7   :  { %3316 = vmatpush1.bf16.msra.mxu1 %v14037_v11  ;;  %3357 = vmatpush1.bf16.msra.mxu0 %v14038_v31  ;;  %v14065_v11 = vld [vmem:[#allocation94_spill] sm:$0xff] }
 0x8f8   :  { %3317 = vmatprep.subr.bf16.mxu1 %v14039_v48  ;;  %3358 = vmatprep.subr.bf16.mxu0 %v14040_v32  ;;  %v14066_v48 = vld [vmem:[#allocation96_spill] sm:$0xff] }
 0x8fb   :  { %3318 = vmatpush1.bf16.msra.mxu1 %v14041_v6  ;;  %3359 = vmatpush1.bf16.msra.mxu0 %v14042_v42  ;;  %v14067_v6 = vld [vmem:[#allocation97_spill] sm:$0xff] }
 0x8fc   :  { %3430 = vmatprep.subr.bf16.mxu1 %v14043_v28  ;;  %3471 = vmatprep.subr.bf16.mxu0 %v14044_v22 }
 0x8fe   :  { %3336 = vmatmul.mubr.bf16.vlgmr.msra.gmra.mrb[92].mxu1 %v3191_v10  ;;  %3377 = vmatmul.mubr.bf16.vlgmr.msra.gmra.mrb[96].mxu0 %v3191_v10  ;;  %v14060_v10 = vld [vmem:[#allocation82_spill] sm:$0xff] }
 0x8ff   :  { %3431 = vmatpush1.bf16.msra.mxu1 %v14045_v14  ;;  %3472 = vmatpush1.bf16.msra.mxu0 %v14046_v12 }
 0x900   :  { %3432 = vmatprep.subr.bf16.mxu1 %v14047_v30  ;;  %3473 = vmatprep.subr.bf16.mxu0 %v14048_v20 }
 0x901   :  { %3462 = vmatprep.mubr.bf16.mxu1 %v13667_v18  ;;  %3503 = vmatprep.mubr.bf16.mxu0 %v13667_v18 }
 0x903   :  { %3433 = vmatpush1.bf16.msra.mxu1 %v14049_v35  ;;  %3474 = vmatpush1.bf16.msra.mxu0 %v14050_v27 }
 0x904   :  { %3434 = vmatprep.subr.bf16.mxu1 %v14051_v9  ;;  %3475 = vmatprep.subr.bf16.mxu0 %v14052_v29 }
 0x907   :  { %3435 = vmatpush1.bf16.msra.mxu1 %v14053_v8  ;;  %3476 = vmatpush1.bf16.msra.mxu0 %v14054_v17 }
 0x908   :  { %3436 = vmatprep.subr.bf16.mxu1 %v14055_v23  ;;  %3477 = vmatprep.subr.bf16.mxu0 %v14056_v57 }
 0x90b   :  { %3437 = vmatpush1.bf16.msra.mxu1 %v14057_v55  ;;  %3478 = vmatpush1.bf16.msra.mxu0 %v14058_v60  ;;  %v14068_v55 = vld [vmem:[#allocation98_spill] sm:$0xff] }
 0x90c   :  { %3438 = vmatprep.subr.bf16.mxu1 %v14059_v59  ;;  %3479 = vmatprep.subr.bf16.mxu0 %v14060_v10  ;;  %v14069_v60 = vld [vmem:[#allocation46_spill] sm:$0xff]  ;;  %v14070_v59 = vld [vmem:[#allocation47_spill] sm:$0xff]  ;;  %v14071_v10 = vld [vmem:[#allocation49_spill] sm:$0xff] }
 0x90f   :  { %3439 = vmatpush1.bf16.msra.mxu1 %v14061_v40  ;;  %3480 = vmatpush1.bf16.msra.mxu0 %v14062_v62  ;;  %v14072_v40 = vld [vmem:[#allocation48_spill] sm:$0xff]  ;;  %v14073_v62 = vld [vmem:[#allocation50_spill] sm:$0xff] }
 0x910   :  { %3440 = vmatprep.subr.bf16.mxu1 %v14063_v7  ;;  %3481 = vmatprep.subr.bf16.mxu0 %v14064_v49  ;;  %v14074_v7 = vld [vmem:[#allocation51_spill] sm:$0xff]  ;;  %v14075_v49 = vld [vmem:[#allocation53_spill] sm:$0xff] }
 0x913   :  { %3441 = vmatpush1.bf16.msra.mxu1 %v14065_v11  ;;  %3482 = vmatpush1.bf16.msra.mxu0 %v14066_v48  ;;  %v14076_v11 = vld [vmem:[#allocation52_spill] sm:$0xff] }
 0x914   :  { %3442 = vmatprep.subr.bf16.mxu1 %v14067_v6  ;;  %3483 = vmatprep.subr.bf16.mxu0 %v14068_v55 }
 0x917   :  { %3443 = vmatpush1.bf16.msra.mxu1 %v14069_v60  ;;  %3484 = vmatpush1.bf16.msra.mxu0 %v14070_v59 }
 0x918   :  { %3444 = vmatprep.subr.bf16.mxu1 %v14071_v10  ;;  %3485 = vmatprep.subr.bf16.mxu0 %v14072_v40 }
 0x91b   :  { %3445 = vmatpush1.bf16.msra.mxu1 %v14073_v62  ;;  %3486 = vmatpush1.bf16.msra.mxu0 %v14074_v7 }
 0x91c   :  { %3515 = vmatprep.subr.bf16.mxu1 %v14075_v49  ;;  %3556 = vmatprep.subr.bf16.mxu0 %v14076_v11 }
 0x98f   :  { %v3142_v48 = vpop.f32.mrb[84].mxu1  ;;  %v3183_v6 = vpop.f32.mrb[88].mxu0 }
 0x990   :  { %v3144_v57 = vpop.f32.mrb[85].mxu1  ;;  %v3185_v55 = vpop.f32.mrb[89].mxu0 }
 0x991   :  { %v3146_v23 = vpop.f32.mrb[86].mxu1  ;;  %v3187_v60 = vpop.f32.mrb[90].mxu0 }
 0x992   :  { %v3147_v17 = vpop.f32.mrb[87].mxu1  ;;  %v3188_v59 = vpop.f32.mrb[91].mxu0 }
 0x9b1   :  { %v3227_v8 = vpop.f32.mrb[88].mxu1  ;;  %v3268_v10 = vpop.f32.mrb[92].mxu0 }
 0x9b2   :  { %v3228_v29 = vadd.f32 %v3227_v8, %v3142_v48  ;;  %v3269_v40 = vadd.f32 %v3268_v10, %v3183_v6  ;;  %v3229_v9 = vpop.f32.mrb[89].mxu1  ;;  %v3270_v62 = vpop.f32.mrb[93].mxu0 }
 0x9b3   :  { %v3230_v27 = vadd.f32 %v3229_v9, %v3144_v57  ;;  %v3271_v7 = vadd.f32 %v3270_v62, %v3185_v55  ;;  %v3231_v35 = vpop.f32.mrb[90].mxu1  ;;  %v3272_v49 = vpop.f32.mrb[94].mxu0 }
 0x9b4   :  { %v3275_v11 = vadd.f32 %v3228_v29, %v10852_v21  ;;  %v3232_v20 = vpop.f32.mrb[91].mxu1  ;;  %v3273_v30 = vpop.f32.mrb[95].mxu0  ;;  %v3277_v59 = vadd.f32 %v3269_v40, %v10864_v39 }
 0x9b5   :  { %v3276_v12 = vadd.f32 %v3230_v27, %v10855_v63  ;;  %v3278_v17 = vadd.f32 %v3271_v7, %v10860_v3 }
 0x9b6   :  { %v7931_v23 = vmul.f32 -1.442695, %v3275_v11 }
 0x9b7   :  { %v7932_v60 = vmul.f32 -1.442695, %v3276_v12  ;;  %v7933_v8 = vmul.f32 -1.442695, %v3278_v17 }
 0x9b8   :  { %9012 = vpow2.f32 %v7931_v23 }
 0x9b9   :  { %9014 = vpow2.f32 %v7932_v60 }
 0x9ba   :  { %9016 = vpow2.f32 %v7933_v8 }
 0x9bb   :  { %9018 = vtanh.f32 %v3277_v59 }
 0x9c2   :  { %v9013_v10 = vpop.eup %9012 }
 0x9c3   :  { %v9015_v9 = vpop.eup %9014  ;;  %v3282_v57 = vadd.f32 1.0, %v9013_v10 }
 0x9c4   :  { %v3288_v35 = vadd.f32 1.0, %v9015_v9  ;;  %v9017_v30 = vpop.eup %9016 }
 0x9c5   :  { %9020 = vrcp.f32 %v3282_v57  ;;  %v9019_v20 = vpop.eup %9018  ;;  %v3295_v55 = vadd.f32 1.0, %v9017_v30 }
 0x9c6   :  { %9022 = vrcp.f32 %v3288_v35 }
 0x9c7   :  { %9024 = vrcp.f32 %v3295_v55 }
 0x9cf   :  { %v9021_v27 = vpop.eup %9020 }
 0x9d0   :  { %v9023_v29 = vpop.eup %9022  ;;  %v3299_v12 = vmul.f32 %v9021_v27, %v9019_v20 }
 0x9d1   :  { %v3298_v62 = vmul.f32 %v9023_v29, %v11980_v19  ;;  %v3337_v7 = vpop.f32.mrb[92].mxu1  ;;  %v3378_v49 = vpop.f32.mrb[96].mxu0 }
 0x9d2   :  { %v3389_v11 = vrot.slane %v3337_v7, 2  ;;  %v3339_v40 = vpop.f32.mrb[93].mxu1  ;;  %v3380_v48 = vpop.f32.mrb[97].mxu0  ;;  %v3391_v20 = vrot.slane %v3378_v49, 2 }
 0x9d3   :  { %v12164_v6 = vadd.f32 %v3299_v12, %v3298_v62  ;;  %v3390_v23 = vrot.slane %v3339_v40, 2  ;;  %v3341_v60 = vpop.f32.mrb[94].mxu1  ;;  %v3382_v17 = vpop.f32.mrb[98].mxu0  ;;  %v3392_v35 = vrot.slane %v3380_v48, 2  ;;  %v14080_v48 = vld [vmem:[#allocation59_spill] sm:$0xff] }
 0x9d4   :  { %v3397_v8 = vadd.f32 %v3389_v11, %v13916_v36  ;;  %v3342_v59 = vpop.f32.mrb[95].mxu1  ;;  %v3383_v10 = vpop.f32.mrb[99].mxu0  ;;  %v3399_v55 = vadd.f32 %v3391_v20, %v13919_v58  ;;  %v14081_v60 = vld [vmem:[#allocation58_spill] sm:$0xff] }
 0x9d5   :  { %v3398_v9 = vadd.f32 %v3390_v23, %v13917_v25  ;;  %9026 = vtanh.f32 %v12164_v6  ;;  %v3400_v30 = vadd.f32 %v3392_v35, %v13918_v34  ;;  %v9025_v27 = vpop.eup %9024  ;;  %v12208_v59 = vld [vmem:[%s10141_s30 + $0x4] ss:$16 sps:$4 sm:$0xff]   ;;  %v12212_v10 = vld [vmem:[%s10141_s30 + $0xc] ss:$16 sps:$4 sm:$0xff]   ;;  %v12224_v35 = vld [vmem:[%s10141_s30 + $0x8] ss:$16 sps:$4 sm:$0xff]  }
 0x9d6   :  { %v7934_v19 = vmul.f32 -1.442695, %v3397_v8  ;;  %v12232_v20 = vld [vmem:[%s10141_s30 + $0x2c] ss:$16 sps:$4 sm:$0xff]  }
 0x9d7   :  { %v7935_v57 = vmul.f32 -1.442695, %v3398_v9  ;;  %v7936_v12 = vmul.f32 -1.442695, %v3400_v30  ;;  %v12228_v30 = vld [vmem:[%s10141_s30 + $0x24] ss:$16 sps:$4 sm:$0xff]  }
 0x9d8   :  { %9028 = vpow2.f32 %v7934_v19 }
 0x9d9   :  { %9030 = vpow2.f32 %v7935_v57  ;;  %v12220_v57 = vld [vmem:[%s10141_s30] ss:$16 sps:$4 sm:$0xff]  }
 0x9da   :  { %9032 = vpow2.f32 %v7936_v12  ;;  %v12246_v12 = vld [vmem:[%s10141_s30 + $0x44] ss:$16 sps:$4 sm:$0xff]  }
 0x9db   :  { %9034 = vtanh.f32 %v3399_v55  ;;  %v12250_v55 = vld [vmem:[%s10141_s30 + $0x4c] ss:$16 sps:$4 sm:$0xff]  }
 0x9df   :  { %v9027_v29 = vpop.eup %9026 }
 0x9e0   :  { %v3302_v36 = vmul.f32 %v9027_v29, %v9025_v27  ;;  %v12238_v27 = vld [vmem:[%s10141_s30 + $0x20] ss:$16 sps:$4 sm:$0xff]   ;;  %v12242_v29 = vld [vmem:[%s10141_s30 + $0x28] ss:$16 sps:$4 sm:$0xff]  }
 0x9e2   :  { %v9029_v62 = vpop.eup %9028  ;;  %v3429_v7 = vpack.c.bf16 %v3302_v36, %v3302_v36  ;;  %v12254_v36 = vld [vmem:[%s10141_s30 + $0x40] ss:$16 sps:$4 sm:$0xff]  }
 0x9e3   :  { %v9031_v11 = vpop.eup %9030  ;;  %v3404_v25 = vadd.f32 1.0, %v9029_v62  ;;  %v12258_v62 = vld [vmem:[%s10141_s30 + $0x48] ss:$16 sps:$4 sm:$0xff]  }
 0x9e4   :  { %v3410_v40 = vadd.f32 1.0, %v9031_v11  ;;  %3463 = vmatmul.mubr.bf16.vlgmr.msra.gmra.mrb[96].mxu1 %v3429_v7  ;;  %3504 = vmatmul.mubr.bf16.vlgmr.msra.gmra.mrb[100].mxu0 %v3429_v7  ;;  %v9033_v34 = vpop.eup %9032  ;;  %v12262_v7 = vld [vmem:[%s10141_s30 + $0x64] ss:$16 sps:$4 sm:$0xff]   ;;  %v12266_v11 = vld [vmem:[%s10141_s30 + $0x6c] ss:$16 sps:$4 sm:$0xff]  }
 0x9e5   :  { %9036 = vrcp.f32 %v3404_v25  ;;  %3516 = vmatpush1.bf16.msra.mxu1 %v11735_v13  ;;  %3557 = vmatpush1.bf16.msra.mxu0 %v11739_v56  ;;  %v9035_v58 = vpop.eup %9034  ;;  %v3421_v56 = vrot.slane %v12030_v33, 6  ;;  %v14079_v33 = vld [vmem:[#allocation57_spill] sm:$0xff]  ;;  %14082 = vst [vmem:[#allocation60_spill] sm:$0xff] %v12266_v11 }
 0x9e6   :  { %9038 = vrcp.f32 %v3410_v40  ;;  %3517 = vmatprep.subr.bf16.mxu1 %v11743_v54  ;;  %3558 = vmatprep.subr.bf16.mxu0 %v11747_v53  ;;  %v12270_v25 = vld [vmem:[%s10141_s30 + $0x60] ss:$16 sps:$4 sm:$0xff]   ;;  %v12274_v40 = vld [vmem:[%s10141_s30 + $0x68] ss:$16 sps:$4 sm:$0xff]  }
 0x9e7   :  { %3547 = vmatprep.mubr.bf16.mxu1 %v13667_v18  ;;  %3588 = vmatprep.mubr.bf16.mxu0 %v13667_v18  ;;  %14083 = vst [vmem:[#allocation61_spill] sm:$0xff] %v12270_v25  ;;  %14084 = vst [vmem:[#allocation63_spill] sm:$0xff] %v12274_v40 }
 0x9e9   :  { %3518 = vmatpush1.bf16.msra.mxu1 %v11753_v37  ;;  %3559 = vmatpush1.bf16.msra.mxu0 %v11757_v24  ;;  %v3417_v37 = vadd.f32 1.0, %v9033_v34  ;;  %v12278_v34 = vld [vmem:[%s10141_s30 + $0x84] ss:$16 sps:$4 sm:$0xff]  }
 0x9ea   :  { %3519 = vmatprep.subr.bf16.mxu1 %v11996_v41  ;;  %3560 = vmatprep.subr.bf16.mxu0 %v12000_v47  ;;  %14085 = vst [vmem:[#allocation62_spill] sm:$0xff] %v12278_v34 }
 0x9eb   :  { %9040 = vrcp.f32 %v3417_v37  ;;  %v12302_v37 = vld [vmem:[%s10141_s30 + $0xa0] ss:$16 sps:$4 sm:$0xff]  }
 0x9ec   :  { %14091 = vst [vmem:[#allocation73_spill] sm:$0xff] %v12302_v37 }
 0x9ed   :  { %3520 = vmatpush1.bf16.msra.mxu1 %v12004_v61  ;;  %3561 = vmatpush1.bf16.msra.mxu0 %v12008_v52 }
 0x9ee   :  { %3521 = vmatprep.subr.bf16.mxu1 %v12012_v15  ;;  %3562 = vmatprep.subr.bf16.mxu0 %v12016_v46 }
 0x9ef   :  { %v9037_v13 = vpop.eup %9036 }
 0x9f0   :  { %v9039_v54 = vpop.eup %9038  ;;  %v3424_v53 = vmul.f32 %v9037_v13, %v9035_v58  ;;  %v12282_v58 = vld [vmem:[%s10141_s30 + $0x8c] ss:$16 sps:$4 sm:$0xff]   ;;  %v12286_v13 = vld [vmem:[%s10141_s30 + $0x80] ss:$16 sps:$4 sm:$0xff]  }
 0x9f1   :  { %v3423_v24 = vmul.f32 %v9039_v54, %v3421_v56  ;;  %3522 = vmatpush1.bf16.msra.mxu1 %v11768_v44  ;;  %3563 = vmatpush1.bf16.msra.mxu0 %v11772_v1  ;;  %v14077_v44 = vld [vmem:[#allocation55_spill] sm:$0xff]  ;;  %v14078_v1 = vld [vmem:[#allocation54_spill] sm:$0xff]  ;;  %14086 = vst [vmem:[#allocation64_spill] sm:$0xff] %v12282_v58  ;;  %14087 = vst [vmem:[#allocation65_spill] sm:$0xff] %v12286_v13 }
 0x9f2   :  { %3523 = vmatprep.subr.bf16.mxu1 %v12023_v16  ;;  %3564 = vmatprep.subr.bf16.mxu0 %v12027_v51  ;;  %v12290_v56 = vld [vmem:[%s10141_s30 + $0x88] ss:$16 sps:$4 sm:$0xff]   ;;  %v12294_v54 = vld [vmem:[%s10141_s30 + $0xa4] ss:$16 sps:$4 sm:$0xff]  }
 0x9f3   :  { %v12190_v49 = vadd.f32 %v3424_v53, %v3423_v24  ;;  %14088 = vst [vmem:[#allocation67_spill] sm:$0xff] %v12290_v56  ;;  %14089 = vst [vmem:[#allocation71_spill] sm:$0xff] %v12294_v54  ;;  %v12298_v53 = vld [vmem:[%s10141_s30 + $0xac] ss:$16 sps:$4 sm:$0xff]   ;;  %v12306_v24 = vld [vmem:[%s10141_s30 + $0xa8] ss:$16 sps:$4 sm:$0xff]  }
 0x9f4   :  { %14090 = vst [vmem:[#allocation72_spill] sm:$0xff] %v12298_v53  ;;  %14092 = vst [vmem:[#allocation74_spill] sm:$0xff] %v12306_v24 }
 0x9f5   :  { %3524 = vmatpush1.bf16.msra.mxu1 %v12033_v26  ;;  %3565 = vmatpush1.bf16.msra.mxu0 %v12037_v2  ;;  %9042 = vtanh.f32 %v12190_v49  ;;  %v9041_v23 = vpop.eup %9040 }
 0x9f6   :  { %3525 = vmatprep.subr.bf16.mxu1 %v12042_v50  ;;  %3566 = vmatprep.subr.bf16.mxu0 %v12046_v38 }
 0x9f9   :  { %3526 = vmatpush1.bf16.msra.mxu1 %v12050_v0  ;;  %3567 = vmatpush1.bf16.msra.mxu0 %v12054_v5 }
 0x9fa   :  { %3527 = vmatprep.subr.bf16.mxu1 %v14077_v44  ;;  %3568 = vmatprep.subr.bf16.mxu0 %v14078_v1 }
 0x9fd   :  { %3528 = vmatpush1.bf16.msra.mxu1 %v14079_v33  ;;  %3569 = vmatpush1.bf16.msra.mxu0 %v14080_v48 }
 0x9fe   :  { %3529 = vmatprep.subr.bf16.mxu1 %v14081_v60  ;;  %3570 = vmatprep.subr.bf16.mxu0 %v12078_v43 }
 0x9ff   :  { %v9043_v17 = vpop.eup %9042 }
 0xa00   :  { %v3427_v8 = vmul.f32 %v9043_v17, %v9041_v23  ;;  %v12310_v23 = vld [vmem:[%s10141_s30 + $0xc4] ss:$16 sps:$4 sm:$0xff]   ;;  %v12314_v17 = vld [vmem:[%s10141_s30 + $0xcc] ss:$16 sps:$4 sm:$0xff]  }
 0xa01   :  { %3530 = vmatpush1.bf16.msra.mxu1 %v12082_v4  ;;  %3571 = vmatpush1.bf16.msra.mxu0 %v12086_v45  ;;  %14093 = vst [vmem:[#allocation75_spill] sm:$0xff] %v12310_v23  ;;  %14094 = vst [vmem:[#allocation78_spill] sm:$0xff] %v12314_v17 }
 0xa02   :  { %3625 = vmatprep.subr.bf16.mxu1 %v12208_v59  ;;  %3666 = vmatprep.subr.bf16.mxu0 %v12212_v10  ;;  %v3428_v9 = vpack.c.bf16 %v3427_v8, %v3427_v8  ;;  %v12318_v8 = vld [vmem:[%s10141_s30 + $0xc0] ss:$16 sps:$4 sm:$0xff]  }
 0xa03   :  { %14095 = vst [vmem:[#allocation76_spill] sm:$0xff] %v12318_v8 }
 0xa04   :  { %v12215_v19 = vrot.slane %v3428_v9, 3  ;;  %v12323_v9 = vld [vmem:[%s10141_s30 + $0xe4] ss:$16 sps:$4 sm:$0xff]  }
 0xa05   :  { %14096 = vst [vmem:[#allocation79_spill] sm:$0xff] %v12323_v9 }
 0xa06   :  { %3548 = vmatmul.mubr.bf16.vlgmr.msra.gmra.mrb[100].mxu1 %v12215_v19  ;;  %3589 = vmatmul.mubr.bf16.vlgmr.msra.gmra.mrb[104].mxu0 %v12215_v19 }
 0xa07   :  { %3626 = vmatpush1.bf16.msra.mxu1 %v12220_v57  ;;  %3667 = vmatpush1.bf16.msra.mxu0 %v12224_v35 }
 0xa08   :  { %3627 = vmatprep.subr.bf16.mxu1 %v12228_v30  ;;  %3668 = vmatprep.subr.bf16.mxu0 %v12232_v20 }
 0xa09   :  { %3657 = vmatprep.mubr.bf16.mxu1 %v13667_v18  ;;  %3698 = vmatprep.mubr.bf16.mxu0 %v13667_v18 }
 0xa0b   :  { %3628 = vmatpush1.bf16.msra.mxu1 %v12238_v27  ;;  %3669 = vmatpush1.bf16.msra.mxu0 %v12242_v29 }
 0xa0c   :  { %3629 = vmatprep.subr.bf16.mxu1 %v12246_v12  ;;  %3670 = vmatprep.subr.bf16.mxu0 %v12250_v55 }
 0xa0f   :  { %3630 = vmatpush1.bf16.msra.mxu1 %v12254_v36  ;;  %3671 = vmatpush1.bf16.msra.mxu0 %v12258_v62 }
 0xa10   :  { %3631 = vmatprep.subr.bf16.mxu1 %v12262_v7  ;;  %3672 = vmatprep.subr.bf16.mxu0 %v12266_v11 }
 0xa13   :  { %3632 = vmatpush1.bf16.msra.mxu1 %v12270_v25  ;;  %3673 = vmatpush1.bf16.msra.mxu0 %v12274_v40 }
 0xa14   :  { %3633 = vmatprep.subr.bf16.mxu1 %v12278_v34  ;;  %3674 = vmatprep.subr.bf16.mxu0 %v12282_v58 }
 0xa17   :  { %3634 = vmatpush1.bf16.msra.mxu1 %v12286_v13  ;;  %3675 = vmatpush1.bf16.msra.mxu0 %v12290_v56 }
 0xa18   :  { %3635 = vmatprep.subr.bf16.mxu1 %v12294_v54  ;;  %3676 = vmatprep.subr.bf16.mxu0 %v12298_v53 }
 0xa1b   :  { %3636 = vmatpush1.bf16.msra.mxu1 %v12302_v37  ;;  %3677 = vmatpush1.bf16.msra.mxu0 %v12306_v24  ;;  %v12328_v24 = vld [vmem:[%s10141_s30 + $0xe0] ss:$16 sps:$4 sm:$0xff]  }
 0xa1c   :  { %3637 = vmatprep.subr.bf16.mxu1 %v12310_v23  ;;  %3678 = vmatprep.subr.bf16.mxu0 %v12314_v17  ;;  %14097 = vst [vmem:[#allocation81_spill] sm:$0xff] %v12328_v24  ;;  %v14111_v17 = vld [vmem:[#allocation70_spill] sm:$0xff] }
 0xa1f   :  { %3638 = vmatpush1.bf16.msra.mxu1 %v12318_v8  ;;  %3679 = vmatpush1.bf16.msra.mxu0 %v14038_v31  ;;  %v14098_v31 = vld [vmem:[#allocation109_spill] sm:$0xff] }
 0xa20   :  { %3639 = vmatprep.subr.bf16.mxu1 %v12323_v9  ;;  %3680 = vmatprep.subr.bf16.mxu0 %v14040_v32  ;;  %v14099_v9 = vld [vmem:[#allocation56_spill] sm:$0xff]  ;;  %v14100_v32 = vld [vmem:[#allocation85_spill] sm:$0xff] }
 0xa21   :  { %v14110_v8 = vld [vmem:[#allocation69_spill] sm:$0xff] }
 0xa23   :  { %3640 = vmatpush1.bf16.msra.mxu1 %v12328_v24  ;;  %3681 = vmatpush1.bf16.msra.mxu0 %v14042_v42  ;;  %v14101_v42 = vld [vmem:[#allocation86_spill] sm:$0xff]  ;;  %v14104_v24 = vld [vmem:[#allocation93_spill] sm:$0xff] }
 0xa24   :  { %3740 = vmatprep.subr.bf16.mxu1 %v14043_v28  ;;  %3781 = vmatprep.subr.bf16.mxu0 %v14044_v22  ;;  %v14102_v28 = vld [vmem:[#allocation87_spill] sm:$0xff]  ;;  %v14103_v22 = vld [vmem:[#allocation88_spill] sm:$0xff] }
 0xa26   :  { %3658 = vmatmul.mubr.bf16.vlgmr.msra.gmra.mrb[104].mxu1 %v12215_v19  ;;  %3699 = vmatmul.mubr.bf16.vlgmr.msra.gmra.mrb[108].mxu0 %v12215_v19  ;;  %v14105_v19 = vld [vmem:[#allocation95_spill] sm:$0xff] }
 0xa27   :  { %3741 = vmatpush1.bf16.msra.mxu1 %v14045_v14  ;;  %3782 = vmatpush1.bf16.msra.mxu0 %v14098_v31  ;;  %v14106_v14 = vld [vmem:[#allocation99_spill] sm:$0xff]  ;;  %v14107_v31 = vld [vmem:[#allocation100_spill] sm:$0xff] }
 0xa28   :  { %3742 = vmatprep.subr.bf16.mxu1 %v14099_v9  ;;  %3783 = vmatprep.subr.bf16.mxu0 %v14100_v32  ;;  %v14108_v9 = vld [vmem:[#allocation66_spill] sm:$0xff]  ;;  %v14109_v32 = vld [vmem:[#allocation68_spill] sm:$0xff] }
 0xa29   :  { %3772 = vmatprep.mubr.bf16.mxu1 %v13667_v18  ;;  %3813 = vmatprep.mubr.bf16.mxu0 %v13667_v18 }
 0xa2b   :  { %3743 = vmatpush1.bf16.msra.mxu1 %v14101_v42  ;;  %3784 = vmatpush1.bf16.msra.mxu0 %v14102_v28  ;;  %v14112_v42 = vld [vmem:[#allocation82_spill] sm:$0xff]  ;;  %v14113_v28 = vld [vmem:[#allocation89_spill] sm:$0xff] }
 0xa2c   :  { %3744 = vmatprep.subr.bf16.mxu1 %v14103_v22  ;;  %3785 = vmatprep.subr.bf16.mxu0 %v14104_v24  ;;  %v14114_v22 = vld [vmem:[#allocation90_spill] sm:$0xff]  ;;  %v14115_v24 = vld [vmem:[#allocation91_spill] sm:$0xff] }
 0xa2f   :  { %3745 = vmatpush1.bf16.msra.mxu1 %v14105_v19  ;;  %3786 = vmatpush1.bf16.msra.mxu0 %v14106_v14  ;;  %v14116_v19 = vld [vmem:[#allocation92_spill] sm:$0xff]  ;;  %v14117_v14 = vld [vmem:[#allocation94_spill] sm:$0xff] }
 0xa30   :  { %3746 = vmatprep.subr.bf16.mxu1 %v14107_v31  ;;  %3787 = vmatprep.subr.bf16.mxu0 %v14108_v9  ;;  %v14118_v31 = vld [vmem:[#allocation96_spill] sm:$0xff]  ;;  %v14119_v9 = vld [vmem:[#allocation97_spill] sm:$0xff] }
 0xa33   :  { %3747 = vmatpush1.bf16.msra.mxu1 %v14109_v32  ;;  %3788 = vmatpush1.bf16.msra.mxu0 %v14110_v8  ;;  %v14120_v32 = vld [vmem:[#allocation98_spill] sm:$0xff] }
 0xa34   :  { %3748 = vmatprep.subr.bf16.mxu1 %v14111_v17  ;;  %3789 = vmatprep.subr.bf16.mxu0 %v14112_v42  ;;  %v14121_v8 = vld [vmem:[#allocation46_spill] sm:$0xff]  ;;  %v14122_v17 = vld [vmem:[#allocation47_spill] sm:$0xff]  ;;  %v14123_v42 = vld [vmem:[#allocation49_spill] sm:$0xff] }
 0xa37   :  { %3749 = vmatpush1.bf16.msra.mxu1 %v14113_v28  ;;  %3790 = vmatpush1.bf16.msra.mxu0 %v14114_v22  ;;  %v14124_v28 = vld [vmem:[#allocation48_spill] sm:$0xff]  ;;  %v14125_v22 = vld [vmem:[#allocation50_spill] sm:$0xff] }
 0xa38   :  { %3750 = vmatprep.subr.bf16.mxu1 %v14115_v24  ;;  %3791 = vmatprep.subr.bf16.mxu0 %v14116_v19  ;;  %v14126_v24 = vld [vmem:[#allocation51_spill] sm:$0xff]  ;;  %v14127_v19 = vld [vmem:[#allocation53_spill] sm:$0xff] }
 0xa3b   :  { %3751 = vmatpush1.bf16.msra.mxu1 %v14117_v14  ;;  %3792 = vmatpush1.bf16.msra.mxu0 %v14118_v31  ;;  %v14128_v14 = vld [vmem:[#allocation52_spill] sm:$0xff] }
 0xa3c   :  { %3752 = vmatprep.subr.bf16.mxu1 %v14119_v9  ;;  %3793 = vmatprep.subr.bf16.mxu0 %v14120_v32 }
 0xa3f   :  { %3753 = vmatpush1.bf16.msra.mxu1 %v14121_v8  ;;  %3794 = vmatpush1.bf16.msra.mxu0 %v14122_v17 }
 0xa40   :  { %3754 = vmatprep.subr.bf16.mxu1 %v14123_v42  ;;  %3795 = vmatprep.subr.bf16.mxu0 %v14124_v28 }
 0xa43   :  { %3755 = vmatpush1.bf16.msra.mxu1 %v14125_v22  ;;  %3796 = vmatpush1.bf16.msra.mxu0 %v14126_v24 }
 0xa44   :  { %3822 = vmatprep.subr.bf16.mxu1 %v14127_v19  ;;  %3863 = vmatprep.subr.bf16.mxu0 %v14128_v14 }
 0xab7   :  { %v3464_v31 = vpop.f32.mrb[96].mxu1  ;;  %v3505_v9 = vpop.f32.mrb[100].mxu0 }
 0xab8   :  { %v3466_v23 = vpop.f32.mrb[97].mxu1  ;;  %v3507_v32 = vpop.f32.mrb[101].mxu0 }
 0xab9   :  { %v3468_v37 = vpop.f32.mrb[98].mxu1  ;;  %v3509_v8 = vpop.f32.mrb[102].mxu0 }
 0xaba   :  { %v3469_v53 = vpop.f32.mrb[99].mxu1  ;;  %v3510_v17 = vpop.f32.mrb[103].mxu0 }
 0xad9   :  { %v3549_v54 = vpop.f32.mrb[100].mxu1  ;;  %v3590_v42 = vpop.f32.mrb[104].mxu0 }
 0xada   :  { %v3550_v56 = vadd.f32 %v3549_v54, %v3464_v31  ;;  %v3591_v28 = vadd.f32 %v3590_v42, %v3505_v9  ;;  %v3551_v13 = vpop.f32.mrb[101].mxu1  ;;  %v3592_v22 = vpop.f32.mrb[105].mxu0 }
 0xadb   :  { %v3552_v58 = vadd.f32 %v3551_v13, %v3466_v23  ;;  %v3593_v24 = vadd.f32 %v3592_v22, %v3507_v32  ;;  %v3553_v34 = vpop.f32.mrb[102].mxu1  ;;  %v3594_v19 = vpop.f32.mrb[106].mxu0 }
 0xadc   :  { %v3597_v14 = vadd.f32 %v3550_v56, %v10852_v21  ;;  %v3554_v40 = vpop.f32.mrb[103].mxu1  ;;  %v3595_v25 = vpop.f32.mrb[107].mxu0  ;;  %v3599_v31 = vadd.f32 %v3591_v28, %v10864_v39 }
 0xadd   :  { %v3598_v11 = vadd.f32 %v3552_v58, %v10855_v63  ;;  %v3600_v53 = vadd.f32 %v3593_v24, %v10860_v3  ;;  %v14129_v24 = vld [vmem:[#allocation110_spill] sm:$0xff] }
 0xade   :  { %v7937_v37 = vmul.f32 -1.442695, %v3597_v14 }
 0xadf   :  { %v7938_v8 = vmul.f32 -1.442695, %v3598_v11  ;;  %v7939_v54 = vmul.f32 -1.442695, %v3600_v53 }
 0xae0   :  { %9044 = vpow2.f32 %v7937_v37 }
 0xae1   :  { %9046 = vpow2.f32 %v7938_v8  ;;  %v14130_v8 = vld [vmem:[#allocation112_spill] sm:$0xff] }
 0xae2   :  { %9048 = vpow2.f32 %v7939_v54 }
 0xae3   :  { %9050 = vtanh.f32 %v3599_v31 }
 0xaea   :  { %v9045_v9 = vpop.eup %9044 }
 0xaeb   :  { %v9047_v13 = vpop.eup %9046  ;;  %v3604_v23 = vadd.f32 1.0, %v9045_v9 }
 0xaec   :  { %v3610_v34 = vadd.f32 1.0, %v9047_v13  ;;  %v9049_v25 = vpop.eup %9048 }
 0xaed   :  { %9052 = vrcp.f32 %v3604_v23  ;;  %v9051_v40 = vpop.eup %9050  ;;  %v3617_v32 = vadd.f32 1.0, %v9049_v25 }
 0xaee   :  { %9054 = vrcp.f32 %v3610_v34 }
 0xaef   :  { %9056 = vrcp.f32 %v3617_v32 }
 0xaf7   :  { %v9053_v58 = vpop.eup %9052 }
 0xaf8   :  { %v9055_v56 = vpop.eup %9054  ;;  %v3621_v11 = vmul.f32 %v9053_v58, %v9051_v40 }
 0xaf9   :  { %v3620_v17 = vmul.f32 %v9055_v56, %v12164_v6  ;;  %v3659_v42 = vpop.f32.mrb[104].mxu1  ;;  %v3700_v22 = vpop.f32.mrb[108].mxu0  ;;  %v14131_v6 = vld [vmem:[#allocation114_spill] sm:$0xff]  ;;  %v14132_v56 = vld [vmem:[#allocation113_spill] sm:$0xff] }
 0xafa   :  { %v3707_v28 = vadd.f32 %v3659_v42, %v14129_v24  ;;  %v3661_v19 = vpop.f32.mrb[105].mxu1  ;;  %v3702_v14 = vpop.f32.mrb[109].mxu0 }
 0xafb   :  { %v12376_v37 = vadd.f32 %v3621_v11, %v3620_v17  ;;  %v3708_v53 = vadd.f32 %v3661_v19, %v14130_v8  ;;  %v3663_v54 = vpop.f32.mrb[106].mxu1  ;;  %v3704_v31 = vpop.f32.mrb[110].mxu0  ;;  %v3710_v25 = vadd.f32 %v3702_v14, %v14131_v6  ;;  %v3709_v11 = vadd.f32 %v3700_v22, %v14132_v56  ;;  %v12383_v14 = vld [vmem:[%s10151_s12] ss:$16 sps:$4 sm:$0xff]   ;;  %v12387_v22 = vld [vmem:[%s10151_s12 + $0x8] ss:$16 sps:$4 sm:$0xff]  }
 0xafc   :  { %v7940_v9 = vmul.f32 -1.442695, %v3707_v28  ;;  %v3664_v13 = vpop.f32.mrb[107].mxu1  ;;  %v3705_v23 = vpop.f32.mrb[111].mxu0  ;;  %v12391_v31 = vld [vmem:[%s10151_s12 + $0x24] ss:$16 sps:$4 sm:$0xff]  }
 0xafd   :  { %v7941_v34 = vmul.f32 -1.442695, %v3708_v53  ;;  %9058 = vtanh.f32 %v12376_v37  ;;  %v7942_v40 = vmul.f32 -1.442695, %v3710_v25  ;;  %v9057_v58 = vpop.eup %9056  ;;  %v12401_v13 = vld [vmem:[%s10151_s12 + $0x20] ss:$16 sps:$4 sm:$0xff]  }
 0xafe   :  { %9060 = vpow2.f32 %v7940_v9  ;;  %v12395_v9 = vld [vmem:[%s10151_s12 + $0x2c] ss:$16 sps:$4 sm:$0xff]   ;;  %v12405_v23 = vld [vmem:[%s10151_s12 + $0x28] ss:$16 sps:$4 sm:$0xff]  }
 0xaff   :  { %9062 = vpow2.f32 %v7941_v34 }
 0xb00   :  { %9064 = vpow2.f32 %v7942_v40 }
 0xb01   :  { %9066 = vtanh.f32 %v3709_v11 }
 0xb07   :  { %v9059_v17 = vpop.eup %9058 }
 0xb08   :  { %v9061_v42 = vpop.eup %9060  ;;  %v3624_v32 = vmul.f32 %v9059_v17, %v9057_v58  ;;  %v3731_v58 = vrot.slane %v12190_v49, 6  ;;  %v14144_v49 = vld [vmem:[#allocation75_spill] sm:$0xff] }
 0xb09   :  { %v9063_v28 = vpop.eup %9062  ;;  %v3714_v19 = vadd.f32 1.0, %v9061_v42 }
 0xb0a   :  { %v3720_v53 = vadd.f32 1.0, %v9063_v28  ;;  %v3739_v54 = vpack.c.bf16 %v3624_v32, %v3624_v32  ;;  %v9065_v34 = vpop.eup %9064  ;;  %v12422_v28 = vld [vmem:[%s10151_s12 + $0x68] ss:$16 sps:$4 sm:$0xff]  }
 0xb0b   :  { %9068 = vrcp.f32 %v3714_v19  ;;  %v9067_v25 = vpop.eup %9066  ;;  %v3727_v42 = vadd.f32 1.0, %v9065_v34  ;;  %v14150_v19 = vld [vmem:[#allocation81_spill] sm:$0xff] }
 0xb0c   :  { %9070 = vrcp.f32 %v3720_v53  ;;  %3773 = vmatmul.mubr.bf16.vlgmr.msra.gmra.mrb[108].mxu1 %v3739_v54  ;;  %3814 = vmatmul.mubr.bf16.vlgmr.msra.gmra.mrb[112].mxu0 %v3739_v54  ;;  %v12482_v53 = vld [vmem:[%s10141_s30 + $0xe8] ss:$16 sps:$4 sm:$0xff]   ;;  %v12486_v54 = vld [vmem:[%s10156_s20 + $0x4] ss:$16 sps:$4 sm:$0xff]   ;;  %v12490_v34 = vld [vmem:[%s10156_s20 + $0xc] ss:$16 sps:$4 sm:$0xff]  }
 0xb0d   :  { %3823 = vmatpush1.bf16.msra.mxu1 %v12383_v14  ;;  %3864 = vmatpush1.bf16.msra.mxu0 %v12387_v22  ;;  %9072 = vrcp.f32 %v3727_v42  ;;  %14151 = vst [vmem:[#allocation80_spill] sm:$0xff] %v12482_v53  ;;  %14152 = vst [vmem:[#allocation84_spill] sm:$0xff] %v12486_v54  ;;  %v12516_v42 = vld [vmem:[%s10156_s20 + $0x28] ss:$16 sps:$4 sm:$0xff]  }
 0xb0e   :  { %3824 = vmatprep.subr.bf16.mxu1 %v12391_v31  ;;  %3865 = vmatprep.subr.bf16.mxu0 %v12395_v9  ;;  %14153 = vst [vmem:[#allocation104_spill] sm:$0xff] %v12490_v34  ;;  %14159 = vst [vmem:[#allocation59_spill] sm:$0xff] %v12516_v42 }
 0xb0f   :  { %3854 = vmatprep.mubr.bf16.mxu1 %v13667_v18  ;;  %3895 = vmatprep.mubr.bf16.mxu0 %v13667_v18 }
 0xb11   :  { %3825 = vmatpush1.bf16.msra.mxu1 %v12401_v13  ;;  %3866 = vmatpush1.bf16.msra.mxu0 %v12405_v23 }
 0xb12   :  { %3826 = vmatprep.subr.bf16.mxu1 %v11996_v41  ;;  %3867 = vmatprep.subr.bf16.mxu0 %v12000_v47  ;;  %v12418_v47 = vld [vmem:[%s10151_s12 + $0x60] ss:$16 sps:$4 sm:$0xff]  }
 0xb15   :  { %v9069_v40 = vpop.eup %9068  ;;  %3827 = vmatpush1.bf16.msra.mxu1 %v12004_v61  ;;  %3868 = vmatpush1.bf16.msra.mxu0 %v12008_v52 }
 0xb16   :  { %v9071_v11 = vpop.eup %9070  ;;  %v3734_v17 = vmul.f32 %v9069_v40, %v9067_v25  ;;  %3828 = vmatprep.subr.bf16.mxu1 %v12012_v15  ;;  %3869 = vmatprep.subr.bf16.mxu0 %v12016_v46  ;;  %v12494_v25 = vld [vmem:[%s10156_s20] ss:$16 sps:$4 sm:$0xff]   ;;  %v12498_v40 = vld [vmem:[%s10156_s20 + $0x8] ss:$16 sps:$4 sm:$0xff]  }
 0xb17   :  { %v3733_v41 = vmul.f32 %v9071_v11, %v3731_v58  ;;  %v9073_v61 = vpop.eup %9072  ;;  %14154 = vst [vmem:[#allocation105_spill] sm:$0xff] %v12494_v25  ;;  %14155 = vst [vmem:[#allocation111_spill] sm:$0xff] %v12498_v40  ;;  %v12502_v58 = vld [vmem:[%s10156_s20 + $0x24] ss:$16 sps:$4 sm:$0xff]   ;;  %v12506_v11 = vld [vmem:[%s10156_s20 + $0x2c] ss:$16 sps:$4 sm:$0xff]  }
 0xb18   :  { %14156 = vst [vmem:[#allocation55_spill] sm:$0xff] %v12502_v58  ;;  %14157 = vst [vmem:[#allocation54_spill] sm:$0xff] %v12506_v11 }
 0xb19   :  { %v12415_v32 = vadd.f32 %v3734_v17, %v3733_v41  ;;  %3829 = vmatpush1.bf16.msra.mxu1 %v12418_v47  ;;  %3870 = vmatpush1.bf16.msra.mxu0 %v12422_v28  ;;  %v12512_v17 = vld [vmem:[%s10156_s20 + $0x20] ss:$16 sps:$4 sm:$0xff]   ;;  %v12520_v41 = vld [vmem:[%s10156_s20 + $0x44] ss:$16 sps:$4 sm:$0xff]  }
 0xb1a   :  { %3830 = vmatprep.subr.bf16.mxu1 %v12023_v16  ;;  %3871 = vmatprep.subr.bf16.mxu0 %v12027_v51  ;;  %v14133_v16 = vld [vmem:[#allocation60_spill] sm:$0xff]  ;;  %v14134_v51 = vld [vmem:[#allocation61_spill] sm:$0xff]  ;;  %14158 = vst [vmem:[#allocation57_spill] sm:$0xff] %v12512_v17  ;;  %14160 = vst [vmem:[#allocation58_spill] sm:$0xff] %v12520_v41 }
 0xb1b   :  { %9074 = vtanh.f32 %v12415_v32 }
 0xb1d   :  { %3831 = vmatpush1.bf16.msra.mxu1 %v12033_v26  ;;  %3872 = vmatpush1.bf16.msra.mxu0 %v12037_v2  ;;  %v14135_v26 = vld [vmem:[#allocation63_spill] sm:$0xff]  ;;  %v14136_v2 = vld [vmem:[#allocation62_spill] sm:$0xff] }
 0xb1e   :  { %3832 = vmatprep.subr.bf16.mxu1 %v12042_v50  ;;  %3873 = vmatprep.subr.bf16.mxu0 %v12046_v38  ;;  %v14137_v50 = vld [vmem:[#allocation64_spill] sm:$0xff]  ;;  %v14138_v38 = vld [vmem:[#allocation65_spill] sm:$0xff] }
 0xb21   :  { %3833 = vmatpush1.bf16.msra.mxu1 %v12050_v0  ;;  %3874 = vmatpush1.bf16.msra.mxu0 %v12054_v5  ;;  %v14139_v0 = vld [vmem:[#allocation67_spill] sm:$0xff] }
 0xb22   :  { %3834 = vmatprep.subr.bf16.mxu1 %v14077_v44  ;;  %3875 = vmatprep.subr.bf16.mxu0 %v14078_v1  ;;  %v14140_v5 = vld [vmem:[#allocation71_spill] sm:$0xff]  ;;  %v14145_v44 = vld [vmem:[#allocation78_spill] sm:$0xff]  ;;  %v14146_v1 = vld [vmem:[#allocation76_spill] sm:$0xff] }
 0xb25   :  { %v9075_v52 = vpop.eup %9074  ;;  %3835 = vmatpush1.bf16.msra.mxu1 %v14079_v33  ;;  %3876 = vmatpush1.bf16.msra.mxu0 %v14080_v48  ;;  %v12472_v33 = vld [vmem:[%s10141_s30 + $0xc8] ss:$16 sps:$4 sm:$0xff]   ;;  %v14148_v48 = vld [vmem:[#allocation79_spill] sm:$0xff] }
 0xb26   :  { %3836 = vmatprep.subr.bf16.mxu1 %v14081_v60  ;;  %3877 = vmatprep.subr.bf16.mxu0 %v12078_v43  ;;  %v3737_v15 = vmul.f32 %v9075_v52, %v9073_v61  ;;  %v14143_v43 = vld [vmem:[#allocation74_spill] sm:$0xff]  ;;  %14147 = vst [vmem:[#allocation77_spill] sm:$0xff] %v12472_v33  ;;  %v12528_v52 = vld [vmem:[%s10156_s20 + $0x40] ss:$16 sps:$4 sm:$0xff]  }
 0xb27   :  { %v12477_v60 = vld [vmem:[%s10141_s30 + $0xec] ss:$16 sps:$4 sm:$0xff]   ;;  %14162 = vst [vmem:[#allocation56_spill] sm:$0xff] %v12528_v52  ;;  %s241_s30 = sshll.u32 %s10070_s25, 4  ;;  %s242_s30 = int_to_ptr.vmem [resolvable:$true] %s241_s30 }
 0xb28   :  { %v3738_v46 = vpack.c.bf16 %v3737_v15, %v3737_v15  ;;  %14149 = vst [vmem:[#allocation83_spill] sm:$0xff] %v12477_v60  ;;  %v12524_v61 = vld [vmem:[%s10156_s20 + $0x4c] ss:$16 sps:$4 sm:$0xff]   ;;  %v12532_v15 = vld [vmem:[%s10156_s20 + $0x48] ss:$16 sps:$4 sm:$0xff]  }
 0xb29   :  { %3837 = vmatpush1.bf16.msra.mxu1 %v12082_v4  ;;  %3878 = vmatpush1.bf16.msra.mxu0 %v12086_v45  ;;  %v14141_v4 = vld [vmem:[#allocation72_spill] sm:$0xff]  ;;  %v14142_v45 = vld [vmem:[#allocation73_spill] sm:$0xff]  ;;  %14161 = vst [vmem:[#allocation109_spill] sm:$0xff] %v12524_v61  ;;  %14163 = vst [vmem:[#allocation85_spill] sm:$0xff] %v12532_v15 }
 0xb2a   :  { %3932 = vmatprep.subr.bf16.mxu1 %v12208_v59  ;;  %3973 = vmatprep.subr.bf16.mxu0 %v12212_v10 }
 0xb2c   :  { %3855 = vmatmul.mubr.bf16.vlgmr.msra.gmra.mrb[112].mxu1 %v3738_v46  ;;  %3896 = vmatmul.mubr.bf16.vlgmr.msra.gmra.mrb[116].mxu0 %v3738_v46 }
 0xb2d   :  { %3933 = vmatpush1.bf16.msra.mxu1 %v12220_v57  ;;  %3974 = vmatpush1.bf16.msra.mxu0 %v12224_v35 }
 0xb2e   :  { %3934 = vmatprep.subr.bf16.mxu1 %v12228_v30  ;;  %3975 = vmatprep.subr.bf16.mxu0 %v12232_v20 }
 0xb2f   :  { %3964 = vmatprep.mubr.bf16.mxu1 %v13667_v18  ;;  %4005 = vmatprep.mubr.bf16.mxu0 %v13667_v18 }
 0xb31   :  { %3935 = vmatpush1.bf16.msra.mxu1 %v12238_v27  ;;  %3976 = vmatpush1.bf16.msra.mxu0 %v12242_v29 }
 0xb32   :  { %3936 = vmatprep.subr.bf16.mxu1 %v12246_v12  ;;  %3977 = vmatprep.subr.bf16.mxu0 %v12250_v55 }
 0xb35   :  { %3937 = vmatpush1.bf16.msra.mxu1 %v12254_v36  ;;  %3978 = vmatpush1.bf16.msra.mxu0 %v12258_v62 }
 0xb36   :  { %3938 = vmatprep.subr.bf16.mxu1 %v12262_v7  ;;  %3979 = vmatprep.subr.bf16.mxu0 %v14133_v16 }
 0xb39   :  { %3939 = vmatpush1.bf16.msra.mxu1 %v14134_v51  ;;  %3980 = vmatpush1.bf16.msra.mxu0 %v14135_v26 }
 0xb3a   :  { %3940 = vmatprep.subr.bf16.mxu1 %v14136_v2  ;;  %3981 = vmatprep.subr.bf16.mxu0 %v14137_v50 }
 0xb3d   :  { %3941 = vmatpush1.bf16.msra.mxu1 %v14138_v38  ;;  %3982 = vmatpush1.bf16.msra.mxu0 %v14139_v0 }
 0xb3e   :  { %3942 = vmatprep.subr.bf16.mxu1 %v14140_v5  ;;  %3983 = vmatprep.subr.bf16.mxu0 %v14141_v4 }
 0xb41   :  { %3943 = vmatpush1.bf16.msra.mxu1 %v14142_v45  ;;  %3984 = vmatpush1.bf16.msra.mxu0 %v14143_v43 }
 0xb42   :  { %3944 = vmatprep.subr.bf16.mxu1 %v14144_v49  ;;  %3985 = vmatprep.subr.bf16.mxu0 %v14145_v44 }
 0xb45   :  { %3945 = vmatpush1.bf16.msra.mxu1 %v14146_v1  ;;  %3986 = vmatpush1.bf16.msra.mxu0 %v12472_v33 }
 0xb46   :  { %3946 = vmatprep.subr.bf16.mxu1 %v14148_v48  ;;  %3987 = vmatprep.subr.bf16.mxu0 %v12477_v60 }
 0xb49   :  { %3947 = vmatpush1.bf16.msra.mxu1 %v14150_v19  ;;  %3988 = vmatpush1.bf16.msra.mxu0 %v12482_v53 }
 0xb4a   :  { %4059 = vmatprep.subr.bf16.mxu1 %v12486_v54  ;;  %4100 = vmatprep.subr.bf16.mxu0 %v12490_v34 }
 0xb4c   :  { %3965 = vmatmul.mubr.bf16.vlgmr.msra.gmra.mrb[116].mxu1 %v3738_v46  ;;  %4006 = vmatmul.mubr.bf16.vlgmr.msra.gmra.mrb[120].mxu0 %v3738_v46  ;;  %v12536_v46 = vld [vmem:[%s10156_s20 + $0x64] ss:$16 sps:$4 sm:$0xff]  }
 0xb4d   :  { %4060 = vmatpush1.bf16.msra.mxu1 %v12494_v25  ;;  %4101 = vmatpush1.bf16.msra.mxu0 %v12498_v40  ;;  %14164 = vst [vmem:[#allocation86_spill] sm:$0xff] %v12536_v46 }
 0xb4e   :  { %4061 = vmatprep.subr.bf16.mxu1 %v12502_v58  ;;  %4102 = vmatprep.subr.bf16.mxu0 %v12506_v11 }
 0xb4f   :  { %4091 = vmatprep.mubr.bf16.mxu1 %v13667_v18  ;;  %4132 = vmatprep.mubr.bf16.mxu0 %v13667_v18 }
 0xb51   :  { %4062 = vmatpush1.bf16.msra.mxu1 %v12512_v17  ;;  %4103 = vmatpush1.bf16.msra.mxu0 %v12516_v42  ;;  %v12600_v42 = vld [vmem:[%s10156_s20 + $0xe4] ss:$16 sps:$4 sm:$0xff]  }
 0xb52   :  { %4063 = vmatprep.subr.bf16.mxu1 %v12520_v41  ;;  %4104 = vmatprep.subr.bf16.mxu0 %v12524_v61  ;;  %v12540_v41 = vld [vmem:[%s10156_s20 + $0x6c] ss:$16 sps:$4 sm:$0xff]   ;;  %v12544_v61 = vld [vmem:[%s10156_s20 + $0x60] ss:$16 sps:$4 sm:$0xff]   ;;  %14180 = vst [vmem:[#allocation94_spill] sm:$0xff] %v12600_v42 }
 0xb53   :  { %14165 = vst [vmem:[#allocation87_spill] sm:$0xff] %v12540_v41  ;;  %14166 = vst [vmem:[#allocation88_spill] sm:$0xff] %v12544_v61 }
 0xb55   :  { %4064 = vmatpush1.bf16.msra.mxu1 %v12528_v52  ;;  %4105 = vmatpush1.bf16.msra.mxu0 %v12532_v15  ;;  %v12548_v52 = vld [vmem:[%s10156_s20 + $0x68] ss:$16 sps:$4 sm:$0xff]   ;;  %v12552_v15 = vld [vmem:[%s10156_s20 + $0x84] ss:$16 sps:$4 sm:$0xff]  }
 0xb56   :  { %4065 = vmatprep.subr.bf16.mxu1 %v12536_v46  ;;  %4106 = vmatprep.subr.bf16.mxu0 %v12540_v41  ;;  %14167 = vst [vmem:[#allocation93_spill] sm:$0xff] %v12548_v52  ;;  %14168 = vst [vmem:[#allocation95_spill] sm:$0xff] %v12552_v15  ;;  %v12556_v46 = vld [vmem:[%s10156_s20 + $0x8c] ss:$16 sps:$4 sm:$0xff]   ;;  %v12560_v41 = vld [vmem:[%s10156_s20 + $0x80] ss:$16 sps:$4 sm:$0xff]  }
 0xb57   :  { %14169 = vst [vmem:[#allocation99_spill] sm:$0xff] %v12556_v46  ;;  %14170 = vst [vmem:[#allocation100_spill] sm:$0xff] %v12560_v41 }
 0xb59   :  { %4066 = vmatpush1.bf16.msra.mxu1 %v12544_v61  ;;  %4107 = vmatpush1.bf16.msra.mxu0 %v12548_v52  ;;  %v12564_v61 = vld [vmem:[%s10156_s20 + $0x88] ss:$16 sps:$4 sm:$0xff]   ;;  %v12568_v52 = vld [vmem:[%s10156_s20 + $0xa4] ss:$16 sps:$4 sm:$0xff]  }
 0xb5a   :  { %4067 = vmatprep.subr.bf16.mxu1 %v12552_v15  ;;  %4108 = vmatprep.subr.bf16.mxu0 %v12556_v46  ;;  %14171 = vst [vmem:[#allocation66_spill] sm:$0xff] %v12564_v61  ;;  %14172 = vst [vmem:[#allocation68_spill] sm:$0xff] %v12568_v52  ;;  %v12572_v15 = vld [vmem:[%s10156_s20 + $0xac] ss:$16 sps:$4 sm:$0xff]   ;;  %v12576_v46 = vld [vmem:[%s10156_s20 + $0xa0] ss:$16 sps:$4 sm:$0xff]  }
 0xb5b   :  { %14173 = vst [vmem:[#allocation69_spill] sm:$0xff] %v12572_v15  ;;  %14174 = vst [vmem:[#allocation70_spill] sm:$0xff] %v12576_v46 }
 0xb5d   :  { %4068 = vmatpush1.bf16.msra.mxu1 %v12560_v41  ;;  %4109 = vmatpush1.bf16.msra.mxu0 %v12564_v61  ;;  %v12580_v41 = vld [vmem:[%s10156_s20 + $0xa8] ss:$16 sps:$4 sm:$0xff]   ;;  %v12584_v61 = vld [vmem:[%s10156_s20 + $0xc4] ss:$16 sps:$4 sm:$0xff]  }
 0xb5e   :  { %4069 = vmatprep.subr.bf16.mxu1 %v12568_v52  ;;  %4110 = vmatprep.subr.bf16.mxu0 %v12572_v15  ;;  %14175 = vst [vmem:[#allocation82_spill] sm:$0xff] %v12580_v41  ;;  %14176 = vst [vmem:[#allocation89_spill] sm:$0xff] %v12584_v61  ;;  %v12588_v52 = vld [vmem:[%s10156_s20 + $0xcc] ss:$16 sps:$4 sm:$0xff]   ;;  %v12592_v15 = vld [vmem:[%s10156_s20 + $0xc0] ss:$16 sps:$4 sm:$0xff]  }
 0xb5f   :  { %14177 = vst [vmem:[#allocation90_spill] sm:$0xff] %v12588_v52  ;;  %14178 = vst [vmem:[#allocation91_spill] sm:$0xff] %v12592_v15 }
 0xb61   :  { %4070 = vmatpush1.bf16.msra.mxu1 %v12576_v46  ;;  %4111 = vmatpush1.bf16.msra.mxu0 %v12580_v41  ;;  %v12596_v46 = vld [vmem:[%s10156_s20 + $0xc8] ss:$16 sps:$4 sm:$0xff]   ;;  %v12604_v41 = vld [vmem:[%s10156_s20 + $0xec] ss:$16 sps:$4 sm:$0xff]  }
 0xb62   :  { %4071 = vmatprep.subr.bf16.mxu1 %v12584_v61  ;;  %4112 = vmatprep.subr.bf16.mxu0 %v12588_v52  ;;  %14179 = vst [vmem:[#allocation92_spill] sm:$0xff] %v12596_v46  ;;  %14181 = vst [vmem:[#allocation96_spill] sm:$0xff] %v12604_v41  ;;  %v12608_v61 = vld [vmem:[%s10156_s20 + $0xe0] ss:$16 sps:$4 sm:$0xff]   ;;  %v12612_v52 = vld [vmem:[%s10156_s20 + $0xe8] ss:$16 sps:$4 sm:$0xff]  }
 0xb63   :  { %14182 = vst [vmem:[#allocation97_spill] sm:$0xff] %v12608_v61  ;;  %14183 = vst [vmem:[#allocation98_spill] sm:$0xff] %v12612_v52 }
 0xb65   :  { %4072 = vmatpush1.bf16.msra.mxu1 %v12592_v15  ;;  %4113 = vmatpush1.bf16.msra.mxu0 %v12596_v46  ;;  %v12616_v15 = vld [vmem:[%s10151_s12 + $0x4] ss:$16 sps:$4 sm:$0xff]   ;;  %v12620_v46 = vld [vmem:[%s10151_s12 + $0xc] ss:$16 sps:$4 sm:$0xff]  }
 0xb66   :  { %4073 = vmatprep.subr.bf16.mxu1 %v12600_v42  ;;  %4114 = vmatprep.subr.bf16.mxu0 %v12604_v41  ;;  %14184 = vst [vmem:[#allocation46_spill] sm:$0xff] %v12616_v15  ;;  %14185 = vst [vmem:[#allocation47_spill] sm:$0xff] %v12620_v46 }
 0xb69   :  { %4074 = vmatpush1.bf16.msra.mxu1 %v12608_v61  ;;  %4115 = vmatpush1.bf16.msra.mxu0 %v12612_v52 }
 0xb6a   :  { %4144 = vmatprep.subr.bf16.mxu1 %v12616_v15  ;;  %4185 = vmatprep.subr.bf16.mxu0 %v12620_v46 }
 0xbdf   :  { %v3774_v42 = vpop.f32.mrb[108].mxu1  ;;  %v3815_v17 = vpop.f32.mrb[112].mxu0 }
 0xbe0   :  { %v3776_v11 = vpop.f32.mrb[109].mxu1  ;;  %v3817_v41 = vpop.f32.mrb[113].mxu0 }
 0xbe1   :  { %v3778_v58 = vpop.f32.mrb[110].mxu1  ;;  %v3819_v40 = vpop.f32.mrb[114].mxu0 }
 0xbe2   :  { %v3779_v25 = vpop.f32.mrb[111].mxu1  ;;  %v3820_v61 = vpop.f32.mrb[115].mxu0 }
 0xbff   :  { %v3856_v34 = vpop.f32.mrb[112].mxu1  ;;  %v3897_v54 = vpop.f32.mrb[116].mxu0 }
 0xc00   :  { %v3857_v53 = vadd.f32 %v3856_v34, %v3774_v42  ;;  %v3898_v52 = vadd.f32 %v3897_v54, %v3815_v17  ;;  %v3858_v19 = vpop.f32.mrb[113].mxu1  ;;  %v3899_v60 = vpop.f32.mrb[117].mxu0 }
 0xc01   :  { %v3859_v48 = vadd.f32 %v3858_v19, %v3776_v11  ;;  %v3900_v15 = vadd.f32 %v3899_v60, %v3817_v41  ;;  %v3860_v33 = vpop.f32.mrb[114].mxu1  ;;  %v3901_v1 = vpop.f32.mrb[118].mxu0 }
 0xc02   :  { %v3904_v46 = vadd.f32 %v3857_v53, %v10852_v21  ;;  %v3861_v44 = vpop.f32.mrb[115].mxu1  ;;  %v3902_v49 = vpop.f32.mrb[119].mxu0  ;;  %v3906_v54 = vadd.f32 %v3898_v52, %v10864_v39 }
 0xc03   :  { %v3905_v43 = vadd.f32 %v3859_v48, %v10855_v63  ;;  %v3907_v25 = vadd.f32 %v3900_v15, %v10860_v3 }
 0xc04   :  { %v7943_v58 = vmul.f32 -1.442695, %v3904_v46 }
 0xc05   :  { %v7944_v40 = vmul.f32 -1.442695, %v3905_v43  ;;  %v7945_v34 = vmul.f32 -1.442695, %v3907_v25 }
 0xc06   :  { %9076 = vpow2.f32 %v7943_v58 }
 0xc07   :  { %9078 = vpow2.f32 %v7944_v40 }
 0xc08   :  { %9080 = vpow2.f32 %v7945_v34 }
 0xc09   :  { %9082 = vtanh.f32 %v3906_v54 }
 0xc10   :  { %v9077_v17 = vpop.eup %9076 }
 0xc11   :  { %v9079_v19 = vpop.eup %9078  ;;  %v3911_v60 = vadd.f32 1.0, %v9077_v17 }
 0xc12   :  { %v3917_v1 = vadd.f32 1.0, %v9079_v19  ;;  %v9081_v49 = vpop.eup %9080 }
 0xc13   :  { %9084 = vrcp.f32 %v3911_v60  ;;  %v9083_v44 = vpop.eup %9082  ;;  %v3924_v53 = vadd.f32 1.0, %v9081_v49 }
 0xc14   :  { %9086 = vrcp.f32 %v3917_v1 }
 0xc15   :  { %9088 = vrcp.f32 %v3924_v53 }
 0xc1d   :  { %v9085_v33 = vpop.eup %9084 }
 0xc1e   :  { %v9087_v48 = vpop.eup %9086  ;;  %v3928_v43 = vmul.f32 %v9085_v33, %v9083_v44 }
 0xc1f   :  { %v3927_v11 = vmul.f32 %v9087_v48, %v12376_v37  ;;  %v3966_v42 = vpop.f32.mrb[116].mxu1  ;;  %v4007_v41 = vpop.f32.mrb[120].mxu0 }
 0xc20   :  { %v4018_v61 = vrot.slane %v3966_v42, 6  ;;  %v3968_v52 = vpop.f32.mrb[117].mxu1  ;;  %v4009_v15 = vpop.f32.mrb[121].mxu0  ;;  %v4020_v44 = vrot.slane %v4007_v41, 6  ;;  %v12644_v41 = vld [vmem:[%s10151_s12 + $0x44] ss:$16 sps:$4 sm:$0xff]  }
 0xc21   :  { %v12628_v46 = vadd.f32 %v3928_v43, %v3927_v11  ;;  %v4019_v58 = vrot.slane %v3968_v52, 6  ;;  %v3970_v40 = vpop.f32.mrb[118].mxu1  ;;  %v4011_v25 = vpop.f32.mrb[122].mxu0  ;;  %v4021_v1 = vrot.slane %v4009_v15, 6 }
 0xc22   :  { %v4026_v34 = vadd.f32 %v4018_v61, %v14129_v24  ;;  %v3971_v54 = vpop.f32.mrb[119].mxu1  ;;  %v4012_v17 = vpop.f32.mrb[123].mxu0  ;;  %v4028_v53 = vadd.f32 %v4020_v44, %v14132_v56  ;;  %v12648_v40 = vld [vmem:[%s10151_s12 + $0x4c] ss:$16 sps:$4 sm:$0xff]  }
 0xc23   :  { %v4027_v19 = vadd.f32 %v4019_v58, %v14130_v8  ;;  %9090 = vtanh.f32 %v12628_v46  ;;  %v4029_v49 = vadd.f32 %v4021_v1, %v14131_v6  ;;  %v9089_v33 = vpop.eup %9088  ;;  %v12656_v54 = vld [vmem:[%s10151_s12 + $0x48] ss:$16 sps:$4 sm:$0xff]   ;;  %v4050_v1 = vrot.slane %v12415_v32, 6 }
 0xc24   :  { %v7946_v37 = vmul.f32 -1.442695, %v4026_v34  ;;  %v12652_v34 = vld [vmem:[%s10151_s12 + $0x40] ss:$16 sps:$4 sm:$0xff]  }
 0xc25   :  { %v7947_v60 = vmul.f32 -1.442695, %v4027_v19  ;;  %v7948_v43 = vmul.f32 -1.442695, %v4029_v49  ;;  %v12660_v19 = vld [vmem:[%s10151_s12 + $0x64] ss:$16 sps:$4 sm:$0xff]  }
 0xc26   :  { %9092 = vpow2.f32 %v7946_v37  ;;  %v12664_v37 = vld [vmem:[%s10151_s12 + $0x6c] ss:$16 sps:$4 sm:$0xff]  }
 0xc27   :  { %9094 = vpow2.f32 %v7947_v60 }
 0xc28   :  { %9096 = vpow2.f32 %v7948_v43  ;;  %v12671_v43 = vld [vmem:[%s10151_s12 + $0x84] ss:$16 sps:$4 sm:$0xff]  }
 0xc29   :  { %9098 = vtanh.f32 %v4028_v53  ;;  %v12675_v53 = vld [vmem:[%s10151_s12 + $0x8c] ss:$16 sps:$4 sm:$0xff]  }
 0xc2d   :  { %v9091_v48 = vpop.eup %9090 }
 0xc2e   :  { %v3931_v11 = vmul.f32 %v9091_v48, %v9089_v33 }
 0xc30   :  { %v9093_v42 = vpop.eup %9092  ;;  %v4058_v61 = vpack.c.bf16 %v3931_v11, %v3931_v11  ;;  %v12681_v11 = vld [vmem:[%s10151_s12 + $0x80] ss:$16 sps:$4 sm:$0xff]  }
 0xc31   :  { %v9095_v52 = vpop.eup %9094  ;;  %v4033_v58 = vadd.f32 1.0, %v9093_v42  ;;  %v12685_v42 = vld [vmem:[%s10151_s12 + $0x88] ss:$16 sps:$4 sm:$0xff]  }
 0xc32   :  { %v4039_v15 = vadd.f32 1.0, %v9095_v52  ;;  %4092 = vmatmul.mubr.bf16.vlgmr.msra.gmra.mrb[120].mxu1 %v4058_v61  ;;  %4133 = vmatmul.mubr.bf16.vlgmr.msra.gmra.mrb[124].mxu0 %v4058_v61  ;;  %v9097_v25 = vpop.eup %9096  ;;  %v12690_v61 = vld [vmem:[%s10151_s12 + $0xa4] ss:$16 sps:$4 sm:$0xff]   ;;  %v12694_v52 = vld [vmem:[%s10151_s12 + $0xac] ss:$16 sps:$4 sm:$0xff]  }
 0xc33   :  { %9100 = vrcp.f32 %v4033_v58  ;;  %4145 = vmatpush1.bf16.msra.mxu1 %v12383_v14  ;;  %4186 = vmatpush1.bf16.msra.mxu0 %v12387_v22  ;;  %v9099_v17 = vpop.eup %9098  ;;  %v4046_v33 = vadd.f32 1.0, %v9097_v25  ;;  %v12698_v58 = vld [vmem:[%s10151_s12 + $0xa0] ss:$16 sps:$4 sm:$0xff]   ;;  %v12706_v25 = vld [vmem:[%s10151_s12 + $0xc4] ss:$16 sps:$4 sm:$0xff]  }
 0xc34   :  { %9102 = vrcp.f32 %v4039_v15  ;;  %4146 = vmatprep.subr.bf16.mxu1 %v12391_v31  ;;  %4187 = vmatprep.subr.bf16.mxu0 %v12395_v9  ;;  %v12702_v15 = vld [vmem:[%s10151_s12 + $0xa8] ss:$16 sps:$4 sm:$0xff]   ;;  %14186 = vst [vmem:[#allocation49_spill] sm:$0xff] %v12706_v25 }
 0xc35   :  { %4176 = vmatprep.mubr.bf16.mxu1 %v13667_v18  ;;  %4217 = vmatprep.mubr.bf16.mxu0 %v13667_v18  ;;  %9104 = vrcp.f32 %v4046_v33  ;;  %v12726_v33 = vld [vmem:[%s10151_s12 + $0xec] ss:$16 sps:$4 sm:$0xff]  }
 0xc37   :  { %4147 = vmatpush1.bf16.msra.mxu1 %v12401_v13  ;;  %4188 = vmatpush1.bf16.msra.mxu0 %v12405_v23 }
 0xc38   :  { %4148 = vmatprep.subr.bf16.mxu1 %v12644_v41  ;;  %4189 = vmatprep.subr.bf16.mxu0 %v12648_v40 }
 0xc3b   :  { %4149 = vmatpush1.bf16.msra.mxu1 %v12652_v34  ;;  %4190 = vmatpush1.bf16.msra.mxu0 %v12656_v54 }
 0xc3c   :  { %4150 = vmatprep.subr.bf16.mxu1 %v12660_v19  ;;  %4191 = vmatprep.subr.bf16.mxu0 %v12664_v37 }
 0xc3d   :  { %v9101_v60 = vpop.eup %9100 }
 0xc3e   :  { %v9103_v49 = vpop.eup %9102  ;;  %v4053_v44 = vmul.f32 %v9101_v60, %v9099_v17  ;;  %v12710_v17 = vld [vmem:[%s10151_s12 + $0xcc] ss:$16 sps:$4 sm:$0xff]   ;;  %v12714_v60 = vld [vmem:[%s10151_s12 + $0xc0] ss:$16 sps:$4 sm:$0xff]  }
 0xc3f   :  { %v4052_v48 = vmul.f32 %v9103_v49, %v4050_v1  ;;  %4151 = vmatpush1.bf16.msra.mxu1 %v12418_v47  ;;  %4192 = vmatpush1.bf16.msra.mxu0 %v12422_v28  ;;  %14187 = vst [vmem:[#allocation48_spill] sm:$0xff] %v12710_v17  ;;  %14188 = vst [vmem:[#allocation50_spill] sm:$0xff] %v12714_v60  ;;  %v12718_v1 = vld [vmem:[%s10151_s12 + $0xc8] ss:$16 sps:$4 sm:$0xff]   ;;  %v9105_v49 = vpop.eup %9104 }
 0xc40   :  { %4152 = vmatprep.subr.bf16.mxu1 %v12671_v43  ;;  %4193 = vmatprep.subr.bf16.mxu0 %v12675_v53  ;;  %14189 = vst [vmem:[#allocation51_spill] sm:$0xff] %v12718_v1 }
 0xc41   :  { %v12678_v32 = vadd.f32 %v4053_v44, %v4052_v48  ;;  %v12722_v44 = vld [vmem:[%s10151_s12 + $0xe4] ss:$16 sps:$4 sm:$0xff]  }
 0xc42   :  { %14190 = vst [vmem:[#allocation53_spill] sm:$0xff] %v12722_v44 }
 0xc43   :  { %4153 = vmatpush1.bf16.msra.mxu1 %v12681_v11  ;;  %4194 = vmatpush1.bf16.msra.mxu0 %v12685_v42  ;;  %9106 = vtanh.f32 %v12678_v32 }
 0xc44   :  { %4154 = vmatprep.subr.bf16.mxu1 %v12690_v61  ;;  %4195 = vmatprep.subr.bf16.mxu0 %v12694_v52 }
 0xc47   :  { %4155 = vmatpush1.bf16.msra.mxu1 %v12698_v58  ;;  %4196 = vmatpush1.bf16.msra.mxu0 %v12702_v15 }
 0xc48   :  { %4156 = vmatprep.subr.bf16.mxu1 %v12706_v25  ;;  %4197 = vmatprep.subr.bf16.mxu0 %v12710_v17  ;;  %v12730_v17 = vld [vmem:[%s10151_s12 + $0xe0] ss:$16 sps:$4 sm:$0xff]  }
 0xc4b   :  { %4157 = vmatpush1.bf16.msra.mxu1 %v12714_v60  ;;  %4198 = vmatpush1.bf16.msra.mxu0 %v12718_v1  ;;  %v12734_v60 = vld [vmem:[%s10151_s12 + $0xe8] ss:$16 sps:$4 sm:$0xff]   ;;  %s9964_s12 = scalar_lea.hbm %s14238_s17, 32768 }
 0xc4c   :  { %4158 = vmatprep.subr.bf16.mxu1 %v12722_v44  ;;  %4199 = vmatprep.subr.bf16.mxu0 %v12726_v33  ;;  %p9965_p8 = scmp.ne.s32.totalorder %s14238_s17, %s9964_s12  ;;  %p9968_p9 = scmp.lt.u32.totalorder %s9964_s12, %s14238_s17 }
 0xc4d   :  { %v9107_v48 = vpop.eup %9106 }
 0xc4e   :  { %v4056_v25 = vmul.f32 %v9107_v48, %v9105_v49  ;;  %v14216_v49 = vld [vmem:[#allocation95_spill] sm:$0xff]  ;;  %v14218_v48 = vld [vmem:[#allocation100_spill] sm:$0xff]  ;;  %p9970_p10 = pnand %p9968_p9, %p9965_p8 }
 0xc4f   :  { %4159 = vmatpush1.bf16.msra.mxu1 %v12730_v17  ;;  %4200 = vmatpush1.bf16.msra.mxu0 %v12734_v60 }
 0xc50   :  { %4254 = vmatprep.subr.bf16.mxu1 %v12208_v59  ;;  %4295 = vmatprep.subr.bf16.mxu0 %v12212_v10  ;;  %v4057_v1 = vpack.c.bf16 %v4056_v25, %v4056_v25  ;;  %v14191_v59 = vld [vmem:[#allocation74_spill] sm:$0xff]  ;;  %v14192_v10 = vld [vmem:[#allocation75_spill] sm:$0xff]  ;;  %v14214_v25 = vld [vmem:[#allocation88_spill] sm:$0xff] }
 0xc52   :  { %v4142_v44 = vrot.slane %v4057_v1, 1  ;;  %v14215_v1 = vld [vmem:[#allocation93_spill] sm:$0xff] }
 0xc54   :  { %4177 = vmatmul.mubr.bf16.vlgmr.msra.gmra.mrb[124].mxu1 %v4142_v44  ;;  %4218 = vmatmul.mubr.bf16.vlgmr.msra.gmra.mrb[128].mxu0 %v4142_v44 }
 0xc55   :  { %4255 = vmatpush1.bf16.msra.mxu1 %v12220_v57  ;;  %4296 = vmatpush1.bf16.msra.mxu0 %v12224_v35  ;;  %v14193_v57 = vld [vmem:[#allocation78_spill] sm:$0xff]  ;;  %v14194_v35 = vld [vmem:[#allocation76_spill] sm:$0xff] }
 0xc56   :  { %4256 = vmatprep.subr.bf16.mxu1 %v12228_v30  ;;  %4297 = vmatprep.subr.bf16.mxu0 %v12232_v20  ;;  %v14195_v30 = vld [vmem:[#allocation77_spill] sm:$0xff]  ;;  %v14196_v20 = vld [vmem:[#allocation79_spill] sm:$0xff] }
 0xc57   :  { %4286 = vmatprep.mubr.bf16.mxu1 %v13667_v18  ;;  %4327 = vmatprep.mubr.bf16.mxu0 %v13667_v18 }
 0xc59   :  { %4257 = vmatpush1.bf16.msra.mxu1 %v12238_v27  ;;  %4298 = vmatpush1.bf16.msra.mxu0 %v12242_v29  ;;  %v14197_v27 = vld [vmem:[#allocation83_spill] sm:$0xff]  ;;  %v14198_v29 = vld [vmem:[#allocation81_spill] sm:$0xff] }
 0xc5a   :  { %4258 = vmatprep.subr.bf16.mxu1 %v12246_v12  ;;  %4299 = vmatprep.subr.bf16.mxu0 %v12250_v55  ;;  %v14199_v12 = vld [vmem:[#allocation80_spill] sm:$0xff] }
 0xc5b   :  { %v14200_v55 = vld [vmem:[#allocation84_spill] sm:$0xff] }
 0xc5d   :  { %4259 = vmatpush1.bf16.msra.mxu1 %v12254_v36  ;;  %4300 = vmatpush1.bf16.msra.mxu0 %v12258_v62  ;;  %v14201_v36 = vld [vmem:[#allocation104_spill] sm:$0xff]  ;;  %v14202_v62 = vld [vmem:[#allocation105_spill] sm:$0xff] }
 0xc5e   :  { %4260 = vmatprep.subr.bf16.mxu1 %v12262_v7  ;;  %4301 = vmatprep.subr.bf16.mxu0 %v14133_v16  ;;  %v14203_v7 = vld [vmem:[#allocation111_spill] sm:$0xff] }
 0xc5f   :  { %v14204_v16 = vld [vmem:[#allocation55_spill] sm:$0xff] }
 0xc61   :  { %4261 = vmatpush1.bf16.msra.mxu1 %v14134_v51  ;;  %4302 = vmatpush1.bf16.msra.mxu0 %v14135_v26  ;;  %v14205_v51 = vld [vmem:[#allocation54_spill] sm:$0xff]  ;;  %v14206_v26 = vld [vmem:[#allocation57_spill] sm:$0xff] }
 0xc62   :  { %4262 = vmatprep.subr.bf16.mxu1 %v14136_v2  ;;  %4303 = vmatprep.subr.bf16.mxu0 %v14137_v50  ;;  %v14207_v2 = vld [vmem:[#allocation59_spill] sm:$0xff]  ;;  %v14208_v50 = vld [vmem:[#allocation58_spill] sm:$0xff] }
 0xc65   :  { %4263 = vmatpush1.bf16.msra.mxu1 %v14138_v38  ;;  %4304 = vmatpush1.bf16.msra.mxu0 %v14139_v0  ;;  %v14209_v38 = vld [vmem:[#allocation109_spill] sm:$0xff]  ;;  %v14210_v0 = vld [vmem:[#allocation56_spill] sm:$0xff] }
 0xc66   :  { %4264 = vmatprep.subr.bf16.mxu1 %v14140_v5  ;;  %4305 = vmatprep.subr.bf16.mxu0 %v14141_v4  ;;  %v14211_v5 = vld [vmem:[#allocation85_spill] sm:$0xff]  ;;  %v14212_v4 = vld [vmem:[#allocation86_spill] sm:$0xff] }
 0xc69   :  { %4265 = vmatpush1.bf16.msra.mxu1 %v14142_v45  ;;  %4306 = vmatpush1.bf16.msra.mxu0 %v14191_v59  ;;  %v14213_v45 = vld [vmem:[#allocation87_spill] sm:$0xff]  ;;  %v14219_v59 = vld [vmem:[#allocation66_spill] sm:$0xff] }
 0xc6a   :  { %4266 = vmatprep.subr.bf16.mxu1 %v14192_v10  ;;  %4307 = vmatprep.subr.bf16.mxu0 %v14193_v57  ;;  %v14220_v10 = vld [vmem:[#allocation68_spill] sm:$0xff]  ;;  %v14221_v57 = vld [vmem:[#allocation69_spill] sm:$0xff] }
 0xc6d   :  { %4267 = vmatpush1.bf16.msra.mxu1 %v14194_v35  ;;  %4308 = vmatpush1.bf16.msra.mxu0 %v14195_v30  ;;  %v14222_v35 = vld [vmem:[#allocation70_spill] sm:$0xff] }
 0xc6e   :  { %4268 = vmatprep.subr.bf16.mxu1 %v14196_v20  ;;  %4309 = vmatprep.subr.bf16.mxu0 %v14197_v27  ;;  %v14223_v30 = vld [vmem:[#allocation82_spill] sm:$0xff]  ;;  %v14224_v20 = vld [vmem:[#allocation89_spill] sm:$0xff] }
 0xc6f   :  { %v14225_v27 = vld [vmem:[#allocation90_spill] sm:$0xff] }
 0xc71   :  { %4269 = vmatpush1.bf16.msra.mxu1 %v14198_v29  ;;  %4310 = vmatpush1.bf16.msra.mxu0 %v14199_v12  ;;  %v14226_v29 = vld [vmem:[#allocation91_spill] sm:$0xff]  ;;  %v14227_v12 = vld [vmem:[#allocation92_spill] sm:$0xff] }
 0xc72   :  { %4381 = vmatprep.subr.bf16.mxu1 %v14200_v55  ;;  %4422 = vmatprep.subr.bf16.mxu0 %v14201_v36  ;;  %v14228_v55 = vld [vmem:[#allocation94_spill] sm:$0xff]  ;;  %v14229_v36 = vld [vmem:[#allocation96_spill] sm:$0xff] }
 0xc74   :  { %4287 = vmatmul.mubr.bf16.vlgmr.msra.gmra.mrb[128].mxu1 %v4142_v44  ;;  %4328 = vmatmul.mubr.bf16.vlgmr.msra.gmra.mrb[132].mxu0 %v4142_v44  ;;  %v14217_v44 = vld [vmem:[#allocation99_spill] sm:$0xff] }
 0xc75   :  { %4382 = vmatpush1.bf16.msra.mxu1 %v14202_v62  ;;  %4423 = vmatpush1.bf16.msra.mxu0 %v14203_v7  ;;  %v14230_v62 = vld [vmem:[#allocation97_spill] sm:$0xff]  ;;  %v14231_v7 = vld [vmem:[#allocation98_spill] sm:$0xff] }
 0xc76   :  { %4383 = vmatprep.subr.bf16.mxu1 %v14204_v16  ;;  %4424 = vmatprep.subr.bf16.mxu0 %v14205_v51  ;;  %v14232_v16 = vld [vmem:[#allocation46_spill] sm:$0xff]  ;;  %v14233_v51 = vld [vmem:[#allocation47_spill] sm:$0xff] }
 0xc77   :  { %4413 = vmatprep.mubr.bf16.mxu1 %v13667_v18  ;;  %4454 = vmatprep.mubr.bf16.mxu0 %v13667_v18 }
 0xc79   :  { %4384 = vmatpush1.bf16.msra.mxu1 %v14206_v26  ;;  %4425 = vmatpush1.bf16.msra.mxu0 %v14207_v2 }
 0xc7a   :  { %4385 = vmatprep.subr.bf16.mxu1 %v14208_v50  ;;  %4426 = vmatprep.subr.bf16.mxu0 %v14209_v38 }
 0xc7d   :  { %4386 = vmatpush1.bf16.msra.mxu1 %v14210_v0  ;;  %4427 = vmatpush1.bf16.msra.mxu0 %v14211_v5 }
 0xc7e   :  { %4387 = vmatprep.subr.bf16.mxu1 %v14212_v4  ;;  %4428 = vmatprep.subr.bf16.mxu0 %v14213_v45 }
 0xc81   :  { %4388 = vmatpush1.bf16.msra.mxu1 %v14214_v25  ;;  %4429 = vmatpush1.bf16.msra.mxu0 %v14215_v1 }
 0xc82   :  { %4389 = vmatprep.subr.bf16.mxu1 %v14216_v49  ;;  %4430 = vmatprep.subr.bf16.mxu0 %v14217_v44 }
 0xc85   :  { %4390 = vmatpush1.bf16.msra.mxu1 %v14218_v48  ;;  %4431 = vmatpush1.bf16.msra.mxu0 %v14219_v59 }
 0xc86   :  { %4391 = vmatprep.subr.bf16.mxu1 %v14220_v10  ;;  %4432 = vmatprep.subr.bf16.mxu0 %v14221_v57 }
 0xc89   :  { %4392 = vmatpush1.bf16.msra.mxu1 %v14222_v35  ;;  %4433 = vmatpush1.bf16.msra.mxu0 %v14223_v30 }
 0xc8a   :  { %4393 = vmatprep.subr.bf16.mxu1 %v14224_v20  ;;  %4434 = vmatprep.subr.bf16.mxu0 %v14225_v27 }
 0xc8d   :  { %4394 = vmatpush1.bf16.msra.mxu1 %v14226_v29  ;;  %4435 = vmatpush1.bf16.msra.mxu0 %v14227_v12 }
 0xc8e   :  { %4395 = vmatprep.subr.bf16.mxu1 %v14228_v55  ;;  %4436 = vmatprep.subr.bf16.mxu0 %v14229_v36 }
 0xc91   :  { %4396 = vmatpush1.bf16.msra.mxu1 %v14230_v62  ;;  %4437 = vmatpush1.bf16.msra.mxu0 %v14231_v7 }
 0xc92   :  { %4466 = vmatprep.subr.bf16.mxu1 %v14232_v16  ;;  %4507 = vmatprep.subr.bf16.mxu0 %v14233_v51 }
 0xd05   :  { %v4093_v26 = vpop.f32.mrb[120].mxu1  ;;  %v4134_v2 = vpop.f32.mrb[124].mxu0 }
 0xd06   :  { %v4095_v50 = vpop.f32.mrb[121].mxu1  ;;  %v4136_v38 = vpop.f32.mrb[125].mxu0 }
 0xd07   :  { %v4097_v0 = vpop.f32.mrb[122].mxu1  ;;  %v4138_v5 = vpop.f32.mrb[126].mxu0 }
 0xd08   :  { %v4098_v4 = vpop.f32.mrb[123].mxu1  ;;  %v4139_v45 = vpop.f32.mrb[127].mxu0 }
 0xd27   :  { %v4178_v25 = vpop.f32.mrb[124].mxu1  ;;  %v4219_v1 = vpop.f32.mrb[128].mxu0 }
 0xd28   :  { %v4179_v49 = vadd.f32 %v4178_v25, %v4093_v26  ;;  %v4220_v44 = vadd.f32 %v4219_v1, %v4134_v2  ;;  %v4180_v48 = vpop.f32.mrb[125].mxu1  ;;  %v4221_v59 = vpop.f32.mrb[129].mxu0 }
 0xd29   :  { %v4181_v10 = vadd.f32 %v4180_v48, %v4095_v50  ;;  %v4222_v57 = vadd.f32 %v4221_v59, %v4136_v38  ;;  %v4182_v35 = vpop.f32.mrb[126].mxu1  ;;  %v4223_v30 = vpop.f32.mrb[130].mxu0 }
 0xd2a   :  { %v4226_v20 = vadd.f32 %v4179_v49, %v10852_v21  ;;  %v4183_v27 = vpop.f32.mrb[127].mxu1  ;;  %v4224_v29 = vpop.f32.mrb[131].mxu0  ;;  %v4228_v16 = vadd.f32 %v4220_v44, %v10864_v39 }
 0xd2b   :  { %v4227_v12 = vadd.f32 %v4181_v10, %v10855_v63  ;;  %v4229_v62 = vadd.f32 %v4222_v57, %v10860_v3 }
 0xd2c   :  { %v7949_v55 = vmul.f32 -1.442695, %v4226_v20 }
 0xd2d   :  { %v7950_v36 = vmul.f32 -1.442695, %v4227_v12  ;;  %v7951_v7 = vmul.f32 -1.442695, %v4229_v62 }
 0xd2e   :  { %9108 = vpow2.f32 %v7949_v55 }
 0xd2f   :  { %9110 = vpow2.f32 %v7950_v36 }
 0xd30   :  { %9112 = vpow2.f32 %v7951_v7 }
 0xd31   :  { %9114 = vtanh.f32 %v4228_v16 }
 0xd38   :  { %v9109_v51 = vpop.eup %9108 }
 0xd39   :  { %v9111_v26 = vpop.eup %9110  ;;  %v4233_v2 = vadd.f32 1.0, %v9109_v51 }
 0xd3a   :  { %v4239_v50 = vadd.f32 1.0, %v9111_v26  ;;  %v9113_v38 = vpop.eup %9112 }
 0xd3b   :  { %9116 = vrcp.f32 %v4233_v2  ;;  %v9115_v0 = vpop.eup %9114  ;;  %v4246_v25 = vadd.f32 1.0, %v9113_v38 }
 0xd3c   :  { %9118 = vrcp.f32 %v4239_v50 }
 0xd3d   :  { %9120 = vrcp.f32 %v4246_v25 }
 0xd45   :  { %v9117_v5 = vpop.eup %9116 }
 0xd46   :  { %v9119_v4 = vpop.eup %9118  ;;  %v4250_v45 = vmul.f32 %v9117_v5, %v9115_v0 }
 0xd47   :  { %v4249_v1 = vmul.f32 %v9119_v4, %v12628_v46  ;;  %v4288_v49 = vpop.f32.mrb[128].mxu1  ;;  %v4329_v48 = vpop.f32.mrb[132].mxu0 }
 0xd48   :  { %v4340_v59 = vrot.slane %v4288_v49, 4  ;;  %v4290_v44 = vpop.f32.mrb[129].mxu1  ;;  %v4331_v10 = vpop.f32.mrb[133].mxu0  ;;  %v4342_v16 = vrot.slane %v4329_v48, 4 }
 0xd49   :  { %v12812_v57 = vadd.f32 %v4250_v45, %v4249_v1  ;;  %v4341_v35 = vrot.slane %v4290_v44, 4  ;;  %v4292_v30 = vpop.f32.mrb[130].mxu1  ;;  %v4333_v20 = vpop.f32.mrb[134].mxu0  ;;  %v4343_v62 = vrot.slane %v4331_v10, 4 }
 0xd4a   :  { %v4348_v27 = vadd.f32 %v4340_v59, %v14129_v24  ;;  %v4293_v29 = vpop.f32.mrb[131].mxu1  ;;  %v4334_v12 = vpop.f32.mrb[135].mxu0  ;;  %v4350_v50 = vadd.f32 %v4342_v16, %v14132_v56 }
 0xd4b   :  { %v4349_v55 = vadd.f32 %v4341_v35, %v14130_v8  ;;  %9122 = vtanh.f32 %v12812_v57  ;;  %v4351_v7 = vadd.f32 %v4343_v62, %v14131_v6  ;;  %v9121_v51 = vpop.eup %9120 }
 0xd4c   :  { %v7952_v46 = vmul.f32 -1.442695, %v4348_v27 }
 0xd4d   :  { %v7953_v36 = vmul.f32 -1.442695, %v4349_v55  ;;  %v7954_v2 = vmul.f32 -1.442695, %v4351_v7 }
 0xd4e   :  { %9124 = vpow2.f32 %v7952_v46 }
 0xd4f   :  { %9126 = vpow2.f32 %v7953_v36 }
 0xd50   :  { %9128 = vpow2.f32 %v7954_v2 }
 0xd51   :  { %9130 = vtanh.f32 %v4350_v50 }
 0xd55   :  { %v9123_v26 = vpop.eup %9122 }
 0xd56   :  { %v4253_v24 = vmul.f32 %v9123_v26, %v9121_v51 }
 0xd58   :  { %v9125_v38 = vpop.eup %9124  ;;  %v4380_v0 = vpack.c.bf16 %v4253_v24, %v4253_v24 }
 0xd59   :  { %v9127_v5 = vpop.eup %9126  ;;  %v4355_v8 = vadd.f32 1.0, %v9125_v38 }
 0xd5a   :  { %v4361_v4 = vadd.f32 1.0, %v9127_v5  ;;  %4414 = vmatmul.mubr.bf16.vlgmr.msra.gmra.mrb[132].mxu1 %v4380_v0  ;;  %4455 = vmatmul.mubr.bf16.vlgmr.msra.gmra.mrb[136].mxu0 %v4380_v0  ;;  %v9129_v6 = vpop.eup %9128 }
 0xd5b   :  { %9132 = vrcp.f32 %v4355_v8  ;;  %4467 = vmatpush1.bf16.msra.mxu1 %v12383_v14  ;;  %4508 = vmatpush1.bf16.msra.mxu0 %v12387_v22  ;;  %v9131_v56 = vpop.eup %9130  ;;  %v4372_v22 = vrot.slane %v12678_v32, 6 }
 0xd5c   :  { %9134 = vrcp.f32 %v4361_v4  ;;  %4468 = vmatprep.subr.bf16.mxu1 %v12391_v31  ;;  %4509 = vmatprep.subr.bf16.mxu0 %v12395_v9 }
 0xd5d   :  { %4498 = vmatprep.mubr.bf16.mxu1 %v13667_v18  ;;  %4539 = vmatprep.mubr.bf16.mxu0 %v13667_v18 }
 0xd5f   :  { %4469 = vmatpush1.bf16.msra.mxu1 %v12401_v13  ;;  %4510 = vmatpush1.bf16.msra.mxu0 %v12405_v23  ;;  %v4368_v13 = vadd.f32 1.0, %v9129_v6 }
 0xd60   :  { %4470 = vmatprep.subr.bf16.mxu1 %v12644_v41  ;;  %4511 = vmatprep.subr.bf16.mxu0 %v12648_v40  ;;  %v14236_v40 = vld [vmem:[#allocation50_spill] sm:$0xff] }
 0xd61   :  { %9136 = vrcp.f32 %v4368_v13 }
 0xd63   :  { %4471 = vmatpush1.bf16.msra.mxu1 %v12652_v34  ;;  %4512 = vmatpush1.bf16.msra.mxu0 %v12656_v54  ;;  %v14237_v34 = vld [vmem:[#allocation51_spill] sm:$0xff] }
 0xd64   :  { %4472 = vmatprep.subr.bf16.mxu1 %v12660_v19  ;;  %4513 = vmatprep.subr.bf16.mxu0 %v12664_v37  ;;  %v14239_v19 = vld [vmem:[#allocation53_spill] sm:$0xff] }
 0xd65   :  { %v9133_v14 = vpop.eup %9132 }
 0xd66   :  { %v9135_v31 = vpop.eup %9134  ;;  %v4375_v9 = vmul.f32 %v9133_v14, %v9131_v56 }
 0xd67   :  { %v4374_v23 = vmul.f32 %v9135_v31, %v4372_v22  ;;  %4473 = vmatpush1.bf16.msra.mxu1 %v12418_v47  ;;  %4514 = vmatpush1.bf16.msra.mxu0 %v12422_v28  ;;  %v14234_v47 = vld [vmem:[#allocation49_spill] sm:$0xff]  ;;  %v14235_v28 = vld [vmem:[#allocation48_spill] sm:$0xff] }
 0xd68   :  { %4474 = vmatprep.subr.bf16.mxu1 %v12671_v43  ;;  %4515 = vmatprep.subr.bf16.mxu0 %v12675_v53 }
 0xd69   :  { %v4376_v41 = vadd.f32 %v4375_v9, %v4374_v23 }
 0xd6b   :  { %4579 = vst [vmem:[%s10236_s21 - $0x4] sm:$0x30] %v4376_v41  ;;  %4475 = vmatpush1.bf16.msra.mxu1 %v12681_v11  ;;  %4516 = vmatpush1.bf16.msra.mxu0 %v12685_v42  ;;  %9138 = vtanh.f32 %v4376_v41  ;;  %v9137_v54 = vpop.eup %9136 }
 0xd6c   :  { %4476 = vmatprep.subr.bf16.mxu1 %v12690_v61  ;;  %4517 = vmatprep.subr.bf16.mxu0 %v12694_v52 }
 0xd6f   :  { %4477 = vmatpush1.bf16.msra.mxu1 %v12698_v58  ;;  %4518 = vmatpush1.bf16.msra.mxu0 %v12702_v15 }
 0xd70   :  { %4478 = vmatprep.subr.bf16.mxu1 %v14234_v47  ;;  %4519 = vmatprep.subr.bf16.mxu0 %v14235_v28 }
 0xd73   :  { %4479 = vmatpush1.bf16.msra.mxu1 %v14236_v40  ;;  %4520 = vmatpush1.bf16.msra.mxu0 %v14237_v34 }
 0xd74   :  { %4480 = vmatprep.subr.bf16.mxu1 %v14239_v19  ;;  %4521 = vmatprep.subr.bf16.mxu0 %v12726_v33 }
 0xd75   :  { %v9139_v37 = vpop.eup %9138 }
 0xd76   :  { %v4378_v43 = vmul.f32 %v9139_v37, %v9137_v54 }
 0xd77   :  { %4481 = vmatpush1.bf16.msra.mxu1 %v12730_v17  ;;  %4522 = vmatpush1.bf16.msra.mxu0 %v12734_v60 }
 0xd78   :  { %v4379_v53 = vpack.c.bf16 %v4378_v43, %v4378_v43  ;;  %4576 = vst [vmem:[%s10231_s3 - $0x4] sm:$0x30] %v4378_v43 }
 0xd7a   :  { %v4464_v32 = vrot.slane %v4379_v53, 2 }
 0xd7c   :  { %4499 = vmatmul.mubr.bf16.vlgmr.msra.gmra.mrb[136].mxu1 %v4464_v32  ;;  %4540 = vmatmul.mubr.bf16.vlgmr.msra.gmra.mrb[140].mxu0 %v4464_v32 }
 0xd7d   :  { %9973 = shalt.err (!%p9970_p10)  }
 0xd7e   :  { %s9974_s20 = scalar_lea.vmem %s242_s30, 32768  ;;  %p9979_p12 = scmp.lt.s32.totalorder %s242_s30, %s242_s30 }
 0xd7f   :  { %p9975_p11 = scmp.ne.s32.totalorder %s242_s30, %s9974_s20  ;;  %p9980_p13 = scmp.lt.s32.totalorder %s9974_s20, %s9974_s20 }
 0xd81   :  { %p9981_p0 = por %p9980_p13, %p9979_p12 }
 0xd83   :  { %p9982_p1 = pnand %p9981_p0, %p9975_p11 }
 0xd85   :  { %9985 = shalt.err (!%p9982_p1)  }
 0xd86   :  { %244 = dma.hbm_to_vmem [thread:$0]  %s14238_s17, 32768, %s242_s30, [#allocation3] }
 0xe2d   :  { %v4415_v11 = vpop.f32.mrb[132].mxu1  ;;  %v4456_v42 = vpop.f32.mrb[136].mxu0 }
 0xe2e   :  { %v4417_v61 = vpop.f32.mrb[133].mxu1  ;;  %v4458_v52 = vpop.f32.mrb[137].mxu0 }
 0xe2f   :  { %v4419_v58 = vpop.f32.mrb[134].mxu1  ;;  %v4460_v15 = vpop.f32.mrb[138].mxu0 }
 0xe30   :  { %v4420_v17 = vpop.f32.mrb[135].mxu1  ;;  %v4461_v60 = vpop.f32.mrb[139].mxu0 }
 0xe4f   :  { %v4500_v33 = vpop.f32.mrb[136].mxu1  ;;  %v4541_v45 = vpop.f32.mrb[140].mxu0 }
 0xe50   :  { %v4501_v25 = vadd.f32 %v4500_v33, %v4415_v11  ;;  %v4542_v1 = vadd.f32 %v4541_v45, %v4456_v42  ;;  %v4502_v49 = vpop.f32.mrb[137].mxu1  ;;  %v4543_v48 = vpop.f32.mrb[141].mxu0 }
 0xe51   :  { %v4503_v59 = vadd.f32 %v4502_v49, %v4417_v61  ;;  %v4544_v44 = vadd.f32 %v4543_v48, %v4458_v52  ;;  %v4504_v10 = vpop.f32.mrb[138].mxu1  ;;  %v4545_v35 = vpop.f32.mrb[142].mxu0 }
 0xe52   :  { %v4548_v30 = vadd.f32 %v4501_v25, %v10852_v21  ;;  %v4505_v20 = vpop.f32.mrb[139].mxu1  ;;  %v4546_v27 = vpop.f32.mrb[143].mxu0  ;;  %v4550_v62 = vadd.f32 %v4542_v1, %v10864_v39 }
 0xe53   :  { %v4549_v29 = vadd.f32 %v4503_v59, %v10855_v63  ;;  %v4551_v46 = vadd.f32 %v4544_v44, %v10860_v3 }
 0xe54   :  { %v7955_v12 = vmul.f32 -1.442695, %v4548_v30 }
 0xe55   :  { %v7956_v55 = vmul.f32 -1.442695, %v4549_v29  ;;  %v7957_v36 = vmul.f32 -1.442695, %v4551_v46 }
 0xe56   :  { %9140 = vpow2.f32 %v7955_v12 }
 0xe57   :  { %9142 = vpow2.f32 %v7956_v55 }
 0xe58   :  { %9144 = vpow2.f32 %v7957_v36 }
 0xe59   :  { %9146 = vtanh.f32 %v4550_v62 }
 0xe60   :  { %v9141_v7 = vpop.eup %9140 }
 0xe61   :  { %v9143_v16 = vpop.eup %9142  ;;  %v4555_v51 = vadd.f32 1.0, %v9141_v7 }
 0xe62   :  { %v4561_v21 = vadd.f32 1.0, %v9143_v16  ;;  %v9145_v63 = vpop.eup %9144 }
 0xe63   :  { %9148 = vrcp.f32 %v4555_v51  ;;  %v9147_v26 = vpop.eup %9146  ;;  %v4568_v38 = vadd.f32 1.0, %v9145_v63 }
 0xe64   :  { %9150 = vrcp.f32 %v4561_v21 }
 0xe65   :  { %9152 = vrcp.f32 %v4568_v38 }
 0xe6d   :  { %v9149_v2 = vpop.eup %9148 }
 0xe6e   :  { %v9151_v50 = vpop.eup %9150  ;;  %v4572_v24 = vmul.f32 %v9149_v2, %v9147_v26 }
 0xe6f   :  { %v4571_v3 = vmul.f32 %v9151_v50, %v12812_v57  ;;  %v9153_v39 = vpop.eup %9152 }
 0xe71   :  { %v4573_v0 = vadd.f32 %v4572_v24, %v4571_v3 }
 0xe73   :  { %9154 = vtanh.f32 %v4573_v0  ;;  %7959 = vst [vmem:[%s10236_s21 + $0x2] sm:$0x3] %v4573_v0 }
 0xe7d   :  { %v9155_v5 = vpop.eup %9154 }
 0xe7e   :  { %v12864_v8 = vmul.f32 %v9155_v5, %v9153_v39 }
 0xe80   :  { %7958 = vst [vmem:[%s10231_s3 + $0x2] sm:$0x3] %v12864_v8 }
 0xe81   :  { %10018 = dma.done.wait [#allocation3], 32768 }
 0xe82   :  { %10019 = vsyncadd [#allocation3], 4294934528  ;;  %v10071_v4 = vmov 1983009808   ;;  %v4602_v56 = vld [vmem:[#allocation2 + $0x40] sm:$0xff]  ;;  %v4603_v31 = vld [vmem:[#allocation2 + $0x48] sm:$0xff] }
 0xe83   :  { %v4860_v6 = vunpack.c.l.s4 %v10071_v4  ;;  %v4618_v14 = vld [vmem:[#allocation2 + $0xc0] sm:$0xff]  ;;  %8185 = vmatprep.subr.bf16.mxu1 %v4602_v56  ;;  %v4619_v9 = vld [vmem:[#allocation2 + $0xc8] sm:$0xff]  ;;  %s14240_s21 = sld [smem:[#allocation30_spill]]  ;;  %v4604_v47 = vld [vmem:[#allocation2 + $0x50] sm:$0xff]  ;;  %s14242_s3 = sld [smem:[#allocation35_spill]]  ;;  %vm7704_vm5 = vcmask 41984  }
 0xe84   :  { %v4594_v22 = vld [vmem:[#allocation2] sm:$0xff]  ;;  %8207 = vmatprep.subr.bf16.mxu0 %v4618_v14  ;;  %v4595_v13 = vld [vmem:[#allocation2 + $0x8] sm:$0xff]  ;;  %v4620_v28 = vld [vmem:[#allocation2 + $0xd0] sm:$0xff]  ;;  %s14243_s4 = sld [smem:[#allocation38_spill]]  ;;  %s14244_s27 = sld [smem:[#allocation37_spill]] }
 0xe85   :  { %v4610_v57 = vld [vmem:[#allocation2 + $0x80] sm:$0xff]  ;;  %8186 = vmatpush3.bf16.msra.mxu1 %v4594_v22  ;;  %v4611_v23 = vld [vmem:[#allocation2 + $0x88] sm:$0xff]  ;;  %v4861_v41 = vunpack.c.0.s8 %v4860_v6  ;;  %v4596_v40 = vld [vmem:[#allocation2 + $0x10] sm:$0xff]  ;;  %s14245_s7 = sld [smem:[#allocation39_spill]]  ;;  %s14247_s15 = sld [smem:[#allocation32_spill]] }
 0xe86   :  { %8208 = vmatpush3.bf16.msra.mxu0 %v4610_v57  ;;  %8187 = vmatprep.subr.bf16.mxu1 %v4603_v31  ;;  %v4612_v34 = vld [vmem:[#allocation2 + $0x90] sm:$0xff]  ;;  %v14241_v54 = vld [vmem:[#allocation101_spill] sm:$0xff]  ;;  %v4607_v1 = vld [vmem:[#allocation2 + $0x68] sm:$0xff]  ;;  %s14249_s29 = sld [smem:[#allocation40_spill]]  ;;  %s14253_s0 = sld [smem:[#allocation33_spill]] }
 0xe87   :  { %8209 = vmatprep.subr.bf16.mxu0 %v4619_v9  ;;  %v12869_v19 = vsub.s32 %v4861_v41, %v14241_v54  ;;  %v4605_v37 = vld [vmem:[#allocation2 + $0x58] sm:$0xff]  ;;  %v4606_v52 = vld [vmem:[#allocation2 + $0x60] sm:$0xff]  ;;  %v4623_v49 = vld [vmem:[#allocation2 + $0xe8] sm:$0xff]  ;;  %s14255_s18 = sld [smem:[#allocation43_spill]]  ;;  %s14256_s22 = sld [smem:[#allocation41_spill]] }
 0xe88   :  { %v4621_v43 = vld [vmem:[#allocation2 + $0xd8] sm:$0xff]  ;;  %v4622_v58 = vld [vmem:[#allocation2 + $0xe0] sm:$0xff]  ;;  %v4599_v59 = vld [vmem:[#allocation2 + $0x28] sm:$0xff]  ;;  %s14257_s23 = sld [smem:[#allocation42_spill]]  ;;  %s14258_s26 = sld [smem:[#allocation44_spill]] }
 0xe89   :  { %8188 = vmatpush3.bf16.msra.mxu1 %v4595_v13  ;;  %v4586_v53 = vld [vmem:[%s14240_s21] sm:$0xff]  ;;  %v4597_v32 = vld [vmem:[#allocation2 + $0x18] sm:$0xff]  ;;  %v4615_v44 = vld [vmem:[#allocation2 + $0xa8] sm:$0xff] }
 0xe8a   :  { %8210 = vmatpush3.bf16.msra.mxu0 %v4611_v23  ;;  %8189 = vmatprep.subr.bf16.mxu1 %v4604_v47  ;;  %v4613_v11 = vld [vmem:[#allocation2 + $0x98] sm:$0xff]  ;;  %v4865_v42 = vrot.slane %v4586_v53, %v12869_v19  ;;  %v4858_v61 = vcombine.high %v4586_v53, %v4586_v53  ;;  %v4598_v60 = vld [vmem:[#allocation2 + $0x20] sm:$0xff]  ;;  %v4608_v10 = vld [vmem:[#allocation2 + $0x70] sm:$0xff] }
 0xe8b   :  { %8211 = vmatprep.subr.bf16.mxu0 %v4620_v28  ;;  %v4614_v33 = vld [vmem:[#allocation2 + $0xa0] sm:$0xff]  ;;  %v4624_v35 = vld [vmem:[#allocation2 + $0xf0] sm:$0xff]  ;;  %v4587_v30 = vld [vmem:[%s14240_s21 + $0x8] sm:$0xff] }
 0xe8c   :  { %v4873_v15 = vcombine.high %v4865_v42, %v4865_v42  ;;  %v4872_v17 = vrot.slane %v4858_v61, %v12869_v19  ;;  %v4875_v20 = vcombine.high %v4587_v30, %v4587_v30  ;;  %v4600_v27 = vld [vmem:[#allocation2 + $0x30] sm:$0xff]  ;;  %v4609_v12 = vld [vmem:[#allocation2 + $0x78] sm:$0xff]  ;;  %v12876_v46 = vrot.slane %v4587_v30, %v12869_v19  ;;  %v4634_v16 = vld [vmem:[#allocation2 + $0x140] sm:$0xff] }
 0xe8d   :  { %8190 = vmatpush3.bf16.msra.mxu1 %v4596_v40  ;;  %v4616_v29 = vld [vmem:[#allocation2 + $0xb0] sm:$0xff]  ;;  %v4625_v55 = vld [vmem:[#allocation2 + $0xf8] sm:$0xff]  ;;  %v4650_v51 = vld [vmem:[#allocation2 + $0x1c0] sm:$0xff]  ;;  %v5026_v26 = vpack.c.bf16 %v4865_v42, %v4865_v42 }
 0xe8e   :  { %8212 = vmatpush3.bf16.msra.mxu0 %v4612_v34  ;;  %8191 = vmatprep.subr.bf16.mxu1 %v4605_v37  ;;  %v5027_v45 = vpack.c.bf16 %v4873_v15, %v4873_v15  ;;  %v4874_v25 = vcombine.high %v4872_v17, %v4872_v17  ;;  %v12879_v36 = vrot.slane %v4875_v20, %v12869_v19  ;;  %v4601_v62 = vld [vmem:[#allocation2 + $0x38] sm:$0xff]  ;;  %v4626_v50 = vld [vmem:[#allocation2 + $0x100] sm:$0xff]  ;;  %v4635_v38 = vld [vmem:[#allocation2 + $0x148] sm:$0xff] }
 0xe8f   :  { %8213 = vmatprep.subr.bf16.mxu0 %v4621_v43  ;;  %v4617_v7 = vld [vmem:[#allocation2 + $0xb8] sm:$0xff]  ;;  %v4890_v21 = vcombine.high %v12876_v46, %v12876_v46  ;;  %v5028_v2 = vpack.c.bf16 %v4872_v17, %v4872_v17  ;;  %v4642_v24 = vld [vmem:[#allocation2 + $0x180] sm:$0xff]  ;;  %v4651_v3 = vld [vmem:[#allocation2 + $0x1c8] sm:$0xff] }
 0xe90   :  { %5097 = vmatprep.mubr.bf16.mxu1 %v5027_v45  ;;  %v5029_v48 = vpack.c.bf16 %v4874_v25, %v4874_v25  ;;  %v4891_v63 = vcombine.high %v12879_v36, %v12879_v36  ;;  %v4627_v5 = vld [vmem:[#allocation2 + $0x108] sm:$0xff]  ;;  %v4636_v6 = vld [vmem:[#allocation2 + $0x150] sm:$0xff]  ;;  %v4637_v57 = vld [vmem:[#allocation2 + $0x158] sm:$0xff] }
 0xe91   :  { %8192 = vmatpush3.bf16.msra.mxu1 %v4597_v32  ;;  %v5031_v0 = vpack.c.bf16 %v4890_v21, %v4890_v21  ;;  %v4643_v4 = vld [vmem:[#allocation2 + $0x188] sm:$0xff]  ;;  %v4652_v56 = vld [vmem:[#allocation2 + $0x1d0] sm:$0xff]  ;;  %v4653_v31 = vld [vmem:[#allocation2 + $0x1d8] sm:$0xff] }
 0xe92   :  { %8214 = vmatpush3.bf16.msra.mxu0 %v4613_v11  ;;  %8193 = vmatprep.subr.bf16.mxu1 %v4606_v52  ;;  %v5033_v39 = vpack.c.bf16 %v4891_v63, %v4891_v63  ;;  %v4628_v14 = vld [vmem:[#allocation2 + $0x110] sm:$0xff]  ;;  %v4629_v9 = vld [vmem:[#allocation2 + $0x118] sm:$0xff]  ;;  %v4638_v23 = vld [vmem:[#allocation2 + $0x160] sm:$0xff] }
 0xe93   :  { %8215 = vmatprep.subr.bf16.mxu0 %v4622_v58  ;;  %5137 = vmatprep.mubr.bf16.mxu0 %v5029_v48  ;;  %v4644_v22 = vld [vmem:[#allocation2 + $0x190] sm:$0xff]  ;;  %v4645_v13 = vld [vmem:[#allocation2 + $0x198] sm:$0xff]  ;;  %v4654_v41 = vld [vmem:[#allocation2 + $0x1e0] sm:$0xff]  ;;  %v5030_v48 = vpack.c.bf16 %v12876_v46, %v12876_v46 }
 0xe94   :  { %v4630_v47 = vld [vmem:[#allocation2 + $0x120] sm:$0xff]  ;;  %v4639_v40 = vld [vmem:[#allocation2 + $0x168] sm:$0xff]  ;;  %v4588_v54 = vld [vmem:[%s14240_s21 + $0x10] sm:$0xff] }
 0xe95   :  { %8194 = vmatpush3.bf16.msra.mxu1 %v4598_v60  ;;  %v4646_v28 = vld [vmem:[#allocation2 + $0x1a0] sm:$0xff]  ;;  %v4655_v34 = vld [vmem:[#allocation2 + $0x1e8] sm:$0xff]  ;;  %v4640_v53 = vld [vmem:[#allocation2 + $0x170] sm:$0xff]  ;;  %v4892_v11 = vcombine.high %v4588_v54, %v4588_v54  ;;  %v12887_v15 = vrot.slane %v4588_v54, %v12869_v19 }
 0xe96   :  { %8216 = vmatpush3.bf16.msra.mxu0 %v4614_v33  ;;  %8195 = vmatprep.subr.bf16.mxu1 %v4607_v1  ;;  %v4631_v37 = vld [vmem:[#allocation2 + $0x128] sm:$0xff]  ;;  %v4656_v32 = vld [vmem:[#allocation2 + $0x1f0] sm:$0xff]  ;;  %v4641_v52 = vld [vmem:[#allocation2 + $0x178] sm:$0xff] }
 0xe97   :  { %8217 = vmatprep.subr.bf16.mxu0 %v4623_v49  ;;  %v4647_v43 = vld [vmem:[#allocation2 + $0x1a8] sm:$0xff]  ;;  %v4632_v42 = vld [vmem:[#allocation2 + $0x130] sm:$0xff]  ;;  %v4657_v58 = vld [vmem:[#allocation2 + $0x1f8] sm:$0xff]  ;;  %v12890_v17 = vrot.slane %v4892_v11, %v12869_v19  ;;  %v4907_v1 = vcombine.high %v12887_v15, %v12887_v15 }
 0xe98   :  { %v4648_v61 = vld [vmem:[#allocation2 + $0x1b0] sm:$0xff]  ;;  %v4633_v60 = vld [vmem:[#allocation2 + $0x138] sm:$0xff]  ;;  %v4666_v45 = vld [vmem:[#allocation2 + $0x240] sm:$0xff] }
 0xe99   :  { %8196 = vmatpush3.bf16.msra.mxu1 %v4599_v59  ;;  %v4649_v33 = vld [vmem:[#allocation2 + $0x1b8] sm:$0xff]  ;;  %v4682_v25 = vld [vmem:[#allocation2 + $0x2c0] sm:$0xff]  ;;  %v4908_v49 = vcombine.high %v12890_v17, %v12890_v17  ;;  %v5032_v59 = vpack.c.bf16 %v12879_v36, %v12879_v36  ;;  %v4683_v30 = vld [vmem:[#allocation2 + $0x2c8] sm:$0xff]  ;;  %v5035_v20 = vpack.c.bf16 %v4907_v1, %v4907_v1  ;;  %v5036_v54 = vpack.c.bf16 %v12890_v17, %v12890_v17 }
 0xe9a   :  { %8218 = vmatpush3.bf16.msra.mxu0 %v4615_v44  ;;  %8197 = vmatprep.subr.bf16.mxu1 %v4608_v10  ;;  %v4658_v44 = vld [vmem:[#allocation2 + $0x200] sm:$0xff]  ;;  %v4684_v46 = vld [vmem:[#allocation2 + $0x2d0] sm:$0xff]  ;;  %v4677_v21 = vld [vmem:[#allocation2 + $0x298] sm:$0xff] }
 0xe9b   :  { %8219 = vmatprep.subr.bf16.mxu0 %v4624_v35  ;;  %v4674_v10 = vld [vmem:[#allocation2 + $0x280] sm:$0xff]  ;;  %v4667_v35 = vld [vmem:[#allocation2 + $0x248] sm:$0xff]  ;;  %v4660_v36 = vld [vmem:[#allocation2 + $0x210] sm:$0xff] }
 0xe9c   :  { %v4670_v63 = vld [vmem:[#allocation2 + $0x260] sm:$0xff]  ;;  %v4692_v17 = vld [vmem:[#allocation2 + $0x310] sm:$0xff]  ;;  %v4709_v1 = vld [vmem:[#allocation2 + $0x398] sm:$0xff] }
 0xe9d   :  { %8198 = vmatpush3.bf16.msra.mxu1 %v4600_v27  ;;  %v5037_v27 = vpack.c.bf16 %v4908_v49, %v4908_v49  ;;  %v4702_v49 = vld [vmem:[#allocation2 + $0x360] sm:$0xff] }
 0xe9e   :  { %8220 = vmatpush3.bf16.msra.mxu0 %v4616_v29  ;;  %8199 = vmatprep.subr.bf16.mxu1 %v4609_v12  ;;  %v4659_v29 = vld [vmem:[#allocation2 + $0x208] sm:$0xff] }
 0xe9f   :  { %8221 = vmatprep.subr.bf16.mxu0 %v4625_v55  ;;  %v4675_v12 = vld [vmem:[#allocation2 + $0x288] sm:$0xff]  ;;  %v4668_v55 = vld [vmem:[#allocation2 + $0x250] sm:$0xff] }
 0xea1   :  { %8200 = vmatpush3.bf16.msra.mxu1 %v4601_v62  ;;  %v4676_v62 = vld [vmem:[#allocation2 + $0x290] sm:$0xff] }
 0xea2   :  { %8222 = vmatpush3.bf16.msra.mxu0 %v4617_v7  ;;  %8229 = vmatprep.subr.bf16.mxu1 %v4634_v16  ;;  %v4669_v7 = vld [vmem:[#allocation2 + $0x258] sm:$0xff] }
 0xea3   :  { %8251 = vmatprep.subr.bf16.mxu0 %v4650_v51  ;;  %v4685_v16 = vld [vmem:[#allocation2 + $0x2d8] sm:$0xff] }
 0xea4   :  { %5098 = vmatmul.mubr.bf16.vlgmr.msra.gmra.mrb[140].mxu1 %v5026_v26  ;;  %v4661_v51 = vld [vmem:[#allocation2 + $0x218] sm:$0xff]  ;;  %v4686_v26 = vld [vmem:[#allocation2 + $0x2e0] sm:$0xff] }
 0xea5   :  { %5138 = vmatmul.mubr.bf16.vlgmr.msra.gmra.mrb[144].mxu0 %v5028_v2  ;;  %8230 = vmatpush3.bf16.msra.mxu1 %v4626_v50  ;;  %v4662_v2 = vld [vmem:[#allocation2 + $0x220] sm:$0xff] }
 0xea6   :  { %8252 = vmatpush3.bf16.msra.mxu0 %v4642_v24  ;;  %8231 = vmatprep.subr.bf16.mxu1 %v4635_v38  ;;  %v4678_v50 = vld [vmem:[#allocation2 + $0x2a0] sm:$0xff]  ;;  %v4671_v24 = vld [vmem:[#allocation2 + $0x268] sm:$0xff] }
 0xea7   :  { %8253 = vmatprep.subr.bf16.mxu0 %v4651_v3  ;;  %5177 = vmatprep.mubr.bf16.mxu1 %v5031_v0  ;;  %v4687_v38 = vld [vmem:[#allocation2 + $0x2e8] sm:$0xff]  ;;  %v4589_v0 = vld [vmem:[%s14240_s21 + $0x18] sm:$0xff] }
 0xea8   :  { %5217 = vmatprep.mubr.bf16.mxu0 %v5033_v39  ;;  %v4663_v3 = vld [vmem:[#allocation2 + $0x228] sm:$0xff] }
 0xea9   :  { %8232 = vmatpush3.bf16.msra.mxu1 %v4627_v5  ;;  %v4679_v39 = vld [vmem:[#allocation2 + $0x2a8] sm:$0xff]  ;;  %v4672_v5 = vld [vmem:[#allocation2 + $0x270] sm:$0xff] }
 0xeaa   :  { %8254 = vmatpush3.bf16.msra.mxu0 %v4643_v4  ;;  %8233 = vmatprep.subr.bf16.mxu1 %v4636_v6  ;;  %v4688_v4 = vld [vmem:[#allocation2 + $0x2f0] sm:$0xff]  ;;  %v4909_v6 = vcombine.high %v4589_v0, %v4589_v0 }
 0xeab   :  { %8255 = vmatprep.subr.bf16.mxu0 %v4652_v56  ;;  %v4664_v56 = vld [vmem:[#allocation2 + $0x230] sm:$0xff] }
 0xead   :  { %8234 = vmatpush3.bf16.msra.mxu1 %v4628_v14  ;;  %v4680_v14 = vld [vmem:[#allocation2 + $0x2b0] sm:$0xff] }
 0xeae   :  { %8256 = vmatpush3.bf16.msra.mxu0 %v4644_v22  ;;  %8235 = vmatprep.subr.bf16.mxu1 %v4637_v57  ;;  %v4673_v22 = vld [vmem:[#allocation2 + $0x278] sm:$0xff] }
 0xeaf   :  { %8257 = vmatprep.subr.bf16.mxu0 %v4653_v31  ;;  %v4689_v57 = vld [vmem:[#allocation2 + $0x2f8] sm:$0xff]  ;;  %v12902_v31 = vrot.slane %v4589_v0, %v12869_v19  ;;  %v4722_v0 = vld [vmem:[#allocation2 + $0x400] sm:$0xff] }
 0xeb1   :  { %8236 = vmatpush3.bf16.msra.mxu1 %v4629_v9  ;;  %v12905_v9 = vrot.slane %v4909_v6, %v12869_v19 }
 0xeb2   :  { %8258 = vmatpush3.bf16.msra.mxu0 %v4645_v13  ;;  %8237 = vmatprep.subr.bf16.mxu1 %v4638_v23  ;;  %v4665_v13 = vld [vmem:[#allocation2 + $0x238] sm:$0xff] }
 0xeb3   :  { %8259 = vmatprep.subr.bf16.mxu0 %v4654_v41  ;;  %v4681_v23 = vld [vmem:[#allocation2 + $0x2b8] sm:$0xff]  ;;  %v4698_v41 = vld [vmem:[#allocation2 + $0x340] sm:$0xff] }
 0xeb5   :  { %8238 = vmatpush3.bf16.msra.mxu1 %v4630_v47  ;;  %v4714_v47 = vld [vmem:[#allocation2 + $0x3c0] sm:$0xff] }
 0xeb6   :  { %8260 = vmatpush3.bf16.msra.mxu0 %v4646_v28  ;;  %8239 = vmatprep.subr.bf16.mxu1 %v4639_v40  ;;  %v4924_v28 = vcombine.high %v12902_v31, %v12902_v31  ;;  %v4925_v40 = vcombine.high %v12905_v9, %v12905_v9 }
 0xeb7   :  { %8261 = vmatprep.subr.bf16.mxu0 %v4655_v34  ;;  %v5034_v34 = vpack.c.bf16 %v12887_v15, %v12887_v15  ;;  %v4716_v15 = vld [vmem:[#allocation2 + $0x3d0] sm:$0xff] }
 0xeb8   :  { %v5039_v11 = vpack.c.bf16 %v4924_v28, %v4924_v28  ;;  %v4741_v28 = vld [vmem:[#allocation2 + $0x498] sm:$0xff] }
 0xeb9   :  { %8240 = vmatpush3.bf16.msra.mxu1 %v4631_v37  ;;  %v4690_v37 = vld [vmem:[#allocation2 + $0x300] sm:$0xff] }
 0xeba   :  { %8262 = vmatpush3.bf16.msra.mxu0 %v4647_v43  ;;  %8241 = vmatprep.subr.bf16.mxu1 %v4640_v53  ;;  %v4706_v43 = vld [vmem:[#allocation2 + $0x380] sm:$0xff]  ;;  %v4699_v53 = vld [vmem:[#allocation2 + $0x348] sm:$0xff] }
 0xebb   :  { %8263 = vmatprep.subr.bf16.mxu0 %v4656_v32  ;;  %v4715_v32 = vld [vmem:[#allocation2 + $0x3c8] sm:$0xff] }
 0xebd   :  { %8242 = vmatpush3.bf16.msra.mxu1 %v4632_v42  ;;  %v5041_v42 = vpack.c.bf16 %v4925_v40, %v4925_v40  ;;  %v4734_v40 = vld [vmem:[#allocation2 + $0x460] sm:$0xff] }
 0xebe   :  { %8264 = vmatpush3.bf16.msra.mxu0 %v4648_v61  ;;  %8243 = vmatprep.subr.bf16.mxu1 %v4641_v52  ;;  %v4691_v61 = vld [vmem:[#allocation2 + $0x308] sm:$0xff] }
 0xebf   :  { %8265 = vmatprep.subr.bf16.mxu0 %v4657_v58  ;;  %v4707_v52 = vld [vmem:[#allocation2 + $0x388] sm:$0xff]  ;;  %v4700_v58 = vld [vmem:[#allocation2 + $0x350] sm:$0xff] }
 0xec1   :  { %8244 = vmatpush3.bf16.msra.mxu1 %v4633_v60  ;;  %v4708_v60 = vld [vmem:[#allocation2 + $0x390] sm:$0xff] }
 0xec2   :  { %8266 = vmatpush3.bf16.msra.mxu0 %v4649_v33  ;;  %8273 = vmatprep.subr.bf16.mxu1 %v4666_v45  ;;  %v4701_v33 = vld [vmem:[#allocation2 + $0x358] sm:$0xff] }
 0xec3   :  { %8295 = vmatprep.subr.bf16.mxu0 %v4682_v25  ;;  %v4717_v45 = vld [vmem:[#allocation2 + $0x3d8] sm:$0xff] }
 0xec4   :  { %5178 = vmatmul.mubr.bf16.vlgmr.msra.gmra.mrb[144].mxu1 %v5030_v48  ;;  %v4693_v25 = vld [vmem:[#allocation2 + $0x318] sm:$0xff]  ;;  %v4718_v48 = vld [vmem:[#allocation2 + $0x3e0] sm:$0xff] }
 0xec5   :  { %5218 = vmatmul.mubr.bf16.vlgmr.msra.gmra.mrb[148].mxu0 %v5032_v59  ;;  %8274 = vmatpush3.bf16.msra.mxu1 %v4658_v44  ;;  %v4694_v59 = vld [vmem:[#allocation2 + $0x320] sm:$0xff] }
 0xec6   :  { %8296 = vmatpush3.bf16.msra.mxu0 %v4674_v10  ;;  %8275 = vmatprep.subr.bf16.mxu1 %v4667_v35  ;;  %v4710_v44 = vld [vmem:[#allocation2 + $0x3a0] sm:$0xff]  ;;  %v4703_v10 = vld [vmem:[#allocation2 + $0x368] sm:$0xff] }
 0xec7   :  { %8297 = vmatprep.subr.bf16.mxu0 %v4683_v30  ;;  %5257 = vmatprep.mubr.bf16.mxu1 %v5035_v20  ;;  %v4719_v35 = vld [vmem:[#allocation2 + $0x3e8] sm:$0xff] }
 0xec8   :  { %5297 = vmatprep.mubr.bf16.mxu0 %v5037_v27  ;;  %v4695_v30 = vld [vmem:[#allocation2 + $0x328] sm:$0xff]  ;;  %v4590_v27 = vld [vmem:[%s14240_s21 + $0x20] sm:$0xff] }
 0xec9   :  { %8276 = vmatpush3.bf16.msra.mxu1 %v4659_v29  ;;  %v4711_v20 = vld [vmem:[#allocation2 + $0x3a8] sm:$0xff]  ;;  %v4704_v29 = vld [vmem:[#allocation2 + $0x370] sm:$0xff] }
 0xeca   :  { %8298 = vmatpush3.bf16.msra.mxu0 %v4675_v12  ;;  %8277 = vmatprep.subr.bf16.mxu1 %v4668_v55  ;;  %v4720_v12 = vld [vmem:[#allocation2 + $0x3f0] sm:$0xff]  ;;  %v4926_v55 = vcombine.high %v4590_v27, %v4590_v27 }
 0xecb   :  { %8299 = vmatprep.subr.bf16.mxu0 %v4684_v46  ;;  %v4696_v46 = vld [vmem:[#allocation2 + $0x330] sm:$0xff] }
 0xecd   :  { %8278 = vmatpush3.bf16.msra.mxu1 %v4660_v36  ;;  %v4712_v36 = vld [vmem:[#allocation2 + $0x3b0] sm:$0xff] }
 0xece   :  { %8300 = vmatpush3.bf16.msra.mxu0 %v4676_v62  ;;  %8279 = vmatprep.subr.bf16.mxu1 %v4669_v7  ;;  %v4705_v62 = vld [vmem:[#allocation2 + $0x378] sm:$0xff] }
 0xecf   :  { %8301 = vmatprep.subr.bf16.mxu0 %v4685_v16  ;;  %v4721_v7 = vld [vmem:[#allocation2 + $0x3f8] sm:$0xff]  ;;  %v12917_v16 = vrot.slane %v4590_v27, %v12869_v19  ;;  %v4770_v27 = vld [vmem:[#allocation2 + $0x580] sm:$0xff] }
 0xed1   :  { %8280 = vmatpush3.bf16.msra.mxu1 %v4661_v51  ;;  %v12920_v51 = vrot.slane %v4926_v55, %v12869_v19 }
 0xed2   :  { %8302 = vmatpush3.bf16.msra.mxu0 %v4677_v21  ;;  %8281 = vmatprep.subr.bf16.mxu1 %v4670_v63  ;;  %v4697_v21 = vld [vmem:[#allocation2 + $0x338] sm:$0xff] }
 0xed3   :  { %8303 = vmatprep.subr.bf16.mxu0 %v4686_v26  ;;  %v4713_v63 = vld [vmem:[#allocation2 + $0x3b8] sm:$0xff]  ;;  %v4730_v26 = vld [vmem:[#allocation2 + $0x440] sm:$0xff] }
 0xed5   :  { %8282 = vmatpush3.bf16.msra.mxu1 %v4662_v2  ;;  %v4746_v2 = vld [vmem:[#allocation2 + $0x4c0] sm:$0xff] }
 0xed6   :  { %8304 = vmatpush3.bf16.msra.mxu0 %v4678_v50  ;;  %8283 = vmatprep.subr.bf16.mxu1 %v4671_v24  ;;  %v4941_v50 = vcombine.high %v12917_v16, %v12917_v16  ;;  %v4942_v24 = vcombine.high %v12920_v51, %v12920_v51 }
 0xed7   :  { %8305 = vmatprep.subr.bf16.mxu0 %v4687_v38  ;;  %v5038_v38 = vpack.c.bf16 %v12902_v31, %v12902_v31  ;;  %v4748_v31 = vld [vmem:[#allocation2 + $0x4d0] sm:$0xff] }
 0xed8   :  { %v5043_v6 = vpack.c.bf16 %v4941_v50, %v4941_v50  ;;  %v4773_v50 = vld [vmem:[#allocation2 + $0x598] sm:$0xff] }
 0xed9   :  { %8284 = vmatpush3.bf16.msra.mxu1 %v4663_v3  ;;  %v5040_v3 = vpack.c.bf16 %v12905_v9, %v12905_v9  ;;  %v4724_v9 = vld [vmem:[#allocation2 + $0x410] sm:$0xff] }
 0xeda   :  { %8306 = vmatpush3.bf16.msra.mxu0 %v4679_v39  ;;  %8285 = vmatprep.subr.bf16.mxu1 %v4672_v5  ;;  %v4738_v39 = vld [vmem:[#allocation2 + $0x480] sm:$0xff]  ;;  %v4731_v5 = vld [vmem:[#allocation2 + $0x448] sm:$0xff] }
 0xedb   :  { %8307 = vmatprep.subr.bf16.mxu0 %v4688_v4  ;;  %v4747_v4 = vld [vmem:[#allocation2 + $0x4c8] sm:$0xff] }
 0xedd   :  { %8286 = vmatpush3.bf16.msra.mxu1 %v4664_v56  ;;  %v5045_v56 = vpack.c.bf16 %v4942_v24, %v4942_v24  ;;  %v4766_v24 = vld [vmem:[#allocation2 + $0x560] sm:$0xff] }
 0xede   :  { %8308 = vmatpush3.bf16.msra.mxu0 %v4680_v14  ;;  %8287 = vmatprep.subr.bf16.mxu1 %v4673_v22  ;;  %v4723_v14 = vld [vmem:[#allocation2 + $0x408] sm:$0xff] }
 0xedf   :  { %8309 = vmatprep.subr.bf16.mxu0 %v4689_v57  ;;  %v4739_v22 = vld [vmem:[#allocation2 + $0x488] sm:$0xff]  ;;  %v4732_v57 = vld [vmem:[#allocation2 + $0x450] sm:$0xff] }
 0xee1   :  { %8288 = vmatpush3.bf16.msra.mxu1 %v4665_v13  ;;  %v4740_v13 = vld [vmem:[#allocation2 + $0x490] sm:$0xff] }
 0xee2   :  { %8310 = vmatpush3.bf16.msra.mxu0 %v4681_v23  ;;  %8317 = vmatprep.subr.bf16.mxu1 %v4698_v41  ;;  %v4733_v23 = vld [vmem:[#allocation2 + $0x458] sm:$0xff] }
 0xee3   :  { %8339 = vmatprep.subr.bf16.mxu0 %v4714_v47  ;;  %v4749_v41 = vld [vmem:[#allocation2 + $0x4d8] sm:$0xff] }
 0xee4   :  { %5258 = vmatmul.mubr.bf16.vlgmr.msra.gmra.mrb[148].mxu1 %v5034_v34  ;;  %v4725_v47 = vld [vmem:[#allocation2 + $0x418] sm:$0xff]  ;;  %v4750_v34 = vld [vmem:[#allocation2 + $0x4e0] sm:$0xff] }
 0xee5   :  { %5298 = vmatmul.mubr.bf16.vlgmr.msra.gmra.mrb[152].mxu0 %v5036_v54  ;;  %8318 = vmatpush3.bf16.msra.mxu1 %v4690_v37  ;;  %v4726_v54 = vld [vmem:[#allocation2 + $0x420] sm:$0xff] }
 0xee6   :  { %8340 = vmatpush3.bf16.msra.mxu0 %v4706_v43  ;;  %8319 = vmatprep.subr.bf16.mxu1 %v4699_v53  ;;  %v4742_v37 = vld [vmem:[#allocation2 + $0x4a0] sm:$0xff]  ;;  %v4735_v43 = vld [vmem:[#allocation2 + $0x468] sm:$0xff] }
 0xee7   :  { %8341 = vmatprep.subr.bf16.mxu0 %v4715_v32  ;;  %5337 = vmatprep.mubr.bf16.mxu1 %v5039_v11  ;;  %v4751_v53 = vld [vmem:[#allocation2 + $0x4e8] sm:$0xff] }
 0xee8   :  { %5377 = vmatprep.mubr.bf16.mxu0 %v5041_v42  ;;  %v4591_v32 = vld [vmem:[%s14240_s21 + $0x28] sm:$0xff] }
 0xee9   :  { %8320 = vmatpush3.bf16.msra.mxu1 %v4691_v61  ;;  %v4727_v11 = vld [vmem:[#allocation2 + $0x428] sm:$0xff]  ;;  %v4736_v61 = vld [vmem:[#allocation2 + $0x470] sm:$0xff] }
 0xeea   :  { %8342 = vmatpush3.bf16.msra.mxu0 %v4707_v52  ;;  %8321 = vmatprep.subr.bf16.mxu1 %v4700_v58  ;;  %v4743_v42 = vld [vmem:[#allocation2 + $0x4a8] sm:$0xff]  ;;  %v4752_v52 = vld [vmem:[#allocation2 + $0x4f0] sm:$0xff]  ;;  %v4943_v58 = vcombine.high %v4591_v32, %v4591_v32 }
 0xeeb   :  { %8343 = vmatprep.subr.bf16.mxu0 %v4716_v15  ;;  %v4728_v15 = vld [vmem:[#allocation2 + $0x430] sm:$0xff] }
 0xeed   :  { %8322 = vmatpush3.bf16.msra.mxu1 %v4692_v17  ;;  %v4744_v17 = vld [vmem:[#allocation2 + $0x4b0] sm:$0xff] }
 0xeee   :  { %8344 = vmatpush3.bf16.msra.mxu0 %v4708_v60  ;;  %8323 = vmatprep.subr.bf16.mxu1 %v4701_v33  ;;  %v4737_v60 = vld [vmem:[#allocation2 + $0x478] sm:$0xff] }
 0xeef   :  { %8345 = vmatprep.subr.bf16.mxu0 %v4717_v45  ;;  %v4753_v33 = vld [vmem:[#allocation2 + $0x4f8] sm:$0xff]  ;;  %v12932_v45 = vrot.slane %v4591_v32, %v12869_v19 }
 0xef1   :  { %8324 = vmatpush3.bf16.msra.mxu1 %v4693_v25  ;;  %v12935_v25 = vrot.slane %v4943_v58, %v12869_v19 }
 0xef2   :  { %8346 = vmatpush3.bf16.msra.mxu0 %v4709_v1  ;;  %8325 = vmatprep.subr.bf16.mxu1 %v4702_v49  ;;  %v4729_v1 = vld [vmem:[#allocation2 + $0x438] sm:$0xff] }
 0xef3   :  { %8347 = vmatprep.subr.bf16.mxu0 %v4718_v48  ;;  %v4745_v49 = vld [vmem:[#allocation2 + $0x4b8] sm:$0xff]  ;;  %v4762_v48 = vld [vmem:[#allocation2 + $0x540] sm:$0xff]  ;;  %v5048_v32 = vpack.c.bf16 %v12935_v25, %v12935_v25 }
 0xef5   :  { %8326 = vmatpush3.bf16.msra.mxu1 %v4694_v59  ;;  %v4778_v59 = vld [vmem:[#allocation2 + $0x5c0] sm:$0xff] }
 0xef6   :  { %8348 = vmatpush3.bf16.msra.mxu0 %v4710_v44  ;;  %8327 = vmatprep.subr.bf16.mxu1 %v4703_v10  ;;  %v4958_v44 = vcombine.high %v12932_v45, %v12932_v45  ;;  %v4959_v10 = vcombine.high %v12935_v25, %v12935_v25  ;;  %v4788_v25 = vld [vmem:[#allocation2 + $0x610] sm:$0xff] }
 0xef7   :  { %8349 = vmatprep.subr.bf16.mxu0 %v4719_v35  ;;  %v5042_v35 = vpack.c.bf16 %v12917_v16, %v12917_v16  ;;  %v4780_v16 = vld [vmem:[#allocation2 + $0x5d0] sm:$0xff] }
 0xef8   :  { %v5047_v55 = vpack.c.bf16 %v4958_v44, %v4958_v44  ;;  %v4805_v44 = vld [vmem:[#allocation2 + $0x698] sm:$0xff] }
 0xef9   :  { %8328 = vmatpush3.bf16.msra.mxu1 %v4695_v30  ;;  %v5044_v30 = vpack.c.bf16 %v12920_v51, %v12920_v51  ;;  %v4756_v51 = vld [vmem:[#allocation2 + $0x510] sm:$0xff] }
 0xefa   :  { %8350 = vmatpush3.bf16.msra.mxu0 %v4711_v20  ;;  %8329 = vmatprep.subr.bf16.mxu1 %v4704_v29  ;;  %v4754_v20 = vld [vmem:[#allocation2 + $0x500] sm:$0xff]  ;;  %v4763_v29 = vld [vmem:[#allocation2 + $0x548] sm:$0xff] }
 0xefb   :  { %8351 = vmatprep.subr.bf16.mxu0 %v4720_v12  ;;  %v4779_v12 = vld [vmem:[#allocation2 + $0x5c8] sm:$0xff] }
 0xefd   :  { %8330 = vmatpush3.bf16.msra.mxu1 %v4696_v46  ;;  %v5049_v46 = vpack.c.bf16 %v4959_v10, %v4959_v10  ;;  %v4798_v10 = vld [vmem:[#allocation2 + $0x660] sm:$0xff] }
 0xefe   :  { %8352 = vmatpush3.bf16.msra.mxu0 %v4712_v36  ;;  %8331 = vmatprep.subr.bf16.mxu1 %v4705_v62  ;;  %v4755_v36 = vld [vmem:[#allocation2 + $0x508] sm:$0xff] }
 0xeff   :  { %8353 = vmatprep.subr.bf16.mxu0 %v4721_v7  ;;  %v4771_v62 = vld [vmem:[#allocation2 + $0x588] sm:$0xff]  ;;  %v4764_v7 = vld [vmem:[#allocation2 + $0x550] sm:$0xff] }
 0xf01   :  { %8332 = vmatpush3.bf16.msra.mxu1 %v4697_v21  ;;  %v4772_v21 = vld [vmem:[#allocation2 + $0x590] sm:$0xff] }
 0xf02   :  { %8354 = vmatpush3.bf16.msra.mxu0 %v4713_v63  ;;  %8361 = vmatprep.subr.bf16.mxu1 %v4730_v26  ;;  %v4765_v63 = vld [vmem:[#allocation2 + $0x558] sm:$0xff] }
 0xf03   :  { %8383 = vmatprep.subr.bf16.mxu0 %v4746_v2  ;;  %v4781_v26 = vld [vmem:[#allocation2 + $0x5d8] sm:$0xff] }
 0xf04   :  { %5338 = vmatmul.mubr.bf16.vlgmr.msra.gmra.mrb[152].mxu1 %v5038_v38  ;;  %v4757_v2 = vld [vmem:[#allocation2 + $0x518] sm:$0xff]  ;;  %v4782_v38 = vld [vmem:[#allocation2 + $0x5e0] sm:$0xff] }
 0xf05   :  { %5378 = vmatmul.mubr.bf16.vlgmr.msra.gmra.mrb[156].mxu0 %v5040_v3  ;;  %8362 = vmatpush3.bf16.msra.mxu1 %v4722_v0  ;;  %v4758_v3 = vld [vmem:[#allocation2 + $0x520] sm:$0xff] }
 0xf06   :  { %8384 = vmatpush3.bf16.msra.mxu0 %v4738_v39  ;;  %8363 = vmatprep.subr.bf16.mxu1 %v4731_v5  ;;  %v4774_v0 = vld [vmem:[#allocation2 + $0x5a0] sm:$0xff]  ;;  %v4767_v39 = vld [vmem:[#allocation2 + $0x568] sm:$0xff] }
 0xf07   :  { %8385 = vmatprep.subr.bf16.mxu0 %v4747_v4  ;;  %5417 = vmatprep.mubr.bf16.mxu1 %v5043_v6  ;;  %v4783_v5 = vld [vmem:[#allocation2 + $0x5e8] sm:$0xff]  ;;  %v4592_v4 = vld [vmem:[%s14240_s21 + $0x30] sm:$0xff] }
 0xf08   :  { %5457 = vmatprep.mubr.bf16.mxu0 %v5045_v56  ;;  %v4759_v6 = vld [vmem:[#allocation2 + $0x528] sm:$0xff] }
 0xf09   :  { %8364 = vmatpush3.bf16.msra.mxu1 %v4723_v14  ;;  %v4775_v56 = vld [vmem:[#allocation2 + $0x5a8] sm:$0xff]  ;;  %v4768_v14 = vld [vmem:[#allocation2 + $0x570] sm:$0xff] }
 0xf0a   :  { %8386 = vmatpush3.bf16.msra.mxu0 %v4739_v22  ;;  %8365 = vmatprep.subr.bf16.mxu1 %v4732_v57  ;;  %v4784_v22 = vld [vmem:[#allocation2 + $0x5f0] sm:$0xff]  ;;  %v4960_v57 = vcombine.high %v4592_v4, %v4592_v4 }
 0xf0b   :  { %8387 = vmatprep.subr.bf16.mxu0 %v4748_v31  ;;  %v4760_v31 = vld [vmem:[#allocation2 + $0x530] sm:$0xff] }
 0xf0d   :  { %8366 = vmatpush3.bf16.msra.mxu1 %v4724_v9  ;;  %v4776_v9 = vld [vmem:[#allocation2 + $0x5b0] sm:$0xff] }
 0xf0e   :  { %8388 = vmatpush3.bf16.msra.mxu0 %v4740_v13  ;;  %8367 = vmatprep.subr.bf16.mxu1 %v4733_v23  ;;  %v4769_v13 = vld [vmem:[#allocation2 + $0x578] sm:$0xff] }
 0xf0f   :  { %8389 = vmatprep.subr.bf16.mxu0 %v4749_v41  ;;  %v4785_v23 = vld [vmem:[#allocation2 + $0x5f8] sm:$0xff]  ;;  %v12947_v41 = vrot.slane %v4592_v4, %v12869_v19  ;;  %v4818_v4 = vld [vmem:[#allocation2 + $0x700] sm:$0xff] }
 0xf11   :  { %8368 = vmatpush3.bf16.msra.mxu1 %v4725_v47  ;;  %v12950_v47 = vrot.slane %v4960_v57, %v12869_v19 }
 0xf12   :  { %8390 = vmatpush3.bf16.msra.mxu0 %v4741_v28  ;;  %8369 = vmatprep.subr.bf16.mxu1 %v4734_v40  ;;  %v4761_v28 = vld [vmem:[#allocation2 + $0x538] sm:$0xff] }
 0xf13   :  { %8391 = vmatprep.subr.bf16.mxu0 %v4750_v34  ;;  %v4777_v40 = vld [vmem:[#allocation2 + $0x5b8] sm:$0xff]  ;;  %v4794_v34 = vld [vmem:[#allocation2 + $0x640] sm:$0xff] }
 0xf15   :  { %8370 = vmatpush3.bf16.msra.mxu1 %v4726_v54  ;;  %v4810_v54 = vld [vmem:[#allocation2 + $0x6c0] sm:$0xff] }
 0xf16   :  { %8392 = vmatpush3.bf16.msra.mxu0 %v4742_v37  ;;  %8371 = vmatprep.subr.bf16.mxu1 %v4735_v43  ;;  %v4975_v37 = vcombine.high %v12947_v41, %v12947_v41  ;;  %v4976_v43 = vcombine.high %v12950_v47, %v12950_v47 }
 0xf17   :  { %8393 = vmatprep.subr.bf16.mxu0 %v4751_v53  ;;  %v5046_v53 = vpack.c.bf16 %v12932_v45, %v12932_v45  ;;  %v4812_v45 = vld [vmem:[#allocation2 + $0x6d0] sm:$0xff] }
 0xf18   :  { %v5051_v58 = vpack.c.bf16 %v4975_v37, %v4975_v37  ;;  %v4830_v37 = vld [vmem:[#allocation2 + $0x760] sm:$0xff] }
 0xf19   :  { %8372 = vmatpush3.bf16.msra.mxu1 %v4727_v11  ;;  %v4786_v11 = vld [vmem:[#allocation2 + $0x600] sm:$0xff] }
 0xf1a   :  { %8394 = vmatpush3.bf16.msra.mxu0 %v4743_v42  ;;  %8373 = vmatprep.subr.bf16.mxu1 %v4736_v61  ;;  %v4802_v42 = vld [vmem:[#allocation2 + $0x680] sm:$0xff]  ;;  %v4795_v61 = vld [vmem:[#allocation2 + $0x648] sm:$0xff] }
 0xf1b   :  { %8395 = vmatprep.subr.bf16.mxu0 %v4752_v52  ;;  %v4811_v52 = vld [vmem:[#allocation2 + $0x6c8] sm:$0xff] }
 0xf1d   :  { %8374 = vmatpush3.bf16.msra.mxu1 %v4728_v15  ;;  %v5053_v15 = vpack.c.bf16 %v4976_v43, %v4976_v43  ;;  %v4846_v43 = vld [vmem:[#allocation2 + $0x7e0] sm:$0xff] }
 0xf1e   :  { %8396 = vmatpush3.bf16.msra.mxu0 %v4744_v17  ;;  %8375 = vmatprep.subr.bf16.mxu1 %v4737_v60  ;;  %v4787_v17 = vld [vmem:[#allocation2 + $0x608] sm:$0xff] }
 0xf1f   :  { %8397 = vmatprep.subr.bf16.mxu0 %v4753_v33  ;;  %v4803_v60 = vld [vmem:[#allocation2 + $0x688] sm:$0xff]  ;;  %v4796_v33 = vld [vmem:[#allocation2 + $0x650] sm:$0xff] }
 0xf21   :  { %8376 = vmatpush3.bf16.msra.mxu1 %v4729_v1  ;;  %v4804_v1 = vld [vmem:[#allocation2 + $0x690] sm:$0xff] }
 0xf22   :  { %8398 = vmatpush3.bf16.msra.mxu0 %v4745_v49  ;;  %8405 = vmatprep.subr.bf16.mxu1 %v4762_v48  ;;  %v4797_v49 = vld [vmem:[#allocation2 + $0x658] sm:$0xff] }
 0xf23   :  { %8427 = vmatprep.subr.bf16.mxu0 %v4778_v59  ;;  %v4813_v48 = vld [vmem:[#allocation2 + $0x6d8] sm:$0xff] }
 0xf24   :  { %5418 = vmatmul.mubr.bf16.vlgmr.msra.gmra.mrb[156].mxu1 %v5042_v35  ;;  %v4789_v59 = vld [vmem:[#allocation2 + $0x618] sm:$0xff]  ;;  %v4814_v35 = vld [vmem:[#allocation2 + $0x6e0] sm:$0xff] }
 0xf25   :  { %5458 = vmatmul.mubr.bf16.vlgmr.msra.gmra.mrb[160].mxu0 %v5044_v30  ;;  %8406 = vmatpush3.bf16.msra.mxu1 %v4754_v20  ;;  %v4790_v30 = vld [vmem:[#allocation2 + $0x620] sm:$0xff] }
 0xf26   :  { %8428 = vmatpush3.bf16.msra.mxu0 %v4770_v27  ;;  %8407 = vmatprep.subr.bf16.mxu1 %v4763_v29  ;;  %v4806_v20 = vld [vmem:[#allocation2 + $0x6a0] sm:$0xff]  ;;  %v4799_v27 = vld [vmem:[#allocation2 + $0x668] sm:$0xff] }
 0xf27   :  { %8429 = vmatprep.subr.bf16.mxu0 %v4779_v12  ;;  %5497 = vmatprep.mubr.bf16.mxu1 %v5047_v55  ;;  %v4815_v29 = vld [vmem:[#allocation2 + $0x6e8] sm:$0xff]  ;;  %v4593_v12 = vld [vmem:[%s14240_s21 + $0x38] sm:$0xff] }
 0xf28   :  { %5537 = vmatprep.mubr.bf16.mxu0 %v5049_v46  ;;  %v4791_v55 = vld [vmem:[#allocation2 + $0x628] sm:$0xff] }
 0xf29   :  { %8408 = vmatpush3.bf16.msra.mxu1 %v4755_v36  ;;  %v4807_v46 = vld [vmem:[#allocation2 + $0x6a8] sm:$0xff]  ;;  %v4800_v36 = vld [vmem:[#allocation2 + $0x670] sm:$0xff] }
 0xf2a   :  { %8430 = vmatpush3.bf16.msra.mxu0 %v4771_v62  ;;  %8409 = vmatprep.subr.bf16.mxu1 %v4764_v7  ;;  %v4816_v62 = vld [vmem:[#allocation2 + $0x6f0] sm:$0xff]  ;;  %v4977_v7 = vcombine.high %v4593_v12, %v4593_v12 }
 0xf2b   :  { %8431 = vmatprep.subr.bf16.mxu0 %v4780_v16  ;;  %v4792_v16 = vld [vmem:[#allocation2 + $0x630] sm:$0xff] }
 0xf2d   :  { %8410 = vmatpush3.bf16.msra.mxu1 %v4756_v51  ;;  %v4808_v51 = vld [vmem:[#allocation2 + $0x6b0] sm:$0xff] }
 0xf2e   :  { %8432 = vmatpush3.bf16.msra.mxu0 %v4772_v21  ;;  %8411 = vmatprep.subr.bf16.mxu1 %v4765_v63  ;;  %v4801_v21 = vld [vmem:[#allocation2 + $0x678] sm:$0xff] }
 0xf2f   :  { %8433 = vmatprep.subr.bf16.mxu0 %v4781_v26  ;;  %v4817_v63 = vld [vmem:[#allocation2 + $0x6f8] sm:$0xff]  ;;  %v12962_v26 = vrot.slane %v4593_v12, %v12869_v19 }
 0xf31   :  { %8412 = vmatpush3.bf16.msra.mxu1 %v4757_v2  ;;  %v12965_v2 = vrot.slane %v4977_v7, %v12869_v19  ;;  %v5052_v19 = vpack.c.bf16 %v12950_v47, %v12950_v47  ;;  %v4836_v47 = vld [vmem:[#allocation2 + $0x790] sm:$0xff] }
 0xf32   :  { %8434 = vmatpush3.bf16.msra.mxu0 %v4773_v50  ;;  %8413 = vmatprep.subr.bf16.mxu1 %v4766_v24  ;;  %v4793_v50 = vld [vmem:[#allocation2 + $0x638] sm:$0xff] }
 0xf33   :  { %8435 = vmatprep.subr.bf16.mxu0 %v4782_v38  ;;  %v4809_v24 = vld [vmem:[#allocation2 + $0x6b8] sm:$0xff]  ;;  %v4826_v38 = vld [vmem:[#allocation2 + $0x740] sm:$0xff] }
 0xf35   :  { %8414 = vmatpush3.bf16.msra.mxu1 %v4758_v3  ;;  %v4842_v3 = vld [vmem:[#allocation2 + $0x7c0] sm:$0xff] }
 0xf36   :  { %8436 = vmatpush3.bf16.msra.mxu0 %v4774_v0  ;;  %8415 = vmatprep.subr.bf16.mxu1 %v4767_v39  ;;  %v4992_v0 = vcombine.high %v12962_v26, %v12962_v26  ;;  %v4993_v39 = vcombine.high %v12965_v2, %v12965_v2 }
 0xf37   :  { %8437 = vmatprep.subr.bf16.mxu0 %v4783_v5  ;;  %v5050_v5 = vpack.c.bf16 %v12947_v41, %v12947_v41  ;;  %v4820_v41 = vld [vmem:[#allocation2 + $0x710] sm:$0xff] }
 0xf38   :  { %v5057_v57 = vpack.c.bf16 %v4993_v39, %v4993_v39  ;;  %v9452_v39 = vld [vmem:[%s14243_s4] ss:$16 sps:$4 sm:$0xff]  }
 0xf39   :  { %8416 = vmatpush3.bf16.msra.mxu1 %v4759_v6  ;;  %v4834_v6 = vld [vmem:[#allocation2 + $0x780] sm:$0xff] }
 0xf3a   :  { %8438 = vmatpush3.bf16.msra.mxu0 %v4775_v56  ;;  %8417 = vmatprep.subr.bf16.mxu1 %v4768_v14  ;;  %v4827_v56 = vld [vmem:[#allocation2 + $0x748] sm:$0xff] }
 0xf3b   :  { %8439 = vmatprep.subr.bf16.mxu0 %v4784_v22  ;;  %v4843_v14 = vld [vmem:[#allocation2 + $0x7c8] sm:$0xff]  ;;  %v5055_v22 = vpack.c.bf16 %v4992_v0, %v4992_v0 }
 0xf3d   :  { %8418 = vmatpush3.bf16.msra.mxu1 %v4760_v31  ;;  %v4819_v31 = vld [vmem:[#allocation2 + $0x708] sm:$0xff] }
 0xf3e   :  { %8440 = vmatpush3.bf16.msra.mxu0 %v4776_v9  ;;  %8419 = vmatprep.subr.bf16.mxu1 %v4769_v13  ;;  %v4835_v9 = vld [vmem:[#allocation2 + $0x788] sm:$0xff]  ;;  %v4828_v13 = vld [vmem:[#allocation2 + $0x750] sm:$0xff] }
 0xf3f   :  { %8441 = vmatprep.subr.bf16.mxu0 %v4785_v23  ;;  %v4844_v23 = vld [vmem:[#allocation2 + $0x7d0] sm:$0xff] }
 0xf41   :  { %8420 = vmatpush3.bf16.msra.mxu1 %v4761_v28  ;;  %v4829_v28 = vld [vmem:[#allocation2 + $0x758] sm:$0xff] }
 0xf42   :  { %8442 = vmatpush3.bf16.msra.mxu0 %v4777_v40  ;;  %8449 = vmatprep.subr.bf16.mxu1 %v4794_v34  ;;  %v4845_v40 = vld [vmem:[#allocation2 + $0x7d8] sm:$0xff] }
 0xf43   :  { %8471 = vmatprep.subr.bf16.mxu0 %v4810_v54  ;;  %v4821_v34 = vld [vmem:[#allocation2 + $0x718] sm:$0xff] }
 0xf44   :  { %5498 = vmatmul.mubr.bf16.vlgmr.msra.gmra.mrb[160].mxu1 %v5046_v53  ;;  %v4837_v54 = vld [vmem:[#allocation2 + $0x798] sm:$0xff]  ;;  %v4822_v53 = vld [vmem:[#allocation2 + $0x720] sm:$0xff] }
 0xf45   :  { %5538 = vmatmul.mubr.bf16.vlgmr.msra.gmra.mrb[164].mxu0 %v5048_v32  ;;  %8450 = vmatpush3.bf16.msra.mxu1 %v4786_v11  ;;  %v4838_v32 = vld [vmem:[#allocation2 + $0x7a0] sm:$0xff]  ;;  %v4831_v11 = vld [vmem:[#allocation2 + $0x768] sm:$0xff] }
 0xf46   :  { %8472 = vmatpush3.bf16.msra.mxu0 %v4802_v42  ;;  %8451 = vmatprep.subr.bf16.mxu1 %v4795_v61  ;;  %v4847_v42 = vld [vmem:[#allocation2 + $0x7e8] sm:$0xff] }
 0xf47   :  { %8473 = vmatprep.subr.bf16.mxu0 %v4811_v52  ;;  %5577 = vmatprep.mubr.bf16.mxu1 %v5051_v58  ;;  %v4823_v61 = vld [vmem:[#allocation2 + $0x728] sm:$0xff] }
 0xf48   :  { %5617 = vmatprep.mubr.bf16.mxu0 %v5053_v15  ;;  %v4839_v52 = vld [vmem:[#allocation2 + $0x7a8] sm:$0xff] }
 0xf49   :  { %8452 = vmatpush3.bf16.msra.mxu1 %v4787_v17  ;;  %v4832_v17 = vld [vmem:[#allocation2 + $0x770] sm:$0xff] }
 0xf4a   :  { %8474 = vmatpush3.bf16.msra.mxu0 %v4803_v60  ;;  %8453 = vmatprep.subr.bf16.mxu1 %v4796_v33  ;;  %v4848_v60 = vld [vmem:[#allocation2 + $0x7f0] sm:$0xff]  ;;  %v7960_v33 = vld [vmem:[%s14242_s3] ss:$0 sm:$0xff] }
 0xf4b   :  { %8475 = vmatprep.subr.bf16.mxu0 %v4812_v45 }
 0xf4d   :  { %8454 = vmatpush3.bf16.msra.mxu1 %v4788_v25 }
 0xf4e   :  { %8476 = vmatpush3.bf16.msra.mxu0 %v4804_v1  ;;  %8455 = vmatprep.subr.bf16.mxu1 %v4797_v49 }
 0xf4f   :  { %8477 = vmatprep.subr.bf16.mxu0 %v4813_v48 }
 0xf51   :  { %8456 = vmatpush3.bf16.msra.mxu1 %v4789_v59 }
 0xf52   :  { %8478 = vmatpush3.bf16.msra.mxu0 %v4805_v44  ;;  %8457 = vmatprep.subr.bf16.mxu1 %v4798_v10 }
 0xf53   :  { %8479 = vmatprep.subr.bf16.mxu0 %v4814_v35  ;;  %v4824_v35 = vld [vmem:[#allocation2 + $0x730] sm:$0xff] }
 0xf55   :  { %8458 = vmatpush3.bf16.msra.mxu1 %v4790_v30  ;;  %v4840_v30 = vld [vmem:[#allocation2 + $0x7b0] sm:$0xff] }
 0xf56   :  { %8480 = vmatpush3.bf16.msra.mxu0 %v4806_v20  ;;  %8459 = vmatprep.subr.bf16.mxu1 %v4799_v27  ;;  %v4833_v27 = vld [vmem:[#allocation2 + $0x778] sm:$0xff] }
 0xf57   :  { %8481 = vmatprep.subr.bf16.mxu0 %v4815_v29  ;;  %v4849_v29 = vld [vmem:[#allocation2 + $0x7f8] sm:$0xff] }
 0xf59   :  { %8460 = vmatpush3.bf16.msra.mxu1 %v4791_v55  ;;  %v4825_v55 = vld [vmem:[#allocation2 + $0x738] sm:$0xff] }
 0xf5a   :  { %8482 = vmatpush3.bf16.msra.mxu0 %v4807_v46  ;;  %8461 = vmatprep.subr.bf16.mxu1 %v4800_v36  ;;  %v4841_v46 = vld [vmem:[#allocation2 + $0x7b8] sm:$0xff]  ;;  %v5054_v36 = vpack.c.bf16 %v12962_v26, %v12962_v26 }
 0xf5b   :  { %8483 = vmatprep.subr.bf16.mxu0 %v4816_v62  ;;  %v5056_v62 = vpack.c.bf16 %v12965_v2, %v12965_v2 }
 0xf5d   :  { %8462 = vmatpush3.bf16.msra.mxu1 %v4792_v16 }
 0xf5e   :  { %8484 = vmatpush3.bf16.msra.mxu0 %v4808_v51  ;;  %8463 = vmatprep.subr.bf16.mxu1 %v4801_v21 }
 0xf5f   :  { %8485 = vmatprep.subr.bf16.mxu0 %v4817_v63 }
 0xf61   :  { %8464 = vmatpush3.bf16.msra.mxu1 %v4793_v50 }
 0xf62   :  { %8486 = vmatpush3.bf16.msra.mxu0 %v4809_v24  ;;  %8493 = vmatprep.subr.bf16.mxu1 %v4826_v38 }
 0xf63   :  { %8515 = vmatprep.subr.bf16.mxu0 %v4842_v3 }
 0xf64   :  { %5578 = vmatmul.mubr.bf16.vlgmr.msra.gmra.mrb[164].mxu1 %v5050_v5  ;;  %v9454_v5 = vld [vmem:[%s14243_s4 + $0x4] ss:$16 sps:$4 sm:$0xff]  }
 0xf65   :  { %5618 = vmatmul.mubr.bf16.vlgmr.msra.gmra.mrb[168].mxu0 %v5052_v19  ;;  %8494 = vmatpush3.bf16.msra.mxu1 %v4818_v4  ;;  %v9455_v19 = vld [vmem:[%s14243_s4 + $0x8] ss:$16 sps:$4 sm:$0xff]   ;;  %v9457_v4 = vld [vmem:[%s14243_s4 + $0xc] ss:$16 sps:$4 sm:$0xff]  }
 0xf66   :  { %8516 = vmatpush3.bf16.msra.mxu0 %v4834_v6  ;;  %8495 = vmatprep.subr.bf16.mxu1 %v4827_v56  ;;  %v9460_v6 = vld [vmem:[%s14243_s4 + $0x24] ss:$16 sps:$4 sm:$0xff]   ;;  %v9463_v56 = vld [vmem:[%s14243_s4 + $0x2c] ss:$16 sps:$4 sm:$0xff]  }
 0xf67   :  { %8517 = vmatprep.subr.bf16.mxu0 %v4843_v14  ;;  %5657 = vmatprep.mubr.bf16.mxu1 %v5055_v22  ;;  %v9458_v14 = vld [vmem:[%s14243_s4 + $0x20] ss:$16 sps:$4 sm:$0xff]   ;;  %v9461_v22 = vld [vmem:[%s14243_s4 + $0x28] ss:$16 sps:$4 sm:$0xff]  }
 0xf68   :  { %5697 = vmatprep.mubr.bf16.mxu0 %v5057_v57  ;;  %v9466_v57 = vld [vmem:[%s14243_s4 + $0x44] ss:$16 sps:$4 sm:$0xff]  }
 0xf69   :  { %8496 = vmatpush3.bf16.msra.mxu1 %v4819_v31  ;;  %v9469_v31 = vld [vmem:[%s14243_s4 + $0x4c] ss:$16 sps:$4 sm:$0xff]  }
 0xf6a   :  { %8518 = vmatpush3.bf16.msra.mxu0 %v4835_v9  ;;  %8497 = vmatprep.subr.bf16.mxu1 %v4828_v13  ;;  %v9464_v9 = vld [vmem:[%s14243_s4 + $0x40] ss:$16 sps:$4 sm:$0xff]   ;;  %v9467_v13 = vld [vmem:[%s14243_s4 + $0x48] ss:$16 sps:$4 sm:$0xff]  }
 0xf6b   :  { %8519 = vmatprep.subr.bf16.mxu0 %v4844_v23  ;;  %v9472_v23 = vld [vmem:[%s14243_s4 + $0x64] ss:$16 sps:$4 sm:$0xff]  }
 0xf6d   :  { %8498 = vmatpush3.bf16.msra.mxu1 %v4820_v41  ;;  %v9475_v41 = vld [vmem:[%s14243_s4 + $0x6c] ss:$16 sps:$4 sm:$0xff]  }
 0xf6e   :  { %8520 = vmatpush3.bf16.msra.mxu0 %v4836_v47  ;;  %8499 = vmatprep.subr.bf16.mxu1 %v4829_v28  ;;  %v9470_v47 = vld [vmem:[%s14243_s4 + $0x60] ss:$16 sps:$4 sm:$0xff]   ;;  %v9473_v28 = vld [vmem:[%s14243_s4 + $0x68] ss:$16 sps:$4 sm:$0xff]  }
 0xf6f   :  { %8521 = vmatprep.subr.bf16.mxu0 %v4845_v40  ;;  %v9478_v40 = vld [vmem:[%s14243_s4 + $0x84] ss:$16 sps:$4 sm:$0xff]  }
 0xf71   :  { %8500 = vmatpush3.bf16.msra.mxu1 %v4821_v34  ;;  %v9481_v34 = vld [vmem:[%s14243_s4 + $0x8c] ss:$16 sps:$4 sm:$0xff]  }
 0xf72   :  { %8522 = vmatpush3.bf16.msra.mxu0 %v4837_v54  ;;  %8501 = vmatprep.subr.bf16.mxu1 %v4830_v37  ;;  %v9476_v54 = vld [vmem:[%s14243_s4 + $0x80] ss:$16 sps:$4 sm:$0xff]   ;;  %v9479_v37 = vld [vmem:[%s14243_s4 + $0x88] ss:$16 sps:$4 sm:$0xff]  }
 0xf73   :  { %8523 = vmatprep.subr.bf16.mxu0 %v4846_v43  ;;  %v9484_v43 = vld [vmem:[%s14243_s4 + $0xa4] ss:$16 sps:$4 sm:$0xff]  }
 0xf75   :  { %8502 = vmatpush3.bf16.msra.mxu1 %v4822_v53  ;;  %v9482_v53 = vld [vmem:[%s14243_s4 + $0xa0] ss:$16 sps:$4 sm:$0xff]  }
 0xf76   :  { %8524 = vmatpush3.bf16.msra.mxu0 %v4838_v32  ;;  %8503 = vmatprep.subr.bf16.mxu1 %v4831_v11  ;;  %v9487_v32 = vld [vmem:[%s14243_s4 + $0xac] ss:$16 sps:$4 sm:$0xff]  }
 0xf77   :  { %8525 = vmatprep.subr.bf16.mxu0 %v4847_v42  ;;  %v8201_v58 = vpop.f32.mrb[140].mxu1 }
 0xf78   :  { %v8223_v15 = vpop.f32.mrb[144].mxu0  ;;  %v8202_v45 = vpop.f32.mrb[141].mxu1 }
 0xf79   :  { %v8224_v25 = vpop.f32.mrb[145].mxu0  ;;  %v8203_v1 = vadd.f32 %v8202_v45, %v8201_v58  ;;  %v8204_v48 = vpop.f32.mrb[142].mxu1  ;;  %8504 = vmatpush3.bf16.msra.mxu1 %v4823_v61  ;;  %v9485_v61 = vld [vmem:[%s14243_s4 + $0xa8] ss:$16 sps:$4 sm:$0xff]  }
 0xf7a   :  { %v8225_v49 = vadd.f32 %v8224_v25, %v8223_v15  ;;  %v8226_v59 = vpop.f32.mrb[146].mxu0  ;;  %8526 = vmatpush3.bf16.msra.mxu0 %v4839_v52  ;;  %v8205_v44 = vpop.f32.mrb[143].mxu1  ;;  %8505 = vmatprep.subr.bf16.mxu1 %v4832_v17  ;;  %v9490_v15 = vld [vmem:[%s14243_s4 + $0xc4] ss:$16 sps:$4 sm:$0xff]   ;;  %v9488_v25 = vld [vmem:[%s14243_s4 + $0xc0] ss:$16 sps:$4 sm:$0xff]  }
 0xf7b   :  { %v8227_v10 = vpop.f32.mrb[147].mxu0  ;;  %8527 = vmatprep.subr.bf16.mxu0 %v4848_v60  ;;  %v5100_v20 = vadd.f32 %v8203_v1, %v7960_v33  ;;  %v9493_v48 = vld [vmem:[%s14243_s4 + $0xcc] ss:$16 sps:$4 sm:$0xff]   ;;  %v9491_v44 = vld [vmem:[%s14243_s4 + $0xc8] ss:$16 sps:$4 sm:$0xff]  }
 0xf7c   :  { %v9496_v10 = vld [vmem:[%s14243_s4 + $0xe4] ss:$16 sps:$4 sm:$0xff]  }
 0xf7d   :  { %v5140_v12 = vadd.f32 %v8225_v49, %v5100_v20  ;;  %8506 = vmatpush3.bf16.msra.mxu1 %v4824_v35  ;;  %v9497_v20 = vld [vmem:[%s14243_s4 + $0xe8] ss:$16 sps:$4 sm:$0xff]  }
 0xf7e   :  { %8528 = vmatpush3.bf16.msra.mxu0 %v4840_v30  ;;  %8507 = vmatprep.subr.bf16.mxu1 %v4833_v27  ;;  %v9494_v30 = vld [vmem:[%s14243_s4 + $0xe0] ss:$16 sps:$4 sm:$0xff]   ;;  %v9499_v27 = vld [vmem:[%s14243_s4 + $0xec] ss:$16 sps:$4 sm:$0xff]  }
 0xf7f   :  { %8529 = vmatprep.subr.bf16.mxu0 %v4849_v29  ;;  %v5772_v29 = vpack.c.bf16 %v12864_v8, %v12864_v8  ;;  %v9506_v8 = vld [vmem:[%s14244_s27 + $0x20] ss:$16 sps:$4 sm:$0xff]  }
 0xf81   :  { %8508 = vmatpush3.bf16.msra.mxu1 %v4825_v55  ;;  %v9500_v55 = vld [vmem:[%s14244_s27] ss:$16 sps:$4 sm:$0xff]  }
 0xf82   :  { %8530 = vmatpush3.bf16.msra.mxu0 %v4841_v46  ;;  %5933 = vmatprep.subr.bf16.mxu1 %v9454_v5  ;;  %v9505_v46 = vld [vmem:[%s14244_s27 + $0xc] ss:$16 sps:$4 sm:$0xff]   ;;  %v9527_v5 = vld [vmem:[%s14244_s27 + $0x88] ss:$16 sps:$4 sm:$0xff]  }
 0xf83   :  { %5974 = vmatprep.subr.bf16.mxu0 %v9457_v4  ;;  %v9535_v4 = vld [vmem:[%s14244_s27 + $0xac] ss:$16 sps:$4 sm:$0xff]  }
 0xf84   :  { %5658 = vmatmul.mubr.bf16.vlgmr.msra.gmra.mrb[168].mxu1 %v5054_v36  ;;  %v9508_v36 = vld [vmem:[%s14244_s27 + $0x24] ss:$16 sps:$4 sm:$0xff]  }
 0xf85   :  { %5698 = vmatmul.mubr.bf16.vlgmr.msra.gmra.mrb[172].mxu0 %v5056_v62  ;;  %5965 = vmatprep.mubr.bf16.mxu1 %v13667_v18  ;;  %v9503_v62 = vld [vmem:[%s14244_s27 + $0x8] ss:$16 sps:$4 sm:$0xff]  }
 0xf86   :  { %6006 = vmatprep.mubr.bf16.mxu0 %v13667_v18  ;;  %5934 = vmatpush1.bf16.msra.mxu1 %v9452_v39  ;;  %v9524_v39 = vld [vmem:[%s14244_s27 + $0x80] ss:$16 sps:$4 sm:$0xff]  }
 0xf87   :  { %5975 = vmatpush1.bf16.msra.mxu0 %v9455_v19  ;;  %5935 = vmatprep.subr.bf16.mxu1 %v9460_v6  ;;  %v9532_v19 = vld [vmem:[%s14244_s27 + $0xa4] ss:$16 sps:$4 sm:$0xff]  }
 0xf88   :  { %5976 = vmatprep.subr.bf16.mxu0 %v9463_v56 }
 0xf8a   :  { %5936 = vmatpush1.bf16.msra.mxu1 %v9458_v14  ;;  %v9530_v14 = vld [vmem:[%s14244_s27 + $0xa0] ss:$16 sps:$4 sm:$0xff]  }
 0xf8b   :  { %5977 = vmatpush1.bf16.msra.mxu0 %v9461_v22  ;;  %5937 = vmatprep.subr.bf16.mxu1 %v9466_v57  ;;  %v9533_v22 = vld [vmem:[%s14244_s27 + $0xa8] ss:$16 sps:$4 sm:$0xff]  }
 0xf8c   :  { %5978 = vmatprep.subr.bf16.mxu0 %v9469_v31 }
 0xf8e   :  { %5938 = vmatpush1.bf16.msra.mxu1 %v9464_v9 }
 0xf8f   :  { %5979 = vmatpush1.bf16.msra.mxu0 %v9467_v13  ;;  %5939 = vmatprep.subr.bf16.mxu1 %v9472_v23 }
 0xf90   :  { %5980 = vmatprep.subr.bf16.mxu0 %v9475_v41 }
 0xf92   :  { %5940 = vmatpush1.bf16.msra.mxu1 %v9470_v47 }
 0xf93   :  { %5981 = vmatpush1.bf16.msra.mxu0 %v9473_v28  ;;  %5941 = vmatprep.subr.bf16.mxu1 %v9478_v40  ;;  %v9538_v40 = vld [vmem:[%s14244_s27 + $0xc4] ss:$16 sps:$4 sm:$0xff]  }
 0xf94   :  { %5982 = vmatprep.subr.bf16.mxu0 %v9481_v34  ;;  %v9541_v34 = vld [vmem:[%s14244_s27 + $0xcc] ss:$16 sps:$4 sm:$0xff]  }
 0xf96   :  { %5942 = vmatpush1.bf16.msra.mxu1 %v9476_v54 }
 0xf97   :  { %v8245_v7 = vpop.f32.mrb[144].mxu1  ;;  %5983 = vmatpush1.bf16.msra.mxu0 %v9479_v37  ;;  %5943 = vmatprep.subr.bf16.mxu1 %v9484_v43  ;;  %v9536_v37 = vld [vmem:[%s14244_s27 + $0xc0] ss:$16 sps:$4 sm:$0xff]   ;;  %v9539_v43 = vld [vmem:[%s14244_s27 + $0xc8] ss:$16 sps:$4 sm:$0xff]  }
 0xf98   :  { %v8267_v16 = vpop.f32.mrb[148].mxu0  ;;  %v8246_v51 = vpop.f32.mrb[145].mxu1  ;;  %5984 = vmatprep.subr.bf16.mxu0 %v9487_v32  ;;  %v9544_v32 = vld [vmem:[%s14244_s27 + $0xe4] ss:$16 sps:$4 sm:$0xff]  }
 0xf99   :  { %v8268_v21 = vpop.f32.mrb[149].mxu0  ;;  %v8247_v63 = vadd.f32 %v8246_v51, %v8245_v7  ;;  %v8248_v2 = vpop.f32.mrb[146].mxu1  ;;  %v9511_v7 = vld [vmem:[%s14244_s27 + $0x2c] ss:$16 sps:$4 sm:$0xff]   ;;  %v9509_v51 = vld [vmem:[%s14244_s27 + $0x28] ss:$16 sps:$4 sm:$0xff]  }
 0xf9a   :  { %v8269_v26 = vadd.f32 %v8268_v21, %v8267_v16  ;;  %v8270_v50 = vpop.f32.mrb[150].mxu0  ;;  %v8249_v24 = vpop.f32.mrb[147].mxu1  ;;  %5944 = vmatpush1.bf16.msra.mxu1 %v9482_v53  ;;  %v9514_v16 = vld [vmem:[%s14244_s27 + $0x44] ss:$16 sps:$4 sm:$0xff]   ;;  %v9517_v21 = vld [vmem:[%s14244_s27 + $0x4c] ss:$16 sps:$4 sm:$0xff]  }
 0xf9b   :  { %v8271_v38 = vpop.f32.mrb[151].mxu0  ;;  %v5180_v3 = vadd.f32 %v8247_v63, %v5140_v12  ;;  %5985 = vmatpush1.bf16.msra.mxu0 %v9485_v61  ;;  %5945 = vmatprep.subr.bf16.mxu1 %v9490_v15  ;;  %v9502_v12 = vld [vmem:[%s14244_s27 + $0x4] ss:$16 sps:$4 sm:$0xff]   ;;  %v9512_v63 = vld [vmem:[%s14244_s27 + $0x40] ss:$16 sps:$4 sm:$0xff]  }
 0xf9c   :  { %5986 = vmatprep.subr.bf16.mxu0 %v9493_v48  ;;  %v9515_v2 = vld [vmem:[%s14244_s27 + $0x48] ss:$16 sps:$4 sm:$0xff]   ;;  %v9523_v50 = vld [vmem:[%s14244_s27 + $0x6c] ss:$16 sps:$4 sm:$0xff]   ;;  %v9518_v24 = vld [vmem:[%s14244_s27 + $0x60] ss:$16 sps:$4 sm:$0xff]  }
 0xf9d   :  { %v12982_v0 = vadd.f32 %v8269_v26, %v5180_v3  ;;  %v9520_v26 = vld [vmem:[%s14244_s27 + $0x64] ss:$16 sps:$4 sm:$0xff]   ;;  %v9521_v3 = vld [vmem:[%s14244_s27 + $0x68] ss:$16 sps:$4 sm:$0xff]  }
 0xf9e   :  { %5946 = vmatpush1.bf16.msra.mxu1 %v9488_v25  ;;  %v9526_v38 = vld [vmem:[%s14244_s27 + $0x84] ss:$16 sps:$4 sm:$0xff]   ;;  %v9545_v61 = vld [vmem:[%s14244_s27 + $0xe8] ss:$16 sps:$4 sm:$0xff]  }
 0xf9f   :  { %5987 = vmatpush1.bf16.msra.mxu0 %v9491_v44  ;;  %5947 = vmatprep.subr.bf16.mxu1 %v9496_v10 }
 0xfa0   :  { %5988 = vmatprep.subr.bf16.mxu0 %v9499_v27 }
 0xfa2   :  { %5948 = vmatpush1.bf16.msra.mxu1 %v9494_v30 }
 0xfa3   :  { %6175 = vmatprep.subr.bf16.mxu1 %v9502_v12  ;;  %5989 = vmatpush1.bf16.msra.mxu0 %v9497_v20 }
 0xfa4   :  { %6216 = vmatprep.subr.bf16.mxu0 %v9505_v46 }
 0xfa5   :  { %5966 = vmatmul.mubr.bf16.vlgmr.msra.gmra.mrb[172].mxu1 %v5772_v29 }
 0xfa6   :  { %6176 = vmatpush1.bf16.msra.mxu1 %v9500_v55  ;;  %6207 = vmatprep.mubr.bf16.mxu1 %v13667_v18 }
 0xfa7   :  { %6007 = vmatmul.mubr.bf16.vlgmr.msra.gmra.mrb[176].mxu0 %v5772_v29  ;;  %6177 = vmatprep.subr.bf16.mxu1 %v9508_v36 }
 0xfa8   :  { %6217 = vmatpush1.bf16.msra.mxu0 %v9503_v62  ;;  %6248 = vmatprep.mubr.bf16.mxu0 %v13667_v18 }
 0xfa9   :  { %6218 = vmatprep.subr.bf16.mxu0 %v9511_v7 }
 0xfaa   :  { %6178 = vmatpush1.bf16.msra.mxu1 %v9506_v8 }
 0xfab   :  { %6179 = vmatprep.subr.bf16.mxu1 %v9514_v16 }
 0xfac   :  { %6219 = vmatpush1.bf16.msra.mxu0 %v9509_v51 }
 0xfad   :  { %6220 = vmatprep.subr.bf16.mxu0 %v9517_v21 }
 0xfae   :  { %6180 = vmatpush1.bf16.msra.mxu1 %v9512_v63 }
 0xfaf   :  { %6181 = vmatprep.subr.bf16.mxu1 %v9520_v26 }
 0xfb0   :  { %6221 = vmatpush1.bf16.msra.mxu0 %v9515_v2 }
 0xfb1   :  { %6222 = vmatprep.subr.bf16.mxu0 %v9523_v50 }
 0xfb2   :  { %6182 = vmatpush1.bf16.msra.mxu1 %v9518_v24 }
 0xfb3   :  { %6183 = vmatprep.subr.bf16.mxu1 %v9526_v38 }
 0xfb4   :  { %6223 = vmatpush1.bf16.msra.mxu0 %v9521_v3 }
 0xfb6   :  { %6184 = vmatpush1.bf16.msra.mxu1 %v9524_v39 }
 0xfb7   :  { %v8289_v11 = vpop.f32.mrb[148].mxu1  ;;  %6185 = vmatprep.subr.bf16.mxu1 %v9532_v19 }
 0xfb8   :  { %v8311_v42 = vpop.f32.mrb[152].mxu0  ;;  %v8290_v52 = vpop.f32.mrb[149].mxu1 }
 0xfb9   :  { %v8312_v58 = vpop.f32.mrb[153].mxu0  ;;  %v8291_v17 = vadd.f32 %v8290_v52, %v8289_v11  ;;  %v8292_v33 = vpop.f32.mrb[150].mxu1  ;;  %v9547_v11 = vld [vmem:[%s14244_s27 + $0xec] ss:$16 sps:$4 sm:$0xff]   ;;  %v9550_v52 = vld [vmem:[%s14245_s7 + $0x4] ss:$16 sps:$4 sm:$0xff]  }
 0xfba   :  { %v8313_v60 = vadd.f32 %v8312_v58, %v8311_v42  ;;  %v8314_v45 = vpop.f32.mrb[154].mxu0  ;;  %v8293_v1 = vpop.f32.mrb[151].mxu1  ;;  %6186 = vmatpush1.bf16.msra.mxu1 %v9530_v14  ;;  %v9542_v42 = vld [vmem:[%s14244_s27 + $0xe0] ss:$16 sps:$4 sm:$0xff]   ;;  %v9553_v58 = vld [vmem:[%s14245_s7 + $0xc] ss:$16 sps:$4 sm:$0xff]  }
 0xfbb   :  { %v8315_v49 = vpop.f32.mrb[155].mxu0  ;;  %v5260_v59 = vadd.f32 %v8291_v17, %v12982_v0  ;;  %v9529_v0 = vld [vmem:[%s14244_s27 + $0x8c] ss:$16 sps:$4 sm:$0xff]   ;;  %6187 = vmatprep.subr.bf16.mxu1 %v9538_v40  ;;  %v9551_v40 = vld [vmem:[%s14245_s7 + $0x8] ss:$16 sps:$4 sm:$0xff]  }
 0xfbc   :  { %6224 = vmatprep.subr.bf16.mxu0 %v9529_v0 }
 0xfbd   :  { %v13014_v35 = vadd.f32 %v8313_v60, %v5260_v59  ;;  %6225 = vmatpush1.bf16.msra.mxu0 %v9527_v5 }
 0xfbe   :  { %6226 = vmatprep.subr.bf16.mxu0 %v9535_v4  ;;  %6188 = vmatpush1.bf16.msra.mxu1 %v9536_v37  ;;  %v9559_v37 = vld [vmem:[%s14245_s7 + $0x2c] ss:$16 sps:$4 sm:$0xff]  }
 0xfbf   :  { %6189 = vmatprep.subr.bf16.mxu1 %v9544_v32  ;;  %v9562_v32 = vld [vmem:[%s14245_s7 + $0x44] ss:$16 sps:$4 sm:$0xff]  }
 0xfc1   :  { %6227 = vmatpush1.bf16.msra.mxu0 %v9533_v22 }
 0xfc2   :  { %6228 = vmatprep.subr.bf16.mxu0 %v9541_v34  ;;  %6190 = vmatpush1.bf16.msra.mxu1 %v9542_v42  ;;  %v9560_v42 = vld [vmem:[%s14245_s7 + $0x40] ss:$16 sps:$4 sm:$0xff]  }
 0xfc3   :  { %6450 = vmatprep.subr.bf16.mxu1 %v9550_v52  ;;  %v9568_v52 = vld [vmem:[%s14245_s7 + $0x64] ss:$16 sps:$4 sm:$0xff]  }
 0xfc5   :  { %6229 = vmatpush1.bf16.msra.mxu0 %v9539_v43  ;;  %v9554_v43 = vld [vmem:[%s14245_s7 + $0x20] ss:$16 sps:$4 sm:$0xff]  }
 0xfc6   :  { %6230 = vmatprep.subr.bf16.mxu0 %v9547_v11  ;;  %v9565_v11 = vld [vmem:[%s14245_s7 + $0x4c] ss:$16 sps:$4 sm:$0xff]  }
 0xfc9   :  { %6231 = vmatpush1.bf16.msra.mxu0 %v9545_v61  ;;  %v9563_v61 = vld [vmem:[%s14245_s7 + $0x48] ss:$16 sps:$4 sm:$0xff]  }
 0xfca   :  { %6491 = vmatprep.subr.bf16.mxu0 %v9553_v58  ;;  %v9571_v58 = vld [vmem:[%s14245_s7 + $0x6c] ss:$16 sps:$4 sm:$0xff]  }
 0xfd7   :  { %v8333_v6 = vpop.f32.mrb[152].mxu1 }
 0xfd8   :  { %v8355_v56 = vpop.f32.mrb[156].mxu0  ;;  %v8334_v57 = vpop.f32.mrb[153].mxu1 }
 0xfd9   :  { %v8356_v31 = vpop.f32.mrb[157].mxu0  ;;  %v8335_v9 = vadd.f32 %v8334_v57, %v8333_v6  ;;  %v8336_v23 = vpop.f32.mrb[154].mxu1 }
 0xfda   :  { %v8357_v13 = vadd.f32 %v8356_v31, %v8355_v56  ;;  %v8358_v41 = vpop.f32.mrb[158].mxu0  ;;  %v8337_v47 = vpop.f32.mrb[155].mxu1 }
 0xfdb   :  { %v8359_v28 = vpop.f32.mrb[159].mxu0  ;;  %v5340_v54 = vadd.f32 %v8335_v9, %v13014_v35 }
 0xfdc   :  { %v9548_v28 = vld [vmem:[%s14245_s7] ss:$16 sps:$4 sm:$0xff]  }
 0xfdd   :  { %v5380_v53 = vadd.f32 %v8357_v13, %v5340_v54  ;;  %v9556_v54 = vld [vmem:[%s14245_s7 + $0x24] ss:$16 sps:$4 sm:$0xff]  }
 0xff7   :  { %v8377_v15 = vpop.f32.mrb[156].mxu1 }
 0xff8   :  { %v8399_v17 = vpop.f32.mrb[160].mxu0  ;;  %v8378_v60 = vpop.f32.mrb[157].mxu1 }
 0xff9   :  { %v8400_v33 = vpop.f32.mrb[161].mxu0  ;;  %v8379_v45 = vadd.f32 %v8378_v60, %v8377_v15  ;;  %v8380_v1 = vpop.f32.mrb[158].mxu1  ;;  %v9566_v15 = vld [vmem:[%s14245_s7 + $0x60] ss:$16 sps:$4 sm:$0xff]   ;;  %v9574_v60 = vld [vmem:[%s14245_s7 + $0x84] ss:$16 sps:$4 sm:$0xff]  }
 0xffa   :  { %v8401_v25 = vadd.f32 %v8400_v33, %v8399_v17  ;;  %v8402_v49 = vpop.f32.mrb[162].mxu0  ;;  %v8381_v48 = vpop.f32.mrb[159].mxu1  ;;  %v9569_v17 = vld [vmem:[%s14245_s7 + $0x68] ss:$16 sps:$4 sm:$0xff]   ;;  %v9577_v33 = vld [vmem:[%s14245_s7 + $0x8c] ss:$16 sps:$4 sm:$0xff]  }
 0xffb   :  { %v8403_v59 = vpop.f32.mrb[163].mxu0  ;;  %v5420_v44 = vadd.f32 %v8379_v45, %v5380_v53  ;;  %v9557_v53 = vld [vmem:[%s14245_s7 + $0x28] ss:$16 sps:$4 sm:$0xff]   ;;  %v9572_v45 = vld [vmem:[%s14245_s7 + $0x80] ss:$16 sps:$4 sm:$0xff]  }
 0xffc   :  { %v9580_v1 = vld [vmem:[%s14245_s7 + $0xa4] ss:$16 sps:$4 sm:$0xff]   ;;  %v9583_v49 = vld [vmem:[%s14245_s7 + $0xac] ss:$16 sps:$4 sm:$0xff]   ;;  %v9578_v48 = vld [vmem:[%s14245_s7 + $0xa0] ss:$16 sps:$4 sm:$0xff]  }
 0xffd   :  { %v5460_v10 = vadd.f32 %v8401_v25, %v5420_v44  ;;  %v9575_v25 = vld [vmem:[%s14245_s7 + $0x88] ss:$16 sps:$4 sm:$0xff]   ;;  %v9586_v44 = vld [vmem:[%s14245_s7 + $0xc4] ss:$16 sps:$4 sm:$0xff]  }
 0xffe   :  { %v9581_v59 = vld [vmem:[%s14245_s7 + $0xa8] ss:$16 sps:$4 sm:$0xff]  }
0x1017   :  { %v8421_v35 = vpop.f32.mrb[160].mxu1 }
0x1018   :  { %v8443_v30 = vpop.f32.mrb[164].mxu0  ;;  %v8422_v20 = vpop.f32.mrb[161].mxu1 }
0x1019   :  { %v8444_v27 = vpop.f32.mrb[165].mxu0  ;;  %v8423_v29 = vadd.f32 %v8422_v20, %v8421_v35  ;;  %v8424_v55 = vpop.f32.mrb[162].mxu1  ;;  %v9584_v35 = vld [vmem:[%s14245_s7 + $0xc0] ss:$16 sps:$4 sm:$0xff]   ;;  %v9592_v20 = vld [vmem:[%s14245_s7 + $0xe4] ss:$16 sps:$4 sm:$0xff]  }
0x101a   :  { %v8445_v12 = vadd.f32 %v8444_v27, %v8443_v30  ;;  %v8446_v46 = vpop.f32.mrb[166].mxu0  ;;  %v8425_v36 = vpop.f32.mrb[163].mxu1  ;;  %v9587_v30 = vld [vmem:[%s14245_s7 + $0xc8] ss:$16 sps:$4 sm:$0xff]   ;;  %v9595_v27 = vld [vmem:[%s14245_s7 + $0xec] ss:$16 sps:$4 sm:$0xff]  }
0x101b   :  { %v8447_v62 = vpop.f32.mrb[167].mxu0  ;;  %v5500_v7 = vadd.f32 %v8423_v29, %v5460_v10  ;;  %v9589_v10 = vld [vmem:[%s14245_s7 + $0xcc] ss:$16 sps:$4 sm:$0xff]   ;;  %v9590_v29 = vld [vmem:[%s14245_s7 + $0xe0] ss:$16 sps:$4 sm:$0xff]  }
0x101c   :  { %v9598_v55 = vld [vmem:[#allocation12 + $0x4] ss:$16 sps:$4 sm:$0xff]   ;;  %v9601_v46 = vld [vmem:[#allocation12 + $0xc] ss:$16 sps:$4 sm:$0xff]  }
0x101d   :  { %v5540_v8 = vadd.f32 %v8445_v12, %v5500_v7  ;;  %v9593_v12 = vld [vmem:[%s14245_s7 + $0xe8] ss:$16 sps:$4 sm:$0xff]   ;;  %v9596_v7 = vld [vmem:[#allocation12] ss:$16 sps:$4 sm:$0xff]  }
0x101e   :  { %v14246_v36 = vld [vmem:[#allocation108_spill] sm:$0xff] }
0x101f   :  { %v6289_v62 = vpack.c.bf16 %v14246_v36, %v14246_v36  ;;  %v9674_v36 = vld [vmem:[#allocation15 + $0xa0] ss:$16 sps:$4 sm:$0xff]  }
0x1037   :  { %v8465_v16 = vpop.f32.mrb[164].mxu1 }
0x1038   :  { %v8487_v51 = vpop.f32.mrb[168].mxu0  ;;  %v8466_v21 = vpop.f32.mrb[165].mxu1 }
0x1039   :  { %v8488_v63 = vpop.f32.mrb[169].mxu0  ;;  %v8467_v26 = vadd.f32 %v8466_v21, %v8465_v16  ;;  %v8468_v50 = vpop.f32.mrb[166].mxu1  ;;  %v9604_v16 = vld [vmem:[#allocation12 + $0x24] ss:$16 sps:$4 sm:$0xff]   ;;  %v9602_v21 = vld [vmem:[#allocation12 + $0x20] ss:$16 sps:$4 sm:$0xff]  }
0x103a   :  { %v8489_v2 = vadd.f32 %v8488_v63, %v8487_v51  ;;  %v8490_v24 = vpop.f32.mrb[170].mxu0  ;;  %v8469_v38 = vpop.f32.mrb[167].mxu1  ;;  %v9607_v51 = vld [vmem:[#allocation12 + $0x2c] ss:$16 sps:$4 sm:$0xff]   ;;  %v9605_v63 = vld [vmem:[#allocation12 + $0x28] ss:$16 sps:$4 sm:$0xff]  }
0x103b   :  { %v8491_v3 = vpop.f32.mrb[171].mxu0  ;;  %v5580_v0 = vadd.f32 %v8467_v26, %v5540_v8  ;;  %v9599_v8 = vld [vmem:[#allocation12 + $0x8] ss:$16 sps:$4 sm:$0xff]   ;;  %v9610_v26 = vld [vmem:[#allocation12 + $0x44] ss:$16 sps:$4 sm:$0xff]  }
0x103c   :  { %v9608_v50 = vld [vmem:[#allocation12 + $0x40] ss:$16 sps:$4 sm:$0xff]   ;;  %v9611_v24 = vld [vmem:[#allocation12 + $0x48] ss:$16 sps:$4 sm:$0xff]   ;;  %v9616_v38 = vld [vmem:[#allocation12 + $0x64] ss:$16 sps:$4 sm:$0xff]  }
0x103d   :  { %v5620_v39 = vadd.f32 %v8489_v2, %v5580_v0  ;;  %v9613_v2 = vld [vmem:[#allocation12 + $0x4c] ss:$16 sps:$4 sm:$0xff]   ;;  %v9614_v0 = vld [vmem:[#allocation12 + $0x60] ss:$16 sps:$4 sm:$0xff]  }
0x103e   :  { %v9619_v3 = vld [vmem:[#allocation12 + $0x6c] ss:$16 sps:$4 sm:$0xff]  }
0x1057   :  { %v8509_v5 = vpop.f32.mrb[168].mxu1 }
0x1058   :  { %v8531_v19 = vpop.f32.mrb[172].mxu0  ;;  %v8510_v4 = vpop.f32.mrb[169].mxu1 }
0x1059   :  { %v8532_v6 = vpop.f32.mrb[173].mxu0  ;;  %v8511_v56 = vadd.f32 %v8510_v4, %v8509_v5  ;;  %v8512_v22 = vpop.f32.mrb[170].mxu1  ;;  %v9622_v5 = vld [vmem:[#allocation12 + $0x84] ss:$16 sps:$4 sm:$0xff]   ;;  %v9620_v4 = vld [vmem:[#allocation12 + $0x80] ss:$16 sps:$4 sm:$0xff]  }
0x105a   :  { %v8533_v14 = vadd.f32 %v8532_v6, %v8531_v19  ;;  %v8534_v57 = vpop.f32.mrb[174].mxu0  ;;  %v8513_v31 = vpop.f32.mrb[171].mxu1  ;;  %v9625_v19 = vld [vmem:[#allocation12 + $0x8c] ss:$16 sps:$4 sm:$0xff]   ;;  %v9623_v6 = vld [vmem:[#allocation12 + $0x88] ss:$16 sps:$4 sm:$0xff]  }
0x105b   :  { %v8535_v9 = vpop.f32.mrb[175].mxu0  ;;  %v5660_v13 = vadd.f32 %v8511_v56, %v5620_v39  ;;  %v9617_v39 = vld [vmem:[#allocation12 + $0x68] ss:$16 sps:$4 sm:$0xff]   ;;  %v9628_v56 = vld [vmem:[#allocation12 + $0xa4] ss:$16 sps:$4 sm:$0xff]  }
0x105c   :  { %v9626_v57 = vld [vmem:[#allocation12 + $0xa0] ss:$16 sps:$4 sm:$0xff]   ;;  %v9629_v31 = vld [vmem:[#allocation12 + $0xa8] ss:$16 sps:$4 sm:$0xff]  }
0x105d   :  { %v5700_v23 = vadd.f32 %v8533_v14, %v5660_v13  ;;  %v9631_v14 = vld [vmem:[#allocation12 + $0xac] ss:$16 sps:$4 sm:$0xff]   ;;  %v9634_v13 = vld [vmem:[#allocation12 + $0xc4] ss:$16 sps:$4 sm:$0xff]  }
0x105f   :  { %v5705_v41 = vmul.f32 0.1, %v5700_v23 }
0x1061   :  { %v5706_v47 = vmax.f32 %v5700_v23, %v5705_v41  ;;  %v9637_v23 = vld [vmem:[#allocation12 + $0xcc] ss:$16 sps:$4 sm:$0xff]  }
0x1063   :  { %v5739_v34 = vpack.c.bf16 %v5706_v47, %v5706_v47 }
0x1065   :  { %6208 = vmatmul.mubr.bf16.vlgmr.msra.gmra.mrb[176].mxu1 %v5739_v34  ;;  %6249 = vmatmul.mubr.bf16.vlgmr.msra.gmra.mrb[180].mxu0 %v5739_v34 }
0x1066   :  { %6451 = vmatpush1.bf16.msra.mxu1 %v9548_v28  ;;  %6492 = vmatpush1.bf16.msra.mxu0 %v9551_v40 }
0x1067   :  { %6452 = vmatprep.subr.bf16.mxu1 %v9556_v54  ;;  %6493 = vmatprep.subr.bf16.mxu0 %v9559_v37  ;;  %v9632_v54 = vld [vmem:[#allocation12 + $0xc0] ss:$16 sps:$4 sm:$0xff]   ;;  %v9635_v37 = vld [vmem:[#allocation12 + $0xc8] ss:$16 sps:$4 sm:$0xff]  }
0x1068   :  { %6482 = vmatprep.mubr.bf16.mxu1 %v13667_v18  ;;  %6523 = vmatprep.mubr.bf16.mxu0 %v13667_v18 }
0x106a   :  { %6453 = vmatpush1.bf16.msra.mxu1 %v9554_v43  ;;  %6494 = vmatpush1.bf16.msra.mxu0 %v9557_v53  ;;  %v9640_v53 = vld [vmem:[#allocation12 + $0xe4] ss:$16 sps:$4 sm:$0xff]  }
0x106b   :  { %6454 = vmatprep.subr.bf16.mxu1 %v9562_v32  ;;  %6495 = vmatprep.subr.bf16.mxu0 %v9565_v11  ;;  %v9643_v32 = vld [vmem:[#allocation12 + $0xec] ss:$16 sps:$4 sm:$0xff]   ;;  %v9638_v11 = vld [vmem:[#allocation12 + $0xe0] ss:$16 sps:$4 sm:$0xff]  }
0x106e   :  { %6455 = vmatpush1.bf16.msra.mxu1 %v9560_v42  ;;  %6496 = vmatpush1.bf16.msra.mxu0 %v9563_v61  ;;  %v9641_v42 = vld [vmem:[#allocation12 + $0xe8] ss:$16 sps:$4 sm:$0xff]   ;;  %v6536_v61 = vld [vmem:[%s14247_s15] sm:$0x3] }
0x106f   :  { %6456 = vmatprep.subr.bf16.mxu1 %v9568_v52  ;;  %6497 = vmatprep.subr.bf16.mxu0 %v9571_v58  ;;  %v6569_v52 = vpack.c.bf16 %v6536_v61, %v6536_v61  ;;  %v9644_v58 = vld [vmem:[#allocation15] ss:$16 sps:$4 sm:$0xff]   ;;  %v9730_v61 = vld [vmem:[#allocation13 + $0xc4] ss:$16 sps:$4 sm:$0xff]  }
0x1072   :  { %6457 = vmatpush1.bf16.msra.mxu1 %v9566_v15  ;;  %6498 = vmatpush1.bf16.msra.mxu0 %v9569_v17  ;;  %v9646_v15 = vld [vmem:[#allocation15 + $0x4] ss:$16 sps:$4 sm:$0xff]   ;;  %v9647_v17 = vld [vmem:[#allocation15 + $0x8] ss:$16 sps:$4 sm:$0xff]  }
0x1073   :  { %6458 = vmatprep.subr.bf16.mxu1 %v9574_v60  ;;  %6499 = vmatprep.subr.bf16.mxu0 %v9577_v33  ;;  %v9649_v60 = vld [vmem:[#allocation15 + $0xc] ss:$16 sps:$4 sm:$0xff]   ;;  %v9652_v33 = vld [vmem:[#allocation15 + $0x24] ss:$16 sps:$4 sm:$0xff]  }
0x1076   :  { %6459 = vmatpush1.bf16.msra.mxu1 %v9572_v45  ;;  %6500 = vmatpush1.bf16.msra.mxu0 %v9575_v25  ;;  %v9655_v45 = vld [vmem:[#allocation15 + $0x2c] ss:$16 sps:$4 sm:$0xff]   ;;  %v9650_v25 = vld [vmem:[#allocation15 + $0x20] ss:$16 sps:$4 sm:$0xff]  }
0x1077   :  { %6460 = vmatprep.subr.bf16.mxu1 %v9580_v1  ;;  %6501 = vmatprep.subr.bf16.mxu0 %v9583_v49  ;;  %v9653_v1 = vld [vmem:[#allocation15 + $0x28] ss:$16 sps:$4 sm:$0xff]   ;;  %v9658_v49 = vld [vmem:[#allocation15 + $0x44] ss:$16 sps:$4 sm:$0xff]  }
0x1078   :  { %v13094_v22 = vpop.f32.mrb[172].mxu1 }
0x1079   :  { %v13096_v9 = vpop.f32.mrb[173].mxu1 }
0x107a   :  { %6461 = vmatpush1.bf16.msra.mxu1 %v9578_v48  ;;  %6502 = vmatpush1.bf16.msra.mxu0 %v9581_v59  ;;  %v5971_v41 = vpop.f32.mrb[174].mxu1  ;;  %v13098_v47 = vpop.f32.mrb[176].mxu0  ;;  %v9661_v48 = vld [vmem:[#allocation15 + $0x4c] ss:$16 sps:$4 sm:$0xff]   ;;  %v9656_v59 = vld [vmem:[#allocation15 + $0x40] ss:$16 sps:$4 sm:$0xff]  }
0x107b   :  { %6462 = vmatprep.subr.bf16.mxu1 %v9586_v44  ;;  %6503 = vmatprep.subr.bf16.mxu0 %v9589_v10  ;;  %v5972_v28 = vpop.f32.mrb[175].mxu1  ;;  %v13100_v40 = vpop.f32.mrb[177].mxu0  ;;  %v9659_v44 = vld [vmem:[#allocation15 + $0x48] ss:$16 sps:$4 sm:$0xff]   ;;  %v9664_v10 = vld [vmem:[#allocation15 + $0x64] ss:$16 sps:$4 sm:$0xff]  }
0x107c   :  { %v6012_v34 = vpop.f32.mrb[178].mxu0  ;;  %v9715_v41 = vld [vmem:[#allocation13 + $0x6c] ss:$16 sps:$4 sm:$0xff]   ;;  %v9710_v28 = vld [vmem:[#allocation13 + $0x60] ss:$16 sps:$4 sm:$0xff]  }
0x107d   :  { %v6013_v43 = vpop.f32.mrb[179].mxu0  ;;  %v9713_v34 = vld [vmem:[#allocation13 + $0x68] ss:$16 sps:$4 sm:$0xff]  }
0x107e   :  { %6463 = vmatpush1.bf16.msra.mxu1 %v9584_v35  ;;  %6504 = vmatpush1.bf16.msra.mxu0 %v9587_v30  ;;  %v9667_v35 = vld [vmem:[#allocation15 + $0x6c] ss:$16 sps:$4 sm:$0xff]   ;;  %v9662_v30 = vld [vmem:[#allocation15 + $0x60] ss:$16 sps:$4 sm:$0xff]  }
0x107f   :  { %6464 = vmatprep.subr.bf16.mxu1 %v9592_v20  ;;  %6505 = vmatprep.subr.bf16.mxu0 %v9595_v27  ;;  %v9665_v20 = vld [vmem:[#allocation15 + $0x68] ss:$16 sps:$4 sm:$0xff]   ;;  %v9670_v27 = vld [vmem:[#allocation15 + $0x84] ss:$16 sps:$4 sm:$0xff]   ;;  %v9721_v43 = vld [vmem:[#allocation13 + $0x8c] ss:$16 sps:$4 sm:$0xff]  }
0x1082   :  { %6465 = vmatpush1.bf16.msra.mxu1 %v9590_v29  ;;  %6506 = vmatpush1.bf16.msra.mxu0 %v9593_v12  ;;  %v9668_v29 = vld [vmem:[#allocation15 + $0x80] ss:$16 sps:$4 sm:$0xff]   ;;  %v9673_v12 = vld [vmem:[#allocation15 + $0x8c] ss:$16 sps:$4 sm:$0xff]  }
0x1083   :  { %6730 = vmatprep.subr.bf16.mxu1 %v9598_v55  ;;  %6771 = vmatprep.subr.bf16.mxu0 %v9601_v46  ;;  %v9671_v55 = vld [vmem:[#allocation15 + $0x88] ss:$16 sps:$4 sm:$0xff]   ;;  %v9676_v46 = vld [vmem:[#allocation15 + $0xa4] ss:$16 sps:$4 sm:$0xff]  }
0x1085   :  { %6483 = vmatmul.mubr.bf16.vlgmr.msra.gmra.mrb[180].mxu1 %v6289_v62  ;;  %6524 = vmatmul.mubr.bf16.vlgmr.msra.gmra.mrb[184].mxu0 %v6289_v62  ;;  %v9679_v62 = vld [vmem:[#allocation15 + $0xac] ss:$16 sps:$4 sm:$0xff]  }
0x1086   :  { %6731 = vmatpush1.bf16.msra.mxu1 %v9596_v7  ;;  %6772 = vmatpush1.bf16.msra.mxu0 %v9599_v8  ;;  %v9677_v7 = vld [vmem:[#allocation15 + $0xa8] ss:$16 sps:$4 sm:$0xff]   ;;  %v9682_v8 = vld [vmem:[#allocation15 + $0xc4] ss:$16 sps:$4 sm:$0xff]  }
0x1087   :  { %6732 = vmatprep.subr.bf16.mxu1 %v9604_v16  ;;  %6773 = vmatprep.subr.bf16.mxu0 %v9607_v51  ;;  %v9680_v16 = vld [vmem:[#allocation15 + $0xc0] ss:$16 sps:$4 sm:$0xff]   ;;  %v9685_v51 = vld [vmem:[#allocation15 + $0xcc] ss:$16 sps:$4 sm:$0xff]  }
0x1088   :  { %6762 = vmatprep.mubr.bf16.mxu1 %v13667_v18  ;;  %6803 = vmatprep.mubr.bf16.mxu0 %v13667_v18 }
0x108a   :  { %6733 = vmatpush1.bf16.msra.mxu1 %v9602_v21  ;;  %6774 = vmatpush1.bf16.msra.mxu0 %v9605_v63  ;;  %v9683_v21 = vld [vmem:[#allocation15 + $0xc8] ss:$16 sps:$4 sm:$0xff]   ;;  %v9688_v63 = vld [vmem:[#allocation15 + $0xe4] ss:$16 sps:$4 sm:$0xff]  }
0x108b   :  { %6734 = vmatprep.subr.bf16.mxu1 %v9610_v26  ;;  %6775 = vmatprep.subr.bf16.mxu0 %v9613_v2  ;;  %v9686_v26 = vld [vmem:[#allocation15 + $0xe0] ss:$16 sps:$4 sm:$0xff]   ;;  %v9691_v2 = vld [vmem:[#allocation15 + $0xec] ss:$16 sps:$4 sm:$0xff]  }
0x108e   :  { %6735 = vmatpush1.bf16.msra.mxu1 %v9608_v50  ;;  %6776 = vmatpush1.bf16.msra.mxu0 %v9611_v24  ;;  %v9689_v50 = vld [vmem:[#allocation15 + $0xe8] ss:$16 sps:$4 sm:$0xff]   ;;  %v8092_v24 = vld [vmem:[%s14247_s15 + $0x2] sm:$0x3] }
0x108f   :  { %6736 = vmatprep.subr.bf16.mxu1 %v9616_v38  ;;  %6777 = vmatprep.subr.bf16.mxu0 %v9619_v3  ;;  %v6934_v38 = vpack.c.bf16 %v8092_v24, %v8092_v24  ;;  %v9694_v3 = vld [vmem:[#allocation13 + $0x4] ss:$16 sps:$4 sm:$0xff]   ;;  %v14251_v24 = vld [vmem:[#allocation103_spill] sm:$0xff] }
0x1092   :  { %6737 = vmatpush1.bf16.msra.mxu1 %v9614_v0  ;;  %6778 = vmatpush1.bf16.msra.mxu0 %v9617_v39  ;;  %v9697_v0 = vld [vmem:[#allocation13 + $0xc] ss:$16 sps:$4 sm:$0xff]   ;;  %v9692_v39 = vld [vmem:[#allocation13] ss:$16 sps:$4 sm:$0xff]  }
0x1093   :  { %6738 = vmatprep.subr.bf16.mxu1 %v9622_v5  ;;  %6779 = vmatprep.subr.bf16.mxu0 %v9625_v19  ;;  %v9695_v5 = vld [vmem:[#allocation13 + $0x8] ss:$16 sps:$4 sm:$0xff]   ;;  %v9700_v19 = vld [vmem:[#allocation13 + $0x24] ss:$16 sps:$4 sm:$0xff]  }
0x1096   :  { %6739 = vmatpush1.bf16.msra.mxu1 %v9620_v4  ;;  %6780 = vmatpush1.bf16.msra.mxu0 %v9623_v6  ;;  %v9703_v4 = vld [vmem:[#allocation13 + $0x2c] ss:$16 sps:$4 sm:$0xff]   ;;  %v9698_v6 = vld [vmem:[#allocation13 + $0x20] ss:$16 sps:$4 sm:$0xff]  }
0x1097   :  { %6740 = vmatprep.subr.bf16.mxu1 %v9628_v56  ;;  %6781 = vmatprep.subr.bf16.mxu0 %v9631_v14  ;;  %v9701_v56 = vld [vmem:[#allocation13 + $0x28] ss:$16 sps:$4 sm:$0xff]   ;;  %v9706_v14 = vld [vmem:[#allocation13 + $0x44] ss:$16 sps:$4 sm:$0xff]  }
0x109a   :  { %6741 = vmatpush1.bf16.msra.mxu1 %v9626_v57  ;;  %6782 = vmatpush1.bf16.msra.mxu0 %v9629_v31  ;;  %v9709_v57 = vld [vmem:[#allocation13 + $0x4c] ss:$16 sps:$4 sm:$0xff]   ;;  %v9704_v31 = vld [vmem:[#allocation13 + $0x40] ss:$16 sps:$4 sm:$0xff]  }
0x109b   :  { %6742 = vmatprep.subr.bf16.mxu1 %v9634_v13  ;;  %6783 = vmatprep.subr.bf16.mxu0 %v9637_v23  ;;  %v9707_v13 = vld [vmem:[#allocation13 + $0x48] ss:$16 sps:$4 sm:$0xff]   ;;  %v9712_v23 = vld [vmem:[#allocation13 + $0x64] ss:$16 sps:$4 sm:$0xff]  }
0x109e   :  { %6743 = vmatpush1.bf16.msra.mxu1 %v9632_v54  ;;  %6784 = vmatpush1.bf16.msra.mxu0 %v9635_v37  ;;  %v9718_v54 = vld [vmem:[#allocation13 + $0x84] ss:$16 sps:$4 sm:$0xff]   ;;  %v9719_v37 = vld [vmem:[#allocation13 + $0x88] ss:$16 sps:$4 sm:$0xff]  }
0x109f   :  { %6744 = vmatprep.subr.bf16.mxu1 %v9640_v53  ;;  %6785 = vmatprep.subr.bf16.mxu0 %v9643_v32  ;;  %v9724_v53 = vld [vmem:[#allocation13 + $0xa4] ss:$16 sps:$4 sm:$0xff]   ;;  %v9727_v32 = vld [vmem:[#allocation13 + $0xac] ss:$16 sps:$4 sm:$0xff]  }
0x10a2   :  { %6745 = vmatpush1.bf16.msra.mxu1 %v9638_v11  ;;  %6786 = vmatpush1.bf16.msra.mxu0 %v9641_v42  ;;  %v9722_v11 = vld [vmem:[#allocation13 + $0xa0] ss:$16 sps:$4 sm:$0xff]   ;;  %v9725_v42 = vld [vmem:[#allocation13 + $0xa8] ss:$16 sps:$4 sm:$0xff]  }
0x10a3   :  { %7095 = vmatprep.subr.bf16.mxu1 %v9646_v15  ;;  %7136 = vmatprep.subr.bf16.mxu0 %v9649_v60  ;;  %v9731_v15 = vld [vmem:[#allocation13 + $0xc8] ss:$16 sps:$4 sm:$0xff]   ;;  %v9739_v60 = vld [vmem:[#allocation13 + $0xec] ss:$16 sps:$4 sm:$0xff]  }
0x10a5   :  { %6763 = vmatmul.mubr.bf16.vlgmr.msra.gmra.mrb[184].mxu1 %v6569_v52  ;;  %6804 = vmatmul.mubr.bf16.vlgmr.msra.gmra.mrb[188].mxu0 %v6569_v52  ;;  %v9733_v52 = vld [vmem:[#allocation13 + $0xcc] ss:$16 sps:$4 sm:$0xff]  }
0x10a6   :  { %7127 = vmatprep.mubr.bf16.mxu1 %v13667_v18  ;;  %7168 = vmatprep.mubr.bf16.mxu0 %v13667_v18 }
0x10a7   :  { %7096 = vmatpush1.bf16.msra.mxu1 %v9644_v58  ;;  %7137 = vmatpush1.bf16.msra.mxu0 %v9647_v17  ;;  %v9728_v58 = vld [vmem:[#allocation13 + $0xc0] ss:$16 sps:$4 sm:$0xff]   ;;  %v9736_v17 = vld [vmem:[#allocation13 + $0xe4] ss:$16 sps:$4 sm:$0xff]  }
0x10a8   :  { %7097 = vmatprep.subr.bf16.mxu1 %v9652_v33  ;;  %7138 = vmatprep.subr.bf16.mxu0 %v9655_v45  ;;  %v9734_v33 = vld [vmem:[#allocation13 + $0xe0] ss:$16 sps:$4 sm:$0xff]   ;;  %v9737_v45 = vld [vmem:[#allocation13 + $0xe8] ss:$16 sps:$4 sm:$0xff]  }
0x10ab   :  { %7098 = vmatpush1.bf16.msra.mxu1 %v9650_v25  ;;  %7139 = vmatpush1.bf16.msra.mxu0 %v9653_v1  ;;  %v14248_v25 = vmov 0.0  }
0x10ac   :  { %7099 = vmatprep.subr.bf16.mxu1 %v9658_v49  ;;  %7140 = vmatprep.subr.bf16.mxu0 %v9661_v48 }
0x10af   :  { %7100 = vmatpush1.bf16.msra.mxu1 %v9656_v59  ;;  %7141 = vmatpush1.bf16.msra.mxu0 %v9659_v44 }
0x10b0   :  { %7101 = vmatprep.subr.bf16.mxu1 %v9664_v10  ;;  %7142 = vmatprep.subr.bf16.mxu0 %v9667_v35 }
0x10b3   :  { %7102 = vmatpush1.bf16.msra.mxu1 %v9662_v30  ;;  %7143 = vmatpush1.bf16.msra.mxu0 %v9665_v20 }
0x10b4   :  { %7103 = vmatprep.subr.bf16.mxu1 %v9670_v27  ;;  %7144 = vmatprep.subr.bf16.mxu0 %v9673_v12 }
0x10b7   :  { %7104 = vmatpush1.bf16.msra.mxu1 %v9668_v29  ;;  %7145 = vmatpush1.bf16.msra.mxu0 %v9671_v55 }
0x10b8   :  { %7105 = vmatprep.subr.bf16.mxu1 %v9676_v46  ;;  %7146 = vmatprep.subr.bf16.mxu0 %v9679_v62 }
0x10bb   :  { %7106 = vmatpush1.bf16.msra.mxu1 %v9674_v36  ;;  %7147 = vmatpush1.bf16.msra.mxu0 %v9677_v7 }
0x10bc   :  { %7107 = vmatprep.subr.bf16.mxu1 %v9682_v8  ;;  %7148 = vmatprep.subr.bf16.mxu0 %v9685_v51 }
0x10bf   :  { %7108 = vmatpush1.bf16.msra.mxu1 %v9680_v16  ;;  %7149 = vmatpush1.bf16.msra.mxu0 %v9683_v21 }
0x10c0   :  { %7109 = vmatprep.subr.bf16.mxu1 %v9688_v63  ;;  %7150 = vmatprep.subr.bf16.mxu0 %v9691_v2 }
0x10c3   :  { %7110 = vmatpush1.bf16.msra.mxu1 %v9686_v26  ;;  %7151 = vmatpush1.bf16.msra.mxu0 %v9689_v50  ;;  %v14250_v26 = vld [vmem:[#allocation102_spill] sm:$0xff] }
0x10c4   :  { %7337 = vmatprep.subr.bf16.mxu1 %v9694_v3  ;;  %7378 = vmatprep.subr.bf16.mxu0 %v9697_v0 }
0x10c6   :  { %7128 = vmatmul.mubr.bf16.vlgmr.msra.gmra.mrb[188].mxu1 %v6934_v38  ;;  %7169 = vmatmul.mubr.bf16.vlgmr.msra.gmra.mrb[192].mxu0 %v6934_v38 }
0x10c7   :  { %7369 = vmatprep.mubr.bf16.mxu1 %v13667_v18  ;;  %7338 = vmatpush1.bf16.msra.mxu1 %v9692_v39 }
0x10c8   :  { %7379 = vmatpush1.bf16.msra.mxu0 %v9695_v5  ;;  %7410 = vmatprep.mubr.bf16.mxu0 %v13667_v18  ;;  %v9716_v18 = vld [vmem:[#allocation13 + $0x80] ss:$16 sps:$4 sm:$0xff]  }
0x10c9   :  { %7339 = vmatprep.subr.bf16.mxu1 %v9700_v19  ;;  %7380 = vmatprep.subr.bf16.mxu0 %v9703_v4 }
0x10cb   :  { %7340 = vmatpush1.bf16.msra.mxu1 %v9698_v6 }
0x10cc   :  { %7381 = vmatpush1.bf16.msra.mxu0 %v9701_v56  ;;  %7341 = vmatprep.subr.bf16.mxu1 %v9706_v14 }
0x10cd   :  { %7382 = vmatprep.subr.bf16.mxu0 %v9709_v57 }
0x10cf   :  { %7342 = vmatpush1.bf16.msra.mxu1 %v9704_v31 }
0x10d0   :  { %7383 = vmatpush1.bf16.msra.mxu0 %v9707_v13  ;;  %7343 = vmatprep.subr.bf16.mxu1 %v9712_v23 }
0x10d1   :  { %7384 = vmatprep.subr.bf16.mxu0 %v9715_v41 }
0x10d3   :  { %7344 = vmatpush1.bf16.msra.mxu1 %v9710_v28  ;;  %v14252_v28 = vld [vmem:[#allocation107_spill] sm:$0xff] }
0x10d4   :  { %7385 = vmatpush1.bf16.msra.mxu0 %v9713_v34  ;;  %7345 = vmatprep.subr.bf16.mxu1 %v9718_v54  ;;  %v14254_v54 = vld [vmem:[#allocation106_spill] sm:$0xff] }
0x10d5   :  { %7386 = vmatprep.subr.bf16.mxu0 %v9721_v43 }
0x10d7   :  { %7346 = vmatpush1.bf16.msra.mxu1 %v9716_v18 }
0x10d8   :  { %7387 = vmatpush1.bf16.msra.mxu0 %v9719_v37  ;;  %7347 = vmatprep.subr.bf16.mxu1 %v9724_v53 }
0x10d9   :  { %7388 = vmatprep.subr.bf16.mxu0 %v9727_v32 }
0x10db   :  { %7348 = vmatpush1.bf16.msra.mxu1 %v9722_v11 }
0x10dc   :  { %7389 = vmatpush1.bf16.msra.mxu0 %v9725_v42  ;;  %7349 = vmatprep.subr.bf16.mxu1 %v9730_v61 }
0x10dd   :  { %7390 = vmatprep.subr.bf16.mxu0 %v9733_v52 }
0x10df   :  { %7350 = vmatpush1.bf16.msra.mxu1 %v9728_v58 }
0x10e0   :  { %7391 = vmatpush1.bf16.msra.mxu0 %v9731_v15  ;;  %7351 = vmatprep.subr.bf16.mxu1 %v9736_v17  ;;  %v6842_v15 = vld [vmem:[%s14253_s0] sm:$0x3] }
0x10e1   :  { %7392 = vmatprep.subr.bf16.mxu0 %v9739_v60 }
0x10e3   :  { %7352 = vmatpush1.bf16.msra.mxu1 %v9734_v33 }
0x10e4   :  { %7393 = vmatpush1.bf16.msra.mxu0 %v9737_v45  ;;  %8563 = vmatprep.subr.bf16.mxu1 %v14248_v25 }
0x10e5   :  { %8583 = vmatprep.subr.bf16.mxu0 %v14248_v25 }
0x1138   :  { %v6209_v1 = vpop.f32.mrb[176].mxu1  ;;  %v6250_v49 = vpop.f32.mrb[180].mxu0 }
0x1139   :  { %v6210_v48 = vadd.f32 %v6209_v1, %v13094_v22  ;;  %v6251_v59 = vadd.f32 %v6250_v49, %v13098_v47  ;;  %v6211_v44 = vpop.f32.mrb[177].mxu1  ;;  %v6252_v10 = vpop.f32.mrb[181].mxu0  ;;  %v13121_v49 = vld [vmem:[%s14253_s0 + $0x2] sm:$0x3] }
0x113a   :  { %v6212_v35 = vadd.f32 %v6211_v44, %v13096_v9  ;;  %v6253_v30 = vadd.f32 %v6252_v10, %v13100_v40  ;;  %v6213_v20 = vpop.f32.mrb[178].mxu1  ;;  %v6254_v27 = vpop.f32.mrb[182].mxu0  ;;  %v6816_v9 = vld [vmem:[%s14249_s29] sm:$0xf] }
0x113b   :  { %v6214_v29 = vpop.f32.mrb[179].mxu1  ;;  %v6255_v12 = vpop.f32.mrb[183].mxu0  ;;  %v6821_v40 = vrot.slane %v6816_v9, %v14250_v26  ;;  %v6825_v38 = vrot.slane %v6816_v9, %v14251_v24  ;;  %v6833_v34 = vrot.slane %v6816_v9, %v14252_v28  ;;  %v6829_v37 = vrot.slane %v6816_v9, %v14254_v54  ;;  %v9749_v9 = vld [vmem:[%s14255_s18 + $0x8] sm:$0xff]  }
0x1158   :  { %v6484_v55 = vpop.f32.mrb[180].mxu1  ;;  %v6525_v46 = vpop.f32.mrb[184].mxu0 }
0x1159   :  { %v6532_v36 = vadd.f32 %v6484_v55, %v6210_v48  ;;  %v6534_v62 = vadd.f32 %v6525_v46, %v6251_v59  ;;  %v6486_v7 = vpop.f32.mrb[181].mxu1  ;;  %v6527_v8 = vpop.f32.mrb[185].mxu0 }
0x115a   :  { %v6533_v22 = vadd.f32 %v6486_v7, %v6212_v35  ;;  %v6535_v16 = vadd.f32 %v6527_v8, %v6253_v30  ;;  %v6488_v47 = vpop.f32.mrb[182].mxu1  ;;  %v6529_v51 = vpop.f32.mrb[186].mxu0  ;;  %v9741_v7 = vld [vmem:[#allocation16 + $0x8] sm:$0xff]   ;;  %v9742_v8 = vld [vmem:[#allocation16 + $0x10] sm:$0xff]  }
0x115b   :  { %v6489_v21 = vpop.f32.mrb[183].mxu1  ;;  %v6530_v63 = vpop.f32.mrb[187].mxu0  ;;  %v9745_v47 = vld [vmem:[#allocation16 + $0x28] sm:$0xff]   ;;  %v9746_v51 = vld [vmem:[#allocation16 + $0x30] sm:$0xff]  }
0x115c   :  { %v9747_v21 = vld [vmem:[#allocation16 + $0x38] sm:$0xff]  }
0x115d   :  { %v9748_v63 = vld [vmem:[%s14255_s18] sm:$0xff]  }
0x1178   :  { %v6764_v2 = vpop.f32.mrb[184].mxu1  ;;  %v6805_v50 = vpop.f32.mrb[188].mxu0 }
0x1179   :  { %v6812_v3 = vadd.f32 %v6764_v2, %v6532_v36  ;;  %v6814_v0 = vadd.f32 %v6805_v50, %v6534_v62  ;;  %v6766_v39 = vpop.f32.mrb[185].mxu1  ;;  %v6807_v5 = vpop.f32.mrb[189].mxu0  ;;  %v9740_v62 = vld [vmem:[#allocation16] sm:$0xff]   ;;  %v9751_v2 = vld [vmem:[%s14255_s18 + $0x18] sm:$0xff]  }
0x117a   :  { %v6813_v19 = vadd.f32 %v6766_v39, %v6533_v22  ;;  %v6815_v4 = vadd.f32 %v6807_v5, %v6535_v16  ;;  %v6768_v6 = vpop.f32.mrb[186].mxu1  ;;  %v6809_v56 = vpop.f32.mrb[190].mxu0  ;;  %v9743_v22 = vld [vmem:[#allocation16 + $0x18] sm:$0xff]   ;;  %v9744_v16 = vld [vmem:[#allocation16 + $0x20] sm:$0xff]  }
0x117b   :  { %v6838_v14 = vadd.f32 %v6821_v40, %v6812_v3  ;;  %v6769_v57 = vpop.f32.mrb[187].mxu1  ;;  %v6810_v31 = vpop.f32.mrb[191].mxu0  ;;  %v6840_v53 = vadd.f32 %v6829_v37, %v6814_v0  ;;  %v9750_v40 = vld [vmem:[%s14255_s18 + $0x10] sm:$0xff]   ;;  %v9752_v50 = vld [vmem:[%s14255_s18 + $0x20] sm:$0xff]  }
0x117c   :  { %v6839_v13 = vadd.f32 %v6825_v38, %v6813_v19  ;;  %v6841_v18 = vadd.f32 %v6833_v34, %v6815_v4  ;;  %v9753_v38 = vld [vmem:[%s14255_s18 + $0x28] sm:$0xff]   ;;  %v7419_v3 = vld [vmem:[%s14256_s22] sm:$0xf] }
0x117d   :  { %v8089_v23 = vmul.f32 -1.442695, %v6838_v14  ;;  %v7424_v0 = vrot.slane %v7419_v3, %v14250_v26  ;;  %v7428_v19 = vrot.slane %v7419_v3, %v14251_v24  ;;  %v7436_v26 = vrot.slane %v7419_v3, %v14252_v28 }
0x117e   :  { %v8090_v41 = vmul.f32 -1.442695, %v6839_v13  ;;  %v8091_v43 = vmul.f32 -1.442695, %v6841_v18  ;;  %v7432_v24 = vrot.slane %v7419_v3, %v14254_v54 }
0x117f   :  { %9756 = vpow2.f32 %v8089_v23 }
0x1180   :  { %9758 = vpow2.f32 %v8090_v41 }
0x1181   :  { %9760 = vpow2.f32 %v8091_v43 }
0x1182   :  { %9762 = vtanh.f32 %v6840_v53 }
0x1189   :  { %v9757_v32 = vpop.eup %9756 }
0x118a   :  { %v9759_v11 = vpop.eup %9758  ;;  %v6846_v42 = vadd.f32 1.0, %v9757_v32 }
0x118b   :  { %v6852_v61 = vadd.f32 1.0, %v9759_v11  ;;  %v9761_v52 = vpop.eup %9760 }
0x118c   :  { %9764 = vrcp.f32 %v6846_v42  ;;  %v9763_v58 = vpop.eup %9762  ;;  %v6859_v45 = vadd.f32 1.0, %v9761_v52 }
0x118d   :  { %9766 = vrcp.f32 %v6852_v61 }
0x118e   :  { %9768 = vrcp.f32 %v6859_v45 }
0x1196   :  { %v9765_v17 = vpop.eup %9764 }
0x1197   :  { %v9767_v60 = vpop.eup %9766  ;;  %v6863_v33 = vmul.f32 %v9765_v17, %v9763_v58 }
0x1198   :  { %v6862_v1 = vmul.f32 %v9767_v60, %v6842_v15  ;;  %v9769_v59 = vpop.eup %9768 }
0x1199   :  { %v7129_v30 = vpop.f32.mrb[188].mxu1  ;;  %v7170_v12 = vpop.f32.mrb[192].mxu0 }
0x119a   :  { %v6864_v48 = vadd.f32 %v6863_v33, %v6862_v1  ;;  %v7131_v20 = vpop.f32.mrb[189].mxu1  ;;  %v7172_v55 = vpop.f32.mrb[193].mxu0 }
0x119b   :  { %v7133_v27 = vpop.f32.mrb[190].mxu1  ;;  %v7174_v46 = vpop.f32.mrb[194].mxu0 }
0x119c   :  { %9770 = vtanh.f32 %v6864_v48  ;;  %7474 = vst [vmem:[%s10246_s19] sm:$0x3] %v6864_v48  ;;  %v7134_v29 = vpop.f32.mrb[191].mxu1  ;;  %v7175_v36 = vpop.f32.mrb[195].mxu0  ;;  %v8163_v27 = vld [vmem:[%s14257_s23] ss:$0 sm:$0xff] }
0x11a6   :  { %v9771_v44 = vpop.eup %9770 }
0x11a7   :  { %v6866_v10 = vmul.f32 %v9771_v44, %v9769_v59 }
0x11a9   :  { %v6899_v35 = vpack.c.bf16 %v6866_v10, %v6866_v10  ;;  %7471 = vst [vmem:[%s10241_s5] sm:$0x3] %v6866_v10 }
0x11ab   :  { %7370 = vmatmul.mubr.bf16.vlgmr.msra.gmra.mrb[192].mxu1 %v6899_v35  ;;  %7411 = vmatmul.mubr.bf16.vlgmr.msra.gmra.mrb[196].mxu0 %v6899_v35 }
0x11ac   :  { %8579 = vmatprep.mubr.msk.bf16.mxu1 %vm10069_vm0, %v14248_v25  ;;  %8599 = vmatprep.mubr.msk.bf16.mxu0 %vm10069_vm0, %v14248_v25 }
0x11ad   :  { %8564 = vmatpush3.bf16.msra.mxu1 %v9740_v62  ;;  %8584 = vmatpush3.bf16.msra.mxu0 %v9748_v63 }
0x11ae   :  { %8565 = vmatprep.subr.bf16.mxu1 %v14248_v25  ;;  %8585 = vmatprep.subr.bf16.mxu0 %v14248_v25 }
0x11b1   :  { %8566 = vmatpush3.bf16.msra.mxu1 %v9741_v7  ;;  %8586 = vmatpush3.bf16.msra.mxu0 %v9749_v9 }
0x11b2   :  { %8567 = vmatprep.subr.bf16.mxu1 %v14248_v25  ;;  %8587 = vmatprep.subr.bf16.mxu0 %v14248_v25 }
0x11b5   :  { %8568 = vmatpush3.bf16.msra.mxu1 %v9742_v8  ;;  %8588 = vmatpush3.bf16.msra.mxu0 %v9750_v40  ;;  %v8172_v8 = vld [vmem:[%s14258_s26] ss:$0 sm:$0xff] }
0x11b6   :  { %8569 = vmatprep.subr.bf16.mxu1 %v14248_v25  ;;  %8589 = vmatprep.subr.bf16.mxu0 %v14248_v25 }
0x11b9   :  { %8570 = vmatpush3.bf16.msra.mxu1 %v9743_v22  ;;  %8590 = vmatpush3.bf16.msra.mxu0 %v9751_v2 }
0x11ba   :  { %8571 = vmatprep.subr.bf16.mxu1 %v14248_v25  ;;  %8591 = vmatprep.subr.bf16.mxu0 %v14248_v25 }
0x11bd   :  { %8572 = vmatpush3.bf16.msra.mxu1 %v9744_v16  ;;  %8592 = vmatpush3.bf16.msra.mxu0 %v9752_v50 }
0x11be   :  { %8573 = vmatprep.subr.bf16.mxu1 %v14248_v25  ;;  %8593 = vmatprep.subr.bf16.mxu0 %v14248_v25 }
0x11c1   :  { %8574 = vmatpush3.bf16.msra.mxu1 %v9745_v47  ;;  %8594 = vmatpush3.bf16.msra.mxu0 %v9753_v38 }
0x11c2   :  { %8575 = vmatprep.subr.bf16.mxu1 %v14248_v25  ;;  %8595 = vmatprep.subr.bf16.mxu0 %v14248_v25 }
0x11c5   :  { %8576 = vmatpush3.bf16.msra.mxu1 %v9746_v51 }
0x11c6   :  { %8577 = vmatprep.subr.bf16.mxu1 %v14248_v25 }
0x11c9   :  { %8578 = vmatpush3.bf16.msra.mxu1 %v9747_v21 }
0x127e   :  { %v7371_v39 = vpop.f32.mrb[192].mxu1  ;;  %v7412_v5 = vpop.f32.mrb[196].mxu0 }
0x127f   :  { %v7372_v4 = vadd.f32 %v7371_v39, %v7129_v30  ;;  %v7413_v6 = vadd.f32 %v7412_v5, %v7170_v12  ;;  %v7373_v56 = vpop.f32.mrb[193].mxu1  ;;  %v7414_v14 = vpop.f32.mrb[197].mxu0  ;;  %v9754_v30 = vld [vmem:[%s14255_s18 + $0x30] sm:$0xff]  }
0x1280   :  { %v7374_v57 = vadd.f32 %v7373_v56, %v7131_v20  ;;  %v7415_v31 = vadd.f32 %v7414_v14, %v7172_v55  ;;  %v7375_v13 = vpop.f32.mrb[194].mxu1  ;;  %v7416_v23 = vpop.f32.mrb[198].mxu0  ;;  %8596 = vmatpush3.bf16.msra.mxu0 %v9754_v30  ;;  %v9755_v20 = vld [vmem:[%s14255_s18 + $0x38] sm:$0xff]  }
0x1281   :  { %v7441_v41 = vadd.f32 %v7424_v0, %v7372_v4  ;;  %v7376_v34 = vpop.f32.mrb[195].mxu1  ;;  %v7417_v18 = vpop.f32.mrb[199].mxu0  ;;  %v7443_v42 = vadd.f32 %v7432_v24, %v7413_v6  ;;  %8597 = vmatprep.subr.bf16.mxu0 %v14248_v25 }
0x1282   :  { %v7442_v37 = vadd.f32 %v7428_v19, %v7374_v57  ;;  %v7444_v32 = vadd.f32 %v7436_v26, %v7415_v31 }
0x1283   :  { %v8158_v43 = vmul.f32 -1.442695, %v7441_v41 }
0x1284   :  { %v8159_v53 = vmul.f32 -1.442695, %v7442_v37  ;;  %v8160_v11 = vmul.f32 -1.442695, %v7444_v32  ;;  %8598 = vmatpush3.bf16.msra.mxu0 %v9755_v20 }
0x1285   :  { %9772 = vpow2.f32 %v8158_v43 }
0x1286   :  { %9774 = vpow2.f32 %v8159_v53 }
0x1287   :  { %9776 = vpow2.f32 %v8160_v11 }
0x1288   :  { %9778 = vtanh.f32 %v7443_v42 }
0x128f   :  { %v9773_v61 = vpop.eup %9772 }
0x1290   :  { %v9775_v52 = vpop.eup %9774  ;;  %v7450_v58 = vadd.f32 1.0, %v9773_v61 }
0x1291   :  { %v7456_v15 = vadd.f32 1.0, %v9775_v52  ;;  %v9777_v17 = vpop.eup %9776 }
0x1292   :  { %9780 = vrcp.f32 %v7450_v58  ;;  %v9779_v60 = vpop.eup %9778  ;;  %v7463_v54 = vadd.f32 1.0, %v9777_v17 }
0x1293   :  { %9782 = vrcp.f32 %v7456_v15 }
0x1294   :  { %9784 = vrcp.f32 %v7463_v54 }
0x129c   :  { %v9781_v28 = vpop.eup %9780 }
0x129d   :  { %v9783_v33 = vpop.eup %9782  ;;  %v7467_v45 = vmul.f32 %v9781_v28, %v9779_v60 }
0x129e   :  { %v7466_v1 = vmul.f32 %v9783_v33, %v13121_v49  ;;  %v9785_v59 = vpop.eup %9784 }
0x12a0   :  { %v7468_v48 = vadd.f32 %v7467_v45, %v7466_v1 }
0x12a2   :  { %8162 = vst [vmem:[%s10246_s19 + $0x2] sm:$0x3] %v7468_v48  ;;  %9786 = vtanh.f32 %v7468_v48 }
0x12ac   :  { %v9787_v44 = vpop.eup %9786 }
0x12ad   :  { %v7470_v10 = vmul.f32 %v9787_v44, %v9785_v59 }
0x12af   :  { %8161 = vst [vmem:[%s10241_s5 + $0x2] sm:$0x3] %v7470_v10  ;;  %v7493_v35 = vpack.c.bf16 %v7470_v10, %v7470_v10  ;;  %s10072_s5 = smov [#allocation18]  }
0x12b0   :  { %s7712_s19 = sshll.u32 %s10072_s5, 4  ;;  %s7713_s19 = int_to_ptr.vmem [resolvable:$true] %s7712_s19 }
0x12b1   :  { %8580 = vmatmul.mubr.bf16.vlgmr.msra.gmra.mrb[196].mxu1 %v7493_v35  ;;  %s9986_s14 = scalar_lea.vmem %s7713_s19, 32  ;;  %p9991_p3 = scmp.lt.s32.totalorder %s7713_s19, %s7713_s19 }
0x12b2   :  { %p9987_p2 = scmp.ne.s32.totalorder %s7713_s19, %s9986_s14  ;;  %p9992_p4 = scmp.lt.s32.totalorder %s9986_s14, %s9986_s14 }
0x12b4   :  { %p9993_p5 = por %p9992_p4, %p9991_p3 }
0x12b6   :  { %p9994_p6 = pnand %p9993_p5, %p9987_p2 }
0x1384   :  { %v7583_v49 = vpop.f32.mrb[196].mxu1 }
0x1385   :  { %v7584_v29 = vadd.f32 %v8163_v27, %v7583_v49  ;;  %v8581_v12 = vpop.f32.mrb[197].mxu1 }
0x1386   :  { %v7586_v55 = vpop.f32.mrb[198].mxu1 }
0x1387   :  { %v7589_v46 = vmul.f32 0.1, %v7584_v29  ;;  %v8582_v36 = vpop.f32.mrb[199].mxu1 }
0x1389   :  { %v7590_v62 = vmax.f32 %v7584_v29, %v7589_v46 }
0x138b   :  { %v7607_v7 = vpack.c.bf16 %v7590_v62, %v7590_v62 }
0x138d   :  { %8600 = vmatmul.mubr.bf16.vlgmr.msra.gmra.mrb[200].mxu0 %v7607_v7 }
0x1460   :  { %v7697_v22 = vpop.f32.mrb[200].mxu0 }
0x1461   :  { %v7698_v16 = vadd.f32 %v8172_v8, %v7697_v22  ;;  %v8601_v47 = vpop.f32.mrb[201].mxu0 }
0x1462   :  { %v7700_v51 = vpop.f32.mrb[202].mxu0 }
0x1463   :  { %v7703_v25 = vmul.f32 0.01, %v7698_v16  ;;  %v8602_v21 = vpop.f32.mrb[203].mxu0 }
0x1465   :  { %7705 = vst.msk [vmem:[#allocation18] sm:$0x3] %vm7704_vm5, %v7703_v25 }
0x1466   :  { %9997 = shalt.err (!%p9994_p6)
}
0x1467   :  { %s14259_s24 = sld [smem:[#allocation45_spill]] }
0x146d   :  { %s9998_s6 = scalar_lea.hbm %s14259_s24, 32 }
0x146e   :  { %p9999_p7 = scmp.ne.s32.totalorder %s14259_s24, %s9998_s6  ;;  %p10002_p8 = scmp.lt.u32.totalorder %s9998_s6, %s14259_s24 }
0x1470   :  { %p10004_p9 = pnand %p10002_p8, %p9999_p7 }
0x1472   :  { %10007 = shalt.err (!%p10004_p9)
}
0x1473   :  { %7715 = dma.vmem_to_hbm [thread:$0]  %s7713_s19, 32, %s14259_s24, [#allocation6]  }
0x1474   :  { %10020 = dma.done.wait [#allocation6], 32  }
0x1475   :  { %10021 = vsyncadd [#allocation6], 4294967264 }
0x1476   :  { %7735 = vsyncpa [#allocation5], 1 }
0x1477   :  { %7736 = vsyncpa [#allocation8], 1 }
0x1478   :  { %7737 = vsyncpa [#allocation11], 1 }
0x1479   :  { %7738 = vsyncpa [#allocation14], 1 }
0x147a   :  { %7739 = vsyncpa [#allocation17], 1 }
0x147b   :  { %7740 = vsyncpa [#allocation6], 1 }
0x147c   :  { %7741 = vsyncmov [#allocation3] }
0x147f   :  { %s7742_s28 = vpop.sfrf %7741 }
0x1480   :  { %p8181_p10 = scmp.ne.s32.totalorder %s7742_s28, 0 }
0x1482   :  { %7746 = shalt.err (%p8181_p10)  }

</bundles_post_ra>
